<compile_context>
chip_gen: v6e
topology: v6e:2x2x1
jax: 0.10.0
libtpu: 0.0.40
codegen_flags: <defaults>
</compile_context>

<pallas_src>
import jax
import jax.numpy as jnp
from jax.experimental import pallas as pl
from jax.experimental.pallas import tpu as pltpu

HIDDEN = 256   # matches the module's hidden_size=256 (lane-aligned gate blocks)
VOCAB = 32     # small stand-in for input_size
SEQ = 8        # tokens processed per forward call (T=1 reproduces module.forward)


# --------------------------------------------------------------------------
# Fused kernel: embedding (one-hot matmul) + batched input projection + GRU
# recurrence, all in a single invocation (no grid).
# --------------------------------------------------------------------------
def _encoder_kernel(tok_ref, emb_ref, h0_ref, wih_t_ref, whh_t_ref,
                    bih_ref, bhh_ref, out_ref, hN_ref):
    T = out_ref.shape[0]
    H = h0_ref.shape[-1]
    V = emb_ref.shape[0]

    # Embedding gather as a one-hot matmul: exact in f32, keeps the table
    # resident in VMEM and avoids dynamic-gather lowering.
    tok = tok_ref[...]                                           # (T, 1) int32
    onehot = (tok == jax.lax.broadcasted_iota(jnp.int32, (T, V), 1)
              ).astype(jnp.float32)                              # (T, V)
    x = jnp.dot(onehot, emb_ref[...],
                preferred_element_type=jnp.float32)              # (T, H)

    # Batched input projection for all timesteps at once.
    gi = (jnp.dot(x, wih_t_ref[...],
                  preferred_element_type=jnp.float32)
          + bih_ref[...])                                        # (T, 3H)

    whh_t = whh_t_ref[...]                                       # (H, 3H) resident
    bhh = bhh_ref[...]                                           # (1, 3H)
    h = h0_ref[...]                                              # (1, H)

    # Statically unrolled recurrence (T is small & static); h lives in vregs.
    for t in range(T):
        gi_t = gi[t:t + 1, :]                                    # (1, 3H) static slice
        gh = (jnp.dot(h, whh_t, preferred_element_type=jnp.float32)
              + bhh)                                             # (1, 3H)

        # H is a multiple of 128 -> gate slices never split a (8,128) vreg.
        i_r, i_z, i_n = gi_t[:, 0:H], gi_t[:, H:2 * H], gi_t[:, 2 * H:3 * H]
        h_r, h_z, h_n = gh[:, 0:H], gh[:, H:2 * H], gh[:, 2 * H:3 * H]

        r = jax.nn.sigmoid(i_r + h_r)
        z = jax.nn.sigmoid(i_z + h_z)
        n = jnp.tanh(i_n + r * h_n)
        h = (1.0 - z) * n + z * h                                # PyTorch GRU update

        out_ref[t:t + 1, :] = h                                  # static row write

    hN_ref[...] = h


# --------------------------------------------------------------------------
# Parameter prep (done once, not per forward call).
# --------------------------------------------------------------------------
def prepare_encoder_params(params):
    emb = params["embedding"]
    _, H = emb.shape
    return {
        "emb": emb,                                # (V, H), resident in VMEM
        "wih_t": jnp.transpose(params["w_ih"]),    # (H, 3H)
        "whh_t": jnp.transpose(params["w_hh"]),    # (H, 3H)
        "bih": params["b_ih"].reshape(1, 3 * H),
        "bhh": params["b_hh"].reshape(1, 3 * H),
    }


@jax.jit
def encoder_rnn_forward(tokens, hidden, prepared):
    """tokens: (T,) int32; hidden: (1,1,H) f32
       -> (outputs (T,1,H), final hidden (1,1,H)); T=1 matches EncoderRNN.forward."""
    emb = prepared["emb"]
    V, H = emb.shape
    T = tokens.shape[0]
    tok2d = tokens.astype(jnp.int32).reshape(T, 1)
    h0 = hidden.reshape(1, H)

    vmem = pl.BlockSpec(memory_space=pltpu.MemorySpace.VMEM)
    out, h_final = pl.pallas_call(
        _encoder_kernel,
        out_shape=(jax.ShapeDtypeStruct((T, H), jnp.float32),
                   jax.ShapeDtypeStruct((1, H), jnp.float32)),
        in_specs=[vmem] * 7,
        out_specs=(vmem, vmem),
    )(tok2d, emb, h0, prepared["wih_t"], prepared["whh_t"],
      prepared["bih"], prepared["bhh"])

    return out.reshape(T, 1, H), h_final.reshape(1, 1, H)


# --------------------------------------------------------------------------
# Pure-JAX reference (PyTorch EncoderRNN.forward applied to each token).
# --------------------------------------------------------------------------
def _reference(tokens, hidden, params):
    emb = params["embedding"]
    w_ih, w_hh = params["w_ih"], params["w_hh"]
    b_ih, b_hh = params["b_ih"], params["b_hh"]
    H = w_ih.shape[1]

    def step(h, tok):
        x = emb[tok].reshape(1, -1)
        gi = x @ w_ih.T + b_ih
        gh = h @ w_hh.T + b_hh
        i_r, i_z, i_n = gi[:, :H], gi[:, H:2 * H], gi[:, 2 * H:]
        h_r, h_z, h_n = gh[:, :H], gh[:, H:2 * H], gh[:, 2 * H:]
        r = jax.nn.sigmoid(i_r + h_r)
        z = jax.nn.sigmoid(i_z + h_z)
        n = jnp.tanh(i_n + r * h_n)
        h_new = (1.0 - z) * n + z * h
        return h_new, h_new

    h_final, outs = jax.lax.scan(step, hidden.reshape(1, H), tokens)
    return outs.reshape(-1, 1, H), h_final.reshape(1, 1, H)


def init_params(key, vocab, hidden):
    ks = jax.random.split(key, 5)
    scale = 1.0 / jnp.sqrt(hidden)
    return {
        "embedding": jax.random.normal(ks[0], (vocab, hidden), jnp.float32),
        "w_ih": jax.random.uniform(ks[1], (3 * hidden, hidden), jnp.float32, -scale, scale),
        "w_hh": jax.random.uniform(ks[2], (3 * hidden, hidden), jnp.float32, -scale, scale),
        "b_ih": jax.random.uniform(ks[3], (3 * hidden,), jnp.float32, -scale, scale),
        "b_hh": jax.random.uniform(ks[4], (3 * hidden,), jnp.float32, -scale, scale),
    }


if __name__ == "__main__":
    key = jax.random.PRNGKey(0)
    pkey, tkey = jax.random.split(key)
    params = init_params(pkey, VOCAB, HIDDEN)
    prepared = prepare_encoder_params(params)

    tokens = jax.random.randint(tkey, (SEQ,), 0, VOCAB, dtype=jnp.int32)
    hidden0 = jnp.zeros((1, 1, HIDDEN), jnp.float32)   # EncoderRNN.initHidden()

    # Full-sequence run (sequence loop folded into one fused kernel).
    out, hid = encoder_rnn_forward(tokens, hidden0, prepared)
    out, hid = jax.block_until_ready(out), jax.block_until_ready(hid)

    ref_out, ref_hid = _reference(tokens, hidden0, params)
    assert out.shape == (SEQ, 1, HIDDEN) and hid.shape == (1, 1, HIDDEN)
    assert jnp.allclose(out, ref_out, atol=1e-5, rtol=1e-5)
    assert jnp.allclose(hid, ref_hid, atol=1e-5, rtol=1e-5)

    # Single-token run: exactly EncoderRNN.forward(input, hidden).
    out1, hid1 = encoder_rnn_forward(tokens[:1], hidden0, prepared)
    out1, hid1 = jax.block_until_ready(out1), jax.block_until_ready(hid1)
    ref_out1, ref_hid1 = _reference(tokens[:1], hidden0, params)
    assert jnp.allclose(out1, ref_out1, atol=1e-5, rtol=1e-5)
    assert jnp.allclose(hid1, ref_hid1, atol=1e-5, rtol=1e-5)

    print("KERNEL_OK")
</pallas_src>

<mosaic_0001>
module attributes {stable_mosaic.version = 11 : i64} {
  func.func @_encoder_kernel(%arg0: memref<8x1xi32, #tpu.memory_space<vmem>>, %arg1: memref<32x256xf32, #tpu.memory_space<vmem>>, %arg2: memref<1x256xf32, #tpu.memory_space<vmem>>, %arg3: memref<256x768xf32, #tpu.memory_space<vmem>>, %arg4: memref<256x768xf32, #tpu.memory_space<vmem>>, %arg5: memref<1x768xf32, #tpu.memory_space<vmem>>, %arg6: memref<1x768xf32, #tpu.memory_space<vmem>>, %arg7: memref<8x256xf32, #tpu.memory_space<vmem>>, %arg8: memref<1x256xf32, #tpu.memory_space<vmem>>) attributes {dimension_semantics = [], scalar_prefetch = 0 : i64, scratch_operands = 0 : i64, tpu.core_type = #tpu.core_type<tc>} {
    %c0 = arith.constant 0 : index
    %c0_0 = arith.constant 0 : index
    %0 = vector.load %arg0[%c0, %c0_0] : memref<8x1xi32, #tpu.memory_space<vmem>>, vector<8x1xi32>
    %1 = tpu.iota {dimensions = array<i32: 1>} : vector<8x32xi32>
    %2 = vector.broadcast %0 : vector<8x1xi32> to vector<8x32xi32>
    %3 = arith.cmpi eq, %2, %1 : vector<8x32xi32>
    %4 = arith.extui %3 : vector<8x32xi1> to vector<8x32xi32>
    %5 = arith.sitofp %4 : vector<8x32xi32> to vector<8x32xf32>
    %c0_1 = arith.constant 0 : index
    %c0_2 = arith.constant 0 : index
    %6 = vector.load %arg1[%c0_1, %c0_2] : memref<32x256xf32, #tpu.memory_space<vmem>>, vector<32x256xf32>
    %cst = arith.constant dense<0.000000e+00> : vector<8x256xf32>
    %7 = tpu.matmul %5, %6, %cst {dimension_numbers = #tpu.dot_dimension_numbers<[1], [0], [0], [1], [0, 0, 1, 1], [], []>} : vector<8x32xf32>, vector<32x256xf32>, vector<8x256xf32> -> vector<8x256xf32>
    %c0_3 = arith.constant 0 : index
    %c0_4 = arith.constant 0 : index
    %8 = vector.load %arg3[%c0_3, %c0_4] : memref<256x768xf32, #tpu.memory_space<vmem>>, vector<256x768xf32>
    %cst_5 = arith.constant dense<0.000000e+00> : vector<8x768xf32>
    %9 = tpu.matmul %7, %8, %cst_5 {dimension_numbers = #tpu.dot_dimension_numbers<[1], [0], [0], [1], [0, 0, 1, 1], [], []>} : vector<8x256xf32>, vector<256x768xf32>, vector<8x768xf32> -> vector<8x768xf32>
    %c0_6 = arith.constant 0 : index
    %c0_7 = arith.constant 0 : index
    %10 = vector.load %arg5[%c0_6, %c0_7] : memref<1x768xf32, #tpu.memory_space<vmem>>, vector<1x768xf32>
    %11 = vector.broadcast %10 : vector<1x768xf32> to vector<8x768xf32>
    %12 = arith.addf %9, %11 : vector<8x768xf32>
    %c0_8 = arith.constant 0 : index
    %c0_9 = arith.constant 0 : index
    %13 = vector.load %arg4[%c0_8, %c0_9] : memref<256x768xf32, #tpu.memory_space<vmem>>, vector<256x768xf32>
    %c0_10 = arith.constant 0 : index
    %c0_11 = arith.constant 0 : index
    %14 = vector.load %arg6[%c0_10, %c0_11] : memref<1x768xf32, #tpu.memory_space<vmem>>, vector<1x768xf32>
    %c0_12 = arith.constant 0 : index
    %c0_13 = arith.constant 0 : index
    %15 = vector.load %arg2[%c0_12, %c0_13] : memref<1x256xf32, #tpu.memory_space<vmem>>, vector<1x256xf32>
    %16 = vector.extract_strided_slice %12 {offsets = [0, 0], sizes = [1, 768], strides = [1, 1]} : vector<8x768xf32> to vector<1x768xf32>
    %cst_14 = arith.constant dense<0.000000e+00> : vector<1x768xf32>
    %17 = tpu.matmul %15, %13, %cst_14 {dimension_numbers = #tpu.dot_dimension_numbers<[1], [0], [0], [1], [0, 0, 1, 1], [], []>} : vector<1x256xf32>, vector<256x768xf32>, vector<1x768xf32> -> vector<1x768xf32>
    %18 = arith.addf %17, %14 : vector<1x768xf32>
    %19 = vector.extract_strided_slice %16 {offsets = [0, 0], sizes = [1, 256], strides = [1, 1]} : vector<1x768xf32> to vector<1x256xf32>
    %20 = vector.extract_strided_slice %16 {offsets = [0, 256], sizes = [1, 256], strides = [1, 1]} : vector<1x768xf32> to vector<1x256xf32>
    %21 = vector.extract_strided_slice %16 {offsets = [0, 512], sizes = [1, 256], strides = [1, 1]} : vector<1x768xf32> to vector<1x256xf32>
    %22 = vector.extract_strided_slice %18 {offsets = [0, 0], sizes = [1, 256], strides = [1, 1]} : vector<1x768xf32> to vector<1x256xf32>
    %23 = vector.extract_strided_slice %18 {offsets = [0, 256], sizes = [1, 256], strides = [1, 1]} : vector<1x768xf32> to vector<1x256xf32>
    %24 = vector.extract_strided_slice %18 {offsets = [0, 512], sizes = [1, 256], strides = [1, 1]} : vector<1x768xf32> to vector<1x256xf32>
    %25 = arith.addf %19, %22 : vector<1x256xf32>
    %26 = arith.negf %25 : vector<1x256xf32>
    %27 = math.exp %26 : vector<1x256xf32>
    %cst_15 = arith.constant 1.000000e+00 : f32
    %28 = vector.broadcast %cst_15 : f32 to vector<1x256xf32>
    %29 = arith.addf %28, %27 : vector<1x256xf32>
    %30 = arith.divf %28, %29 : vector<1x256xf32>
    %31 = arith.addf %20, %23 : vector<1x256xf32>
    %32 = arith.negf %31 : vector<1x256xf32>
    %33 = math.exp %32 : vector<1x256xf32>
    %cst_16 = arith.constant 1.000000e+00 : f32
    %34 = vector.broadcast %cst_16 : f32 to vector<1x256xf32>
    %35 = arith.addf %34, %33 : vector<1x256xf32>
    %36 = arith.divf %34, %35 : vector<1x256xf32>
    %37 = arith.mulf %30, %24 : vector<1x256xf32>
    %38 = arith.addf %21, %37 : vector<1x256xf32>
    %39 = math.tanh %38 : vector<1x256xf32>
    %cst_17 = arith.constant 1.000000e+00 : f32
    %40 = vector.broadcast %cst_17 : f32 to vector<1x256xf32>
    %41 = arith.subf %40, %36 : vector<1x256xf32>
    %42 = arith.mulf %41, %39 : vector<1x256xf32>
    %43 = arith.mulf %36, %15 : vector<1x256xf32>
    %44 = arith.addf %42, %43 : vector<1x256xf32>
    %c0_18 = arith.constant 0 : index
    %c0_19 = arith.constant 0 : index
    %45 = vector.load %arg7[%c0_18, %c0_19] : memref<8x256xf32, #tpu.memory_space<vmem>>, vector<1x256xf32>
    tpu.vector_store %arg7[%c0_18, %c0_19], %44 {strides = array<i32>} : memref<8x256xf32, #tpu.memory_space<vmem>>, vector<1x256xf32>,
    %46 = vector.extract_strided_slice %12 {offsets = [1, 0], sizes = [1, 768], strides = [1, 1]} : vector<8x768xf32> to vector<1x768xf32>
    %cst_20 = arith.constant dense<0.000000e+00> : vector<1x768xf32>
    %47 = tpu.matmul %44, %13, %cst_20 {dimension_numbers = #tpu.dot_dimension_numbers<[1], [0], [0], [1], [0, 0, 1, 1], [], []>} : vector<1x256xf32>, vector<256x768xf32>, vector<1x768xf32> -> vector<1x768xf32>
    %48 = arith.addf %47, %14 : vector<1x768xf32>
    %49 = vector.extract_strided_slice %46 {offsets = [0, 0], sizes = [1, 256], strides = [1, 1]} : vector<1x768xf32> to vector<1x256xf32>
    %50 = vector.extract_strided_slice %46 {offsets = [0, 256], sizes = [1, 256], strides = [1, 1]} : vector<1x768xf32> to vector<1x256xf32>
    %51 = vector.extract_strided_slice %46 {offsets = [0, 512], sizes = [1, 256], strides = [1, 1]} : vector<1x768xf32> to vector<1x256xf32>
    %52 = vector.extract_strided_slice %48 {offsets = [0, 0], sizes = [1, 256], strides = [1, 1]} : vector<1x768xf32> to vector<1x256xf32>
    %53 = vector.extract_strided_slice %48 {offsets = [0, 256], sizes = [1, 256], strides = [1, 1]} : vector<1x768xf32> to vector<1x256xf32>
    %54 = vector.extract_strided_slice %48 {offsets = [0, 512], sizes = [1, 256], strides = [1, 1]} : vector<1x768xf32> to vector<1x256xf32>
    %55 = arith.addf %49, %52 : vector<1x256xf32>
    %56 = arith.negf %55 : vector<1x256xf32>
    %57 = math.exp %56 : vector<1x256xf32>
    %cst_21 = arith.constant 1.000000e+00 : f32
    %58 = vector.broadcast %cst_21 : f32 to vector<1x256xf32>
    %59 = arith.addf %58, %57 : vector<1x256xf32>
    %60 = arith.divf %58, %59 : vector<1x256xf32>
    %61 = arith.addf %50, %53 : vector<1x256xf32>
    %62 = arith.negf %61 : vector<1x256xf32>
    %63 = math.exp %62 : vector<1x256xf32>
    %cst_22 = arith.constant 1.000000e+00 : f32
    %64 = vector.broadcast %cst_22 : f32 to vector<1x256xf32>
    %65 = arith.addf %64, %63 : vector<1x256xf32>
    %66 = arith.divf %64, %65 : vector<1x256xf32>
    %67 = arith.mulf %60, %54 : vector<1x256xf32>
    %68 = arith.addf %51, %67 : vector<1x256xf32>
    %69 = math.tanh %68 : vector<1x256xf32>
    %cst_23 = arith.constant 1.000000e+00 : f32
    %70 = vector.broadcast %cst_23 : f32 to vector<1x256xf32>
    %71 = arith.subf %70, %66 : vector<1x256xf32>
    %72 = arith.mulf %71, %69 : vector<1x256xf32>
    %73 = arith.mulf %66, %44 : vector<1x256xf32>
    %74 = arith.addf %72, %73 : vector<1x256xf32>
    %c1 = arith.constant 1 : index
    %c0_24 = arith.constant 0 : index
    %75 = vector.load %arg7[%c1, %c0_24] : memref<8x256xf32, #tpu.memory_space<vmem>>, vector<1x256xf32>
    tpu.vector_store %arg7[%c1, %c0_24], %74 {strides = array<i32>} : memref<8x256xf32, #tpu.memory_space<vmem>>, vector<1x256xf32>,
    %76 = vector.extract_strided_slice %12 {offsets = [2, 0], sizes = [1, 768], strides = [1, 1]} : vector<8x768xf32> to vector<1x768xf32>
    %cst_25 = arith.constant dense<0.000000e+00> : vector<1x768xf32>
    %77 = tpu.matmul %74, %13, %cst_25 {dimension_numbers = #tpu.dot_dimension_numbers<[1], [0], [0], [1], [0, 0, 1, 1], [], []>} : vector<1x256xf32>, vector<256x768xf32>, vector<1x768xf32> -> vector<1x768xf32>
    %78 = arith.addf %77, %14 : vector<1x768xf32>
    %79 = vector.extract_strided_slice %76 {offsets = [0, 0], sizes = [1, 256], strides = [1, 1]} : vector<1x768xf32> to vector<1x256xf32>
    %80 = vector.extract_strided_slice %76 {offsets = [0, 256], sizes = [1, 256], strides = [1, 1]} : vector<1x768xf32> to vector<1x256xf32>
    %81 = vector.extract_strided_slice %76 {offsets = [0, 512], sizes = [1, 256], strides = [1, 1]} : vector<1x768xf32> to vector<1x256xf32>
    %82 = vector.extract_strided_slice %78 {offsets = [0, 0], sizes = [1, 256], strides = [1, 1]} : vector<1x768xf32> to vector<1x256xf32>
    %83 = vector.extract_strided_slice %78 {offsets = [0, 256], sizes = [1, 256], strides = [1, 1]} : vector<1x768xf32> to vector<1x256xf32>
    %84 = vector.extract_strided_slice %78 {offsets = [0, 512], sizes = [1, 256], strides = [1, 1]} : vector<1x768xf32> to vector<1x256xf32>
    %85 = arith.addf %79, %82 : vector<1x256xf32>
    %86 = arith.negf %85 : vector<1x256xf32>
    %87 = math.exp %86 : vector<1x256xf32>
    %cst_26 = arith.constant 1.000000e+00 : f32
    %88 = vector.broadcast %cst_26 : f32 to vector<1x256xf32>
    %89 = arith.addf %88, %87 : vector<1x256xf32>
    %90 = arith.divf %88, %89 : vector<1x256xf32>
    %91 = arith.addf %80, %83 : vector<1x256xf32>
    %92 = arith.negf %91 : vector<1x256xf32>
    %93 = math.exp %92 : vector<1x256xf32>
    %cst_27 = arith.constant 1.000000e+00 : f32
    %94 = vector.broadcast %cst_27 : f32 to vector<1x256xf32>
    %95 = arith.addf %94, %93 : vector<1x256xf32>
    %96 = arith.divf %94, %95 : vector<1x256xf32>
    %97 = arith.mulf %90, %84 : vector<1x256xf32>
    %98 = arith.addf %81, %97 : vector<1x256xf32>
    %99 = math.tanh %98 : vector<1x256xf32>
    %cst_28 = arith.constant 1.000000e+00 : f32
    %100 = vector.broadcast %cst_28 : f32 to vector<1x256xf32>
    %101 = arith.subf %100, %96 : vector<1x256xf32>
    %102 = arith.mulf %101, %99 : vector<1x256xf32>
    %103 = arith.mulf %96, %74 : vector<1x256xf32>
    %104 = arith.addf %102, %103 : vector<1x256xf32>
    %c2 = arith.constant 2 : index
    %c0_29 = arith.constant 0 : index
    %105 = vector.load %arg7[%c2, %c0_29] : memref<8x256xf32, #tpu.memory_space<vmem>>, vector<1x256xf32>
    tpu.vector_store %arg7[%c2, %c0_29], %104 {strides = array<i32>} : memref<8x256xf32, #tpu.memory_space<vmem>>, vector<1x256xf32>,
    %106 = vector.extract_strided_slice %12 {offsets = [3, 0], sizes = [1, 768], strides = [1, 1]} : vector<8x768xf32> to vector<1x768xf32>
    %cst_30 = arith.constant dense<0.000000e+00> : vector<1x768xf32>
    %107 = tpu.matmul %104, %13, %cst_30 {dimension_numbers = #tpu.dot_dimension_numbers<[1], [0], [0], [1], [0, 0, 1, 1], [], []>} : vector<1x256xf32>, vector<256x768xf32>, vector<1x768xf32> -> vector<1x768xf32>
    %108 = arith.addf %107, %14 : vector<1x768xf32>
    %109 = vector.extract_strided_slice %106 {offsets = [0, 0], sizes = [1, 256], strides = [1, 1]} : vector<1x768xf32> to vector<1x256xf32>
    %110 = vector.extract_strided_slice %106 {offsets = [0, 256], sizes = [1, 256], strides = [1, 1]} : vector<1x768xf32> to vector<1x256xf32>
    %111 = vector.extract_strided_slice %106 {offsets = [0, 512], sizes = [1, 256], strides = [1, 1]} : vector<1x768xf32> to vector<1x256xf32>
    %112 = vector.extract_strided_slice %108 {offsets = [0, 0], sizes = [1, 256], strides = [1, 1]} : vector<1x768xf32> to vector<1x256xf32>
    %113 = vector.extract_strided_slice %108 {offsets = [0, 256], sizes = [1, 256], strides = [1, 1]} : vector<1x768xf32> to vector<1x256xf32>
    %114 = vector.extract_strided_slice %108 {offsets = [0, 512], sizes = [1, 256], strides = [1, 1]} : vector<1x768xf32> to vector<1x256xf32>
    %115 = arith.addf %109, %112 : vector<1x256xf32>
    %116 = arith.negf %115 : vector<1x256xf32>
    %117 = math.exp %116 : vector<1x256xf32>
    %cst_31 = arith.constant 1.000000e+00 : f32
    %118 = vector.broadcast %cst_31 : f32 to vector<1x256xf32>
    %119 = arith.addf %118, %117 : vector<1x256xf32>
    %120 = arith.divf %118, %119 : vector<1x256xf32>
    %121 = arith.addf %110, %113 : vector<1x256xf32>
    %122 = arith.negf %121 : vector<1x256xf32>
    %123 = math.exp %122 : vector<1x256xf32>
    %cst_32 = arith.constant 1.000000e+00 : f32
    %124 = vector.broadcast %cst_32 : f32 to vector<1x256xf32>
    %125 = arith.addf %124, %123 : vector<1x256xf32>
    %126 = arith.divf %124, %125 : vector<1x256xf32>
    %127 = arith.mulf %120, %114 : vector<1x256xf32>
    %128 = arith.addf %111, %127 : vector<1x256xf32>
    %129 = math.tanh %128 : vector<1x256xf32>
    %cst_33 = arith.constant 1.000000e+00 : f32
    %130 = vector.broadcast %cst_33 : f32 to vector<1x256xf32>
    %131 = arith.subf %130, %126 : vector<1x256xf32>
    %132 = arith.mulf %131, %129 : vector<1x256xf32>
    %133 = arith.mulf %126, %104 : vector<1x256xf32>
    %134 = arith.addf %132, %133 : vector<1x256xf32>
    %c3 = arith.constant 3 : index
    %c0_34 = arith.constant 0 : index
    %135 = vector.load %arg7[%c3, %c0_34] : memref<8x256xf32, #tpu.memory_space<vmem>>, vector<1x256xf32>
    tpu.vector_store %arg7[%c3, %c0_34], %134 {strides = array<i32>} : memref<8x256xf32, #tpu.memory_space<vmem>>, vector<1x256xf32>,
    %136 = vector.extract_strided_slice %12 {offsets = [4, 0], sizes = [1, 768], strides = [1, 1]} : vector<8x768xf32> to vector<1x768xf32>
    %cst_35 = arith.constant dense<0.000000e+00> : vector<1x768xf32>
    %137 = tpu.matmul %134, %13, %cst_35 {dimension_numbers = #tpu.dot_dimension_numbers<[1], [0], [0], [1], [0, 0, 1, 1], [], []>} : vector<1x256xf32>, vector<256x768xf32>, vector<1x768xf32> -> vector<1x768xf32>
    %138 = arith.addf %137, %14 : vector<1x768xf32>
    %139 = vector.extract_strided_slice %136 {offsets = [0, 0], sizes = [1, 256], strides = [1, 1]} : vector<1x768xf32> to vector<1x256xf32>
    %140 = vector.extract_strided_slice %136 {offsets = [0, 256], sizes = [1, 256], strides = [1, 1]} : vector<1x768xf32> to vector<1x256xf32>
    %141 = vector.extract_strided_slice %136 {offsets = [0, 512], sizes = [1, 256], strides = [1, 1]} : vector<1x768xf32> to vector<1x256xf32>
    %142 = vector.extract_strided_slice %138 {offsets = [0, 0], sizes = [1, 256], strides = [1, 1]} : vector<1x768xf32> to vector<1x256xf32>
    %143 = vector.extract_strided_slice %138 {offsets = [0, 256], sizes = [1, 256], strides = [1, 1]} : vector<1x768xf32> to vector<1x256xf32>
    %144 = vector.extract_strided_slice %138 {offsets = [0, 512], sizes = [1, 256], strides = [1, 1]} : vector<1x768xf32> to vector<1x256xf32>
    %145 = arith.addf %139, %142 : vector<1x256xf32>
    %146 = arith.negf %145 : vector<1x256xf32>
    %147 = math.exp %146 : vector<1x256xf32>
    %cst_36 = arith.constant 1.000000e+00 : f32
    %148 = vector.broadcast %cst_36 : f32 to vector<1x256xf32>
    %149 = arith.addf %148, %147 : vector<1x256xf32>
    %150 = arith.divf %148, %149 : vector<1x256xf32>
    %151 = arith.addf %140, %143 : vector<1x256xf32>
    %152 = arith.negf %151 : vector<1x256xf32>
    %153 = math.exp %152 : vector<1x256xf32>
    %cst_37 = arith.constant 1.000000e+00 : f32
    %154 = vector.broadcast %cst_37 : f32 to vector<1x256xf32>
    %155 = arith.addf %154, %153 : vector<1x256xf32>
    %156 = arith.divf %154, %155 : vector<1x256xf32>
    %157 = arith.mulf %150, %144 : vector<1x256xf32>
    %158 = arith.addf %141, %157 : vector<1x256xf32>
    %159 = math.tanh %158 : vector<1x256xf32>
    %cst_38 = arith.constant 1.000000e+00 : f32
    %160 = vector.broadcast %cst_38 : f32 to vector<1x256xf32>
    %161 = arith.subf %160, %156 : vector<1x256xf32>
    %162 = arith.mulf %161, %159 : vector<1x256xf32>
    %163 = arith.mulf %156, %134 : vector<1x256xf32>
    %164 = arith.addf %162, %163 : vector<1x256xf32>
    %c4 = arith.constant 4 : index
    %c0_39 = arith.constant 0 : index
    %165 = vector.load %arg7[%c4, %c0_39] : memref<8x256xf32, #tpu.memory_space<vmem>>, vector<1x256xf32>
    tpu.vector_store %arg7[%c4, %c0_39], %164 {strides = array<i32>} : memref<8x256xf32, #tpu.memory_space<vmem>>, vector<1x256xf32>,
    %166 = vector.extract_strided_slice %12 {offsets = [5, 0], sizes = [1, 768], strides = [1, 1]} : vector<8x768xf32> to vector<1x768xf32>
    %cst_40 = arith.constant dense<0.000000e+00> : vector<1x768xf32>
    %167 = tpu.matmul %164, %13, %cst_40 {dimension_numbers = #tpu.dot_dimension_numbers<[1], [0], [0], [1], [0, 0, 1, 1], [], []>} : vector<1x256xf32>, vector<256x768xf32>, vector<1x768xf32> -> vector<1x768xf32>
    %168 = arith.addf %167, %14 : vector<1x768xf32>
    %169 = vector.extract_strided_slice %166 {offsets = [0, 0], sizes = [1, 256], strides = [1, 1]} : vector<1x768xf32> to vector<1x256xf32>
    %170 = vector.extract_strided_slice %166 {offsets = [0, 256], sizes = [1, 256], strides = [1, 1]} : vector<1x768xf32> to vector<1x256xf32>
    %171 = vector.extract_strided_slice %166 {offsets = [0, 512], sizes = [1, 256], strides = [1, 1]} : vector<1x768xf32> to vector<1x256xf32>
    %172 = vector.extract_strided_slice %168 {offsets = [0, 0], sizes = [1, 256], strides = [1, 1]} : vector<1x768xf32> to vector<1x256xf32>
    %173 = vector.extract_strided_slice %168 {offsets = [0, 256], sizes = [1, 256], strides = [1, 1]} : vector<1x768xf32> to vector<1x256xf32>
    %174 = vector.extract_strided_slice %168 {offsets = [0, 512], sizes = [1, 256], strides = [1, 1]} : vector<1x768xf32> to vector<1x256xf32>
    %175 = arith.addf %169, %172 : vector<1x256xf32>
    %176 = arith.negf %175 : vector<1x256xf32>
    %177 = math.exp %176 : vector<1x256xf32>
    %cst_41 = arith.constant 1.000000e+00 : f32
    %178 = vector.broadcast %cst_41 : f32 to vector<1x256xf32>
    %179 = arith.addf %178, %177 : vector<1x256xf32>
    %180 = arith.divf %178, %179 : vector<1x256xf32>
    %181 = arith.addf %170, %173 : vector<1x256xf32>
    %182 = arith.negf %181 : vector<1x256xf32>
    %183 = math.exp %182 : vector<1x256xf32>
    %cst_42 = arith.constant 1.000000e+00 : f32
    %184 = vector.broadcast %cst_42 : f32 to vector<1x256xf32>
    %185 = arith.addf %184, %183 : vector<1x256xf32>
    %186 = arith.divf %184, %185 : vector<1x256xf32>
    %187 = arith.mulf %180, %174 : vector<1x256xf32>
    %188 = arith.addf %171, %187 : vector<1x256xf32>
    %189 = math.tanh %188 : vector<1x256xf32>
    %cst_43 = arith.constant 1.000000e+00 : f32
    %190 = vector.broadcast %cst_43 : f32 to vector<1x256xf32>
    %191 = arith.subf %190, %186 : vector<1x256xf32>
    %192 = arith.mulf %191, %189 : vector<1x256xf32>
    %193 = arith.mulf %186, %164 : vector<1x256xf32>
    %194 = arith.addf %192, %193 : vector<1x256xf32>
    %c5 = arith.constant 5 : index
    %c0_44 = arith.constant 0 : index
    %195 = vector.load %arg7[%c5, %c0_44] : memref<8x256xf32, #tpu.memory_space<vmem>>, vector<1x256xf32>
    tpu.vector_store %arg7[%c5, %c0_44], %194 {strides = array<i32>} : memref<8x256xf32, #tpu.memory_space<vmem>>, vector<1x256xf32>,
    %196 = vector.extract_strided_slice %12 {offsets = [6, 0], sizes = [1, 768], strides = [1, 1]} : vector<8x768xf32> to vector<1x768xf32>
    %cst_45 = arith.constant dense<0.000000e+00> : vector<1x768xf32>
    %197 = tpu.matmul %194, %13, %cst_45 {dimension_numbers = #tpu.dot_dimension_numbers<[1], [0], [0], [1], [0, 0, 1, 1], [], []>} : vector<1x256xf32>, vector<256x768xf32>, vector<1x768xf32> -> vector<1x768xf32>
    %198 = arith.addf %197, %14 : vector<1x768xf32>
    %199 = vector.extract_strided_slice %196 {offsets = [0, 0], sizes = [1, 256], strides = [1, 1]} : vector<1x768xf32> to vector<1x256xf32>
    %200 = vector.extract_strided_slice %196 {offsets = [0, 256], sizes = [1, 256], strides = [1, 1]} : vector<1x768xf32> to vector<1x256xf32>
    %201 = vector.extract_strided_slice %196 {offsets = [0, 512], sizes = [1, 256], strides = [1, 1]} : vector<1x768xf32> to vector<1x256xf32>
    %202 = vector.extract_strided_slice %198 {offsets = [0, 0], sizes = [1, 256], strides = [1, 1]} : vector<1x768xf32> to vector<1x256xf32>
    %203 = vector.extract_strided_slice %198 {offsets = [0, 256], sizes = [1, 256], strides = [1, 1]} : vector<1x768xf32> to vector<1x256xf32>
    %204 = vector.extract_strided_slice %198 {offsets = [0, 512], sizes = [1, 256], strides = [1, 1]} : vector<1x768xf32> to vector<1x256xf32>
    %205 = arith.addf %199, %202 : vector<1x256xf32>
    %206 = arith.negf %205 : vector<1x256xf32>
    %207 = math.exp %206 : vector<1x256xf32>
    %cst_46 = arith.constant 1.000000e+00 : f32
    %208 = vector.broadcast %cst_46 : f32 to vector<1x256xf32>
    %209 = arith.addf %208, %207 : vector<1x256xf32>
    %210 = arith.divf %208, %209 : vector<1x256xf32>
    %211 = arith.addf %200, %203 : vector<1x256xf32>
    %212 = arith.negf %211 : vector<1x256xf32>
    %213 = math.exp %212 : vector<1x256xf32>
    %cst_47 = arith.constant 1.000000e+00 : f32
    %214 = vector.broadcast %cst_47 : f32 to vector<1x256xf32>
    %215 = arith.addf %214, %213 : vector<1x256xf32>
    %216 = arith.divf %214, %215 : vector<1x256xf32>
    %217 = arith.mulf %210, %204 : vector<1x256xf32>
    %218 = arith.addf %201, %217 : vector<1x256xf32>
    %219 = math.tanh %218 : vector<1x256xf32>
    %cst_48 = arith.constant 1.000000e+00 : f32
    %220 = vector.broadcast %cst_48 : f32 to vector<1x256xf32>
    %221 = arith.subf %220, %216 : vector<1x256xf32>
    %222 = arith.mulf %221, %219 : vector<1x256xf32>
    %223 = arith.mulf %216, %194 : vector<1x256xf32>
    %224 = arith.addf %222, %223 : vector<1x256xf32>
    %c6 = arith.constant 6 : index
    %c0_49 = arith.constant 0 : index
    %225 = vector.load %arg7[%c6, %c0_49] : memref<8x256xf32, #tpu.memory_space<vmem>>, vector<1x256xf32>
    tpu.vector_store %arg7[%c6, %c0_49], %224 {strides = array<i32>} : memref<8x256xf32, #tpu.memory_space<vmem>>, vector<1x256xf32>,
    %226 = vector.extract_strided_slice %12 {offsets = [7, 0], sizes = [1, 768], strides = [1, 1]} : vector<8x768xf32> to vector<1x768xf32>
    %cst_50 = arith.constant dense<0.000000e+00> : vector<1x768xf32>
    %227 = tpu.matmul %224, %13, %cst_50 {dimension_numbers = #tpu.dot_dimension_numbers<[1], [0], [0], [1], [0, 0, 1, 1], [], []>} : vector<1x256xf32>, vector<256x768xf32>, vector<1x768xf32> -> vector<1x768xf32>
    %228 = arith.addf %227, %14 : vector<1x768xf32>
    %229 = vector.extract_strided_slice %226 {offsets = [0, 0], sizes = [1, 256], strides = [1, 1]} : vector<1x768xf32> to vector<1x256xf32>
    %230 = vector.extract_strided_slice %226 {offsets = [0, 256], sizes = [1, 256], strides = [1, 1]} : vector<1x768xf32> to vector<1x256xf32>
    %231 = vector.extract_strided_slice %226 {offsets = [0, 512], sizes = [1, 256], strides = [1, 1]} : vector<1x768xf32> to vector<1x256xf32>
    %232 = vector.extract_strided_slice %228 {offsets = [0, 0], sizes = [1, 256], strides = [1, 1]} : vector<1x768xf32> to vector<1x256xf32>
    %233 = vector.extract_strided_slice %228 {offsets = [0, 256], sizes = [1, 256], strides = [1, 1]} : vector<1x768xf32> to vector<1x256xf32>
    %234 = vector.extract_strided_slice %228 {offsets = [0, 512], sizes = [1, 256], strides = [1, 1]} : vector<1x768xf32> to vector<1x256xf32>
    %235 = arith.addf %229, %232 : vector<1x256xf32>
    %236 = arith.negf %235 : vector<1x256xf32>
    %237 = math.exp %236 : vector<1x256xf32>
    %cst_51 = arith.constant 1.000000e+00 : f32
    %238 = vector.broadcast %cst_51 : f32 to vector<1x256xf32>
    %239 = arith.addf %238, %237 : vector<1x256xf32>
    %240 = arith.divf %238, %239 : vector<1x256xf32>
    %241 = arith.addf %230, %233 : vector<1x256xf32>
    %242 = arith.negf %241 : vector<1x256xf32>
    %243 = math.exp %242 : vector<1x256xf32>
    %cst_52 = arith.constant 1.000000e+00 : f32
    %244 = vector.broadcast %cst_52 : f32 to vector<1x256xf32>
    %245 = arith.addf %244, %243 : vector<1x256xf32>
    %246 = arith.divf %244, %245 : vector<1x256xf32>
    %247 = arith.mulf %240, %234 : vector<1x256xf32>
    %248 = arith.addf %231, %247 : vector<1x256xf32>
    %249 = math.tanh %248 : vector<1x256xf32>
    %cst_53 = arith.constant 1.000000e+00 : f32
    %250 = vector.broadcast %cst_53 : f32 to vector<1x256xf32>
    %251 = arith.subf %250, %246 : vector<1x256xf32>
    %252 = arith.mulf %251, %249 : vector<1x256xf32>
    %253 = arith.mulf %246, %224 : vector<1x256xf32>
    %254 = arith.addf %252, %253 : vector<1x256xf32>
    %c7 = arith.constant 7 : index
    %c0_54 = arith.constant 0 : index
    %255 = vector.load %arg7[%c7, %c0_54] : memref<8x256xf32, #tpu.memory_space<vmem>>, vector<1x256xf32>
    tpu.vector_store %arg7[%c7, %c0_54], %254 {strides = array<i32>} : memref<8x256xf32, #tpu.memory_space<vmem>>, vector<1x256xf32>,
    %c0_55 = arith.constant 0 : index
    %c0_56 = arith.constant 0 : index
    %256 = vector.load %arg8[%c0_55, %c0_56] : memref<1x256xf32, #tpu.memory_space<vmem>>, vector<1x256xf32>
    tpu.vector_store %arg8[%c0_55, %c0_56], %254 {strides = array<i32>} : memref<1x256xf32, #tpu.memory_space<vmem>>, vector<1x256xf32>,
    return
  }
}

</mosaic_0001>

<bundles_post_ra>
// kernel: encoder_rnn_forward.1
= control target key start
LH: loop header
LB: loop body
LE: loop exit
PB: predicated region body
PF: predicated region fallthrough
CT: control target
= control target key end

     0   :  { %14 = vsyncpa [#allocation3], 0  ;;  %s7504_s0 = inlined_call_operand.vmem [shape: s32[8,1], index: 0, kind: input, shape index: {}]   ;;  %s7505_s1 = inlined_call_operand.hbm [shape: f32[32,256], index: 1, kind: input, shape index: {}]   ;;  %s7506_s2 = inlined_call_operand.vmem [shape: f32[1,256], index: 2, kind: input, shape index: {}]   ;;  %s7507_s3 = inlined_call_operand.hbm [shape: f32[256,768], index: 3, kind: input, shape index: {}]   ;;  %s7508_s4 = inlined_call_operand.hbm [shape: f32[256,768], index: 4, kind: input, shape index: {}]   ;;  %s7509_s5 = inlined_call_operand.vmem [shape: f32[1,768], index: 5, kind: input, shape index: {}]   ;;  %s7510_s6 = inlined_call_operand.vmem [shape: f32[1,768], index: 6, kind: input, shape index: {}]   ;;  %s7511_s7 = inlined_call_operand.vmem [shape: f32[8,256], index: 7, kind: output, shape index: {0}]   ;;  %s7512_s8 = inlined_call_operand.hbm [shape: f32[1,256], index: 8, kind: output, shape index: {1}]  }
   0x1   :  { %15 = vsyncpa [#allocation6], 0 }
   0x2   :  { %16 = vsyncpa [#allocation4], 0  ;;  %s4128_s27 = smov [#allocation5]  }
   0x3   :  { %s38_s28 = sshll.u32 %s4128_s27, 4  ;;  %s39_s28 = int_to_ptr.vmem [resolvable:$true] %s38_s28 }
   0x4   :  { %s4050_s29 = scalar_lea.vmem %s39_s28, 24576  ;;  %p4055_p1 = scmp.lt.s32.totalorder %s39_s28, %s39_s28 }
   0x5   :  { %p4051_p0 = scmp.ne.s32.totalorder %s39_s28, %s4050_s29  ;;  %p4056_p2 = scmp.lt.s32.totalorder %s4050_s29, %s4050_s29 }
   0x7   :  { %p4057_p3 = por %p4056_p2, %p4055_p1 }
   0x9   :  { %p4058_p4 = pnand %p4057_p3, %p4051_p0 }
   0xb   :  { %4061 = shalt.err (!%p4058_p4)
}
   0xc   :  { %s4129_s30 = smov 768   ;;  %s4130_s9 = smov 48  }
   0xd   :  { %44 = dma.hbm_to_vmem [thread:$0]  %s7507_s3, 24576, %s39_s28, [#allocation6], %s4129_s30, %s4129_s30, %s4130_s9  }
   0xe   :  { %s4131_s12 = smov [#allocation2]  }
   0xf   :  { %s24_s13 = sshll.u32 %s4131_s12, 4  ;;  %s25_s13 = int_to_ptr.vmem [resolvable:$true] %s24_s13 }
  0x10   :  { %s4070_s14 = scalar_lea.vmem %s25_s13, 1024  ;;  %p4075_p6 = scmp.lt.s32.totalorder %s25_s13, %s25_s13 }
  0x11   :  { %p4071_p5 = scmp.ne.s32.totalorder %s25_s13, %s4070_s14  ;;  %p4076_p7 = scmp.lt.s32.totalorder %s4070_s14, %s4070_s14 }
  0x13   :  { %p4077_p8 = por %p4076_p7, %p4075_p6 }
  0x15   :  { %p4078_p9 = pnand %p4077_p8, %p4071_p5 }
  0x17   :  { %4081 = shalt.err (!%p4078_p9)
}
  0x18   :  { %s4132_s15 = smov 256   ;;  %s4133_s16 = smov 16  }
  0x19   :  { %30 = dma.hbm_to_vmem [thread:$0]  %s7505_s1, 1024, %s25_s13, [#allocation3], %s4132_s15, %s4132_s15, %s4133_s16  }
  0x1a   :  { %s4134_s19 = smov [#allocation7]  }
  0x1b   :  { %s50_s20 = sshll.u32 %s4134_s19, 4  ;;  %s51_s20 = int_to_ptr.vmem [resolvable:$true] %s50_s20 }
  0x1c   :  { %s4090_s3 = scalar_lea.vmem %s51_s20, 24576  ;;  %p4095_p11 = scmp.lt.s32.totalorder %s51_s20, %s51_s20 }
  0x1d   :  { %p4091_p10 = scmp.ne.s32.totalorder %s51_s20, %s4090_s3  ;;  %p4096_p12 = scmp.lt.s32.totalorder %s4090_s3, %s4090_s3 }
  0x1f   :  { %p4097_p13 = por %p4096_p12, %p4095_p11 }
  0x21   :  { %p4098_p0 = pnand %p4097_p13, %p4091_p10 }
  0x23   :  { %4101 = shalt.err (!%p4098_p0)
}
  0x24   :  { %56 = dma.hbm_to_vmem [thread:$0]  %s7508_s4, 24576, %s51_s20, [#allocation6], %s4129_s30, %s4129_s30, %s4130_s9  }
  0x25   :  { %4122 = dma.done.wait [#allocation3], 1024  }
  0x26   :  { %4123 = vsyncadd [#allocation3], 4294966272 }
  0x27   :  { %4124 = dma.done.wait [#allocation6], 49152  }
  0x28   :  { %4125 = vsyncadd [#allocation6], 4294918144  ;;  %v4135_v0 = vmov 0   ;;  %v4136_v1 = vmov 0.0   ;;  %v70_v2 = vld [vmem:[%s7504_s0] sm:$0xff]  ;;  %v86_v3 = vld [vmem:[#allocation2 + $0x38] sm:$0xff] }
  0x29   :  { %3305 = vset.pattern.permute.xlu0 %v4135_v0  ;;  %155 = vmatprep.mubr.f32.mxu0 %v4136_v1  ;;  %v85_v4 = vld [vmem:[#allocation2 + $0x30] sm:$0xff]  ;;  %v84_v5 = vld [vmem:[#allocation2 + $0x28] sm:$0xff]  ;;  %v83_v6 = vld [vmem:[#allocation2 + $0x20] sm:$0xff]  ;;  %vm87_vm0 = vcmask 261120   ;;  %s4138_s17 = smov [#allocation8]  }
  0x2a   :  { %74 = vperm.xlu0 %3305, %v70_v2   ;;  %115 = vmatprep.subr.mxu0 %v86_v3  ;;  %v82_v7 = vld [vmem:[#allocation2 + $0x18] sm:$0xff]  ;;  %v81_v8 = vld [vmem:[#allocation2 + $0x10] sm:$0xff]  ;;  %v80_v11 = vld [vmem:[#allocation2 + $0x8] sm:$0xff]  ;;  %s3241_s18 = sshll.u32 %s4138_s17, 4  ;;  %s3242_s18 = int_to_ptr.vmem [resolvable:$true] %s3241_s18 }
  0x2b   :  { %116 = vmatpush1.msra.mxu0 %v85_v4  ;;  %v253_v9 = vld [vmem:[#allocation5 + $0x2d8] sm:$0xff]  ;;  %v252_v10 = vld [vmem:[#allocation5 + $0x2d0] sm:$0xff]  ;;  %v247_v12 = vld [vmem:[#allocation5 + $0x2a8] sm:$0xff]  ;;  %s4102_s3 = scalar_lea.vmem %s3242_s18, 32  ;;  %p4107_p2 = scmp.lt.s32.totalorder %s3242_s18, %s3242_s18 }
  0x2c   :  { %117 = vmatprep.subr.mxu0 %v84_v5  ;;  %386 = vmatprep.subr.mxu1 %v253_v9  ;;  %v79_v13 = vld [vmem:[#allocation2] sm:$0xff]  ;;  %v241_v15 = vld [vmem:[#allocation5 + $0x278] sm:$0xff]  ;;  %v255_v16 = vld [vmem:[#allocation5 + $0x2e8] sm:$0xff]  ;;  %p4103_p1 = scmp.ne.s32.totalorder %s3242_s18, %s4102_s3  ;;  %p4108_p3 = scmp.lt.s32.totalorder %s4102_s3, %s4102_s3 }
  0x2d   :  { %118 = vmatpush1.msra.mxu0 %v83_v6  ;;  %387 = vmatpush1.msra.mxu1 %v252_v10  ;;  %v246_v14 = vld [vmem:[#allocation5 + $0x2a0] sm:$0xff]  ;;  %v240_v17 = vld [vmem:[#allocation5 + $0x270] sm:$0xff]  ;;  %v235_v18 = vld [vmem:[#allocation5 + $0x248] sm:$0xff]  ;;  %v7513_v10 = vlaneseq }
  0x2e   :  { %119 = vmatprep.subr.mxu0 %v82_v7  ;;  %388 = vmatprep.subr.mxu1 %v247_v12  ;;  %v234_v19 = vld [vmem:[#allocation5 + $0x240] sm:$0xff]  ;;  %v229_v20 = vld [vmem:[#allocation5 + $0x218] sm:$0xff]  ;;  %v228_v21 = vld [vmem:[#allocation5 + $0x210] sm:$0xff]  ;;  %p4109_p4 = por %p4108_p3, %p4107_p2 }
  0x2f   :  { %120 = vmatpush1.msra.mxu0 %v81_v8  ;;  %389 = vmatpush1.msra.mxu1 %v246_v14  ;;  %v223_v22 = vld [vmem:[#allocation5 + $0x1e8] sm:$0xff]  ;;  %v222_v23 = vld [vmem:[#allocation5 + $0x1e0] sm:$0xff]  ;;  %v217_v24 = vld [vmem:[#allocation5 + $0x1b8] sm:$0xff] }
  0x30   :  { %121 = vmatprep.subr.mxu0 %v80_v11  ;;  %390 = vmatprep.subr.mxu1 %v241_v15  ;;  %v216_v25 = vld [vmem:[#allocation5 + $0x1b0] sm:$0xff]  ;;  %v211_v26 = vld [vmem:[#allocation5 + $0x188] sm:$0xff]  ;;  %v210_v27 = vld [vmem:[#allocation5 + $0x180] sm:$0xff]  ;;  %v72_v11 = vand.u32 127, %v7513_v10  ;;  %p4110_p5 = pnand %p4109_p4, %p4103_p1 }
  0x31   :  { %122 = vmatpush1.msra.mxu0 %v79_v13  ;;  %391 = vmatpush1.msra.mxu1 %v240_v17  ;;  %v205_v28 = vld [vmem:[#allocation5 + $0x158] sm:$0xff]  ;;  %v204_v29 = vld [vmem:[#allocation5 + $0x150] sm:$0xff]  ;;  %v199_v30 = vld [vmem:[#allocation5 + $0x128] sm:$0xff] }
  0x32   :  { %457 = vmatprep.subr.mxu0 %v255_v16  ;;  %392 = vmatprep.subr.mxu1 %v235_v18  ;;  %v198_v31 = vld [vmem:[#allocation5 + $0x120] sm:$0xff]  ;;  %v193_v32 = vld [vmem:[#allocation5 + $0xf8] sm:$0xff]  ;;  %v192_v33 = vld [vmem:[#allocation5 + $0xf0] sm:$0xff] }
  0x33   :  { %393 = vmatpush1.msra.mxu1 %v234_v19  ;;  %v187_v34 = vld [vmem:[#allocation5 + $0xc8] sm:$0xff]  ;;  %v186_v35 = vld [vmem:[#allocation5 + $0xc0] sm:$0xff]  ;;  %v181_v36 = vld [vmem:[#allocation5 + $0x98] sm:$0xff] }
  0x34   :  { %394 = vmatprep.subr.mxu1 %v229_v20  ;;  %v180_v37 = vld [vmem:[#allocation5 + $0x90] sm:$0xff]  ;;  %v175_v38 = vld [vmem:[#allocation5 + $0x68] sm:$0xff]  ;;  %v174_v39 = vld [vmem:[#allocation5 + $0x60] sm:$0xff] }
  0x35   :  { %395 = vmatpush1.msra.mxu1 %v228_v21  ;;  %v169_v40 = vld [vmem:[#allocation5 + $0x38] sm:$0xff]  ;;  %v168_v41 = vld [vmem:[#allocation5 + $0x30] sm:$0xff]  ;;  %v163_v42 = vld [vmem:[#allocation5 + $0x8] sm:$0xff] }
  0x36   :  { %396 = vmatprep.subr.mxu1 %v223_v22  ;;  %v162_v43 = vld [vmem:[#allocation5] sm:$0xff]  ;;  %v349_v44 = vld [vmem:[#allocation5 + $0x5d8] sm:$0xff]  ;;  %v348_v45 = vld [vmem:[#allocation5 + $0x5d0] sm:$0xff] }
  0x37   :  { %397 = vmatpush1.msra.mxu1 %v222_v23  ;;  %v343_v46 = vld [vmem:[#allocation5 + $0x5a8] sm:$0xff]  ;;  %v342_v47 = vld [vmem:[#allocation5 + $0x5a0] sm:$0xff]  ;;  %v337_v48 = vld [vmem:[#allocation5 + $0x578] sm:$0xff] }
  0x38   :  { %398 = vmatprep.subr.mxu1 %v217_v24  ;;  %v336_v49 = vld [vmem:[#allocation5 + $0x570] sm:$0xff]  ;;  %v331_v50 = vld [vmem:[#allocation5 + $0x548] sm:$0xff]  ;;  %v330_v51 = vld [vmem:[#allocation5 + $0x540] sm:$0xff] }
  0x39   :  { %399 = vmatpush1.msra.mxu1 %v216_v25  ;;  %v325_v52 = vld [vmem:[#allocation5 + $0x518] sm:$0xff]  ;;  %v324_v53 = vld [vmem:[#allocation5 + $0x510] sm:$0xff]  ;;  %v319_v54 = vld [vmem:[#allocation5 + $0x4e8] sm:$0xff] }
  0x3a   :  { %400 = vmatprep.subr.mxu1 %v211_v26  ;;  %v318_v55 = vld [vmem:[#allocation5 + $0x4e0] sm:$0xff]  ;;  %v313_v56 = vld [vmem:[#allocation5 + $0x4b8] sm:$0xff]  ;;  %v312_v57 = vld [vmem:[#allocation5 + $0x4b0] sm:$0xff] }
  0x3b   :  { %401 = vmatpush1.msra.mxu1 %v210_v27  ;;  %v307_v58 = vld [vmem:[#allocation5 + $0x488] sm:$0xff]  ;;  %v306_v59 = vld [vmem:[#allocation5 + $0x480] sm:$0xff]  ;;  %v301_v60 = vld [vmem:[#allocation5 + $0x458] sm:$0xff] }
  0x3c   :  { %402 = vmatprep.subr.mxu1 %v205_v28  ;;  %v300_v61 = vld [vmem:[#allocation5 + $0x450] sm:$0xff]  ;;  %v295_v62 = vld [vmem:[#allocation5 + $0x428] sm:$0xff]  ;;  %v294_v63 = vld [vmem:[#allocation5 + $0x420] sm:$0xff] }
  0x3d   :  { %403 = vmatpush1.msra.mxu1 %v204_v29  ;;  %v289_v0 = vld [vmem:[#allocation5 + $0x3f8] sm:$0xff]  ;;  %v288_v2 = vld [vmem:[#allocation5 + $0x3f0] sm:$0xff]  ;;  %v283_v3 = vld [vmem:[#allocation5 + $0x3c8] sm:$0xff] }
  0x3e   :  { %404 = vmatprep.subr.mxu1 %v199_v30  ;;  %v282_v4 = vld [vmem:[#allocation5 + $0x3c0] sm:$0xff]  ;;  %v277_v5 = vld [vmem:[#allocation5 + $0x398] sm:$0xff]  ;;  %v276_v6 = vld [vmem:[#allocation5 + $0x390] sm:$0xff] }
  0x3f   :  { %405 = vmatpush1.msra.mxu1 %v198_v31  ;;  %v271_v7 = vld [vmem:[#allocation5 + $0x368] sm:$0xff]  ;;  %v270_v8 = vld [vmem:[#allocation5 + $0x360] sm:$0xff]  ;;  %v265_v9 = vld [vmem:[#allocation5 + $0x338] sm:$0xff] }
  0x40   :  { %406 = vmatprep.subr.mxu1 %v193_v32  ;;  %v254_v13 = vld [vmem:[#allocation5 + $0x2e0] sm:$0xff]  ;;  %v249_v15 = vld [vmem:[#allocation5 + $0x2b8] sm:$0xff]  ;;  %v248_v16 = vld [vmem:[#allocation5 + $0x2b0] sm:$0xff] }
  0x41   :  { %407 = vmatpush1.msra.mxu1 %v192_v33  ;;  %v243_v17 = vld [vmem:[#allocation5 + $0x288] sm:$0xff]  ;;  %v242_v18 = vld [vmem:[#allocation5 + $0x280] sm:$0xff]  ;;  %v237_v19 = vld [vmem:[#allocation5 + $0x258] sm:$0xff] }
  0x42   :  { %408 = vmatprep.subr.mxu1 %v187_v34  ;;  %v236_v20 = vld [vmem:[#allocation5 + $0x250] sm:$0xff]  ;;  %v231_v21 = vld [vmem:[#allocation5 + $0x228] sm:$0xff]  ;;  %v230_v22 = vld [vmem:[#allocation5 + $0x220] sm:$0xff] }
  0x43   :  { %409 = vmatpush1.msra.mxu1 %v186_v35  ;;  %v225_v23 = vld [vmem:[#allocation5 + $0x1f8] sm:$0xff]  ;;  %v224_v24 = vld [vmem:[#allocation5 + $0x1f0] sm:$0xff]  ;;  %v218_v25 = vld [vmem:[#allocation5 + $0x1c0] sm:$0xff] }
  0x44   :  { %410 = vmatprep.subr.mxu1 %v181_v36  ;;  %v213_v26 = vld [vmem:[#allocation5 + $0x198] sm:$0xff]  ;;  %v212_v27 = vld [vmem:[#allocation5 + $0x190] sm:$0xff]  ;;  %v207_v28 = vld [vmem:[#allocation5 + $0x168] sm:$0xff] }
  0x45   :  { %411 = vmatpush1.msra.mxu1 %v180_v37  ;;  %v206_v29 = vld [vmem:[#allocation5 + $0x160] sm:$0xff]  ;;  %v201_v30 = vld [vmem:[#allocation5 + $0x138] sm:$0xff]  ;;  %v200_v31 = vld [vmem:[#allocation5 + $0x130] sm:$0xff] }
  0x46   :  { %412 = vmatprep.subr.mxu1 %v175_v38  ;;  %v195_v32 = vld [vmem:[#allocation5 + $0x108] sm:$0xff]  ;;  %v194_v33 = vld [vmem:[#allocation5 + $0x100] sm:$0xff]  ;;  %v189_v34 = vld [vmem:[#allocation5 + $0xd8] sm:$0xff] }
  0x47   :  { %413 = vmatpush1.msra.mxu1 %v174_v39  ;;  %v188_v35 = vld [vmem:[#allocation5 + $0xd0] sm:$0xff]  ;;  %v183_v36 = vld [vmem:[#allocation5 + $0xa8] sm:$0xff]  ;;  %v182_v37 = vld [vmem:[#allocation5 + $0xa0] sm:$0xff] }
  0x48   :  { %414 = vmatprep.subr.mxu1 %v169_v40  ;;  %v177_v38 = vld [vmem:[#allocation5 + $0x78] sm:$0xff]  ;;  %v176_v39 = vld [vmem:[#allocation5 + $0x70] sm:$0xff]  ;;  %v171_v40 = vld [vmem:[#allocation5 + $0x48] sm:$0xff] }
  0x49   :  { %415 = vmatpush1.msra.mxu1 %v168_v41  ;;  %v170_v41 = vld [vmem:[#allocation5 + $0x40] sm:$0xff] }
  0x4a   :  { %416 = vmatprep.subr.mxu1 %v163_v42  ;;  %v165_v42 = vld [vmem:[#allocation5 + $0x18] sm:$0xff] }
  0x4b   :  { %417 = vmatpush1.msra.mxu1 %v162_v43  ;;  %v164_v43 = vld [vmem:[#allocation5 + $0x10] sm:$0xff] }
  0x4c   :  { %418 = vmatprep.subr.mxu1 %v349_v44  ;;  %v351_v44 = vld [vmem:[#allocation5 + $0x5e8] sm:$0xff] }
  0x4d   :  { %419 = vmatpush2.msra.mxu1 %v348_v45  ;;  %v350_v45 = vld [vmem:[#allocation5 + $0x5e0] sm:$0xff] }
  0x4e   :  { %420 = vmatprep.subr.mxu1 %v343_v46  ;;  %v345_v46 = vld [vmem:[#allocation5 + $0x5b8] sm:$0xff] }
  0x4f   :  { %421 = vmatpush2.msra.mxu1 %v342_v47  ;;  %v344_v47 = vld [vmem:[#allocation5 + $0x5b0] sm:$0xff] }
  0x50   :  { %422 = vmatprep.subr.mxu1 %v337_v48  ;;  %v339_v48 = vld [vmem:[#allocation5 + $0x588] sm:$0xff] }
  0x51   :  { %423 = vmatpush2.msra.mxu1 %v336_v49  ;;  %v338_v49 = vld [vmem:[#allocation5 + $0x580] sm:$0xff] }
  0x52   :  { %424 = vmatprep.subr.mxu1 %v331_v50  ;;  %v333_v50 = vld [vmem:[#allocation5 + $0x558] sm:$0xff] }
  0x53   :  { %425 = vmatpush2.msra.mxu1 %v330_v51  ;;  %v332_v51 = vld [vmem:[#allocation5 + $0x550] sm:$0xff] }
  0x54   :  { %426 = vmatprep.subr.mxu1 %v325_v52  ;;  %v327_v52 = vld [vmem:[#allocation5 + $0x528] sm:$0xff] }
  0x55   :  { %427 = vmatpush2.msra.mxu1 %v324_v53  ;;  %v326_v53 = vld [vmem:[#allocation5 + $0x520] sm:$0xff] }
  0x56   :  { %428 = vmatprep.subr.mxu1 %v319_v54  ;;  %v321_v54 = vld [vmem:[#allocation5 + $0x4f8] sm:$0xff] }
  0x57   :  { %429 = vmatpush2.msra.mxu1 %v318_v55  ;;  %v320_v55 = vld [vmem:[#allocation5 + $0x4f0] sm:$0xff] }
  0x58   :  { %430 = vmatprep.subr.mxu1 %v313_v56  ;;  %v315_v56 = vld [vmem:[#allocation5 + $0x4c8] sm:$0xff] }
  0x59   :  { %431 = vmatpush2.msra.mxu1 %v312_v57  ;;  %v314_v57 = vld [vmem:[#allocation5 + $0x4c0] sm:$0xff] }
  0x5a   :  { %432 = vmatprep.subr.mxu1 %v307_v58  ;;  %v309_v58 = vld [vmem:[#allocation5 + $0x498] sm:$0xff] }
  0x5b   :  { %433 = vmatpush2.msra.mxu1 %v306_v59  ;;  %v308_v59 = vld [vmem:[#allocation5 + $0x490] sm:$0xff] }
  0x5c   :  { %434 = vmatprep.subr.mxu1 %v301_v60  ;;  %v303_v60 = vld [vmem:[#allocation5 + $0x468] sm:$0xff] }
  0x5d   :  { %435 = vmatpush2.msra.mxu1 %v300_v61  ;;  %v302_v61 = vld [vmem:[#allocation5 + $0x460] sm:$0xff] }
  0x5e   :  { %436 = vmatprep.subr.mxu1 %v295_v62  ;;  %v297_v62 = vld [vmem:[#allocation5 + $0x438] sm:$0xff] }
  0x5f   :  { %437 = vmatpush2.msra.mxu1 %v294_v63  ;;  %v296_v63 = vld [vmem:[#allocation5 + $0x430] sm:$0xff] }
  0x60   :  { %438 = vmatprep.subr.mxu1 %v289_v0  ;;  %v291_v0 = vld [vmem:[#allocation5 + $0x408] sm:$0xff] }
  0x61   :  { %439 = vmatpush2.msra.mxu1 %v288_v2  ;;  %v290_v2 = vld [vmem:[#allocation5 + $0x400] sm:$0xff] }
  0x62   :  { %440 = vmatprep.subr.mxu1 %v283_v3  ;;  %v285_v3 = vld [vmem:[#allocation5 + $0x3d8] sm:$0xff] }
  0x63   :  { %441 = vmatpush2.msra.mxu1 %v282_v4  ;;  %v284_v4 = vld [vmem:[#allocation5 + $0x3d0] sm:$0xff] }
  0x64   :  { %442 = vmatprep.subr.mxu1 %v277_v5  ;;  %v279_v5 = vld [vmem:[#allocation5 + $0x3a8] sm:$0xff] }
  0x65   :  { %443 = vmatpush2.msra.mxu1 %v276_v6  ;;  %v278_v6 = vld [vmem:[#allocation5 + $0x3a0] sm:$0xff] }
  0x66   :  { %444 = vmatprep.subr.mxu1 %v271_v7  ;;  %v273_v7 = vld [vmem:[#allocation5 + $0x378] sm:$0xff] }
  0x67   :  { %445 = vmatpush2.msra.mxu1 %v270_v8  ;;  %v272_v8 = vld [vmem:[#allocation5 + $0x370] sm:$0xff] }
  0x68   :  { %446 = vmatprep.subr.mxu1 %v265_v9  ;;  %v267_v9 = vld [vmem:[#allocation5 + $0x348] sm:$0xff] }
  0xa5   :  { %v75_v12 = vpop.permute.xlu0 %74 }
  0xa6   :  { %vm76_vm1 = vcmp.eq.s32.totalorder %v75_v12, %v72_v11  ;;  %v264_v11 = vld [vmem:[#allocation5 + $0x330] sm:$0xff]  ;;  %v266_v12 = vld [vmem:[#allocation5 + $0x340] sm:$0xff] }
  0xa7   :  { %v3253_v14 = vsel %vm76_vm1, 1.0, %v4136_v1  ;;  %v219_v1 = vld [vmem:[#allocation5 + $0x1c8] sm:$0xff]  ;;  %447 = vmatpush2.msra.mxu1 %v264_v11  ;;  %v4258_v11 = vld [vmem:[#allocation7 + $0x60] sm:$0xff] }
  0xa8   :  { %3254 = vmatmul.mubr.msk.f32.vlgmr.msra.gmra.mxu0 %vm87_vm0, %v3253_v14  ;;  %v261_v14 = vld [vmem:[#allocation5 + $0x318] sm:$0xff] }
  0xa9   :  { %458 = vmatpush1.msra.mxu0 %v254_v13  ;;  %v259_v13 = vld [vmem:[#allocation5 + $0x308] sm:$0xff] }
  0xaa   :  { %459 = vmatprep.subr.mxu0 %v249_v15  ;;  %448 = vmatprep.subr.mxu1 %v259_v13  ;;  %v258_v15 = vld [vmem:[#allocation5 + $0x300] sm:$0xff]  ;;  %v4261_v13 = vld [vmem:[#allocation7 + $0x38] sm:$0xff] }
  0xab   :  { %460 = vmatpush1.msra.mxu0 %v248_v16  ;;  %v260_v16 = vld [vmem:[#allocation5 + $0x310] sm:$0xff]  ;;  %449 = vmatpush2.msra.mxu1 %v258_v15 }
  0xac   :  { %461 = vmatprep.subr.mxu0 %v243_v17  ;;  %v257_v17 = vld [vmem:[#allocation5 + $0x2f8] sm:$0xff]  ;;  %v4264_v15 = vld [vmem:[#allocation7 + $0x30] sm:$0xff] }
  0xad   :  { %462 = vmatpush1.msra.mxu0 %v242_v18  ;;  %v690_v18 = vld [vmem:[#allocation7 + $0x2d8] sm:$0xff]  ;;  %528 = vmatprep.subr.mxu1 %v257_v17  ;;  %v4267_v17 = vld [vmem:[#allocation7 + $0x8] sm:$0xff] }
  0xae   :  { %463 = vmatprep.subr.mxu0 %v237_v19  ;;  %8037 = vst [vmem:[#allocation12_spill] sm:$0xff] %v4267_v17 }
  0xaf   :  { %464 = vmatpush1.msra.mxu0 %v236_v20 }
  0xb0   :  { %465 = vmatprep.subr.mxu0 %v231_v21  ;;  %v256_v21 = vld [vmem:[#allocation5 + $0x2f0] sm:$0xff] }
  0xb1   :  { %466 = vmatpush1.msra.mxu0 %v230_v22  ;;  %v689_v22 = vld [vmem:[#allocation7 + $0x2d0] sm:$0xff] }
  0xb2   :  { %467 = vmatprep.subr.mxu0 %v225_v23  ;;  %v251_v23 = vld [vmem:[#allocation5 + $0x2c8] sm:$0xff] }
  0xb3   :  { %468 = vmatpush1.msra.mxu0 %v224_v24  ;;  %v684_v24 = vld [vmem:[#allocation7 + $0x2a8] sm:$0xff] }
  0xb4   :  { %469 = vmatprep.subr.mxu0 %v219_v1  ;;  %v250_v1 = vld [vmem:[#allocation5 + $0x2c0] sm:$0xff] }
  0xb5   :  { %470 = vmatpush1.msra.mxu0 %v218_v25  ;;  %v683_v25 = vld [vmem:[#allocation7 + $0x2a0] sm:$0xff] }
  0xb6   :  { %471 = vmatprep.subr.mxu0 %v213_v26  ;;  %v245_v26 = vld [vmem:[#allocation5 + $0x298] sm:$0xff] }
  0xb7   :  { %472 = vmatpush1.msra.mxu0 %v212_v27  ;;  %v678_v27 = vld [vmem:[#allocation7 + $0x278] sm:$0xff] }
  0xb8   :  { %473 = vmatprep.subr.mxu0 %v207_v28  ;;  %v244_v28 = vld [vmem:[#allocation5 + $0x290] sm:$0xff] }
  0xb9   :  { %474 = vmatpush1.msra.mxu0 %v206_v29  ;;  %v677_v29 = vld [vmem:[#allocation7 + $0x270] sm:$0xff] }
  0xba   :  { %475 = vmatprep.subr.mxu0 %v201_v30  ;;  %v239_v30 = vld [vmem:[#allocation5 + $0x268] sm:$0xff] }
  0xbb   :  { %476 = vmatpush1.msra.mxu0 %v200_v31  ;;  %v672_v31 = vld [vmem:[#allocation7 + $0x248] sm:$0xff] }
  0xbc   :  { %477 = vmatprep.subr.mxu0 %v195_v32  ;;  %v238_v32 = vld [vmem:[#allocation5 + $0x260] sm:$0xff] }
  0xbd   :  { %478 = vmatpush1.msra.mxu0 %v194_v33  ;;  %v671_v33 = vld [vmem:[#allocation7 + $0x240] sm:$0xff] }
  0xbe   :  { %479 = vmatprep.subr.mxu0 %v189_v34  ;;  %v233_v34 = vld [vmem:[#allocation5 + $0x238] sm:$0xff] }
  0xbf   :  { %480 = vmatpush1.msra.mxu0 %v188_v35  ;;  %v4203_v35 = vld [vmem:[#allocation7 + $0x218] sm:$0xff] }
  0xc0   :  { %481 = vmatprep.subr.mxu0 %v183_v36  ;;  %v232_v36 = vld [vmem:[#allocation5 + $0x230] sm:$0xff] }
  0xc1   :  { %482 = vmatpush1.msra.mxu0 %v182_v37  ;;  %v4205_v37 = vld [vmem:[#allocation7 + $0x210] sm:$0xff] }
  0xc2   :  { %483 = vmatprep.subr.mxu0 %v177_v38  ;;  %v227_v38 = vld [vmem:[#allocation5 + $0x208] sm:$0xff] }
  0xc3   :  { %484 = vmatpush1.msra.mxu0 %v176_v39  ;;  %v4207_v39 = vld [vmem:[#allocation7 + $0x1e8] sm:$0xff] }
  0xc4   :  { %485 = vmatprep.subr.mxu0 %v171_v40  ;;  %v226_v40 = vld [vmem:[#allocation5 + $0x200] sm:$0xff] }
  0xc5   :  { %486 = vmatpush1.msra.mxu0 %v170_v41  ;;  %v4210_v41 = vld [vmem:[#allocation7 + $0x1e0] sm:$0xff] }
  0xc6   :  { %487 = vmatprep.subr.mxu0 %v165_v42  ;;  %v221_v42 = vld [vmem:[#allocation5 + $0x1d8] sm:$0xff] }
  0xc7   :  { %488 = vmatpush1.msra.mxu0 %v164_v43  ;;  %v4213_v43 = vld [vmem:[#allocation7 + $0x1b8] sm:$0xff] }
  0xc8   :  { %489 = vmatprep.subr.mxu0 %v351_v44  ;;  %v220_v44 = vld [vmem:[#allocation5 + $0x1d0] sm:$0xff] }
  0xc9   :  { %490 = vmatpush2.msra.mxu0 %v350_v45  ;;  %v4216_v45 = vld [vmem:[#allocation7 + $0x1b0] sm:$0xff] }
  0xca   :  { %491 = vmatprep.subr.mxu0 %v345_v46  ;;  %v215_v46 = vld [vmem:[#allocation5 + $0x1a8] sm:$0xff] }
  0xcb   :  { %492 = vmatpush2.msra.mxu0 %v344_v47  ;;  %v4219_v47 = vld [vmem:[#allocation7 + $0x188] sm:$0xff] }
  0xcc   :  { %493 = vmatprep.subr.mxu0 %v339_v48  ;;  %v214_v48 = vld [vmem:[#allocation5 + $0x1a0] sm:$0xff] }
  0xcd   :  { %494 = vmatpush2.msra.mxu0 %v338_v49  ;;  %v4222_v49 = vld [vmem:[#allocation7 + $0x180] sm:$0xff] }
  0xce   :  { %495 = vmatprep.subr.mxu0 %v333_v50  ;;  %v209_v50 = vld [vmem:[#allocation5 + $0x178] sm:$0xff] }
  0xcf   :  { %496 = vmatpush2.msra.mxu0 %v332_v51  ;;  %v4225_v51 = vld [vmem:[#allocation7 + $0x158] sm:$0xff] }
  0xd0   :  { %497 = vmatprep.subr.mxu0 %v327_v52  ;;  %v208_v52 = vld [vmem:[#allocation5 + $0x170] sm:$0xff] }
  0xd1   :  { %498 = vmatpush2.msra.mxu0 %v326_v53  ;;  %v4228_v53 = vld [vmem:[#allocation7 + $0x150] sm:$0xff] }
  0xd2   :  { %499 = vmatprep.subr.mxu0 %v321_v54  ;;  %v203_v54 = vld [vmem:[#allocation5 + $0x148] sm:$0xff] }
  0xd3   :  { %500 = vmatpush2.msra.mxu0 %v320_v55  ;;  %v4231_v55 = vld [vmem:[#allocation7 + $0x128] sm:$0xff] }
  0xd4   :  { %501 = vmatprep.subr.mxu0 %v315_v56  ;;  %v202_v56 = vld [vmem:[#allocation5 + $0x140] sm:$0xff] }
  0xd5   :  { %502 = vmatpush2.msra.mxu0 %v314_v57  ;;  %v4234_v57 = vld [vmem:[#allocation7 + $0x120] sm:$0xff] }
  0xd6   :  { %503 = vmatprep.subr.mxu0 %v309_v58  ;;  %v197_v58 = vld [vmem:[#allocation5 + $0x118] sm:$0xff] }
  0xd7   :  { %504 = vmatpush2.msra.mxu0 %v308_v59  ;;  %v4237_v59 = vld [vmem:[#allocation7 + $0xf8] sm:$0xff] }
  0xd8   :  { %505 = vmatprep.subr.mxu0 %v303_v60  ;;  %v196_v60 = vld [vmem:[#allocation5 + $0x110] sm:$0xff] }
  0xd9   :  { %506 = vmatpush2.msra.mxu0 %v302_v61  ;;  %v4240_v61 = vld [vmem:[#allocation7 + $0xf0] sm:$0xff] }
  0xda   :  { %507 = vmatprep.subr.mxu0 %v297_v62  ;;  %v191_v62 = vld [vmem:[#allocation5 + $0xe8] sm:$0xff] }
  0xdb   :  { %508 = vmatpush2.msra.mxu0 %v296_v63  ;;  %v4243_v63 = vld [vmem:[#allocation7 + $0xc8] sm:$0xff] }
  0xdc   :  { %509 = vmatprep.subr.mxu0 %v291_v0  ;;  %v190_v0 = vld [vmem:[#allocation5 + $0xe0] sm:$0xff] }
  0xdd   :  { %510 = vmatpush2.msra.mxu0 %v290_v2  ;;  %v4246_v2 = vld [vmem:[#allocation7 + $0xc0] sm:$0xff] }
  0xde   :  { %511 = vmatprep.subr.mxu0 %v285_v3  ;;  %v185_v3 = vld [vmem:[#allocation5 + $0xb8] sm:$0xff] }
  0xdf   :  { %512 = vmatpush2.msra.mxu0 %v284_v4  ;;  %v4249_v4 = vld [vmem:[#allocation7 + $0x98] sm:$0xff] }
  0xe0   :  { %513 = vmatprep.subr.mxu0 %v279_v5  ;;  %v184_v5 = vld [vmem:[#allocation5 + $0xb0] sm:$0xff] }
  0xe1   :  { %514 = vmatpush2.msra.mxu0 %v278_v6  ;;  %v4252_v6 = vld [vmem:[#allocation7 + $0x90] sm:$0xff] }
  0xe2   :  { %515 = vmatprep.subr.mxu0 %v273_v7  ;;  %v179_v7 = vld [vmem:[#allocation5 + $0x88] sm:$0xff] }
  0xe3   :  { %516 = vmatpush2.msra.mxu0 %v272_v8  ;;  %v4255_v8 = vld [vmem:[#allocation7 + $0x68] sm:$0xff] }
  0xe4   :  { %517 = vmatprep.subr.mxu0 %v267_v9  ;;  %v178_v9 = vld [vmem:[#allocation5 + $0x80] sm:$0xff] }
  0xe5   :  { %518 = vmatpush2.msra.mxu0 %v266_v12  ;;  %v173_v12 = vld [vmem:[#allocation5 + $0x58] sm:$0xff] }
  0xe6   :  { %519 = vmatprep.subr.mxu0 %v261_v14  ;;  %v172_v14 = vld [vmem:[#allocation5 + $0x50] sm:$0xff] }
  0xe7   :  { %520 = vmatpush2.msra.mxu0 %v260_v16  ;;  %v167_v16 = vld [vmem:[#allocation5 + $0x28] sm:$0xff] }
  0xe8   :  { %835 = vmatprep.subr.mxu0 %v690_v18  ;;  %v166_v18 = vld [vmem:[#allocation5 + $0x20] sm:$0xff] }
 0x168   :  { %v4199_v19 = vpop.f32.mrf.mxu0 }
 0x16a   :  { %v159_v20 = vpop.f32.mrf.mxu0 }
 0x16b   :  { %450 = vmatprep.mubr.f32.mxu1 %v159_v20  ;;  %521 = vmatprep.mubr.f32.mxu0 %v159_v20 }
 0x16c   :  { %451 = vmatmul.mubr.f32.vlgmr.msra.gmra.mxu1 %v4199_v19  ;;  %522 = vmatmul.mubr.f32.vlgmr.msra.gmra.mxu0 %v4199_v19 }
 0x16d   :  { %529 = vmatpush1.msra.mxu1 %v256_v21  ;;  %836 = vmatpush1.msra.mxu0 %v689_v22  ;;  %v353_v21 = vld [vmem:[#allocation5 + $0x5f8] sm:$0xff] }
 0x16e   :  { %530 = vmatprep.subr.mxu1 %v251_v23  ;;  %592 = vmatprep.mubr.f32.mxu1 %v159_v20  ;;  %v4270_v20 = vld [vmem:[#allocation7] sm:$0xff]  ;;  %v4273_v22 = vld [vmem:[#allocation7 + $0x5d8] sm:$0xff]  ;;  %v352_v23 = vld [vmem:[#allocation5 + $0x5f0] sm:$0xff] }
 0x16f   :  { %837 = vmatprep.subr.mxu0 %v684_v24  ;;  %531 = vmatpush1.msra.mxu1 %v250_v1  ;;  %8038 = vst [vmem:[#allocation13_spill] sm:$0xff] %v4270_v20  ;;  %8039 = vst [vmem:[#allocation14_spill] sm:$0xff] %v4273_v22  ;;  %v4276_v24 = vld [vmem:[#allocation7 + $0x5d0] sm:$0xff]  ;;  %v347_v1 = vld [vmem:[#allocation5 + $0x5c8] sm:$0xff] }
 0x170   :  { %838 = vmatpush1.msra.mxu0 %v683_v25  ;;  %532 = vmatprep.subr.mxu1 %v245_v26  ;;  %8040 = vst [vmem:[#allocation15_spill] sm:$0xff] %v4276_v24  ;;  %v4279_v25 = vld [vmem:[#allocation7 + $0x5a8] sm:$0xff]  ;;  %v346_v26 = vld [vmem:[#allocation5 + $0x5c0] sm:$0xff] }
 0x171   :  { %839 = vmatprep.subr.mxu0 %v678_v27  ;;  %533 = vmatpush1.msra.mxu1 %v244_v28  ;;  %8041 = vst [vmem:[#allocation16_spill] sm:$0xff] %v4279_v25  ;;  %v4282_v27 = vld [vmem:[#allocation7 + $0x5a0] sm:$0xff]  ;;  %v341_v28 = vld [vmem:[#allocation5 + $0x598] sm:$0xff] }
 0x172   :  { %840 = vmatpush1.msra.mxu0 %v677_v29  ;;  %534 = vmatprep.subr.mxu1 %v239_v30  ;;  %8042 = vst [vmem:[#allocation17_spill] sm:$0xff] %v4282_v27  ;;  %v4285_v29 = vld [vmem:[#allocation7 + $0x578] sm:$0xff]  ;;  %v340_v30 = vld [vmem:[#allocation5 + $0x590] sm:$0xff] }
 0x173   :  { %841 = vmatprep.subr.mxu0 %v672_v31  ;;  %535 = vmatpush1.msra.mxu1 %v238_v32  ;;  %8043 = vst [vmem:[#allocation18_spill] sm:$0xff] %v4285_v29  ;;  %v4288_v31 = vld [vmem:[#allocation7 + $0x570] sm:$0xff]  ;;  %v335_v32 = vld [vmem:[#allocation5 + $0x568] sm:$0xff] }
 0x174   :  { %842 = vmatpush1.msra.mxu0 %v671_v33  ;;  %536 = vmatprep.subr.mxu1 %v233_v34  ;;  %8044 = vst [vmem:[#allocation19_spill] sm:$0xff] %v4288_v31  ;;  %v4291_v33 = vld [vmem:[#allocation7 + $0x548] sm:$0xff]  ;;  %v334_v34 = vld [vmem:[#allocation5 + $0x560] sm:$0xff] }
 0x175   :  { %843 = vmatprep.subr.mxu0 %v4203_v35  ;;  %537 = vmatpush1.msra.mxu1 %v232_v36  ;;  %8045 = vst [vmem:[#allocation20_spill] sm:$0xff] %v4291_v33  ;;  %v4294_v36 = vld [vmem:[#allocation7 + $0x540] sm:$0xff] }
 0x176   :  { %844 = vmatpush1.msra.mxu0 %v4205_v37  ;;  %538 = vmatprep.subr.mxu1 %v227_v38  ;;  %8046 = vst [vmem:[#allocation21_spill] sm:$0xff] %v4294_v36  ;;  %v329_v38 = vld [vmem:[#allocation5 + $0x538] sm:$0xff] }
 0x177   :  { %845 = vmatprep.subr.mxu0 %v4207_v39  ;;  %539 = vmatpush1.msra.mxu1 %v226_v40  ;;  %v4297_v40 = vld [vmem:[#allocation7 + $0x518] sm:$0xff] }
 0x178   :  { %846 = vmatpush1.msra.mxu0 %v4210_v41  ;;  %540 = vmatprep.subr.mxu1 %v221_v42  ;;  %8047 = vst [vmem:[#allocation22_spill] sm:$0xff] %v4297_v40  ;;  %v328_v42 = vld [vmem:[#allocation5 + $0x530] sm:$0xff] }
 0x179   :  { %847 = vmatprep.subr.mxu0 %v4213_v43  ;;  %541 = vmatpush1.msra.mxu1 %v220_v44  ;;  %v4300_v44 = vld [vmem:[#allocation7 + $0x510] sm:$0xff] }
 0x17a   :  { %848 = vmatpush1.msra.mxu0 %v4216_v45  ;;  %542 = vmatprep.subr.mxu1 %v215_v46  ;;  %8048 = vst [vmem:[#allocation23_spill] sm:$0xff] %v4300_v44  ;;  %v323_v46 = vld [vmem:[#allocation5 + $0x508] sm:$0xff] }
 0x17b   :  { %849 = vmatprep.subr.mxu0 %v4219_v47  ;;  %543 = vmatpush1.msra.mxu1 %v214_v48  ;;  %v4303_v48 = vld [vmem:[#allocation7 + $0x4e8] sm:$0xff] }
 0x17c   :  { %850 = vmatpush1.msra.mxu0 %v4222_v49  ;;  %544 = vmatprep.subr.mxu1 %v209_v50  ;;  %8049 = vst [vmem:[#allocation24_spill] sm:$0xff] %v4303_v48  ;;  %v322_v50 = vld [vmem:[#allocation5 + $0x500] sm:$0xff] }
 0x17d   :  { %851 = vmatprep.subr.mxu0 %v4225_v51  ;;  %545 = vmatpush1.msra.mxu1 %v208_v52  ;;  %v4306_v52 = vld [vmem:[#allocation7 + $0x4e0] sm:$0xff] }
 0x17e   :  { %852 = vmatpush1.msra.mxu0 %v4228_v53  ;;  %546 = vmatprep.subr.mxu1 %v203_v54  ;;  %8050 = vst [vmem:[#allocation25_spill] sm:$0xff] %v4306_v52  ;;  %v317_v54 = vld [vmem:[#allocation5 + $0x4d8] sm:$0xff] }
 0x17f   :  { %853 = vmatprep.subr.mxu0 %v4231_v55  ;;  %547 = vmatpush1.msra.mxu1 %v202_v56  ;;  %v4309_v56 = vld [vmem:[#allocation7 + $0x4b8] sm:$0xff] }
 0x180   :  { %854 = vmatpush1.msra.mxu0 %v4234_v57  ;;  %548 = vmatprep.subr.mxu1 %v197_v58  ;;  %8051 = vst [vmem:[#allocation26_spill] sm:$0xff] %v4309_v56  ;;  %v316_v58 = vld [vmem:[#allocation5 + $0x4d0] sm:$0xff] }
 0x181   :  { %855 = vmatprep.subr.mxu0 %v4237_v59  ;;  %549 = vmatpush1.msra.mxu1 %v196_v60  ;;  %v4312_v60 = vld [vmem:[#allocation7 + $0x4b0] sm:$0xff] }
 0x182   :  { %856 = vmatpush1.msra.mxu0 %v4240_v61  ;;  %550 = vmatprep.subr.mxu1 %v191_v62  ;;  %8052 = vst [vmem:[#allocation27_spill] sm:$0xff] %v4312_v60  ;;  %v311_v62 = vld [vmem:[#allocation5 + $0x4a8] sm:$0xff] }
 0x183   :  { %857 = vmatprep.subr.mxu0 %v4243_v63  ;;  %551 = vmatpush1.msra.mxu1 %v190_v0  ;;  %v4315_v0 = vld [vmem:[#allocation7 + $0x488] sm:$0xff] }
 0x184   :  { %858 = vmatpush1.msra.mxu0 %v4246_v2  ;;  %552 = vmatprep.subr.mxu1 %v185_v3  ;;  %8053 = vst [vmem:[#allocation28_spill] sm:$0xff] %v4315_v0  ;;  %v310_v3 = vld [vmem:[#allocation5 + $0x4a0] sm:$0xff] }
 0x185   :  { %859 = vmatprep.subr.mxu0 %v4249_v4  ;;  %553 = vmatpush1.msra.mxu1 %v184_v5  ;;  %v4318_v5 = vld [vmem:[#allocation7 + $0x480] sm:$0xff] }
 0x186   :  { %860 = vmatpush1.msra.mxu0 %v4252_v6  ;;  %554 = vmatprep.subr.mxu1 %v179_v7  ;;  %8054 = vst [vmem:[#allocation29_spill] sm:$0xff] %v4318_v5  ;;  %v305_v7 = vld [vmem:[#allocation5 + $0x478] sm:$0xff] }
 0x187   :  { %861 = vmatprep.subr.mxu0 %v4255_v8  ;;  %555 = vmatpush1.msra.mxu1 %v178_v9  ;;  %v4321_v9 = vld [vmem:[#allocation7 + $0x458] sm:$0xff] }
 0x188   :  { %862 = vmatpush1.msra.mxu0 %v4258_v11  ;;  %556 = vmatprep.subr.mxu1 %v173_v12  ;;  %8055 = vst [vmem:[#allocation30_spill] sm:$0xff] %v4321_v9  ;;  %v304_v12 = vld [vmem:[#allocation5 + $0x470] sm:$0xff] }
 0x189   :  { %863 = vmatprep.subr.mxu0 %v4261_v13  ;;  %557 = vmatpush1.msra.mxu1 %v172_v14  ;;  %v4324_v14 = vld [vmem:[#allocation7 + $0x450] sm:$0xff] }
 0x18a   :  { %864 = vmatpush1.msra.mxu0 %v4264_v15  ;;  %558 = vmatprep.subr.mxu1 %v167_v16  ;;  %8056 = vst [vmem:[#allocation31_spill] sm:$0xff] %v4324_v14  ;;  %v299_v16 = vld [vmem:[#allocation5 + $0x448] sm:$0xff] }
 0x18b   :  { %865 = vmatprep.subr.mxu0 %v4267_v17  ;;  %559 = vmatpush1.msra.mxu1 %v166_v18  ;;  %v4327_v18 = vld [vmem:[#allocation7 + $0x428] sm:$0xff]  ;;  %v4588_v17 = vld [vmem:[#allocation7 + $0x5f0] sm:$0xff] }
 0x18c   :  { %866 = vmatpush1.msra.mxu0 %v4270_v20  ;;  %560 = vmatprep.subr.mxu1 %v353_v21  ;;  %8057 = vst [vmem:[#allocation32_spill] sm:$0xff] %v4327_v18  ;;  %v298_v21 = vld [vmem:[#allocation5 + $0x440] sm:$0xff]  ;;  %v4582_v20 = vld [vmem:[#allocation7 + $0x5f8] sm:$0xff]  ;;  %8112 = vst [vmem:[#allocation87_spill] sm:$0xff] %v4588_v17 }
 0x18d   :  { %867 = vmatprep.subr.mxu0 %v4273_v22  ;;  %561 = vmatpush2.msra.mxu1 %v352_v23  ;;  %v4330_v23 = vld [vmem:[#allocation7 + $0x420] sm:$0xff]  ;;  %8110 = vst [vmem:[#allocation85_spill] sm:$0xff] %v4582_v20 }
 0x18e   :  { %868 = vmatpush2.msra.mxu0 %v4276_v24  ;;  %562 = vmatprep.subr.mxu1 %v347_v1  ;;  %8058 = vst [vmem:[#allocation33_spill] sm:$0xff] %v4330_v23  ;;  %v293_v1 = vld [vmem:[#allocation5 + $0x418] sm:$0xff]  ;;  %v4570_v24 = vld [vmem:[#allocation7 + $0x28] sm:$0xff]  ;;  %v4576_v22 = vld [vmem:[#allocation7 + $0x20] sm:$0xff] }
 0x18f   :  { %869 = vmatprep.subr.mxu0 %v4279_v25  ;;  %563 = vmatpush2.msra.mxu1 %v346_v26  ;;  %v4333_v26 = vld [vmem:[#allocation7 + $0x3f8] sm:$0xff]  ;;  %v4564_v25 = vld [vmem:[#allocation7 + $0x50] sm:$0xff]  ;;  %8106 = vst [vmem:[#allocation81_spill] sm:$0xff] %v4570_v24  ;;  %8108 = vst [vmem:[#allocation83_spill] sm:$0xff] %v4576_v22 }
 0x190   :  { %870 = vmatpush2.msra.mxu0 %v4282_v27  ;;  %564 = vmatprep.subr.mxu1 %v341_v28  ;;  %8059 = vst [vmem:[#allocation34_spill] sm:$0xff] %v4333_v26  ;;  %v292_v28 = vld [vmem:[#allocation5 + $0x410] sm:$0xff]  ;;  %v4558_v27 = vld [vmem:[#allocation7 + $0x58] sm:$0xff]  ;;  %8104 = vst [vmem:[#allocation79_spill] sm:$0xff] %v4564_v25 }
 0x191   :  { %871 = vmatprep.subr.mxu0 %v4285_v29  ;;  %565 = vmatpush2.msra.mxu1 %v340_v30  ;;  %v4336_v30 = vld [vmem:[#allocation7 + $0x3f0] sm:$0xff]  ;;  %v4552_v29 = vld [vmem:[#allocation7 + $0x80] sm:$0xff]  ;;  %8102 = vst [vmem:[#allocation77_spill] sm:$0xff] %v4558_v27 }
 0x192   :  { %872 = vmatpush2.msra.mxu0 %v4288_v31  ;;  %566 = vmatprep.subr.mxu1 %v335_v32  ;;  %8060 = vst [vmem:[#allocation35_spill] sm:$0xff] %v4336_v30  ;;  %v287_v32 = vld [vmem:[#allocation5 + $0x3e8] sm:$0xff]  ;;  %8101 = vst [vmem:[#allocation76_spill] sm:$0xff] %v4552_v29 }
 0x193   :  { %873 = vmatprep.subr.mxu0 %v4291_v33  ;;  %567 = vmatpush2.msra.mxu1 %v334_v34  ;;  %v4339_v34 = vshrl.u32 %v7513_v10, 7  ;;  %v263_v10 = vld [vmem:[#allocation5 + $0x328] sm:$0xff]  ;;  %v4540_v33 = vld [vmem:[#allocation7 + $0xb0] sm:$0xff] }
 0x194   :  { %874 = vmatpush2.msra.mxu0 %v4294_v36  ;;  %568 = vmatprep.subr.mxu1 %v329_v38  ;;  %v4342_v38 = vld [vmem:[#allocation7 + $0x3c8] sm:$0xff]  ;;  %v4534_v36 = vld [vmem:[#allocation7 + $0xb8] sm:$0xff]  ;;  %8099 = vst [vmem:[#allocation74_spill] sm:$0xff] %v4540_v33 }
 0x195   :  { %875 = vmatprep.subr.mxu0 %v4297_v40  ;;  %569 = vmatpush2.msra.mxu1 %v328_v42  ;;  %8061 = vst [vmem:[#allocation36_spill] sm:$0xff] %v4339_v34  ;;  %8062 = vst [vmem:[#allocation37_spill] sm:$0xff] %v4342_v38  ;;  %v286_v42 = vld [vmem:[#allocation5 + $0x3e0] sm:$0xff]  ;;  %v4546_v31 = vld [vmem:[#allocation7 + $0x88] sm:$0xff] }
 0x196   :  { %876 = vmatpush2.msra.mxu0 %v4300_v44  ;;  %570 = vmatprep.subr.mxu1 %v323_v46  ;;  %v4345_v46 = vld [vmem:[#allocation7 + $0x3c0] sm:$0xff]  ;;  %v4522_v44 = vld [vmem:[#allocation7 + $0xe8] sm:$0xff]  ;;  %8098 = vst [vmem:[#allocation73_spill] sm:$0xff] %v4534_v36  ;;  %8100 = vst [vmem:[#allocation75_spill] sm:$0xff] %v4546_v31 }
 0x197   :  { %877 = vmatprep.subr.mxu0 %v4303_v48  ;;  %571 = vmatpush2.msra.mxu1 %v322_v50  ;;  %8063 = vst [vmem:[#allocation38_spill] sm:$0xff] %v4345_v46  ;;  %v281_v50 = vld [vmem:[#allocation5 + $0x3b8] sm:$0xff]  ;;  %v4516_v48 = vld [vmem:[#allocation7 + $0x110] sm:$0xff]  ;;  %8096 = vst [vmem:[#allocation71_spill] sm:$0xff] %v4522_v44 }
 0x198   :  { %878 = vmatpush2.msra.mxu0 %v4306_v52  ;;  %572 = vmatprep.subr.mxu1 %v317_v54  ;;  %v4348_v54 = vld [vmem:[#allocation7 + $0x398] sm:$0xff]  ;;  %8095 = vst [vmem:[#allocation70_spill] sm:$0xff] %v4516_v48  ;;  %v4528_v40 = vld [vmem:[#allocation7 + $0xe0] sm:$0xff] }
 0x199   :  { %879 = vmatprep.subr.mxu0 %v4309_v56  ;;  %573 = vmatpush2.msra.mxu1 %v316_v58  ;;  %8064 = vst [vmem:[#allocation39_spill] sm:$0xff] %v4348_v54  ;;  %v280_v58 = vld [vmem:[#allocation5 + $0x3b0] sm:$0xff]  ;;  %v4504_v56 = vld [vmem:[#allocation7 + $0x140] sm:$0xff]  ;;  %v4510_v52 = vld [vmem:[#allocation7 + $0x118] sm:$0xff] }
 0x19a   :  { %880 = vmatpush2.msra.mxu0 %v4312_v60  ;;  %574 = vmatprep.subr.mxu1 %v311_v62  ;;  %v4351_v62 = vld [vmem:[#allocation7 + $0x390] sm:$0xff]  ;;  %v4498_v60 = vld [vmem:[#allocation7 + $0x148] sm:$0xff]  ;;  %8093 = vst [vmem:[#allocation68_spill] sm:$0xff] %v4504_v56  ;;  %8094 = vst [vmem:[#allocation69_spill] sm:$0xff] %v4510_v52 }
 0x19b   :  { %881 = vmatprep.subr.mxu0 %v4315_v0  ;;  %575 = vmatpush2.msra.mxu1 %v310_v3  ;;  %8065 = vst [vmem:[#allocation40_spill] sm:$0xff] %v4351_v62  ;;  %v275_v3 = vld [vmem:[#allocation5 + $0x388] sm:$0xff]  ;;  %v4492_v0 = vld [vmem:[#allocation7 + $0x170] sm:$0xff]  ;;  %8092 = vst [vmem:[#allocation67_spill] sm:$0xff] %v4498_v60 }
 0x19c   :  { %882 = vmatpush2.msra.mxu0 %v4318_v5  ;;  %576 = vmatprep.subr.mxu1 %v305_v7  ;;  %v4354_v7 = vld [vmem:[#allocation7 + $0x368] sm:$0xff]  ;;  %v4486_v5 = vld [vmem:[#allocation7 + $0x178] sm:$0xff]  ;;  %8091 = vst [vmem:[#allocation66_spill] sm:$0xff] %v4492_v0  ;;  %8097 = vst [vmem:[#allocation72_spill] sm:$0xff] %v4528_v40 }
 0x19d   :  { %883 = vmatprep.subr.mxu0 %v4321_v9  ;;  %577 = vmatpush2.msra.mxu1 %v304_v12  ;;  %8066 = vst [vmem:[#allocation41_spill] sm:$0xff] %v4354_v7  ;;  %v274_v12 = vld [vmem:[#allocation5 + $0x380] sm:$0xff]  ;;  %8090 = vst [vmem:[#allocation65_spill] sm:$0xff] %v4486_v5 }
 0x19e   :  { %884 = vmatpush2.msra.mxu0 %v4324_v14  ;;  %578 = vmatprep.subr.mxu1 %v299_v16  ;;  %v4357_v16 = vsub.s32 1, %v4339_v34  ;;  %v4474_v14 = vld [vmem:[#allocation7 + $0x1a8] sm:$0xff]  ;;  %v4480_v9 = vld [vmem:[#allocation7 + $0x1a0] sm:$0xff] }
 0x19f   :  { %885 = vmatprep.subr.mxu0 %v4327_v18  ;;  %579 = vmatpush2.msra.mxu1 %v298_v21  ;;  %v4360_v21 = vld [vmem:[#allocation7 + $0x360] sm:$0xff]  ;;  %v4468_v18 = vld [vmem:[#allocation7 + $0x1d0] sm:$0xff]  ;;  %8088 = vst [vmem:[#allocation63_spill] sm:$0xff] %v4474_v14  ;;  %8089 = vst [vmem:[#allocation64_spill] sm:$0xff] %v4480_v9 }
 0x1a0   :  { %886 = vmatpush2.msra.mxu0 %v4330_v23  ;;  %580 = vmatprep.subr.mxu1 %v293_v1  ;;  %8067 = vst [vmem:[#allocation42_spill] sm:$0xff] %v4357_v16  ;;  %8068 = vst [vmem:[#allocation43_spill] sm:$0xff] %v4360_v21  ;;  %v269_v1 = vld [vmem:[#allocation5 + $0x358] sm:$0xff] }
 0x1a1   :  { %887 = vmatprep.subr.mxu0 %v4333_v26  ;;  %581 = vmatpush2.msra.mxu1 %v292_v28  ;;  %v792_v28 = vld [vmem:[%s7506_s2] sm:$0x3]  ;;  %v4462_v23 = vld [vmem:[#allocation7 + $0x1d8] sm:$0xff]  ;;  %8087 = vst [vmem:[#allocation62_spill] sm:$0xff] %v4468_v18 }
 0x1a2   :  { %888 = vmatpush2.msra.mxu0 %v4336_v30  ;;  %582 = vmatprep.subr.mxu1 %v287_v32  ;;  %v4366_v32 = vsub.s32 0, %v4339_v34  ;;  %v4378_v34 = vrot.slane %v792_v28, %v4357_v16  ;;  %v4396_v16 = vld [vmem:[#allocation7 + $0x2f0] sm:$0xff]  ;;  %v4450_v30 = vld [vmem:[#allocation7 + $0x208] sm:$0xff]  ;;  %v4456_v26 = vld [vmem:[#allocation7 + $0x200] sm:$0xff]  ;;  %8086 = vst [vmem:[#allocation61_spill] sm:$0xff] %v4462_v23 }
 0x1a3   :  { %889 = vmatprep.subr.mxu0 %v4342_v38  ;;  %583 = vmatpush2.msra.mxu1 %v286_v42  ;;  %v4369_v42 = vld [vmem:[#allocation7 + $0x338] sm:$0xff]  ;;  %8075 = vst [vmem:[#allocation50_spill] sm:$0xff] %v4396_v16  ;;  %v4444_v38 = vld [vmem:[#allocation7 + $0x230] sm:$0xff]  ;;  %8084 = vst [vmem:[#allocation59_spill] sm:$0xff] %v4450_v30 }
 0x1a4   :  { %890 = vmatpush2.msra.mxu0 %v4345_v46  ;;  %584 = vmatprep.subr.mxu1 %v281_v50  ;;  %8069 = vst [vmem:[#allocation44_spill] sm:$0xff] %v4366_v32  ;;  %8070 = vst [vmem:[#allocation45_spill] sm:$0xff] %v4369_v42  ;;  %v268_v50 = vld [vmem:[#allocation5 + $0x350] sm:$0xff]  ;;  %v262_v46 = vld [vmem:[#allocation5 + $0x320] sm:$0xff] }
 0x1a5   :  { %891 = vmatprep.subr.mxu0 %v4348_v54  ;;  %585 = vmatpush2.msra.mxu1 %v280_v58  ;;  %v4372_v58 = vld [vmem:[#allocation7 + $0x330] sm:$0xff]  ;;  %v4375_v54 = vld [vmem:[#allocation7 + $0x308] sm:$0xff]  ;;  %8083 = vst [vmem:[#allocation58_spill] sm:$0xff] %v4444_v38  ;;  %8085 = vst [vmem:[#allocation60_spill] sm:$0xff] %v4456_v26 }
 0x1a6   :  { %892 = vmatpush2.msra.mxu0 %v4351_v62  ;;  %586 = vmatprep.subr.mxu1 %v275_v3  ;;  %8071 = vst [vmem:[#allocation46_spill] sm:$0xff] %v4372_v58  ;;  %8072 = vst [vmem:[#allocation47_spill] sm:$0xff] %v4375_v54  ;;  %v4381_v3 = vld [vmem:[#allocation7 + $0x300] sm:$0xff]  ;;  %v4438_v62 = vld [vmem:[#allocation7 + $0x238] sm:$0xff] }
 0x1a7   :  { %893 = vmatprep.subr.mxu0 %v4354_v7  ;;  %587 = vmatpush2.msra.mxu1 %v274_v12  ;;  %8073 = vst [vmem:[#allocation48_spill] sm:$0xff] %v4381_v3  ;;  %v4384_v7 = vrot.slane %v792_v28, %v4366_v32  ;;  %v4388_v12 = vld [vmem:[#allocation7 + $0x2e8] sm:$0xff]  ;;  %v4408_v32 = vld [vmem:[#allocation7 + $0x2c0] sm:$0xff]  ;;  %8082 = vst [vmem:[#allocation57_spill] sm:$0xff] %v4438_v62 }
 0x1a8   :  { %894 = vmatpush2.msra.mxu0 %v4360_v21  ;;  %588 = vmatprep.subr.mxu1 %v269_v1  ;;  %v4390_v1 = vld [vmem:[#allocation7 + $0x2f8] sm:$0xff]  ;;  %v4402_v28 = vld [vmem:[#allocation7 + $0x2c8] sm:$0xff]  ;;  %8077 = vst [vmem:[#allocation52_spill] sm:$0xff] %v4408_v32  ;;  %v4432_v21 = vld [vmem:[#allocation7 + $0x260] sm:$0xff] }
 0x1a9   :  { %895 = vmatprep.subr.mxu0 %v4369_v42  ;;  %589 = vmatpush2.msra.mxu1 %v268_v50  ;;  %8074 = vst [vmem:[#allocation49_spill] sm:$0xff] %v4390_v1  ;;  %v4394_v50 = vld [vmem:[#allocation7 + $0x2e0] sm:$0xff]  ;;  %8076 = vst [vmem:[#allocation51_spill] sm:$0xff] %v4402_v28  ;;  %v4426_v42 = vld [vmem:[#allocation7 + $0x268] sm:$0xff] }
 0x1aa   :  { %896 = vmatpush2.msra.mxu0 %v4372_v58  ;;  %590 = vmatprep.subr.mxu1 %v263_v10  ;;  %v4400_v10 = vld [vmem:[#allocation7 + $0x2b8] sm:$0xff]  ;;  %v4420_v58 = vld [vmem:[#allocation7 + $0x290] sm:$0xff]  ;;  %8080 = vst [vmem:[#allocation55_spill] sm:$0xff] %v4426_v42  ;;  %8081 = vst [vmem:[#allocation56_spill] sm:$0xff] %v4432_v21 }
 0x1ab   :  { %897 = vmatprep.subr.mxu0 %v4375_v54  ;;  %591 = vmatpush2.msra.mxu1 %v262_v46  ;;  %v4406_v46 = vld [vmem:[#allocation7 + $0x2b0] sm:$0xff]  ;;  %v4418_v54 = vld [vmem:[#allocation7 + $0x280] sm:$0xff]  ;;  %8079 = vst [vmem:[#allocation54_spill] sm:$0xff] %v4420_v58 }
 0x1ac   :  { %898 = vmatpush2.msra.mxu0 %v4381_v3  ;;  %899 = vmatprep.mubr.f32.mxu0 %v4378_v34  ;;  %v4412_v3 = vld [vmem:[#allocation7 + $0x288] sm:$0xff] }
 0x1ad   :  { %593 = vmatmul.mubr.f32.vlgmr.msra.gmra.mxu1 %v4199_v19  ;;  %900 = vmatmul.mubr.f32.vlgmr.msra.gmra.mxu0 %v4384_v7  ;;  %v4414_v19 = vld [vmem:[#allocation7 + $0x298] sm:$0xff] }
 0x1ae   :  { %906 = vmatprep.subr.mxu1 %v4388_v12  ;;  %977 = vmatprep.subr.mxu0 %v4390_v1  ;;  %8078 = vst [vmem:[#allocation53_spill] sm:$0xff] %v4414_v19  ;;  %v4424_v1 = vld [vmem:[#allocation7 + $0x258] sm:$0xff] }
 0x1af   :  { %907 = vmatpush1.msra.mxu1 %v4394_v50  ;;  %978 = vmatpush1.msra.mxu0 %v4396_v16  ;;  %v4430_v16 = vld [vmem:[#allocation7 + $0x250] sm:$0xff] }
 0x1b0   :  { %908 = vmatprep.subr.mxu1 %v4400_v10  ;;  %979 = vmatprep.subr.mxu0 %v4402_v28  ;;  %v4436_v28 = vld [vmem:[#allocation7 + $0x228] sm:$0xff] }
 0x1b1   :  { %909 = vmatpush1.msra.mxu1 %v4406_v46  ;;  %980 = vmatpush1.msra.mxu0 %v4408_v32  ;;  %v4442_v32 = vld [vmem:[#allocation7 + $0x220] sm:$0xff] }
 0x1b2   :  { %910 = vmatprep.subr.mxu1 %v4412_v3  ;;  %981 = vmatprep.subr.mxu0 %v4414_v19  ;;  %v4448_v19 = vld [vmem:[#allocation7 + $0x1f8] sm:$0xff] }
 0x1b3   :  { %911 = vmatpush1.msra.mxu1 %v4418_v54  ;;  %982 = vmatpush1.msra.mxu0 %v4420_v58  ;;  %v4454_v58 = vld [vmem:[#allocation7 + $0x1f0] sm:$0xff] }
 0x1b4   :  { %912 = vmatprep.subr.mxu1 %v4424_v1  ;;  %983 = vmatprep.subr.mxu0 %v4426_v42  ;;  %v4460_v42 = vld [vmem:[#allocation7 + $0x1c8] sm:$0xff] }
 0x1b5   :  { %913 = vmatpush1.msra.mxu1 %v4430_v16  ;;  %984 = vmatpush1.msra.mxu0 %v4432_v21  ;;  %v4466_v21 = vld [vmem:[#allocation7 + $0x1c0] sm:$0xff] }
 0x1b6   :  { %914 = vmatprep.subr.mxu1 %v4436_v28  ;;  %985 = vmatprep.subr.mxu0 %v4438_v62  ;;  %v4472_v62 = vld [vmem:[#allocation7 + $0x198] sm:$0xff] }
 0x1b7   :  { %915 = vmatpush1.msra.mxu1 %v4442_v32  ;;  %986 = vmatpush1.msra.mxu0 %v4444_v38  ;;  %v4478_v38 = vld [vmem:[#allocation7 + $0x190] sm:$0xff] }
 0x1b8   :  { %916 = vmatprep.subr.mxu1 %v4448_v19  ;;  %987 = vmatprep.subr.mxu0 %v4450_v30  ;;  %v4484_v30 = vld [vmem:[#allocation7 + $0x168] sm:$0xff] }
 0x1b9   :  { %917 = vmatpush1.msra.mxu1 %v4454_v58  ;;  %988 = vmatpush1.msra.mxu0 %v4456_v26  ;;  %v4490_v26 = vld [vmem:[#allocation7 + $0x160] sm:$0xff] }
 0x1ba   :  { %918 = vmatprep.subr.mxu1 %v4460_v42  ;;  %989 = vmatprep.subr.mxu0 %v4462_v23  ;;  %v4496_v23 = vld [vmem:[#allocation7 + $0x138] sm:$0xff] }
 0x1bb   :  { %919 = vmatpush1.msra.mxu1 %v4466_v21  ;;  %990 = vmatpush1.msra.mxu0 %v4468_v18  ;;  %v4502_v18 = vld [vmem:[#allocation7 + $0x130] sm:$0xff] }
 0x1bc   :  { %920 = vmatprep.subr.mxu1 %v4472_v62  ;;  %991 = vmatprep.subr.mxu0 %v4474_v14  ;;  %v4508_v14 = vld [vmem:[#allocation7 + $0x108] sm:$0xff] }
 0x1bd   :  { %921 = vmatpush1.msra.mxu1 %v4478_v38  ;;  %992 = vmatpush1.msra.mxu0 %v4480_v9  ;;  %v4514_v9 = vld [vmem:[#allocation7 + $0x100] sm:$0xff] }
 0x1be   :  { %922 = vmatprep.subr.mxu1 %v4484_v30  ;;  %993 = vmatprep.subr.mxu0 %v4486_v5  ;;  %v4520_v5 = vld [vmem:[#allocation7 + $0xd8] sm:$0xff] }
 0x1bf   :  { %923 = vmatpush1.msra.mxu1 %v4490_v26  ;;  %994 = vmatpush1.msra.mxu0 %v4492_v0  ;;  %v4526_v0 = vld [vmem:[#allocation7 + $0xd0] sm:$0xff] }
 0x1c0   :  { %924 = vmatprep.subr.mxu1 %v4496_v23  ;;  %995 = vmatprep.subr.mxu0 %v4498_v60  ;;  %v4532_v60 = vld [vmem:[#allocation7 + $0xa8] sm:$0xff] }
 0x1c1   :  { %925 = vmatpush1.msra.mxu1 %v4502_v18  ;;  %996 = vmatpush1.msra.mxu0 %v4504_v56  ;;  %v4538_v56 = vld [vmem:[#allocation7 + $0xa0] sm:$0xff] }
 0x1c2   :  { %926 = vmatprep.subr.mxu1 %v4508_v14  ;;  %997 = vmatprep.subr.mxu0 %v4510_v52  ;;  %v4544_v52 = vld [vmem:[#allocation7 + $0x78] sm:$0xff] }
 0x1c3   :  { %927 = vmatpush1.msra.mxu1 %v4514_v9  ;;  %998 = vmatpush1.msra.mxu0 %v4516_v48  ;;  %v4550_v48 = vld [vmem:[#allocation7 + $0x70] sm:$0xff] }
 0x1c4   :  { %928 = vmatprep.subr.mxu1 %v4520_v5  ;;  %999 = vmatprep.subr.mxu0 %v4522_v44  ;;  %v4556_v44 = vld [vmem:[#allocation7 + $0x48] sm:$0xff] }
 0x1c5   :  { %929 = vmatpush1.msra.mxu1 %v4526_v0  ;;  %1000 = vmatpush1.msra.mxu0 %v4528_v40  ;;  %v4562_v40 = vld [vmem:[#allocation7 + $0x40] sm:$0xff] }
 0x1c6   :  { %930 = vmatprep.subr.mxu1 %v4532_v60  ;;  %1001 = vmatprep.subr.mxu0 %v4534_v36  ;;  %8103 = vst [vmem:[#allocation78_spill] sm:$0xff] %v4562_v40  ;;  %v4568_v36 = vld [vmem:[#allocation7 + $0x18] sm:$0xff] }
 0x1c7   :  { %931 = vmatpush1.msra.mxu1 %v4538_v56  ;;  %1002 = vmatpush1.msra.mxu0 %v4540_v33  ;;  %8105 = vst [vmem:[#allocation80_spill] sm:$0xff] %v4568_v36  ;;  %v4574_v33 = vld [vmem:[#allocation7 + $0x10] sm:$0xff] }
 0x1c8   :  { %932 = vmatprep.subr.mxu1 %v4544_v52  ;;  %1003 = vmatprep.subr.mxu0 %v4546_v31  ;;  %8107 = vst [vmem:[#allocation82_spill] sm:$0xff] %v4574_v33  ;;  %v4580_v31 = vld [vmem:[#allocation7 + $0x5e8] sm:$0xff] }
 0x1c9   :  { %933 = vmatpush1.msra.mxu1 %v4550_v48  ;;  %1004 = vmatpush1.msra.mxu0 %v4552_v29  ;;  %8109 = vst [vmem:[#allocation84_spill] sm:$0xff] %v4580_v31  ;;  %v4586_v29 = vld [vmem:[#allocation7 + $0x5e0] sm:$0xff] }
 0x1ca   :  { %934 = vmatprep.subr.mxu1 %v4556_v44  ;;  %1005 = vmatprep.subr.mxu0 %v4558_v27  ;;  %8111 = vst [vmem:[#allocation86_spill] sm:$0xff] %v4586_v29  ;;  %v4592_v27 = vld [vmem:[#allocation7 + $0x5b8] sm:$0xff] }
 0x1cb   :  { %935 = vmatpush1.msra.mxu1 %v4562_v40  ;;  %1006 = vmatpush1.msra.mxu0 %v4564_v25  ;;  %8113 = vst [vmem:[#allocation88_spill] sm:$0xff] %v4592_v27  ;;  %v4594_v40 = vld [vmem:[#allocation7 + $0x5c8] sm:$0xff]  ;;  %v4598_v25 = vld [vmem:[#allocation7 + $0x5b0] sm:$0xff] }
 0x1cc   :  { %936 = vmatprep.subr.mxu1 %v4568_v36  ;;  %1007 = vmatprep.subr.mxu0 %v4570_v24  ;;  %8114 = vst [vmem:[#allocation89_spill] sm:$0xff] %v4594_v40  ;;  %8115 = vst [vmem:[#allocation90_spill] sm:$0xff] %v4598_v25  ;;  %v4600_v36 = vld [vmem:[#allocation7 + $0x5c0] sm:$0xff]  ;;  %v4604_v24 = vld [vmem:[#allocation7 + $0x588] sm:$0xff] }
 0x1cd   :  { %937 = vmatpush1.msra.mxu1 %v4574_v33  ;;  %1008 = vmatpush1.msra.mxu0 %v4576_v22  ;;  %8116 = vst [vmem:[#allocation91_spill] sm:$0xff] %v4600_v36  ;;  %8117 = vst [vmem:[#allocation92_spill] sm:$0xff] %v4604_v24  ;;  %v4606_v33 = vld [vmem:[#allocation7 + $0x598] sm:$0xff]  ;;  %v4610_v22 = vld [vmem:[#allocation7 + $0x580] sm:$0xff] }
 0x1ce   :  { %938 = vmatprep.subr.mxu1 %v4580_v31  ;;  %1009 = vmatprep.subr.mxu0 %v4582_v20  ;;  %8118 = vst [vmem:[#allocation93_spill] sm:$0xff] %v4606_v33  ;;  %8119 = vst [vmem:[#allocation94_spill] sm:$0xff] %v4610_v22  ;;  %v4612_v31 = vld [vmem:[#allocation7 + $0x590] sm:$0xff]  ;;  %v4616_v20 = vld [vmem:[#allocation7 + $0x558] sm:$0xff] }
 0x1cf   :  { %939 = vmatpush2.msra.mxu1 %v4586_v29  ;;  %1010 = vmatpush2.msra.mxu0 %v4588_v17  ;;  %8120 = vst [vmem:[#allocation95_spill] sm:$0xff] %v4612_v31  ;;  %8121 = vst [vmem:[#allocation96_spill] sm:$0xff] %v4616_v20  ;;  %v4618_v29 = vld [vmem:[#allocation7 + $0x568] sm:$0xff]  ;;  %v4622_v17 = vld [vmem:[#allocation7 + $0x550] sm:$0xff] }
 0x1d0   :  { %940 = vmatprep.subr.mxu1 %v4592_v27  ;;  %1011 = vmatprep.subr.mxu0 %v4594_v40  ;;  %8122 = vst [vmem:[#allocation97_spill] sm:$0xff] %v4618_v29  ;;  %8123 = vst [vmem:[#allocation98_spill] sm:$0xff] %v4622_v17  ;;  %v4624_v27 = vld [vmem:[#allocation7 + $0x560] sm:$0xff]  ;;  %v4628_v40 = vld [vmem:[#allocation7 + $0x528] sm:$0xff] }
 0x1d1   :  { %941 = vmatpush2.msra.mxu1 %v4598_v25  ;;  %1012 = vmatpush2.msra.mxu0 %v4600_v36  ;;  %8124 = vst [vmem:[#allocation99_spill] sm:$0xff] %v4624_v27  ;;  %8125 = vst [vmem:[#allocation100_spill] sm:$0xff] %v4628_v40  ;;  %v4630_v25 = vld [vmem:[#allocation7 + $0x538] sm:$0xff]  ;;  %v4634_v36 = vld [vmem:[#allocation7 + $0x520] sm:$0xff] }
 0x1d2   :  { %942 = vmatprep.subr.mxu1 %v4604_v24  ;;  %1013 = vmatprep.subr.mxu0 %v4606_v33  ;;  %8126 = vst [vmem:[#allocation101_spill] sm:$0xff] %v4630_v25  ;;  %8127 = vst [vmem:[#allocation102_spill] sm:$0xff] %v4634_v36  ;;  %v4636_v24 = vld [vmem:[#allocation7 + $0x530] sm:$0xff]  ;;  %v4640_v33 = vld [vmem:[#allocation7 + $0x4f8] sm:$0xff] }
 0x1d3   :  { %943 = vmatpush2.msra.mxu1 %v4610_v22  ;;  %1014 = vmatpush2.msra.mxu0 %v4612_v31  ;;  %8128 = vst [vmem:[#allocation103_spill] sm:$0xff] %v4636_v24  ;;  %8129 = vst [vmem:[#allocation104_spill] sm:$0xff] %v4640_v33  ;;  %v4642_v22 = vld [vmem:[#allocation7 + $0x508] sm:$0xff]  ;;  %v4646_v31 = vld [vmem:[#allocation7 + $0x4f0] sm:$0xff] }
 0x1d4   :  { %944 = vmatprep.subr.mxu1 %v4616_v20  ;;  %1015 = vmatprep.subr.mxu0 %v4618_v29  ;;  %8130 = vst [vmem:[#allocation105_spill] sm:$0xff] %v4642_v22  ;;  %8131 = vst [vmem:[#allocation106_spill] sm:$0xff] %v4646_v31  ;;  %v4648_v20 = vld [vmem:[#allocation7 + $0x500] sm:$0xff]  ;;  %v4652_v29 = vld [vmem:[#allocation7 + $0x4c8] sm:$0xff] }
 0x1d5   :  { %945 = vmatpush2.msra.mxu1 %v4622_v17  ;;  %1016 = vmatpush2.msra.mxu0 %v4624_v27  ;;  %8132 = vst [vmem:[#allocation107_spill] sm:$0xff] %v4648_v20  ;;  %8133 = vst [vmem:[#allocation108_spill] sm:$0xff] %v4652_v29  ;;  %v4654_v17 = vld [vmem:[#allocation7 + $0x4d8] sm:$0xff]  ;;  %v4658_v27 = vld [vmem:[#allocation7 + $0x4c0] sm:$0xff] }
 0x1d6   :  { %946 = vmatprep.subr.mxu1 %v4628_v40  ;;  %1017 = vmatprep.subr.mxu0 %v4630_v25  ;;  %8134 = vst [vmem:[#allocation109_spill] sm:$0xff] %v4654_v17  ;;  %8135 = vst [vmem:[#allocation110_spill] sm:$0xff] %v4658_v27  ;;  %v4660_v40 = vld [vmem:[#allocation7 + $0x4d0] sm:$0xff]  ;;  %v4664_v25 = vld [vmem:[#allocation7 + $0x498] sm:$0xff] }
 0x1d7   :  { %947 = vmatpush2.msra.mxu1 %v4634_v36  ;;  %1018 = vmatpush2.msra.mxu0 %v4636_v24  ;;  %8136 = vst [vmem:[#allocation111_spill] sm:$0xff] %v4660_v40  ;;  %8137 = vst [vmem:[#allocation112_spill] sm:$0xff] %v4664_v25  ;;  %v4666_v36 = vld [vmem:[#allocation7 + $0x4a8] sm:$0xff]  ;;  %v4670_v24 = vld [vmem:[#allocation7 + $0x490] sm:$0xff] }
 0x1d8   :  { %948 = vmatprep.subr.mxu1 %v4640_v33  ;;  %1019 = vmatprep.subr.mxu0 %v4642_v22  ;;  %8138 = vst [vmem:[#allocation113_spill] sm:$0xff] %v4666_v36  ;;  %8139 = vst [vmem:[#allocation114_spill] sm:$0xff] %v4670_v24  ;;  %v4672_v33 = vld [vmem:[#allocation7 + $0x4a0] sm:$0xff]  ;;  %v4676_v22 = vld [vmem:[#allocation7 + $0x468] sm:$0xff] }
 0x1d9   :  { %949 = vmatpush2.msra.mxu1 %v4646_v31  ;;  %1020 = vmatpush2.msra.mxu0 %v4648_v20  ;;  %8140 = vst [vmem:[#allocation115_spill] sm:$0xff] %v4672_v33  ;;  %8141 = vst [vmem:[#allocation116_spill] sm:$0xff] %v4676_v22  ;;  %v4678_v31 = vld [vmem:[#allocation7 + $0x478] sm:$0xff]  ;;  %v4682_v20 = vld [vmem:[#allocation7 + $0x460] sm:$0xff] }
 0x1da   :  { %950 = vmatprep.subr.mxu1 %v4652_v29  ;;  %1021 = vmatprep.subr.mxu0 %v4654_v17  ;;  %8142 = vst [vmem:[#allocation117_spill] sm:$0xff] %v4678_v31  ;;  %8143 = vst [vmem:[#allocation118_spill] sm:$0xff] %v4682_v20  ;;  %v4684_v29 = vld [vmem:[#allocation7 + $0x470] sm:$0xff]  ;;  %v4688_v17 = vld [vmem:[#allocation7 + $0x438] sm:$0xff] }
 0x1db   :  { %951 = vmatpush2.msra.mxu1 %v4658_v27  ;;  %1022 = vmatpush2.msra.mxu0 %v4660_v40  ;;  %8144 = vst [vmem:[#allocation119_spill] sm:$0xff] %v4684_v29  ;;  %8145 = vst [vmem:[#allocation120_spill] sm:$0xff] %v4688_v17  ;;  %v4690_v27 = vld [vmem:[#allocation7 + $0x448] sm:$0xff]  ;;  %v4694_v40 = vld [vmem:[#allocation7 + $0x430] sm:$0xff] }
 0x1dc   :  { %952 = vmatprep.subr.mxu1 %v4664_v25  ;;  %1023 = vmatprep.subr.mxu0 %v4666_v36  ;;  %8146 = vst [vmem:[#allocation121_spill] sm:$0xff] %v4690_v27  ;;  %8147 = vst [vmem:[#allocation122_spill] sm:$0xff] %v4694_v40  ;;  %v4696_v25 = vld [vmem:[#allocation7 + $0x440] sm:$0xff]  ;;  %v4700_v36 = vld [vmem:[#allocation7 + $0x408] sm:$0xff] }
 0x1dd   :  { %953 = vmatpush2.msra.mxu1 %v4670_v24  ;;  %1024 = vmatpush2.msra.mxu0 %v4672_v33  ;;  %8148 = vst [vmem:[#allocation123_spill] sm:$0xff] %v4696_v25  ;;  %8149 = vst [vmem:[#allocation124_spill] sm:$0xff] %v4700_v36  ;;  %v4702_v24 = vld [vmem:[#allocation7 + $0x418] sm:$0xff]  ;;  %v4706_v33 = vld [vmem:[#allocation7 + $0x400] sm:$0xff] }
 0x1de   :  { %954 = vmatprep.subr.mxu1 %v4676_v22  ;;  %1025 = vmatprep.subr.mxu0 %v4678_v31  ;;  %8150 = vst [vmem:[#allocation125_spill] sm:$0xff] %v4702_v24  ;;  %8151 = vst [vmem:[#allocation126_spill] sm:$0xff] %v4706_v33  ;;  %v4708_v22 = vld [vmem:[#allocation7 + $0x410] sm:$0xff]  ;;  %v4712_v31 = vld [vmem:[#allocation7 + $0x3d8] sm:$0xff] }
 0x1df   :  { %955 = vmatpush2.msra.mxu1 %v4682_v20  ;;  %1026 = vmatpush2.msra.mxu0 %v4684_v29  ;;  %8152 = vst [vmem:[#allocation127_spill] sm:$0xff] %v4708_v22  ;;  %8153 = vst [vmem:[#allocation128_spill] sm:$0xff] %v4712_v31  ;;  %v4714_v20 = vld [vmem:[#allocation7 + $0x3e8] sm:$0xff]  ;;  %v4718_v29 = vld [vmem:[#allocation7 + $0x3d0] sm:$0xff] }
 0x1e0   :  { %956 = vmatprep.subr.mxu1 %v4688_v17  ;;  %1027 = vmatprep.subr.mxu0 %v4690_v27  ;;  %8154 = vst [vmem:[#allocation129_spill] sm:$0xff] %v4714_v20  ;;  %8155 = vst [vmem:[#allocation130_spill] sm:$0xff] %v4718_v29  ;;  %v4720_v17 = vld [vmem:[#allocation7 + $0x3e0] sm:$0xff]  ;;  %v4724_v27 = vld [vmem:[#allocation7 + $0x3a8] sm:$0xff] }
 0x1e1   :  { %957 = vmatpush2.msra.mxu1 %v4694_v40  ;;  %1028 = vmatpush2.msra.mxu0 %v4696_v25  ;;  %8156 = vst [vmem:[#allocation131_spill] sm:$0xff] %v4720_v17  ;;  %8157 = vst [vmem:[#allocation132_spill] sm:$0xff] %v4724_v27  ;;  %v4726_v40 = vld [vmem:[#allocation7 + $0x3b8] sm:$0xff]  ;;  %v4730_v25 = vld [vmem:[#allocation7 + $0x3a0] sm:$0xff] }
 0x1e2   :  { %958 = vmatprep.subr.mxu1 %v4700_v36  ;;  %1029 = vmatprep.subr.mxu0 %v4702_v24  ;;  %8158 = vst [vmem:[#allocation133_spill] sm:$0xff] %v4726_v40  ;;  %8159 = vst [vmem:[#allocation134_spill] sm:$0xff] %v4730_v25  ;;  %v4732_v36 = vld [vmem:[#allocation7 + $0x3b0] sm:$0xff]  ;;  %v4736_v24 = vld [vmem:[#allocation7 + $0x378] sm:$0xff] }
 0x1e3   :  { %959 = vmatpush2.msra.mxu1 %v4706_v33  ;;  %1030 = vmatpush2.msra.mxu0 %v4708_v22  ;;  %8160 = vst [vmem:[#allocation135_spill] sm:$0xff] %v4732_v36  ;;  %v4738_v33 = vld [vmem:[#allocation7 + $0x388] sm:$0xff]  ;;  %v4742_v22 = vld [vmem:[#allocation7 + $0x370] sm:$0xff] }
 0x1e4   :  { %960 = vmatprep.subr.mxu1 %v4712_v31  ;;  %1031 = vmatprep.subr.mxu0 %v4714_v20  ;;  %8161 = vst [vmem:[#allocation136_spill] sm:$0xff] %v4738_v33  ;;  %v4744_v31 = vld [vmem:[#allocation7 + $0x380] sm:$0xff]  ;;  %v4748_v20 = vld [vmem:[#allocation7 + $0x348] sm:$0xff] }
 0x1e5   :  { %961 = vmatpush2.msra.mxu1 %v4718_v29  ;;  %1032 = vmatpush2.msra.mxu0 %v4720_v17  ;;  %8162 = vst [vmem:[#allocation137_spill] sm:$0xff] %v4744_v31  ;;  %v4750_v29 = vld [vmem:[#allocation7 + $0x358] sm:$0xff]  ;;  %v4754_v17 = vld [vmem:[#allocation7 + $0x340] sm:$0xff] }
 0x1e6   :  { %962 = vmatprep.subr.mxu1 %v4724_v27  ;;  %1033 = vmatprep.subr.mxu0 %v4726_v40  ;;  %8163 = vst [vmem:[#allocation138_spill] sm:$0xff] %v4750_v29  ;;  %v4756_v27 = vld [vmem:[#allocation7 + $0x350] sm:$0xff]  ;;  %v4760_v40 = vld [vmem:[#allocation7 + $0x318] sm:$0xff] }
 0x1e7   :  { %963 = vmatpush2.msra.mxu1 %v4730_v25  ;;  %1034 = vmatpush2.msra.mxu0 %v4732_v36  ;;  %8164 = vst [vmem:[#allocation139_spill] sm:$0xff] %v4756_v27  ;;  %v4762_v25 = vld [vmem:[#allocation7 + $0x328] sm:$0xff]  ;;  %v4766_v36 = vld [vmem:[#allocation7 + $0x310] sm:$0xff] }
 0x1e8   :  { %964 = vmatprep.subr.mxu1 %v4736_v24  ;;  %1035 = vmatprep.subr.mxu0 %v4738_v33  ;;  %8165 = vst [vmem:[#allocation140_spill] sm:$0xff] %v4762_v25  ;;  %v4770_v33 = vld [vmem:[#allocation7 + $0x320] sm:$0xff] }
 0x1e9   :  { %965 = vmatpush2.msra.mxu1 %v4742_v22  ;;  %1036 = vmatpush2.msra.mxu0 %v4744_v31  ;;  %8166 = vst [vmem:[#allocation141_spill] sm:$0xff] %v4770_v33  ;;  %v4796_v31 = vld [vmem:[#allocation7 + $0x278] sm:$0xff] }
 0x1ea   :  { %966 = vmatprep.subr.mxu1 %v4748_v20  ;;  %1037 = vmatprep.subr.mxu0 %v4750_v29  ;;  %v4780_v29 = vld [vmem:[#allocation7 + $0x2d8] sm:$0xff] }
 0x1eb   :  { %967 = vmatpush2.msra.mxu1 %v4754_v17  ;;  %1038 = vmatpush2.msra.mxu0 %v4756_v27  ;;  %v4784_v27 = vld [vmem:[#allocation7 + $0x2d0] sm:$0xff] }
 0x1ec   :  { %968 = vmatprep.subr.mxu1 %v4760_v40  ;;  %1039 = vmatprep.subr.mxu0 %v4762_v25  ;;  %v4788_v25 = vld [vmem:[#allocation7 + $0x2a8] sm:$0xff] }
 0x1ed   :  { %969 = vmatpush2.msra.mxu1 %v4766_v36  ;;  %970 = vmatprep.mubr.f32.mxu1 %v4378_v34 }
 0x1ee   :  { %1040 = vmatpush2.msra.mxu0 %v4770_v33  ;;  %1041 = vmatprep.mubr.f32.mxu0 %v4378_v34  ;;  %v4792_v33 = vld [vmem:[#allocation7 + $0x2a0] sm:$0xff] }
 0x1ef   :  { %971 = vmatmul.mubr.f32.vlgmr.msra.gmra.mxu1 %v4384_v7  ;;  %1042 = vmatmul.mubr.f32.vlgmr.msra.gmra.mxu0 %v4384_v7 }
 0x1f0   :  { %1114 = vmatprep.subr.mxu1 %v4780_v29  ;;  %1185 = vmatprep.subr.mxu0 %v4388_v12  ;;  %v4800_v12 = vld [vmem:[#allocation7 + $0x270] sm:$0xff] }
 0x1f1   :  { %1115 = vmatpush1.msra.mxu1 %v4784_v27  ;;  %1186 = vmatpush1.msra.mxu0 %v4394_v50  ;;  %v4804_v50 = vld [vmem:[#allocation7 + $0x248] sm:$0xff] }
 0x1f2   :  { %1116 = vmatprep.subr.mxu1 %v4788_v25  ;;  %1187 = vmatprep.subr.mxu0 %v4400_v10  ;;  %v4808_v10 = vld [vmem:[#allocation7 + $0x240] sm:$0xff] }
 0x1f3   :  { %1117 = vmatpush1.msra.mxu1 %v4792_v33  ;;  %1188 = vmatpush1.msra.mxu0 %v4406_v46  ;;  %v8213_v46 = vld [vmem:[#allocation124_spill] sm:$0xff] }
 0x1f4   :  { %1118 = vmatprep.subr.mxu1 %v4796_v31  ;;  %1189 = vmatprep.subr.mxu0 %v4412_v3  ;;  %v8210_v3 = vld [vmem:[#allocation33_spill] sm:$0xff] }
 0x1f5   :  { %1119 = vmatpush1.msra.mxu1 %v4800_v12  ;;  %1190 = vmatpush1.msra.mxu0 %v4418_v54  ;;  %v8203_v54 = vld [vmem:[#allocation114_spill] sm:$0xff] }
 0x1f6   :  { %1120 = vmatprep.subr.mxu1 %v4804_v50  ;;  %1191 = vmatprep.subr.mxu0 %v4424_v1  ;;  %v8211_v1 = vld [vmem:[#allocation122_spill] sm:$0xff] }
 0x1f7   :  { %1121 = vmatpush1.msra.mxu1 %v4808_v10  ;;  %1192 = vmatpush1.msra.mxu0 %v4430_v16  ;;  %v8205_v16 = vld [vmem:[#allocation116_spill] sm:$0xff] }
 0x1f8   :  { %1122 = vmatprep.subr.mxu1 %v4203_v35  ;;  %1193 = vmatprep.subr.mxu0 %v4436_v28  ;;  %v8167_v35 = vld [vmem:[#allocation78_spill] sm:$0xff] }
 0x1f9   :  { %1123 = vmatpush1.msra.mxu1 %v4205_v37  ;;  %1194 = vmatpush1.msra.mxu0 %v4442_v32  ;;  %v8168_v37 = vld [vmem:[#allocation12_spill] sm:$0xff]  ;;  %v8207_v32 = vld [vmem:[#allocation118_spill] sm:$0xff] }
 0x1fa   :  { %1124 = vmatprep.subr.mxu1 %v4207_v39  ;;  %1195 = vmatprep.subr.mxu0 %v4448_v19  ;;  %v8169_v39 = vld [vmem:[#allocation80_spill] sm:$0xff]  ;;  %v8212_v28 = vld [vmem:[#allocation34_spill] sm:$0xff]  ;;  %v8214_v19 = vld [vmem:[#allocation35_spill] sm:$0xff] }
 0x1fb   :  { %1125 = vmatpush1.msra.mxu1 %v4210_v41  ;;  %1196 = vmatpush1.msra.mxu0 %v4454_v58  ;;  %v8170_v41 = vld [vmem:[#allocation13_spill] sm:$0xff]  ;;  %v8209_v58 = vld [vmem:[#allocation120_spill] sm:$0xff] }
 0x1fc   :  { %1126 = vmatprep.subr.mxu1 %v4213_v43  ;;  %1197 = vmatprep.subr.mxu0 %v4460_v42  ;;  %v8171_v43 = vld [vmem:[#allocation82_spill] sm:$0xff]  ;;  %v8208_v42 = vld [vmem:[#allocation32_spill] sm:$0xff] }
 0x1fd   :  { %1127 = vmatpush1.msra.mxu1 %v4216_v45  ;;  %1198 = vmatpush1.msra.mxu0 %v4466_v21  ;;  %v8172_v45 = vld [vmem:[#allocation14_spill] sm:$0xff]  ;;  %v8206_v21 = vld [vmem:[#allocation31_spill] sm:$0xff] }
 0x1fe   :  { %1128 = vmatprep.subr.mxu1 %v4219_v47  ;;  %1199 = vmatprep.subr.mxu0 %v4472_v62  ;;  %v8173_v47 = vld [vmem:[#allocation84_spill] sm:$0xff]  ;;  %v8204_v62 = vld [vmem:[#allocation30_spill] sm:$0xff] }
 0x1ff   :  { %1129 = vmatpush1.msra.mxu1 %v4222_v49  ;;  %1200 = vmatpush1.msra.mxu0 %v4478_v38  ;;  %v8174_v49 = vld [vmem:[#allocation15_spill] sm:$0xff]  ;;  %v8202_v38 = vld [vmem:[#allocation29_spill] sm:$0xff] }
 0x200   :  { %1130 = vmatprep.subr.mxu1 %v4225_v51  ;;  %1201 = vmatprep.subr.mxu0 %v4484_v30  ;;  %v8175_v51 = vld [vmem:[#allocation86_spill] sm:$0xff]  ;;  %v8201_v30 = vld [vmem:[#allocation112_spill] sm:$0xff] }
 0x201   :  { %1131 = vmatpush1.msra.mxu1 %v4228_v53  ;;  %1202 = vmatpush1.msra.mxu0 %v4490_v26  ;;  %v8176_v53 = vld [vmem:[#allocation16_spill] sm:$0xff] }
 0x202   :  { %1132 = vmatprep.subr.mxu1 %v4231_v55  ;;  %1203 = vmatprep.subr.mxu0 %v4496_v23  ;;  %v8177_v55 = vld [vmem:[#allocation88_spill] sm:$0xff]  ;;  %v8199_v23 = vld [vmem:[#allocation110_spill] sm:$0xff] }
 0x203   :  { %1133 = vmatpush1.msra.mxu1 %v4234_v57  ;;  %1204 = vmatpush1.msra.mxu0 %v4502_v18  ;;  %v8178_v57 = vld [vmem:[#allocation17_spill] sm:$0xff]  ;;  %v8198_v18 = vld [vmem:[#allocation27_spill] sm:$0xff]  ;;  %v8200_v26 = vld [vmem:[#allocation28_spill] sm:$0xff] }
 0x204   :  { %1134 = vmatprep.subr.mxu1 %v4237_v59  ;;  %1205 = vmatprep.subr.mxu0 %v4508_v14  ;;  %v8179_v59 = vld [vmem:[#allocation90_spill] sm:$0xff]  ;;  %v8197_v14 = vld [vmem:[#allocation108_spill] sm:$0xff] }
 0x205   :  { %1135 = vmatpush1.msra.mxu1 %v4240_v61  ;;  %1206 = vmatpush1.msra.mxu0 %v4514_v9  ;;  %v8180_v61 = vld [vmem:[#allocation18_spill] sm:$0xff] }
 0x206   :  { %1136 = vmatprep.subr.mxu1 %v4243_v63  ;;  %1207 = vmatprep.subr.mxu0 %v4520_v5  ;;  %v8181_v63 = vld [vmem:[#allocation92_spill] sm:$0xff]  ;;  %v8195_v5 = vld [vmem:[#allocation106_spill] sm:$0xff] }
 0x207   :  { %1137 = vmatpush1.msra.mxu1 %v4246_v2  ;;  %1208 = vmatpush1.msra.mxu0 %v4526_v0  ;;  %v8182_v2 = vld [vmem:[#allocation19_spill] sm:$0xff]  ;;  %v8194_v0 = vld [vmem:[#allocation25_spill] sm:$0xff]  ;;  %v8196_v9 = vld [vmem:[#allocation26_spill] sm:$0xff] }
 0x208   :  { %1138 = vmatprep.subr.mxu1 %v4249_v4  ;;  %1209 = vmatprep.subr.mxu0 %v4532_v60  ;;  %v8183_v4 = vld [vmem:[#allocation94_spill] sm:$0xff]  ;;  %v8193_v60 = vld [vmem:[#allocation104_spill] sm:$0xff] }
 0x209   :  { %1139 = vmatpush1.msra.mxu1 %v4252_v6  ;;  %1210 = vmatpush1.msra.mxu0 %v4538_v56  ;;  %v8184_v6 = vld [vmem:[#allocation20_spill] sm:$0xff] }
 0x20a   :  { %1140 = vmatprep.subr.mxu1 %v4255_v8  ;;  %1211 = vmatprep.subr.mxu0 %v4544_v52  ;;  %v8185_v8 = vld [vmem:[#allocation96_spill] sm:$0xff]  ;;  %v8191_v52 = vld [vmem:[#allocation102_spill] sm:$0xff] }
 0x20b   :  { %1141 = vmatpush1.msra.mxu1 %v4258_v11  ;;  %1212 = vmatpush1.msra.mxu0 %v4550_v48  ;;  %v8186_v11 = vld [vmem:[#allocation21_spill] sm:$0xff]  ;;  %v8190_v48 = vld [vmem:[#allocation23_spill] sm:$0xff]  ;;  %v8192_v56 = vld [vmem:[#allocation24_spill] sm:$0xff] }
 0x20c   :  { %1142 = vmatprep.subr.mxu1 %v4261_v13  ;;  %1213 = vmatprep.subr.mxu0 %v4556_v44  ;;  %v8187_v13 = vld [vmem:[#allocation98_spill] sm:$0xff]  ;;  %v8189_v44 = vld [vmem:[#allocation100_spill] sm:$0xff] }
 0x20d   :  { %1143 = vmatpush1.msra.mxu1 %v4264_v15  ;;  %1214 = vmatpush1.msra.mxu0 %v8167_v35  ;;  %v8188_v15 = vld [vmem:[#allocation22_spill] sm:$0xff] }
 0x20e   :  { %1144 = vmatprep.subr.mxu1 %v8168_v37  ;;  %1215 = vmatprep.subr.mxu0 %v8169_v39  ;;  %v8215_v35 = vld [vmem:[#allocation126_spill] sm:$0xff]  ;;  %v8216_v37 = vld [vmem:[#allocation37_spill] sm:$0xff]  ;;  %v8217_v39 = vld [vmem:[#allocation128_spill] sm:$0xff] }
 0x20f   :  { %1145 = vmatpush1.msra.mxu1 %v8170_v41  ;;  %1216 = vmatpush1.msra.mxu0 %v8171_v43  ;;  %v8218_v41 = vld [vmem:[#allocation38_spill] sm:$0xff] }
 0x210   :  { %1146 = vmatprep.subr.mxu1 %v8172_v45  ;;  %1217 = vmatprep.subr.mxu0 %v8173_v47  ;;  %v8219_v43 = vld [vmem:[#allocation130_spill] sm:$0xff]  ;;  %v8220_v45 = vld [vmem:[#allocation39_spill] sm:$0xff]  ;;  %v8221_v47 = vld [vmem:[#allocation132_spill] sm:$0xff] }
 0x211   :  { %1147 = vmatpush2.msra.mxu1 %v8174_v49  ;;  %1218 = vmatpush2.msra.mxu0 %v8175_v51  ;;  %v8222_v49 = vld [vmem:[#allocation40_spill] sm:$0xff]  ;;  %v8223_v51 = vld [vmem:[#allocation134_spill] sm:$0xff] }
 0x212   :  { %1148 = vmatprep.subr.mxu1 %v8176_v53  ;;  %1219 = vmatprep.subr.mxu0 %v8177_v55  ;;  %v8224_v53 = vld [vmem:[#allocation41_spill] sm:$0xff]  ;;  %v8225_v55 = vld [vmem:[#allocation43_spill] sm:$0xff] }
 0x213   :  { %1149 = vmatpush2.msra.mxu1 %v8178_v57  ;;  %1220 = vmatpush2.msra.mxu0 %v8179_v59  ;;  %v8226_v57 = vld [vmem:[#allocation45_spill] sm:$0xff]  ;;  %v8227_v59 = vld [vmem:[#allocation46_spill] sm:$0xff] }
 0x214   :  { %1150 = vmatprep.subr.mxu1 %v8180_v61  ;;  %1221 = vmatprep.subr.mxu0 %v8181_v63  ;;  %v8228_v61 = vld [vmem:[#allocation47_spill] sm:$0xff]  ;;  %v8229_v63 = vld [vmem:[#allocation48_spill] sm:$0xff] }
 0x215   :  { %1151 = vmatpush2.msra.mxu1 %v8182_v2  ;;  %1222 = vmatpush2.msra.mxu0 %v8183_v4  ;;  %v8230_v2 = vld [vmem:[#allocation49_spill] sm:$0xff] }
 0x216   :  { %1152 = vmatprep.subr.mxu1 %v8184_v6  ;;  %1223 = vmatprep.subr.mxu0 %v8185_v8 }
 0x217   :  { %1153 = vmatpush2.msra.mxu1 %v8186_v11  ;;  %1224 = vmatpush2.msra.mxu0 %v8187_v13  ;;  %v791_v11 = vld [vmem:[%s7510_s6] sm:$0x3f] }
 0x218   :  { %1154 = vmatprep.subr.mxu1 %v8188_v15  ;;  %1225 = vmatprep.subr.mxu0 %v8189_v44 }
 0x219   :  { %1155 = vmatpush2.msra.mxu1 %v8190_v48  ;;  %1226 = vmatpush2.msra.mxu0 %v8191_v52  ;;  %v354_v48 = vld [vmem:[%s7509_s5] sm:$0x3f] }
 0x21a   :  { %1156 = vmatprep.subr.mxu1 %v8192_v56  ;;  %1227 = vmatprep.subr.mxu0 %v8193_v60  ;;  %v8231_v56 = vld [vmem:[#allocation44_spill] sm:$0xff] }
 0x21b   :  { %1157 = vmatpush2.msra.mxu1 %v8194_v0  ;;  %1228 = vmatpush2.msra.mxu0 %v8195_v5  ;;  %v4933_v0 = vrot.slane %v791_v11, %v8231_v56 }
 0x21c   :  { %1158 = vmatprep.subr.mxu1 %v8196_v9  ;;  %1229 = vmatprep.subr.mxu0 %v8197_v14 }
 0x21d   :  { %1159 = vmatpush2.msra.mxu1 %v8198_v18  ;;  %1230 = vmatpush2.msra.mxu0 %v8199_v23  ;;  %v359_v18 = vrot.slane %v354_v48, %v8231_v56 }
 0x21e   :  { %1160 = vmatprep.subr.mxu1 %v8200_v26  ;;  %1231 = vmatprep.subr.mxu0 %v8201_v30 }
 0x21f   :  { %1161 = vmatpush2.msra.mxu1 %v8202_v38  ;;  %1232 = vmatpush2.msra.mxu0 %v8203_v54  ;;  %v8232_v38 = vld [vmem:[#allocation42_spill] sm:$0xff] }
 0x220   :  { %1162 = vmatprep.subr.mxu1 %v8204_v62  ;;  %1233 = vmatprep.subr.mxu0 %v8205_v16  ;;  %v4937_v62 = vrot.slane %v791_v11, %v8232_v38 }
 0x221   :  { %1163 = vmatpush2.msra.mxu1 %v8206_v21  ;;  %1234 = vmatpush2.msra.mxu0 %v8207_v32 }
 0x222   :  { %1164 = vmatprep.subr.mxu1 %v8208_v42  ;;  %1235 = vmatprep.subr.mxu0 %v8209_v58  ;;  %8233 = vst [vmem:[#allocation78_spill] sm:$0xff] %v4937_v62 }
 0x223   :  { %1165 = vmatpush2.msra.mxu1 %v8210_v3  ;;  %1236 = vmatpush2.msra.mxu0 %v8211_v1  ;;  %v363_v3 = vrot.slane %v354_v48, %v8232_v38 }
 0x224   :  { %1166 = vmatprep.subr.mxu1 %v8212_v28  ;;  %1237 = vmatprep.subr.mxu0 %v8213_v46 }
 0x225   :  { %1167 = vmatpush2.msra.mxu1 %v8214_v19  ;;  %1238 = vmatpush2.msra.mxu0 %v8215_v35 }
 0x226   :  { %1168 = vmatprep.subr.mxu1 %v8216_v37  ;;  %1239 = vmatprep.subr.mxu0 %v8217_v39 }
 0x227   :  { %1169 = vmatpush2.msra.mxu1 %v8218_v41  ;;  %1240 = vmatpush2.msra.mxu0 %v8219_v43 }
 0x228   :  { %1170 = vmatprep.subr.mxu1 %v8220_v45  ;;  %1241 = vmatprep.subr.mxu0 %v8221_v47 }
 0x229   :  { %1171 = vmatpush2.msra.mxu1 %v8222_v49  ;;  %1242 = vmatpush2.msra.mxu0 %v8223_v51 }
 0x22a   :  { %1172 = vmatprep.subr.mxu1 %v8224_v53  ;;  %1243 = vmatprep.subr.mxu0 %v4736_v24 }
 0x22b   :  { %1173 = vmatpush2.msra.mxu1 %v8225_v55  ;;  %1244 = vmatpush2.msra.mxu0 %v4742_v22 }
 0x22c   :  { %1174 = vmatprep.subr.mxu1 %v8226_v57  ;;  %1245 = vmatprep.subr.mxu0 %v4748_v20  ;;  %v523_v6 = vpop.f32.mrf.mxu0  ;;  %v452_v26 = vpop.f32.mrf.mxu1  ;;  %v8236_v57 = vld [vmem:[#allocation36_spill] sm:$0xff] }
 0x22d   :  { %1175 = vmatpush2.msra.mxu1 %v8227_v59  ;;  %1246 = vmatpush2.msra.mxu0 %v4754_v17  ;;  %v4941_v28 = vadd.f32 %v452_v26, %v359_v18  ;;  %v366_v59 = vsub.s32 2, %v8236_v57 }
 0x22e   :  { %1176 = vmatprep.subr.mxu1 %v8228_v61  ;;  %1247 = vmatprep.subr.mxu0 %v4760_v40  ;;  %v525_v15 = vpop.f32.mrf.mxu0  ;;  %v454_v19 = vpop.f32.mrf.mxu1 }
 0x22f   :  { %1177 = vmatpush2.msra.mxu1 %v8229_v63  ;;  %1248 = vmatpush2.msra.mxu0 %v4766_v36  ;;  %8234 = vst [vmem:[#allocation12_spill] sm:$0xff] %v4941_v28  ;;  %v4945_v45 = vadd.f32 %v454_v19, %v363_v3  ;;  %v367_v56 = vrot.slane %v354_v48, %v366_v59 }
 0x230   :  { %1256 = vmatprep.subr.mxu1 %v8230_v2  ;;  %1417 = vmatprep.subr.mxu0 %v4780_v29  ;;  %v370_v2 = vsub.s32 3, %v8236_v57 }
 0x231   :  { %8235 = vst [vmem:[#allocation80_spill] sm:$0xff] %v4945_v45  ;;  %v4954_v19 = vadd.f32 %v523_v6, %v367_v56 }
 0x233   :  { %8239 = vst [vmem:[#allocation14_spill] sm:$0xff] %v4954_v19 }
 0x26d   :  { %v901_v9 = vpop.f32.mrf.mxu0  ;;  %v594_v61 = vpop.f32.mrf.mxu1 }
 0x26e   :  { %v902_v21 = vadd.f32 %v901_v9, %v4933_v0  ;;  %v4950_v9 = vrot.slane %v791_v11, %v366_v59 }
 0x26f   :  { %v903_v42 = vpop.f32.mrf.mxu0  ;;  %v596_v38 = vpop.f32.mrf.mxu1 }
 0x270   :  { %v904_v37 = vadd.f32 %v903_v42, %v4937_v62  ;;  %v1048_v41 = vadd.f32 %v902_v21, %v4941_v28  ;;  %8237 = vst [vmem:[#allocation13_spill] sm:$0xff] %v4950_v9  ;;  %v371_v21 = vrot.slane %v354_v48, %v370_v2  ;;  %v4952_v42 = vrot.slane %v791_v11, %v370_v2 }
 0x271   :  { %v374_v2 = vsub.s32 4, %v8236_v57 }
 0x272   :  { %v1049_v49 = vadd.f32 %v904_v37, %v4945_v45  ;;  %v3255_v53 = vmul.f32 -1.442695, %v1048_v41  ;;  %8238 = vst [vmem:[#allocation82_spill] sm:$0xff] %v4952_v42 }
 0x273   :  { %v4963_v56 = vrot.slane %v791_v11, %v374_v2 }
 0x274   :  { %v3256_v55 = vmul.f32 -1.442695, %v1049_v49  ;;  %3306 = vpow2.f32 %v3255_v53  ;;  %v4957_v53 = vadd.f32 %v525_v15, %v371_v21 }
 0x276   :  { %3308 = vpow2.f32 %v3256_v55  ;;  %8240 = vst [vmem:[#allocation84_spill] sm:$0xff] %v4957_v53 }
 0x281   :  { %v3307_v63 = vpop.eup %3306 }
 0x282   :  { %v1056_v26 = vadd.f32 1.0, %v3307_v63 }
 0x283   :  { %v3309_v18 = vpop.eup %3308 }
 0x284   :  { %v1057_v37 = vadd.f32 1.0, %v3309_v18  ;;  %3310 = vrcp.f32 %v1056_v26  ;;  %v378_v26 = vsub.s32 5, %v8236_v57 }
 0x286   :  { %3312 = vrcp.f32 %v1057_v37  ;;  %v4966_v15 = vrot.slane %v791_v11, %v378_v26 }
 0x288   :  { %8241 = vst [vmem:[#allocation15_spill] sm:$0xff] %v4966_v15 }
 0x291   :  { %v3311_v37 = vpop.eup %3310 }
 0x2af   :  { %v972_v3 = vpop.f32.mrf.mxu1  ;;  %v1043_v18 = vpop.f32.mrf.mxu0 }
 0x2b0   :  { %v973_v41 = vadd.f32 %v972_v3, %v4950_v9  ;;  %v1044_v21 = vadd.f32 %v1043_v18, %v4963_v56 }
 0x2b1   :  { %v974_v49 = vpop.f32.mrf.mxu1  ;;  %v1045_v3 = vpop.f32.mrf.mxu0 }
 0x2b2   :  { %v1062_v55 = vadd.f32 %v973_v41, %v4954_v19  ;;  %v975_v59 = vadd.f32 %v974_v49, %v4952_v42  ;;  %v375_v41 = vrot.slane %v354_v48, %v374_v2  ;;  %v1046_v49 = vadd.f32 %v1045_v3, %v4966_v15 }
 0x2b4   :  { %v3257_v63 = vmul.f32 -1.442695, %v1062_v55  ;;  %v1063_v45 = vadd.f32 %v975_v59, %v4957_v53  ;;  %v1076_v55 = vmul.f32 %v3311_v37, %v1044_v21  ;;  %v379_v59 = vrot.slane %v354_v48, %v378_v26  ;;  %v3313_v53 = vpop.eup %3312 }
 0x2b5   :  { %v4137_v21 = vmov 1966171168  }
 0x2b6   :  { %3314 = vpow2.f32 %v3257_v63  ;;  %v3258_v6 = vmul.f32 -1.442695, %v1063_v45  ;;  %v4970_v63 = vadd.f32 %v594_v61, %v375_v41  ;;  %v1077_v45 = vmul.f32 %v3313_v53, %v1046_v49 }
 0x2b7   :  { %v4973_v9 = vadd.f32 %v596_v38, %v379_v59  ;;  %v1094_v48 = vunpack.c.l.s4 %v4137_v21 }
 0x2b8   :  { %3316 = vpow2.f32 %v3258_v6  ;;  %v1078_v42 = vadd.f32 %v1076_v55, %v4970_v63 }
 0x2b9   :  { %v1079_v2 = vadd.f32 %v1077_v45, %v4973_v9  ;;  %v1095_v41 = vunpack.c.0.s8 %v1094_v48  ;;  %v8247_v48 = vld [vmem:[#allocation52_spill] sm:$0xff] }
 0x2bb   :  { %v4979_v45 = vsub.s32 %v1095_v41, %v8236_v57  ;;  %v8243_v57 = vlaneseq  ;;  %v8252_v41 = vld [vmem:[#allocation57_spill] sm:$0xff] }
 0x2bd   :  { %vm4995_vm2 = vcmp.lt.s32.totalorder %v8243_v57, 256  ;;  %v5036_v57 = vld [vmem:[#allocation7 + $0x1b8] sm:$0xff] }
 0x2c3   :  { %v3315_v19 = vpop.eup %3314 }
 0x2c4   :  { %v1070_v11 = vadd.f32 1.0, %v3315_v19 }
 0x2c5   :  { %v3317_v6 = vpop.eup %3316 }
 0x2c6   :  { %3318 = vrcp.f32 %v1070_v11  ;;  %v1071_v18 = vadd.f32 1.0, %v3317_v6 }
 0x2c7   :  { %3320 = vtanh.f32 %v1078_v42 }
 0x2c8   :  { %3322 = vrcp.f32 %v1071_v18 }
 0x2c9   :  { %3324 = vtanh.f32 %v1079_v2  ;;  %v8246_v2 = vld [vmem:[#allocation51_spill] sm:$0xff] }
 0x2d3   :  { %v3319_v26 = vpop.eup %3318 }
 0x2d4   :  { %v3321_v61 = vpop.eup %3320  ;;  %v1082_v3 = vsub.f32 1.0, %v3319_v26  ;;  %v1086_v59 = vmul.f32 %v3319_v26, %v4384_v7  ;;  %v8242_v7 = vld [vmem:[#allocation50_spill] sm:$0xff]  ;;  %v8248_v26 = vld [vmem:[#allocation53_spill] sm:$0xff] }
 0x2d5   :  { %v3323_v53 = vpop.eup %3322 }
 0x2d6   :  { %v1083_v37 = vsub.f32 1.0, %v3323_v53  ;;  %v1084_v49 = vmul.f32 %v3321_v61, %v1082_v3  ;;  %v3325_v38 = vpop.eup %3324  ;;  %v1087_v19 = vmul.f32 %v3323_v53, %v4378_v34  ;;  %v8249_v61 = vld [vmem:[#allocation54_spill] sm:$0xff]  ;;  %v8250_v3 = vld [vmem:[#allocation55_spill] sm:$0xff]  ;;  %v8251_v53 = vld [vmem:[#allocation56_spill] sm:$0xff] }
 0x2d8   :  { %v1085_v55 = vmul.f32 %v3325_v38, %v1083_v37  ;;  %v4983_v11 = vadd.f32 %v1086_v59, %v1084_v49  ;;  %v8253_v37 = vld [vmem:[#allocation58_spill] sm:$0xff]  ;;  %v8254_v38 = vld [vmem:[#allocation59_spill] sm:$0xff]  ;;  %v5028_v59 = vld [vmem:[#allocation7 + $0x1e8] sm:$0xff] }
 0x2d9   :  { %v5020_v49 = vld [vmem:[#allocation7 + $0x218] sm:$0xff] }
 0x2da   :  { %v4981_v42 = vadd.f32 %v1087_v19, %v1085_v55  ;;  %v5024_v55 = vld [vmem:[#allocation7 + $0x210] sm:$0xff]  ;;  %v8255_v19 = vld [vmem:[#allocation60_spill] sm:$0xff] }
 0x2dc   :  { %1178 = vmatprep.mubr.f32.mxu1 %v4981_v42  ;;  %1249 = vmatprep.mubr.f32.mxu0 %v4981_v42  ;;  %v1092_v6 = vcombine.low %v4983_v11, %v4981_v42 }
 0x2dd   :  { %1179 = vmatmul.mubr.f32.vlgmr.msra.gmra.mxu1 %v4983_v11  ;;  %1250 = vmatmul.mubr.f32.vlgmr.msra.gmra.mxu0 %v4983_v11 }
 0x2de   :  { %v1099_v34 = vrot.slane %v1092_v6, %v4979_v45  ;;  %1257 = vmatpush1.msra.mxu1 %v8242_v7  ;;  %1320 = vmatprep.mubr.f32.mxu1 %v4981_v42  ;;  %v8256_v6 = vld [vmem:[#allocation61_spill] sm:$0xff]  ;;  %v8257_v7 = vld [vmem:[#allocation62_spill] sm:$0xff] }
 0x2df   :  { %1258 = vmatprep.subr.mxu1 %v8246_v2  ;;  %1418 = vmatpush1.msra.mxu0 %v4784_v27  ;;  %v8258_v2 = vld [vmem:[#allocation63_spill] sm:$0xff] }
 0x2e0   :  { %v1106_v21 = vrot.slane %v1099_v34, %v4979_v45  ;;  %1259 = vmatpush1.msra.mxu1 %v8247_v48  ;;  %1419 = vmatprep.subr.mxu0 %v4788_v25  ;;  %v5032_v34 = vld [vmem:[#allocation7 + $0x1e0] sm:$0xff] }
 0x2e1   :  { %1260 = vmatprep.subr.mxu1 %v8248_v26  ;;  %1420 = vmatpush1.msra.mxu0 %v4792_v33  ;;  %v8259_v48 = vld [vmem:[#allocation64_spill] sm:$0xff] }
 0x2e2   :  { %1112 = vst.msk [vmem:[%s7511_s7] ss:$8 sm:$0x3] %vm4995_vm2, %v1106_v21  ;;  %1261 = vmatpush1.msra.mxu1 %v8249_v61  ;;  %1421 = vmatprep.subr.mxu0 %v4796_v31  ;;  %v5040_v21 = vld [vmem:[#allocation7 + $0x1b0] sm:$0xff]  ;;  %v5044_v26 = vld [vmem:[#allocation7 + $0x188] sm:$0xff] }
 0x2e3   :  { %1262 = vmatprep.subr.mxu1 %v8250_v3  ;;  %1422 = vmatpush1.msra.mxu0 %v4800_v12  ;;  %v8260_v61 = vld [vmem:[#allocation65_spill] sm:$0xff]  ;;  %v5048_v3 = vld [vmem:[#allocation7 + $0x180] sm:$0xff] }
 0x2e4   :  { %1263 = vmatpush1.msra.mxu1 %v8251_v53  ;;  %1423 = vmatprep.subr.mxu0 %v4804_v50  ;;  %v8261_v53 = vld [vmem:[#allocation66_spill] sm:$0xff] }
 0x2e5   :  { %1264 = vmatprep.subr.mxu1 %v8252_v41  ;;  %1424 = vmatpush1.msra.mxu0 %v4808_v10  ;;  %v5052_v41 = vld [vmem:[#allocation7 + $0x158] sm:$0xff] }
 0x2e6   :  { %1265 = vmatpush1.msra.mxu1 %v8253_v37  ;;  %1425 = vmatprep.subr.mxu0 %v5020_v49  ;;  %v8262_v37 = vld [vmem:[#allocation67_spill] sm:$0xff] }
 0x2e7   :  { %1266 = vmatprep.subr.mxu1 %v8254_v38  ;;  %1426 = vmatpush1.msra.mxu0 %v5024_v55  ;;  %v5056_v38 = vld [vmem:[#allocation7 + $0x150] sm:$0xff] }
 0x2e8   :  { %1267 = vmatpush1.msra.mxu1 %v8255_v19  ;;  %1427 = vmatprep.subr.mxu0 %v5028_v59  ;;  %v8263_v19 = vld [vmem:[#allocation68_spill] sm:$0xff] }
 0x2e9   :  { %1268 = vmatprep.subr.mxu1 %v8256_v6  ;;  %1428 = vmatpush1.msra.mxu0 %v5032_v34  ;;  %v5060_v6 = vld [vmem:[#allocation7 + $0x128] sm:$0xff] }
 0x2ea   :  { %1269 = vmatpush1.msra.mxu1 %v8257_v7  ;;  %1429 = vmatprep.subr.mxu0 %v5036_v57  ;;  %8264 = vst [vmem:[#allocation86_spill] sm:$0xff] %v5060_v6  ;;  %v8265_v7 = vld [vmem:[#allocation69_spill] sm:$0xff] }
 0x2eb   :  { %1270 = vmatprep.subr.mxu1 %v8258_v2  ;;  %1430 = vmatpush1.msra.mxu0 %v5040_v21  ;;  %v5064_v2 = vld [vmem:[#allocation7 + $0x120] sm:$0xff] }
 0x2ec   :  { %1271 = vmatpush1.msra.mxu1 %v8259_v48  ;;  %1431 = vmatprep.subr.mxu0 %v5044_v26  ;;  %8266 = vst [vmem:[#allocation16_spill] sm:$0xff] %v5064_v2  ;;  %v8267_v48 = vld [vmem:[#allocation70_spill] sm:$0xff] }
 0x2ed   :  { %1272 = vmatprep.subr.mxu1 %v8260_v61  ;;  %1432 = vmatpush1.msra.mxu0 %v5048_v3  ;;  %v5068_v61 = vld [vmem:[#allocation7 + $0xf8] sm:$0xff] }
 0x2ee   :  { %1273 = vmatpush1.msra.mxu1 %v8261_v53  ;;  %1433 = vmatprep.subr.mxu0 %v5052_v41  ;;  %8268 = vst [vmem:[#allocation88_spill] sm:$0xff] %v5068_v61  ;;  %v8269_v53 = vld [vmem:[#allocation71_spill] sm:$0xff] }
 0x2ef   :  { %1274 = vmatprep.subr.mxu1 %v8262_v37  ;;  %1434 = vmatpush1.msra.mxu0 %v5056_v38  ;;  %v5072_v37 = vld [vmem:[#allocation7 + $0xf0] sm:$0xff] }
 0x2f0   :  { %1275 = vmatpush1.msra.mxu1 %v8263_v19  ;;  %1435 = vmatprep.subr.mxu0 %v5060_v6  ;;  %8270 = vst [vmem:[#allocation17_spill] sm:$0xff] %v5072_v37  ;;  %v8271_v19 = vld [vmem:[#allocation72_spill] sm:$0xff] }
 0x2f1   :  { %1276 = vmatprep.subr.mxu1 %v8265_v7  ;;  %1436 = vmatpush1.msra.mxu0 %v5064_v2  ;;  %v5076_v6 = vld [vmem:[#allocation7 + $0xc8] sm:$0xff]  ;;  %v5080_v2 = vld [vmem:[#allocation7 + $0xc0] sm:$0xff] }
 0x2f2   :  { %1277 = vmatpush1.msra.mxu1 %v8267_v48  ;;  %1437 = vmatprep.subr.mxu0 %v5068_v61  ;;  %8272 = vst [vmem:[#allocation90_spill] sm:$0xff] %v5076_v6  ;;  %v8273_v7 = vld [vmem:[#allocation73_spill] sm:$0xff]  ;;  %8274 = vst [vmem:[#allocation18_spill] sm:$0xff] %v5080_v2  ;;  %v8275_v48 = vld [vmem:[#allocation74_spill] sm:$0xff] }
 0x2f3   :  { %1278 = vmatprep.subr.mxu1 %v8269_v53  ;;  %1438 = vmatpush1.msra.mxu0 %v5072_v37  ;;  %v5084_v61 = vld [vmem:[#allocation7 + $0x98] sm:$0xff]  ;;  %v5088_v37 = vld [vmem:[#allocation7 + $0x90] sm:$0xff] }
 0x2f4   :  { %1279 = vmatpush1.msra.mxu1 %v8271_v19  ;;  %1439 = vmatprep.subr.mxu0 %v5076_v6  ;;  %8276 = vst [vmem:[#allocation92_spill] sm:$0xff] %v5084_v61  ;;  %v8277_v53 = vld [vmem:[#allocation75_spill] sm:$0xff]  ;;  %8278 = vst [vmem:[#allocation19_spill] sm:$0xff] %v5088_v37  ;;  %v8279_v19 = vld [vmem:[#allocation76_spill] sm:$0xff] }
 0x2f5   :  { %1280 = vmatprep.subr.mxu1 %v8273_v7  ;;  %1440 = vmatpush1.msra.mxu0 %v5080_v2  ;;  %v5092_v6 = vld [vmem:[#allocation7 + $0x68] sm:$0xff]  ;;  %v5096_v2 = vld [vmem:[#allocation7 + $0x60] sm:$0xff] }
 0x2f6   :  { %1281 = vmatpush1.msra.mxu1 %v8275_v48  ;;  %1441 = vmatprep.subr.mxu0 %v5084_v61  ;;  %8280 = vst [vmem:[#allocation94_spill] sm:$0xff] %v5092_v6  ;;  %v8281_v7 = vld [vmem:[#allocation77_spill] sm:$0xff]  ;;  %8282 = vst [vmem:[#allocation20_spill] sm:$0xff] %v5096_v2  ;;  %v8283_v48 = vld [vmem:[#allocation79_spill] sm:$0xff] }
 0x2f7   :  { %1282 = vmatprep.subr.mxu1 %v8277_v53  ;;  %1442 = vmatpush1.msra.mxu0 %v5088_v37  ;;  %v5100_v61 = vld [vmem:[#allocation7 + $0x38] sm:$0xff]  ;;  %v8285_v53 = vld [vmem:[#allocation81_spill] sm:$0xff] }
 0x2f8   :  { %1283 = vmatpush1.msra.mxu1 %v8279_v19  ;;  %1443 = vmatprep.subr.mxu0 %v5092_v6  ;;  %8284 = vst [vmem:[#allocation96_spill] sm:$0xff] %v5100_v61  ;;  %v5104_v37 = vld [vmem:[#allocation7 + $0x30] sm:$0xff]  ;;  %v8287_v19 = vld [vmem:[#allocation83_spill] sm:$0xff]  ;;  %v5108_v6 = vld [vmem:[#allocation7 + $0x8] sm:$0xff] }
 0x2f9   :  { %1284 = vmatprep.subr.mxu1 %v8281_v7  ;;  %1444 = vmatpush1.msra.mxu0 %v5096_v2  ;;  %8286 = vst [vmem:[#allocation21_spill] sm:$0xff] %v5104_v37  ;;  %8288 = vst [vmem:[#allocation98_spill] sm:$0xff] %v5108_v6  ;;  %v8289_v7 = vld [vmem:[#allocation85_spill] sm:$0xff]  ;;  %v5112_v2 = vld [vmem:[#allocation7] sm:$0xff] }
 0x2fa   :  { %1285 = vmatpush1.msra.mxu1 %v8283_v48  ;;  %1445 = vmatprep.subr.mxu0 %v5100_v61  ;;  %8290 = vst [vmem:[#allocation22_spill] sm:$0xff] %v5112_v2  ;;  %v8291_v48 = vld [vmem:[#allocation87_spill] sm:$0xff] }
 0x2fb   :  { %1286 = vmatprep.subr.mxu1 %v8285_v53  ;;  %1446 = vmatpush1.msra.mxu0 %v5104_v37  ;;  %v5116_v61 = vld [vmem:[#allocation7 + $0x5d8] sm:$0xff]  ;;  %v8293_v53 = vld [vmem:[#allocation89_spill] sm:$0xff] }
 0x2fc   :  { %1287 = vmatpush1.msra.mxu1 %v8287_v19  ;;  %1447 = vmatprep.subr.mxu0 %v5108_v6  ;;  %8292 = vst [vmem:[#allocation100_spill] sm:$0xff] %v5116_v61  ;;  %v5120_v37 = vld [vmem:[#allocation7 + $0x5d0] sm:$0xff]  ;;  %v8295_v19 = vld [vmem:[#allocation91_spill] sm:$0xff]  ;;  %v5124_v6 = vld [vmem:[#allocation7 + $0x5a8] sm:$0xff] }
 0x2fd   :  { %1288 = vmatprep.subr.mxu1 %v8289_v7  ;;  %1448 = vmatpush1.msra.mxu0 %v5112_v2  ;;  %8294 = vst [vmem:[#allocation23_spill] sm:$0xff] %v5120_v37  ;;  %8296 = vst [vmem:[#allocation102_spill] sm:$0xff] %v5124_v6  ;;  %v8297_v7 = vld [vmem:[#allocation93_spill] sm:$0xff]  ;;  %v5128_v2 = vld [vmem:[#allocation7 + $0x5a0] sm:$0xff] }
 0x2fe   :  { %1289 = vmatpush2.msra.mxu1 %v8291_v48  ;;  %1449 = vmatprep.subr.mxu0 %v5116_v61  ;;  %8298 = vst [vmem:[#allocation24_spill] sm:$0xff] %v5128_v2  ;;  %v8299_v48 = vld [vmem:[#allocation95_spill] sm:$0xff] }
 0x2ff   :  { %1290 = vmatprep.subr.mxu1 %v8293_v53  ;;  %1450 = vmatpush2.msra.mxu0 %v5120_v37  ;;  %v5132_v61 = vld [vmem:[#allocation7 + $0x578] sm:$0xff]  ;;  %v8301_v53 = vld [vmem:[#allocation97_spill] sm:$0xff] }
 0x300   :  { %1291 = vmatpush2.msra.mxu1 %v8295_v19  ;;  %1451 = vmatprep.subr.mxu0 %v5124_v6  ;;  %8300 = vst [vmem:[#allocation104_spill] sm:$0xff] %v5132_v61  ;;  %v5136_v37 = vld [vmem:[#allocation7 + $0x570] sm:$0xff]  ;;  %v8303_v19 = vld [vmem:[#allocation99_spill] sm:$0xff]  ;;  %v5140_v6 = vld [vmem:[#allocation7 + $0x548] sm:$0xff] }
 0x301   :  { %1292 = vmatprep.subr.mxu1 %v8297_v7  ;;  %1452 = vmatpush2.msra.mxu0 %v5128_v2  ;;  %8302 = vst [vmem:[#allocation25_spill] sm:$0xff] %v5136_v37  ;;  %8304 = vst [vmem:[#allocation106_spill] sm:$0xff] %v5140_v6  ;;  %v8305_v7 = vld [vmem:[#allocation101_spill] sm:$0xff]  ;;  %v5144_v2 = vld [vmem:[#allocation7 + $0x540] sm:$0xff] }
 0x302   :  { %1293 = vmatpush2.msra.mxu1 %v8299_v48  ;;  %1453 = vmatprep.subr.mxu0 %v5132_v61  ;;  %8306 = vst [vmem:[#allocation26_spill] sm:$0xff] %v5144_v2  ;;  %v8307_v48 = vld [vmem:[#allocation103_spill] sm:$0xff] }
 0x303   :  { %1294 = vmatprep.subr.mxu1 %v8301_v53  ;;  %1454 = vmatpush2.msra.mxu0 %v5136_v37  ;;  %v5148_v61 = vld [vmem:[#allocation7 + $0x518] sm:$0xff]  ;;  %v8309_v53 = vld [vmem:[#allocation105_spill] sm:$0xff] }
 0x304   :  { %1295 = vmatpush2.msra.mxu1 %v8303_v19  ;;  %1455 = vmatprep.subr.mxu0 %v5140_v6  ;;  %8308 = vst [vmem:[#allocation108_spill] sm:$0xff] %v5148_v61  ;;  %v5152_v37 = vld [vmem:[#allocation7 + $0x510] sm:$0xff]  ;;  %v8311_v19 = vld [vmem:[#allocation107_spill] sm:$0xff]  ;;  %v5156_v6 = vld [vmem:[#allocation7 + $0x4e8] sm:$0xff] }
 0x305   :  { %1296 = vmatprep.subr.mxu1 %v8305_v7  ;;  %1456 = vmatpush2.msra.mxu0 %v5144_v2  ;;  %8310 = vst [vmem:[#allocation27_spill] sm:$0xff] %v5152_v37  ;;  %8312 = vst [vmem:[#allocation110_spill] sm:$0xff] %v5156_v6  ;;  %v8313_v7 = vld [vmem:[#allocation109_spill] sm:$0xff]  ;;  %v5160_v2 = vld [vmem:[#allocation7 + $0x4e0] sm:$0xff] }
 0x306   :  { %1297 = vmatpush2.msra.mxu1 %v8307_v48  ;;  %1457 = vmatprep.subr.mxu0 %v5148_v61  ;;  %8314 = vst [vmem:[#allocation28_spill] sm:$0xff] %v5160_v2  ;;  %v8315_v48 = vld [vmem:[#allocation111_spill] sm:$0xff] }
 0x307   :  { %1298 = vmatprep.subr.mxu1 %v8309_v53  ;;  %1458 = vmatpush2.msra.mxu0 %v5152_v37  ;;  %v5164_v61 = vld [vmem:[#allocation7 + $0x4b8] sm:$0xff]  ;;  %v8317_v53 = vld [vmem:[#allocation113_spill] sm:$0xff] }
 0x308   :  { %1299 = vmatpush2.msra.mxu1 %v8311_v19  ;;  %1459 = vmatprep.subr.mxu0 %v5156_v6  ;;  %8316 = vst [vmem:[#allocation112_spill] sm:$0xff] %v5164_v61  ;;  %v5168_v37 = vld [vmem:[#allocation7 + $0x4b0] sm:$0xff]  ;;  %v8319_v19 = vld [vmem:[#allocation115_spill] sm:$0xff]  ;;  %v5172_v6 = vld [vmem:[#allocation7 + $0x488] sm:$0xff] }
 0x309   :  { %1300 = vmatprep.subr.mxu1 %v8313_v7  ;;  %1460 = vmatpush2.msra.mxu0 %v5160_v2  ;;  %8318 = vst [vmem:[#allocation29_spill] sm:$0xff] %v5168_v37  ;;  %8320 = vst [vmem:[#allocation114_spill] sm:$0xff] %v5172_v6  ;;  %v8321_v7 = vld [vmem:[#allocation117_spill] sm:$0xff]  ;;  %v5176_v2 = vld [vmem:[#allocation7 + $0x480] sm:$0xff] }
 0x30a   :  { %1301 = vmatpush2.msra.mxu1 %v8315_v48  ;;  %1461 = vmatprep.subr.mxu0 %v5164_v61  ;;  %8322 = vst [vmem:[#allocation30_spill] sm:$0xff] %v5176_v2  ;;  %v8323_v48 = vld [vmem:[#allocation119_spill] sm:$0xff] }
 0x30b   :  { %1302 = vmatprep.subr.mxu1 %v8317_v53  ;;  %1462 = vmatpush2.msra.mxu0 %v5168_v37  ;;  %v5180_v61 = vld [vmem:[#allocation7 + $0x458] sm:$0xff]  ;;  %v8325_v53 = vld [vmem:[#allocation121_spill] sm:$0xff] }
 0x30c   :  { %1303 = vmatpush2.msra.mxu1 %v8319_v19  ;;  %1463 = vmatprep.subr.mxu0 %v5172_v6  ;;  %8324 = vst [vmem:[#allocation116_spill] sm:$0xff] %v5180_v61  ;;  %v5184_v37 = vld [vmem:[#allocation7 + $0x450] sm:$0xff]  ;;  %v8327_v19 = vld [vmem:[#allocation123_spill] sm:$0xff]  ;;  %v5188_v6 = vld [vmem:[#allocation7 + $0x428] sm:$0xff] }
 0x30d   :  { %1304 = vmatprep.subr.mxu1 %v8321_v7  ;;  %1464 = vmatpush2.msra.mxu0 %v5176_v2  ;;  %8326 = vst [vmem:[#allocation31_spill] sm:$0xff] %v5184_v37  ;;  %8328 = vst [vmem:[#allocation118_spill] sm:$0xff] %v5188_v6  ;;  %v8329_v7 = vld [vmem:[#allocation125_spill] sm:$0xff]  ;;  %v5192_v2 = vld [vmem:[#allocation7 + $0x420] sm:$0xff] }
 0x30e   :  { %1305 = vmatpush2.msra.mxu1 %v8323_v48  ;;  %1465 = vmatprep.subr.mxu0 %v5180_v61  ;;  %8330 = vst [vmem:[#allocation32_spill] sm:$0xff] %v5192_v2  ;;  %v8331_v48 = vld [vmem:[#allocation127_spill] sm:$0xff] }
 0x30f   :  { %1306 = vmatprep.subr.mxu1 %v8325_v53  ;;  %1466 = vmatpush2.msra.mxu0 %v5184_v37  ;;  %v5196_v61 = vld [vmem:[#allocation7 + $0x3f8] sm:$0xff]  ;;  %v8333_v53 = vld [vmem:[#allocation129_spill] sm:$0xff] }
 0x310   :  { %1307 = vmatpush2.msra.mxu1 %v8327_v19  ;;  %1467 = vmatprep.subr.mxu0 %v5188_v6  ;;  %8332 = vst [vmem:[#allocation120_spill] sm:$0xff] %v5196_v61  ;;  %v5200_v37 = vld [vmem:[#allocation7 + $0x3f0] sm:$0xff]  ;;  %v8335_v19 = vld [vmem:[#allocation131_spill] sm:$0xff]  ;;  %v5204_v6 = vld [vmem:[#allocation7 + $0x3c8] sm:$0xff] }
 0x311   :  { %1308 = vmatprep.subr.mxu1 %v8329_v7  ;;  %1468 = vmatpush2.msra.mxu0 %v5192_v2  ;;  %8334 = vst [vmem:[#allocation33_spill] sm:$0xff] %v5200_v37  ;;  %8336 = vst [vmem:[#allocation122_spill] sm:$0xff] %v5204_v6  ;;  %v8337_v7 = vld [vmem:[#allocation133_spill] sm:$0xff]  ;;  %v5208_v2 = vld [vmem:[#allocation7 + $0x3c0] sm:$0xff] }
 0x312   :  { %1309 = vmatpush2.msra.mxu1 %v8331_v48  ;;  %1469 = vmatprep.subr.mxu0 %v5196_v61  ;;  %8338 = vst [vmem:[#allocation34_spill] sm:$0xff] %v5208_v2  ;;  %v8339_v48 = vld [vmem:[#allocation135_spill] sm:$0xff] }
 0x313   :  { %1310 = vmatprep.subr.mxu1 %v8333_v53  ;;  %1470 = vmatpush2.msra.mxu0 %v5200_v37  ;;  %v5212_v61 = vld [vmem:[#allocation7 + $0x398] sm:$0xff]  ;;  %v8341_v53 = vld [vmem:[#allocation136_spill] sm:$0xff]  ;;  %v5216_v37 = vld [vmem:[#allocation7 + $0x390] sm:$0xff] }
 0x314   :  { %1311 = vmatpush2.msra.mxu1 %v8335_v19  ;;  %1471 = vmatprep.subr.mxu0 %v5204_v6  ;;  %8340 = vst [vmem:[#allocation124_spill] sm:$0xff] %v5212_v61  ;;  %8342 = vst [vmem:[#allocation35_spill] sm:$0xff] %v5216_v37  ;;  %v8343_v19 = vld [vmem:[#allocation137_spill] sm:$0xff] }
 0x315   :  { %1312 = vmatprep.subr.mxu1 %v8337_v7  ;;  %1472 = vmatpush2.msra.mxu0 %v5208_v2  ;;  %v5220_v6 = vld [vmem:[#allocation7 + $0x368] sm:$0xff]  ;;  %v8345_v7 = vld [vmem:[#allocation138_spill] sm:$0xff]  ;;  %v5224_v2 = vld [vmem:[#allocation7 + $0x360] sm:$0xff] }
 0x316   :  { %1313 = vmatpush2.msra.mxu1 %v8339_v48  ;;  %1473 = vmatprep.subr.mxu0 %v5212_v61  ;;  %8344 = vst [vmem:[#allocation126_spill] sm:$0xff] %v5220_v6  ;;  %v8346_v48 = vld [vmem:[#allocation139_spill] sm:$0xff] }
 0x317   :  { %1314 = vmatprep.subr.mxu1 %v8341_v53  ;;  %1474 = vmatpush2.msra.mxu0 %v5216_v37  ;;  %v5228_v61 = vld [vmem:[#allocation7 + $0x338] sm:$0xff]  ;;  %v8347_v53 = vld [vmem:[#allocation140_spill] sm:$0xff]  ;;  %v5232_v37 = vld [vmem:[#allocation7 + $0x330] sm:$0xff] }
 0x318   :  { %1315 = vmatpush2.msra.mxu1 %v8343_v19  ;;  %1475 = vmatprep.subr.mxu0 %v5220_v6  ;;  %8348 = vst [vmem:[#allocation37_spill] sm:$0xff] %v5232_v37  ;;  %v8349_v19 = vld [vmem:[#allocation141_spill] sm:$0xff] }
 0x319   :  { %1316 = vmatprep.subr.mxu1 %v8345_v7  ;;  %1476 = vmatpush2.msra.mxu0 %v5224_v2  ;;  %v5236_v6 = vld [vmem:[#allocation7 + $0x308] sm:$0xff] }
 0x31a   :  { %1317 = vmatpush2.msra.mxu1 %v8346_v48  ;;  %1477 = vmatprep.subr.mxu0 %v5228_v61  ;;  %8350 = vst [vmem:[#allocation128_spill] sm:$0xff] %v5236_v6  ;;  %v5240_v7 = vld [vmem:[#allocation7 + $0x2e8] sm:$0xff]  ;;  %v5243_v48 = vld [vmem:[#allocation7 + $0x2e0] sm:$0xff] }
 0x31b   :  { %1318 = vmatprep.subr.mxu1 %v8347_v53  ;;  %1478 = vmatpush2.msra.mxu0 %v5232_v37  ;;  %8351 = vst [vmem:[#allocation38_spill] sm:$0xff] %v5240_v7  ;;  %8352 = vst [vmem:[#allocation130_spill] sm:$0xff] %v5243_v48  ;;  %v5246_v53 = vld [vmem:[#allocation7 + $0x300] sm:$0xff]  ;;  %v5249_v37 = vld [vmem:[#allocation7 + $0x2b8] sm:$0xff] }
 0x31c   :  { %1319 = vmatpush2.msra.mxu1 %v8349_v19  ;;  %1479 = vmatprep.subr.mxu0 %v5236_v6  ;;  %8353 = vst [vmem:[#allocation39_spill] sm:$0xff] %v5246_v53  ;;  %8354 = vst [vmem:[#allocation132_spill] sm:$0xff] %v5249_v37  ;;  %v5252_v19 = vld [vmem:[#allocation7 + $0x2f8] sm:$0xff]  ;;  %v5255_v6 = vld [vmem:[#allocation7 + $0x2b0] sm:$0xff] }
 0x31d   :  { %1321 = vmatmul.mubr.f32.vlgmr.msra.gmra.mxu1 %v4983_v11  ;;  %1488 = vmatprep.subr.mxu1 %v5240_v7  ;;  %8355 = vst [vmem:[#allocation40_spill] sm:$0xff] %v5252_v19  ;;  %8356 = vst [vmem:[#allocation134_spill] sm:$0xff] %v5255_v6  ;;  %v5258_v7 = vld [vmem:[#allocation7 + $0x288] sm:$0xff] }
 0x31e   :  { %1489 = vmatpush1.msra.mxu1 %v5243_v48  ;;  %1480 = vmatpush2.msra.mxu0 %v5246_v53  ;;  %8357 = vst [vmem:[#allocation41_spill] sm:$0xff] %v5258_v7  ;;  %v5261_v48 = vld [vmem:[#allocation7 + $0x280] sm:$0xff]  ;;  %v5264_v53 = vld [vmem:[#allocation7 + $0x258] sm:$0xff] }
 0x31f   :  { %1490 = vmatprep.subr.mxu1 %v5249_v37  ;;  %1559 = vmatprep.subr.mxu0 %v5252_v19  ;;  %8358 = vst [vmem:[#allocation43_spill] sm:$0xff] %v5261_v48  ;;  %8359 = vst [vmem:[#allocation45_spill] sm:$0xff] %v5264_v53  ;;  %v5267_v37 = vld [vmem:[#allocation7 + $0x250] sm:$0xff]  ;;  %v5270_v19 = vld [vmem:[#allocation7 + $0x228] sm:$0xff] }
 0x320   :  { %1491 = vmatpush1.msra.mxu1 %v5255_v6  ;;  %8360 = vst [vmem:[#allocation46_spill] sm:$0xff] %v5267_v37  ;;  %8361 = vst [vmem:[#allocation47_spill] sm:$0xff] %v5270_v19  ;;  %v5273_v6 = vld [vmem:[#allocation7 + $0x220] sm:$0xff] }
 0x321   :  { %1492 = vmatprep.subr.mxu1 %v5258_v7  ;;  %8362 = vst [vmem:[#allocation48_spill] sm:$0xff] %v5273_v6  ;;  %v5276_v7 = vld [vmem:[#allocation7 + $0x1f8] sm:$0xff] }
 0x322   :  { %1493 = vmatpush1.msra.mxu1 %v5261_v48  ;;  %8363 = vst [vmem:[#allocation49_spill] sm:$0xff] %v5276_v7  ;;  %v5279_v48 = vld [vmem:[#allocation7 + $0x1f0] sm:$0xff] }
 0x323   :  { %1494 = vmatprep.subr.mxu1 %v5264_v53  ;;  %8364 = vst [vmem:[#allocation44_spill] sm:$0xff] %v5279_v48  ;;  %v5282_v53 = vld [vmem:[#allocation7 + $0x1c8] sm:$0xff] }
 0x324   :  { %1495 = vmatpush1.msra.mxu1 %v5267_v37  ;;  %8365 = vst [vmem:[#allocation42_spill] sm:$0xff] %v5282_v53  ;;  %v5285_v37 = vld [vmem:[#allocation7 + $0x1c0] sm:$0xff] }
 0x325   :  { %1496 = vmatprep.subr.mxu1 %v5270_v19  ;;  %8366 = vst [vmem:[#allocation36_spill] sm:$0xff] %v5285_v37  ;;  %v5288_v19 = vld [vmem:[#allocation7 + $0x198] sm:$0xff] }
 0x326   :  { %1497 = vmatpush1.msra.mxu1 %v5273_v6  ;;  %8367 = vst [vmem:[#allocation50_spill] sm:$0xff] %v5288_v19  ;;  %v5291_v6 = vld [vmem:[#allocation7 + $0x190] sm:$0xff] }
 0x327   :  { %1498 = vmatprep.subr.mxu1 %v5276_v7  ;;  %8368 = vst [vmem:[#allocation51_spill] sm:$0xff] %v5291_v6  ;;  %v5294_v7 = vld [vmem:[#allocation7 + $0x168] sm:$0xff] }
 0x328   :  { %1499 = vmatpush1.msra.mxu1 %v5279_v48  ;;  %8369 = vst [vmem:[#allocation52_spill] sm:$0xff] %v5294_v7  ;;  %v5297_v48 = vld [vmem:[#allocation7 + $0x160] sm:$0xff] }
 0x329   :  { %1500 = vmatprep.subr.mxu1 %v5282_v53  ;;  %8370 = vst [vmem:[#allocation53_spill] sm:$0xff] %v5297_v48  ;;  %v5300_v53 = vld [vmem:[#allocation7 + $0x138] sm:$0xff] }
 0x32a   :  { %1501 = vmatpush1.msra.mxu1 %v5285_v37  ;;  %8371 = vst [vmem:[#allocation54_spill] sm:$0xff] %v5300_v53  ;;  %v5303_v37 = vld [vmem:[#allocation7 + $0x130] sm:$0xff] }
 0x32b   :  { %1502 = vmatprep.subr.mxu1 %v5288_v19  ;;  %8372 = vst [vmem:[#allocation55_spill] sm:$0xff] %v5303_v37  ;;  %v5306_v19 = vld [vmem:[#allocation7 + $0x108] sm:$0xff] }
 0x32c   :  { %1503 = vmatpush1.msra.mxu1 %v5291_v6  ;;  %8373 = vst [vmem:[#allocation56_spill] sm:$0xff] %v5306_v19  ;;  %v5309_v6 = vld [vmem:[#allocation7 + $0x100] sm:$0xff] }
 0x32d   :  { %1504 = vmatprep.subr.mxu1 %v5294_v7  ;;  %8374 = vst [vmem:[#allocation57_spill] sm:$0xff] %v5309_v6  ;;  %v5312_v7 = vld [vmem:[#allocation7 + $0xd8] sm:$0xff] }
 0x32e   :  { %1505 = vmatpush1.msra.mxu1 %v5297_v48  ;;  %8375 = vst [vmem:[#allocation58_spill] sm:$0xff] %v5312_v7  ;;  %v5315_v48 = vld [vmem:[#allocation7 + $0xd0] sm:$0xff] }
 0x32f   :  { %1506 = vmatprep.subr.mxu1 %v5300_v53  ;;  %8376 = vst [vmem:[#allocation59_spill] sm:$0xff] %v5315_v48  ;;  %v5318_v53 = vld [vmem:[#allocation7 + $0xa8] sm:$0xff] }
 0x330   :  { %1507 = vmatpush1.msra.mxu1 %v5303_v37  ;;  %8377 = vst [vmem:[#allocation60_spill] sm:$0xff] %v5318_v53  ;;  %v5321_v37 = vld [vmem:[#allocation7 + $0xa0] sm:$0xff] }
 0x331   :  { %1508 = vmatprep.subr.mxu1 %v5306_v19  ;;  %8378 = vst [vmem:[#allocation61_spill] sm:$0xff] %v5321_v37  ;;  %v5324_v19 = vld [vmem:[#allocation7 + $0x78] sm:$0xff] }
 0x332   :  { %1509 = vmatpush1.msra.mxu1 %v5309_v6  ;;  %8379 = vst [vmem:[#allocation62_spill] sm:$0xff] %v5324_v19  ;;  %v5327_v6 = vld [vmem:[#allocation7 + $0x70] sm:$0xff] }
 0x333   :  { %1510 = vmatprep.subr.mxu1 %v5312_v7  ;;  %8380 = vst [vmem:[#allocation63_spill] sm:$0xff] %v5327_v6  ;;  %v5330_v7 = vld [vmem:[#allocation7 + $0x48] sm:$0xff] }
 0x334   :  { %1511 = vmatpush1.msra.mxu1 %v5315_v48  ;;  %8381 = vst [vmem:[#allocation64_spill] sm:$0xff] %v5330_v7  ;;  %v5333_v48 = vld [vmem:[#allocation7 + $0x40] sm:$0xff] }
 0x335   :  { %1512 = vmatprep.subr.mxu1 %v5318_v53  ;;  %8382 = vst [vmem:[#allocation65_spill] sm:$0xff] %v5333_v48  ;;  %v5336_v53 = vld [vmem:[#allocation7 + $0x18] sm:$0xff] }
 0x336   :  { %1513 = vmatpush1.msra.mxu1 %v5321_v37  ;;  %8383 = vst [vmem:[#allocation66_spill] sm:$0xff] %v5336_v53  ;;  %v5339_v37 = vld [vmem:[#allocation7 + $0x10] sm:$0xff] }
 0x337   :  { %1514 = vmatprep.subr.mxu1 %v5324_v19  ;;  %v5342_v19 = vld [vmem:[#allocation7 + $0x5e8] sm:$0xff] }
 0x338   :  { %1515 = vmatpush1.msra.mxu1 %v5327_v6  ;;  %v5345_v6 = vld [vmem:[#allocation7 + $0x5e0] sm:$0xff] }
 0x339   :  { %1516 = vmatprep.subr.mxu1 %v5330_v7  ;;  %v5348_v7 = vld [vmem:[#allocation7 + $0x5b8] sm:$0xff] }
 0x33a   :  { %1517 = vmatpush1.msra.mxu1 %v5333_v48  ;;  %v5351_v48 = vld [vmem:[#allocation7 + $0x5b0] sm:$0xff] }
 0x33b   :  { %1518 = vmatprep.subr.mxu1 %v5336_v53  ;;  %v5354_v53 = vld [vmem:[#allocation7 + $0x588] sm:$0xff] }
 0x33c   :  { %1519 = vmatpush1.msra.mxu1 %v5339_v37 }
 0x33d   :  { %1520 = vmatprep.subr.mxu1 %v5342_v19 }
 0x33e   :  { %1521 = vmatpush2.msra.mxu1 %v5345_v6 }
 0x33f   :  { %1522 = vmatprep.subr.mxu1 %v5348_v7 }
 0x340   :  { %1523 = vmatpush2.msra.mxu1 %v5351_v48 }
 0x341   :  { %1524 = vmatprep.subr.mxu1 %v5354_v53 }
 0x342   :  { %1525 = vmatpush2.msra.mxu1 %v8183_v4 }
 0x343   :  { %1526 = vmatprep.subr.mxu1 %v8185_v8 }
 0x344   :  { %1527 = vmatpush2.msra.mxu1 %v8187_v13 }
 0x345   :  { %1528 = vmatprep.subr.mxu1 %v8189_v44 }
 0x346   :  { %1529 = vmatpush2.msra.mxu1 %v8191_v52 }
 0x347   :  { %1530 = vmatprep.subr.mxu1 %v8193_v60 }
 0x348   :  { %1531 = vmatpush2.msra.mxu1 %v8195_v5 }
 0x349   :  { %1532 = vmatprep.subr.mxu1 %v8197_v14 }
 0x34a   :  { %1533 = vmatpush2.msra.mxu1 %v8199_v23 }
 0x34b   :  { %1534 = vmatprep.subr.mxu1 %v8201_v30 }
 0x34c   :  { %1535 = vmatpush2.msra.mxu1 %v8203_v54 }
 0x34d   :  { %1536 = vmatprep.subr.mxu1 %v8205_v16 }
 0x34e   :  { %1537 = vmatpush2.msra.mxu1 %v8207_v32  ;;  %v8387_v32 = vld [vmem:[#allocation14_spill] sm:$0xff] }
 0x34f   :  { %1538 = vmatprep.subr.mxu1 %v8209_v58 }
 0x350   :  { %1539 = vmatpush2.msra.mxu1 %v8211_v1  ;;  %v8388_v1 = vld [vmem:[#allocation84_spill] sm:$0xff] }
 0x351   :  { %1540 = vmatprep.subr.mxu1 %v8213_v46 }
 0x352   :  { %1541 = vmatpush2.msra.mxu1 %v8215_v35 }
 0x353   :  { %1542 = vmatprep.subr.mxu1 %v8217_v39 }
 0x354   :  { %1543 = vmatpush2.msra.mxu1 %v8219_v43 }
 0x355   :  { %1544 = vmatprep.subr.mxu1 %v8221_v47 }
 0x356   :  { %1545 = vmatpush2.msra.mxu1 %v8223_v51 }
 0x357   :  { %1546 = vmatprep.subr.mxu1 %v4736_v24 }
 0x358   :  { %1547 = vmatpush2.msra.mxu1 %v4742_v22 }
 0x359   :  { %1548 = vmatprep.subr.mxu1 %v4748_v20  ;;  %v8384_v20 = vld [vmem:[#allocation80_spill] sm:$0xff] }
 0x35a   :  { %1549 = vmatpush2.msra.mxu1 %v4754_v17 }
 0x35b   :  { %1550 = vmatprep.subr.mxu1 %v4760_v40  ;;  %v8385_v40 = vld [vmem:[#allocation13_spill] sm:$0xff] }
 0x35c   :  { %1551 = vmatpush2.msra.mxu1 %v4766_v36 }
 0x35d   :  { %1720 = vmatprep.subr.mxu1 %v4780_v29  ;;  %v8386_v29 = vld [vmem:[#allocation82_spill] sm:$0xff] }
 0x39d   :  { %v1180_v4 = vpop.f32.mrf.mxu1  ;;  %v1251_v60 = vpop.f32.mrf.mxu0 }
 0x39e   :  { %v1181_v13 = vadd.f32 %v1180_v4, %v4933_v0  ;;  %v1252_v23 = vadd.f32 %v1251_v60, %v8385_v40 }
 0x39f   :  { %v1182_v8 = vpop.f32.mrf.mxu1  ;;  %v1253_v14 = vpop.f32.mrf.mxu0 }
 0x3a0   :  { %v1183_v44 = vadd.f32 %v1182_v8, %v4937_v62  ;;  %v1329_v52 = vrot.slane %v1181_v13, 7  ;;  %v1254_v30 = vadd.f32 %v1253_v14, %v8386_v29  ;;  %v1349_v54 = vrot.slane %v1252_v23, 7 }
 0x3a2   :  { %v1330_v24 = vrot.slane %v1183_v44, 7  ;;  %v1333_v22 = vadd.f32 %v1329_v52, %v4941_v28  ;;  %v1350_v16 = vrot.slane %v1254_v30, 7  ;;  %v1353_v58 = vadd.f32 %v1349_v54, %v8387_v32 }
 0x3a4   :  { %v1334_v5 = vadd.f32 %v1330_v24, %v8384_v20  ;;  %v3259_v17 = vmul.f32 -1.442695, %v1333_v22  ;;  %v1354_v46 = vadd.f32 %v1350_v16, %v8388_v1  ;;  %v3261_v35 = vmul.f32 -1.442695, %v1353_v58 }
 0x3a6   :  { %v3260_v36 = vmul.f32 -1.442695, %v1334_v5  ;;  %3326 = vpow2.f32 %v3259_v17  ;;  %v3262_v39 = vmul.f32 -1.442695, %v1354_v46 }
 0x3a8   :  { %3328 = vpow2.f32 %v3260_v36 }
 0x3a9   :  { %3330 = vpow2.f32 %v3261_v35 }
 0x3aa   :  { %3332 = vpow2.f32 %v3262_v39 }
 0x3b3   :  { %v3327_v43 = vpop.eup %3326 }
 0x3b4   :  { %v1341_v51 = vadd.f32 1.0, %v3327_v43 }
 0x3b5   :  { %v3329_v47 = vpop.eup %3328 }
 0x3b6   :  { %v1342_v4 = vadd.f32 1.0, %v3329_v47  ;;  %3334 = vrcp.f32 %v1341_v51  ;;  %v3331_v8 = vpop.eup %3330  ;;  %v1383_v47 = vrot.slane %v4983_v11, 7 }
 0x3b7   :  { %v3333_v13 = vpop.eup %3332  ;;  %v1361_v52 = vadd.f32 1.0, %v3331_v8 }
 0x3b8   :  { %3336 = vrcp.f32 %v1342_v4  ;;  %v1362_v60 = vadd.f32 1.0, %v3333_v13  ;;  %v1384_v4 = vrot.slane %v4981_v42, 7 }
 0x3b9   :  { %3338 = vrcp.f32 %v1361_v52 }
 0x3ba   :  { %3340 = vrcp.f32 %v1362_v60 }
 0x3c3   :  { %v3335_v14 = vpop.eup %3334 }
 0x3c5   :  { %v3337_v30 = vpop.eup %3336 }
 0x3c6   :  { %v3339_v46 = vpop.eup %3338 }
 0x3c7   :  { %v3341_v35 = vpop.eup %3340  ;;  %v1379_v39 = vsub.f32 1.0, %v3339_v46 }
 0x3c8   :  { %v1380_v51 = vsub.f32 1.0, %v3341_v35 }
 0x3dd   :  { %v1322_v44 = vpop.f32.mrf.mxu1 }
 0x3de   :  { %v1323_v24 = vadd.f32 %v1322_v44, %v4963_v56  ;;  %v1387_v44 = vmul.f32 %v3339_v46, %v1383_v47  ;;  %v5449_v46 = vld [vmem:[#allocation7 + $0x230] sm:$0xff]  ;;  %v5505_v47 = vld [vmem:[#allocation7 + $0xe0] sm:$0xff] }
 0x3df   :  { %v1324_v22 = vpop.f32.mrf.mxu1 }
 0x3e0   :  { %v1369_v5 = vrot.slane %v1323_v24, 7  ;;  %v1325_v17 = vadd.f32 %v1324_v22, %v4966_v15  ;;  %v1388_v24 = vmul.f32 %v3341_v35, %v1384_v4  ;;  %v5493_v35 = vld [vmem:[#allocation7 + $0x118] sm:$0xff] }
 0x3e1   :  { %v5509_v4 = vld [vmem:[#allocation7 + $0xb8] sm:$0xff] }
 0x3e2   :  { %v1373_v23 = vmul.f32 %v3335_v14, %v1369_v5  ;;  %v1370_v36 = vrot.slane %v1325_v17, 7 }
 0x3e4   :  { %v1375_v54 = vadd.f32 %v1373_v23, %v4970_v63  ;;  %v1374_v16 = vmul.f32 %v3337_v30, %v1370_v36  ;;  %v5412_v23 = vld [vmem:[#allocation7 + $0x2f0] sm:$0xff]  ;;  %v5415_v36 = vld [vmem:[#allocation7 + $0x2c8] sm:$0xff] }
 0x3e6   :  { %3342 = vtanh.f32 %v1375_v54  ;;  %v1376_v58 = vadd.f32 %v1374_v16, %v4973_v9  ;;  %v5420_v54 = vld [vmem:[#allocation7 + $0x2c0] sm:$0xff]  ;;  %v5424_v16 = vld [vmem:[#allocation7 + $0x298] sm:$0xff] }
 0x3e8   :  { %3344 = vtanh.f32 %v1376_v58  ;;  %v5437_v58 = vld [vmem:[#allocation7 + $0x268] sm:$0xff] }
 0x3f3   :  { %v3343_v43 = vpop.eup %3342 }
 0x3f4   :  { %v1381_v8 = vmul.f32 %v3343_v43, %v1379_v39  ;;  %v5497_v39 = vld [vmem:[#allocation7 + $0x110] sm:$0xff]  ;;  %v5501_v43 = vld [vmem:[#allocation7 + $0xe8] sm:$0xff] }
 0x3f5   :  { %v3345_v13 = vpop.eup %3344 }
 0x3f6   :  { %v1382_v52 = vmul.f32 %v3345_v13, %v1380_v51  ;;  %v5399_v22 = vadd.f32 %v1387_v44, %v1381_v8  ;;  %v8393_v51 = vld [vmem:[#allocation90_spill] sm:$0xff]  ;;  %v8395_v44 = vld [vmem:[#allocation92_spill] sm:$0xff] }
 0x3f7   :  { %v8394_v8 = vld [vmem:[#allocation18_spill] sm:$0xff] }
 0x3f8   :  { %v5401_v60 = vadd.f32 %v1388_v24, %v1382_v52  ;;  %v5407_v14 = vrot.slane %v5399_v22, 1  ;;  %v5513_v13 = vld [vmem:[#allocation7 + $0xb0] sm:$0xff]  ;;  %v5517_v52 = vld [vmem:[#allocation7 + $0x88] sm:$0xff]  ;;  %v8396_v24 = vld [vmem:[#allocation19_spill] sm:$0xff] }
 0x3fa   :  { %v1414_v5 = vrot.slane %v5401_v60, 1  ;;  %v1393_v17 = vcombine.low %v5399_v22, %v5401_v60 }
 0x3fc   :  { %1481 = vmatprep.mubr.f32.mxu0 %v1414_v5  ;;  %1552 = vmatprep.mubr.f32.mxu1 %v1414_v5  ;;  %v1400_v42 = vrot.slane %v1393_v17, %v4979_v45  ;;  %v8397_v17 = vld [vmem:[#allocation94_spill] sm:$0xff] }
 0x3fd   :  { %1482 = vmatmul.mubr.f32.vlgmr.msra.gmra.mxu0 %v5407_v14  ;;  %1553 = vmatmul.mubr.f32.vlgmr.msra.gmra.mxu1 %v5407_v14 }
 0x3fe   :  { %v1401_v11 = vcombine.high %v1400_v42, %v1400_v42  ;;  %1560 = vmatpush1.msra.mxu0 %v5412_v23  ;;  %1623 = vmatprep.mubr.f32.mxu0 %v1414_v5  ;;  %v5521_v5 = vld [vmem:[#allocation7 + $0x80] sm:$0xff]  ;;  %v5525_v42 = vld [vmem:[#allocation7 + $0x58] sm:$0xff] }
 0x3ff   :  { %1561 = vmatprep.subr.mxu0 %v5415_v36  ;;  %1721 = vmatpush1.msra.mxu1 %v4784_v27  ;;  %v5433_v27 = vld [vmem:[#allocation7 + $0x290] sm:$0xff] }
 0x400   :  { %v1408_v30 = vrot.slane %v1401_v11, %v4979_v45  ;;  %1562 = vmatpush1.msra.mxu0 %v5420_v54  ;;  %1722 = vmatprep.subr.mxu1 %v4788_v25  ;;  %v5441_v25 = vld [vmem:[#allocation7 + $0x260] sm:$0xff] }
 0x401   :  { %1563 = vmatprep.subr.mxu0 %v5424_v16  ;;  %1723 = vmatpush1.msra.mxu1 %v4792_v33  ;;  %v5445_v33 = vld [vmem:[#allocation7 + $0x238] sm:$0xff]  ;;  %v8398_v11 = vld [vmem:[#allocation20_spill] sm:$0xff] }
 0x402   :  { %3263 = vst.msk [vmem:[%s7511_s7 + $0x1] ss:$8 sm:$0x3] %vm4995_vm2, %v1408_v30  ;;  %1564 = vmatpush1.msra.mxu0 %v5433_v27  ;;  %1724 = vmatprep.subr.mxu1 %v4796_v31  ;;  %v5453_v31 = vld [vmem:[#allocation7 + $0x208] sm:$0xff]  ;;  %v5529_v30 = vld [vmem:[#allocation7 + $0x50] sm:$0xff] }
 0x403   :  { %1565 = vmatprep.subr.mxu0 %v5437_v58  ;;  %1725 = vmatpush1.msra.mxu1 %v4800_v12  ;;  %v5457_v12 = vld [vmem:[#allocation7 + $0x200] sm:$0xff] }
 0x404   :  { %1566 = vmatpush1.msra.mxu0 %v5441_v25  ;;  %1726 = vmatprep.subr.mxu1 %v4804_v50  ;;  %v5461_v50 = vld [vmem:[#allocation7 + $0x1d8] sm:$0xff] }
 0x405   :  { %1567 = vmatprep.subr.mxu0 %v5445_v33  ;;  %1727 = vmatpush1.msra.mxu1 %v4808_v10  ;;  %v5465_v10 = vld [vmem:[#allocation7 + $0x1d0] sm:$0xff] }
 0x406   :  { %1568 = vmatpush1.msra.mxu0 %v5449_v46  ;;  %1728 = vmatprep.subr.mxu1 %v5020_v49  ;;  %v5469_v49 = vld [vmem:[#allocation7 + $0x1a8] sm:$0xff] }
 0x407   :  { %1569 = vmatprep.subr.mxu0 %v5453_v31  ;;  %1729 = vmatpush1.msra.mxu1 %v5024_v55  ;;  %v5473_v55 = vld [vmem:[#allocation7 + $0x1a0] sm:$0xff] }
 0x408   :  { %1570 = vmatpush1.msra.mxu0 %v5457_v12  ;;  %1730 = vmatprep.subr.mxu1 %v5028_v59  ;;  %v5477_v59 = vld [vmem:[#allocation7 + $0x178] sm:$0xff] }
 0x409   :  { %1571 = vmatprep.subr.mxu0 %v5461_v50  ;;  %1731 = vmatpush1.msra.mxu1 %v5032_v34  ;;  %v5481_v34 = vld [vmem:[#allocation7 + $0x170] sm:$0xff] }
 0x40a   :  { %1572 = vmatpush1.msra.mxu0 %v5465_v10  ;;  %1732 = vmatprep.subr.mxu1 %v5036_v57  ;;  %v5485_v57 = vld [vmem:[#allocation7 + $0x148] sm:$0xff] }
 0x40b   :  { %1573 = vmatprep.subr.mxu0 %v5469_v49  ;;  %1733 = vmatpush1.msra.mxu1 %v5040_v21  ;;  %v5489_v21 = vld [vmem:[#allocation7 + $0x140] sm:$0xff] }
 0x40c   :  { %1574 = vmatpush1.msra.mxu0 %v5473_v55  ;;  %1734 = vmatprep.subr.mxu1 %v5044_v26  ;;  %v8389_v26 = vld [vmem:[#allocation86_spill] sm:$0xff] }
 0x40d   :  { %1575 = vmatprep.subr.mxu0 %v5477_v59  ;;  %1735 = vmatpush1.msra.mxu1 %v5048_v3  ;;  %v8390_v3 = vld [vmem:[#allocation16_spill] sm:$0xff] }
 0x40e   :  { %1576 = vmatpush1.msra.mxu0 %v5481_v34  ;;  %1736 = vmatprep.subr.mxu1 %v5052_v41  ;;  %v8391_v41 = vld [vmem:[#allocation88_spill] sm:$0xff] }
 0x40f   :  { %1577 = vmatprep.subr.mxu0 %v5485_v57  ;;  %1737 = vmatpush1.msra.mxu1 %v5056_v38  ;;  %v8392_v38 = vld [vmem:[#allocation17_spill] sm:$0xff] }
 0x410   :  { %1578 = vmatpush1.msra.mxu0 %v5489_v21  ;;  %1738 = vmatprep.subr.mxu1 %v8389_v26  ;;  %v8399_v26 = vld [vmem:[#allocation96_spill] sm:$0xff] }
 0x411   :  { %1579 = vmatprep.subr.mxu0 %v5493_v35  ;;  %1739 = vmatpush1.msra.mxu1 %v8390_v3  ;;  %v5533_v3 = vld [vmem:[#allocation7 + $0x28] sm:$0xff] }
 0x412   :  { %1580 = vmatpush1.msra.mxu0 %v5497_v39  ;;  %1740 = vmatprep.subr.mxu1 %v8391_v41  ;;  %v8400_v41 = vld [vmem:[#allocation21_spill] sm:$0xff] }
 0x413   :  { %1581 = vmatprep.subr.mxu0 %v5501_v43  ;;  %1741 = vmatpush1.msra.mxu1 %v8392_v38  ;;  %v5537_v38 = vld [vmem:[#allocation7 + $0x20] sm:$0xff] }
 0x414   :  { %1582 = vmatpush1.msra.mxu0 %v5505_v47  ;;  %1742 = vmatprep.subr.mxu1 %v8393_v51  ;;  %v8401_v51 = vld [vmem:[#allocation98_spill] sm:$0xff] }
 0x415   :  { %1583 = vmatprep.subr.mxu0 %v5509_v4  ;;  %1743 = vmatpush1.msra.mxu1 %v8394_v8  ;;  %v5541_v8 = vld [vmem:[#allocation7 + $0x5f8] sm:$0xff] }
 0x416   :  { %1584 = vmatpush1.msra.mxu0 %v5513_v13  ;;  %1744 = vmatprep.subr.mxu1 %v8395_v44  ;;  %8402 = vst [vmem:[#allocation67_spill] sm:$0xff] %v5541_v8  ;;  %v8403_v44 = vld [vmem:[#allocation22_spill] sm:$0xff] }
 0x417   :  { %1585 = vmatprep.subr.mxu0 %v5517_v52  ;;  %1745 = vmatpush1.msra.mxu1 %v8396_v24  ;;  %v5545_v24 = vld [vmem:[#allocation7 + $0x5f0] sm:$0xff] }
 0x418   :  { %1586 = vmatpush1.msra.mxu0 %v5521_v5  ;;  %1746 = vmatprep.subr.mxu1 %v8397_v17  ;;  %8404 = vst [vmem:[#allocation68_spill] sm:$0xff] %v5545_v24  ;;  %v8405_v17 = vld [vmem:[#allocation100_spill] sm:$0xff] }
 0x419   :  { %1587 = vmatprep.subr.mxu0 %v5525_v42  ;;  %1747 = vmatpush1.msra.mxu1 %v8398_v11  ;;  %v5549_v11 = vld [vmem:[#allocation7 + $0x5c8] sm:$0xff] }
 0x41a   :  { %1588 = vmatpush1.msra.mxu0 %v5529_v30  ;;  %1748 = vmatprep.subr.mxu1 %v8399_v26  ;;  %8406 = vst [vmem:[#allocation69_spill] sm:$0xff] %v5549_v11  ;;  %v8407_v26 = vld [vmem:[#allocation23_spill] sm:$0xff] }
 0x41b   :  { %1589 = vmatprep.subr.mxu0 %v5533_v3  ;;  %1749 = vmatpush1.msra.mxu1 %v8400_v41  ;;  %v5553_v41 = vld [vmem:[#allocation7 + $0x5c0] sm:$0xff] }
 0x41c   :  { %1590 = vmatpush1.msra.mxu0 %v5537_v38  ;;  %1750 = vmatprep.subr.mxu1 %v8401_v51  ;;  %8408 = vst [vmem:[#allocation70_spill] sm:$0xff] %v5553_v41  ;;  %v8409_v51 = vld [vmem:[#allocation102_spill] sm:$0xff] }
 0x41d   :  { %1591 = vmatprep.subr.mxu0 %v5541_v8  ;;  %1751 = vmatpush1.msra.mxu1 %v8403_v44  ;;  %v5557_v8 = vld [vmem:[#allocation7 + $0x598] sm:$0xff]  ;;  %v8411_v44 = vld [vmem:[#allocation24_spill] sm:$0xff] }
 0x41e   :  { %1592 = vmatpush2.msra.mxu0 %v5545_v24  ;;  %1752 = vmatprep.subr.mxu1 %v8405_v17  ;;  %8410 = vst [vmem:[#allocation71_spill] sm:$0xff] %v5557_v8  ;;  %v5561_v24 = vld [vmem:[#allocation7 + $0x590] sm:$0xff]  ;;  %v8413_v17 = vld [vmem:[#allocation104_spill] sm:$0xff] }
 0x41f   :  { %1593 = vmatprep.subr.mxu0 %v5549_v11  ;;  %1753 = vmatpush2.msra.mxu1 %v8407_v26  ;;  %8412 = vst [vmem:[#allocation72_spill] sm:$0xff] %v5561_v24  ;;  %v5565_v11 = vld [vmem:[#allocation7 + $0x568] sm:$0xff] }
 0x420   :  { %1594 = vmatpush2.msra.mxu0 %v5553_v41  ;;  %1754 = vmatprep.subr.mxu1 %v8409_v51  ;;  %8414 = vst [vmem:[#allocation73_spill] sm:$0xff] %v5565_v11  ;;  %v8415_v26 = vld [vmem:[#allocation25_spill] sm:$0xff]  ;;  %v5569_v41 = vld [vmem:[#allocation7 + $0x560] sm:$0xff]  ;;  %v8417_v51 = vld [vmem:[#allocation106_spill] sm:$0xff] }
 0x421   :  { %1595 = vmatprep.subr.mxu0 %v5557_v8  ;;  %1755 = vmatpush2.msra.mxu1 %v8411_v44  ;;  %8416 = vst [vmem:[#allocation74_spill] sm:$0xff] %v5569_v41  ;;  %v5573_v8 = vld [vmem:[#allocation7 + $0x538] sm:$0xff] }
 0x422   :  { %1596 = vmatpush2.msra.mxu0 %v5561_v24  ;;  %1756 = vmatprep.subr.mxu1 %v8413_v17  ;;  %8418 = vst [vmem:[#allocation75_spill] sm:$0xff] %v5573_v8  ;;  %v8419_v44 = vld [vmem:[#allocation26_spill] sm:$0xff]  ;;  %v8421_v17 = vld [vmem:[#allocation108_spill] sm:$0xff] }
 0x423   :  { %1597 = vmatprep.subr.mxu0 %v5565_v11  ;;  %1757 = vmatpush2.msra.mxu1 %v8415_v26  ;;  %v5577_v24 = vld [vmem:[#allocation7 + $0x530] sm:$0xff]  ;;  %v5581_v11 = vld [vmem:[#allocation7 + $0x508] sm:$0xff]  ;;  %v8423_v26 = vld [vmem:[#allocation27_spill] sm:$0xff] }
 0x424   :  { %1598 = vmatpush2.msra.mxu0 %v5569_v41  ;;  %1758 = vmatprep.subr.mxu1 %v8417_v51  ;;  %8420 = vst [vmem:[#allocation76_spill] sm:$0xff] %v5577_v24  ;;  %8422 = vst [vmem:[#allocation77_spill] sm:$0xff] %v5581_v11  ;;  %v5585_v41 = vld [vmem:[#allocation7 + $0x500] sm:$0xff]  ;;  %v8425_v51 = vld [vmem:[#allocation110_spill] sm:$0xff] }
 0x425   :  { %1599 = vmatprep.subr.mxu0 %v5573_v8  ;;  %1759 = vmatpush2.msra.mxu1 %v8419_v44  ;;  %8424 = vst [vmem:[#allocation79_spill] sm:$0xff] %v5585_v41  ;;  %v5589_v8 = vld [vmem:[#allocation7 + $0x4d8] sm:$0xff]  ;;  %v8427_v44 = vld [vmem:[#allocation28_spill] sm:$0xff] }
 0x426   :  { %1600 = vmatpush2.msra.mxu0 %v5577_v24  ;;  %1760 = vmatprep.subr.mxu1 %v8421_v17  ;;  %8426 = vst [vmem:[#allocation81_spill] sm:$0xff] %v5589_v8  ;;  %v5593_v24 = vld [vmem:[#allocation7 + $0x4d0] sm:$0xff]  ;;  %v8429_v17 = vld [vmem:[#allocation112_spill] sm:$0xff] }
 0x427   :  { %1601 = vmatprep.subr.mxu0 %v5581_v11  ;;  %1761 = vmatpush2.msra.mxu1 %v8423_v26  ;;  %8428 = vst [vmem:[#allocation83_spill] sm:$0xff] %v5593_v24  ;;  %v5597_v11 = vld [vmem:[#allocation7 + $0x4a8] sm:$0xff] }
 0x428   :  { %1602 = vmatpush2.msra.mxu0 %v5585_v41  ;;  %1762 = vmatprep.subr.mxu1 %v8425_v51  ;;  %8430 = vst [vmem:[#allocation85_spill] sm:$0xff] %v5597_v11  ;;  %v8431_v26 = vld [vmem:[#allocation29_spill] sm:$0xff]  ;;  %v5601_v41 = vld [vmem:[#allocation7 + $0x4a0] sm:$0xff]  ;;  %v8433_v51 = vld [vmem:[#allocation114_spill] sm:$0xff] }
 0x429   :  { %1603 = vmatprep.subr.mxu0 %v5589_v8  ;;  %1763 = vmatpush2.msra.mxu1 %v8427_v44  ;;  %8432 = vst [vmem:[#allocation87_spill] sm:$0xff] %v5601_v41  ;;  %v5605_v8 = vld [vmem:[#allocation7 + $0x478] sm:$0xff] }
 0x42a   :  { %1604 = vmatpush2.msra.mxu0 %v5593_v24  ;;  %1764 = vmatprep.subr.mxu1 %v8429_v17  ;;  %8434 = vst [vmem:[#allocation89_spill] sm:$0xff] %v5605_v8  ;;  %v8435_v44 = vld [vmem:[#allocation30_spill] sm:$0xff]  ;;  %v8437_v17 = vld [vmem:[#allocation116_spill] sm:$0xff] }
 0x42b   :  { %1605 = vmatprep.subr.mxu0 %v5597_v11  ;;  %1765 = vmatpush2.msra.mxu1 %v8431_v26  ;;  %v5609_v24 = vld [vmem:[#allocation7 + $0x470] sm:$0xff]  ;;  %v5613_v11 = vld [vmem:[#allocation7 + $0x448] sm:$0xff]  ;;  %v8439_v26 = vld [vmem:[#allocation31_spill] sm:$0xff] }
 0x42c   :  { %1606 = vmatpush2.msra.mxu0 %v5601_v41  ;;  %1766 = vmatprep.subr.mxu1 %v8433_v51  ;;  %8436 = vst [vmem:[#allocation91_spill] sm:$0xff] %v5609_v24  ;;  %8438 = vst [vmem:[#allocation93_spill] sm:$0xff] %v5613_v11  ;;  %v5617_v41 = vld [vmem:[#allocation7 + $0x440] sm:$0xff]  ;;  %v8441_v51 = vld [vmem:[#allocation118_spill] sm:$0xff] }
 0x42d   :  { %1607 = vmatprep.subr.mxu0 %v5605_v8  ;;  %1767 = vmatpush2.msra.mxu1 %v8435_v44  ;;  %8440 = vst [vmem:[#allocation95_spill] sm:$0xff] %v5617_v41  ;;  %v5621_v8 = vld [vmem:[#allocation7 + $0x418] sm:$0xff]  ;;  %v8443_v44 = vld [vmem:[#allocation32_spill] sm:$0xff] }
 0x42e   :  { %1608 = vmatpush2.msra.mxu0 %v5609_v24  ;;  %1768 = vmatprep.subr.mxu1 %v8437_v17  ;;  %8442 = vst [vmem:[#allocation97_spill] sm:$0xff] %v5621_v8  ;;  %v5625_v24 = vld [vmem:[#allocation7 + $0x410] sm:$0xff]  ;;  %v8445_v17 = vld [vmem:[#allocation120_spill] sm:$0xff] }
 0x42f   :  { %1609 = vmatprep.subr.mxu0 %v5613_v11  ;;  %1769 = vmatpush2.msra.mxu1 %v8439_v26  ;;  %8444 = vst [vmem:[#allocation99_spill] sm:$0xff] %v5625_v24  ;;  %v5629_v11 = vld [vmem:[#allocation7 + $0x3e8] sm:$0xff] }
 0x430   :  { %1610 = vmatpush2.msra.mxu0 %v5617_v41  ;;  %1770 = vmatprep.subr.mxu1 %v8441_v51  ;;  %8446 = vst [vmem:[#allocation101_spill] sm:$0xff] %v5629_v11  ;;  %v8447_v26 = vld [vmem:[#allocation33_spill] sm:$0xff]  ;;  %v5633_v41 = vld [vmem:[#allocation7 + $0x3e0] sm:$0xff]  ;;  %v8449_v51 = vld [vmem:[#allocation122_spill] sm:$0xff] }
 0x431   :  { %1611 = vmatprep.subr.mxu0 %v5621_v8  ;;  %1771 = vmatpush2.msra.mxu1 %v8443_v44  ;;  %8448 = vst [vmem:[#allocation103_spill] sm:$0xff] %v5633_v41  ;;  %v5637_v8 = vld [vmem:[#allocation7 + $0x3b8] sm:$0xff] }
 0x432   :  { %1612 = vmatpush2.msra.mxu0 %v5625_v24  ;;  %1772 = vmatprep.subr.mxu1 %v8445_v17  ;;  %8450 = vst [vmem:[#allocation105_spill] sm:$0xff] %v5637_v8  ;;  %v8451_v44 = vld [vmem:[#allocation34_spill] sm:$0xff]  ;;  %v8453_v17 = vld [vmem:[#allocation124_spill] sm:$0xff] }
 0x433   :  { %1613 = vmatprep.subr.mxu0 %v5629_v11  ;;  %1773 = vmatpush2.msra.mxu1 %v8447_v26  ;;  %v5641_v24 = vld [vmem:[#allocation7 + $0x3b0] sm:$0xff]  ;;  %v5645_v11 = vld [vmem:[#allocation7 + $0x388] sm:$0xff]  ;;  %v8455_v26 = vld [vmem:[#allocation35_spill] sm:$0xff] }
 0x434   :  { %1614 = vmatpush2.msra.mxu0 %v5633_v41  ;;  %1774 = vmatprep.subr.mxu1 %v8449_v51  ;;  %8452 = vst [vmem:[#allocation107_spill] sm:$0xff] %v5641_v24  ;;  %8454 = vst [vmem:[#allocation109_spill] sm:$0xff] %v5645_v11  ;;  %v5649_v41 = vld [vmem:[#allocation7 + $0x380] sm:$0xff]  ;;  %v8457_v51 = vld [vmem:[#allocation126_spill] sm:$0xff] }
 0x435   :  { %1615 = vmatprep.subr.mxu0 %v5637_v8  ;;  %1775 = vmatpush2.msra.mxu1 %v8451_v44  ;;  %8456 = vst [vmem:[#allocation111_spill] sm:$0xff] %v5649_v41  ;;  %v5653_v8 = vld [vmem:[#allocation7 + $0x358] sm:$0xff]  ;;  %v5657_v44 = vld [vmem:[#allocation7 + $0x350] sm:$0xff] }
 0x436   :  { %1616 = vmatpush2.msra.mxu0 %v5641_v24  ;;  %1776 = vmatprep.subr.mxu1 %v8453_v17  ;;  %8458 = vst [vmem:[#allocation113_spill] sm:$0xff] %v5653_v8  ;;  %8459 = vst [vmem:[#allocation115_spill] sm:$0xff] %v5657_v44  ;;  %v5661_v17 = vld [vmem:[#allocation7 + $0x328] sm:$0xff]  ;;  %v8471_v24 = vld [vmem:[#allocation43_spill] sm:$0xff] }
 0x437   :  { %1617 = vmatprep.subr.mxu0 %v5645_v11  ;;  %1777 = vmatpush2.msra.mxu1 %v8455_v26  ;;  %8460 = vst [vmem:[#allocation117_spill] sm:$0xff] %v5661_v17  ;;  %v8461_v26 = vld [vmem:[#allocation37_spill] sm:$0xff]  ;;  %v8468_v11 = vld [vmem:[#allocation40_spill] sm:$0xff] }
 0x438   :  { %1618 = vmatpush2.msra.mxu0 %v5649_v41  ;;  %1778 = vmatprep.subr.mxu1 %v8457_v51  ;;  %v5665_v41 = vld [vmem:[#allocation7 + $0x320] sm:$0xff] }
 0x439   :  { %1619 = vmatprep.subr.mxu0 %v5653_v8  ;;  %1779 = vmatpush2.msra.mxu1 %v5224_v2  ;;  %8462 = vst [vmem:[#allocation119_spill] sm:$0xff] %v5665_v41  ;;  %v8463_v51 = vld [vmem:[#allocation128_spill] sm:$0xff]  ;;  %v8464_v2 = vld [vmem:[#allocation38_spill] sm:$0xff] }
 0x43a   :  { %1620 = vmatpush2.msra.mxu0 %v5657_v44  ;;  %1780 = vmatprep.subr.mxu1 %v5228_v61  ;;  %v8465_v8 = vld [vmem:[#allocation130_spill] sm:$0xff]  ;;  %v8466_v44 = vld [vmem:[#allocation39_spill] sm:$0xff]  ;;  %v8467_v61 = vld [vmem:[#allocation132_spill] sm:$0xff] }
 0x43b   :  { %1621 = vmatprep.subr.mxu0 %v5661_v17  ;;  %1781 = vmatpush2.msra.mxu1 %v8461_v26  ;;  %v8469_v17 = vld [vmem:[#allocation134_spill] sm:$0xff]  ;;  %v8470_v26 = vld [vmem:[#allocation41_spill] sm:$0xff] }
 0x43c   :  { %1622 = vmatpush2.msra.mxu0 %v5665_v41  ;;  %1782 = vmatprep.subr.mxu1 %v8463_v51  ;;  %v8472_v41 = vld [vmem:[#allocation45_spill] sm:$0xff]  ;;  %v8473_v51 = vld [vmem:[#allocation46_spill] sm:$0xff] }
 0x43d   :  { %1624 = vmatmul.mubr.f32.vlgmr.msra.gmra.mxu0 %v5407_v14  ;;  %1791 = vmatprep.subr.mxu0 %v8464_v2  ;;  %v8474_v14 = vld [vmem:[#allocation47_spill] sm:$0xff]  ;;  %v8475_v2 = vld [vmem:[#allocation48_spill] sm:$0xff] }
 0x43e   :  { %1792 = vmatpush1.msra.mxu0 %v8465_v8  ;;  %1783 = vmatpush2.msra.mxu1 %v8466_v44  ;;  %v8476_v8 = vld [vmem:[#allocation49_spill] sm:$0xff]  ;;  %v8477_v44 = vld [vmem:[#allocation44_spill] sm:$0xff] }
 0x43f   :  { %1793 = vmatprep.subr.mxu0 %v8467_v61  ;;  %1862 = vmatprep.subr.mxu1 %v8468_v11  ;;  %v8478_v61 = vld [vmem:[#allocation42_spill] sm:$0xff]  ;;  %v8479_v11 = vld [vmem:[#allocation36_spill] sm:$0xff] }
 0x440   :  { %1794 = vmatpush1.msra.mxu0 %v8469_v17  ;;  %v8480_v17 = vld [vmem:[#allocation50_spill] sm:$0xff] }
 0x441   :  { %1795 = vmatprep.subr.mxu0 %v8470_v26  ;;  %v8481_v26 = vld [vmem:[#allocation51_spill] sm:$0xff] }
 0x442   :  { %1796 = vmatpush1.msra.mxu0 %v8471_v24  ;;  %v8482_v24 = vld [vmem:[#allocation52_spill] sm:$0xff] }
 0x443   :  { %1797 = vmatprep.subr.mxu0 %v8472_v41  ;;  %v8483_v41 = vld [vmem:[#allocation53_spill] sm:$0xff] }
 0x444   :  { %1798 = vmatpush1.msra.mxu0 %v8473_v51  ;;  %v8484_v51 = vld [vmem:[#allocation54_spill] sm:$0xff] }
 0x445   :  { %1799 = vmatprep.subr.mxu0 %v8474_v14  ;;  %v8485_v14 = vld [vmem:[#allocation55_spill] sm:$0xff] }
 0x446   :  { %1800 = vmatpush1.msra.mxu0 %v8475_v2  ;;  %v8486_v2 = vld [vmem:[#allocation56_spill] sm:$0xff] }
 0x447   :  { %1801 = vmatprep.subr.mxu0 %v8476_v8  ;;  %v8487_v8 = vld [vmem:[#allocation57_spill] sm:$0xff] }
 0x448   :  { %1802 = vmatpush1.msra.mxu0 %v8477_v44  ;;  %v8488_v44 = vld [vmem:[#allocation58_spill] sm:$0xff] }
 0x449   :  { %1803 = vmatprep.subr.mxu0 %v8478_v61  ;;  %v8489_v61 = vld [vmem:[#allocation59_spill] sm:$0xff] }
 0x44a   :  { %1804 = vmatpush1.msra.mxu0 %v8479_v11  ;;  %v8490_v11 = vld [vmem:[#allocation60_spill] sm:$0xff] }
 0x44b   :  { %1805 = vmatprep.subr.mxu0 %v8480_v17  ;;  %v8491_v17 = vld [vmem:[#allocation61_spill] sm:$0xff] }
 0x44c   :  { %1806 = vmatpush1.msra.mxu0 %v8481_v26  ;;  %v8492_v26 = vld [vmem:[#allocation62_spill] sm:$0xff] }
 0x44d   :  { %1807 = vmatprep.subr.mxu0 %v8482_v24  ;;  %v8493_v24 = vld [vmem:[#allocation63_spill] sm:$0xff] }
 0x44e   :  { %1808 = vmatpush1.msra.mxu0 %v8483_v41  ;;  %v8494_v41 = vld [vmem:[#allocation64_spill] sm:$0xff] }
 0x44f   :  { %1809 = vmatprep.subr.mxu0 %v8484_v51  ;;  %v8495_v51 = vld [vmem:[#allocation65_spill] sm:$0xff] }
 0x450   :  { %1810 = vmatpush1.msra.mxu0 %v8485_v14  ;;  %v8496_v14 = vld [vmem:[#allocation66_spill] sm:$0xff] }
 0x451   :  { %1811 = vmatprep.subr.mxu0 %v8486_v2  ;;  %v5709_v2 = vld [vmem:[#allocation7 + $0x580] sm:$0xff] }
 0x452   :  { %1812 = vmatpush1.msra.mxu0 %v8487_v8  ;;  %v5712_v8 = vld [vmem:[#allocation7 + $0x558] sm:$0xff] }
 0x453   :  { %1813 = vmatprep.subr.mxu0 %v8488_v44  ;;  %v5715_v44 = vld [vmem:[#allocation7 + $0x550] sm:$0xff] }
 0x454   :  { %1814 = vmatpush1.msra.mxu0 %v8489_v61  ;;  %8497 = vst [vmem:[#allocation121_spill] sm:$0xff] %v5715_v44  ;;  %v5736_v61 = vld [vmem:[#allocation7 + $0x498] sm:$0xff] }
 0x455   :  { %1815 = vmatprep.subr.mxu0 %v8490_v11  ;;  %8504 = vst [vmem:[#allocation135_spill] sm:$0xff] %v5736_v61  ;;  %v5739_v11 = vld [vmem:[#allocation7 + $0x490] sm:$0xff] }
 0x456   :  { %1816 = vmatpush1.msra.mxu0 %v8491_v17  ;;  %8505 = vst [vmem:[#allocation136_spill] sm:$0xff] %v5739_v11  ;;  %v5742_v17 = vld [vmem:[#allocation7 + $0x468] sm:$0xff] }
 0x457   :  { %1817 = vmatprep.subr.mxu0 %v8492_v26  ;;  %8506 = vst [vmem:[#allocation137_spill] sm:$0xff] %v5742_v17  ;;  %v5745_v26 = vld [vmem:[#allocation7 + $0x460] sm:$0xff] }
 0x458   :  { %1818 = vmatpush1.msra.mxu0 %v8493_v24  ;;  %8507 = vst [vmem:[#allocation138_spill] sm:$0xff] %v5745_v26  ;;  %v5748_v24 = vld [vmem:[#allocation7 + $0x438] sm:$0xff] }
 0x459   :  { %1819 = vmatprep.subr.mxu0 %v8494_v41  ;;  %8508 = vst [vmem:[#allocation139_spill] sm:$0xff] %v5748_v24  ;;  %v5751_v41 = vld [vmem:[#allocation7 + $0x430] sm:$0xff] }
 0x45a   :  { %1820 = vmatpush1.msra.mxu0 %v8495_v51  ;;  %8509 = vst [vmem:[#allocation140_spill] sm:$0xff] %v5751_v41  ;;  %v5754_v51 = vld [vmem:[#allocation7 + $0x408] sm:$0xff] }
 0x45b   :  { %1821 = vmatprep.subr.mxu0 %v8496_v14  ;;  %8510 = vst [vmem:[#allocation141_spill] sm:$0xff] %v5754_v51  ;;  %v5757_v14 = vld [vmem:[#allocation7 + $0x400] sm:$0xff] }
 0x45c   :  { %1822 = vmatpush1.msra.mxu0 %v5339_v37  ;;  %v5718_v37 = vld [vmem:[#allocation7 + $0x528] sm:$0xff]  ;;  %8511 = vst [vmem:[#allocation13_spill] sm:$0xff] %v5757_v14 }
 0x45d   :  { %1823 = vmatprep.subr.mxu0 %v5342_v19  ;;  %8498 = vst [vmem:[#allocation123_spill] sm:$0xff] %v5718_v37  ;;  %v5733_v19 = vld [vmem:[#allocation7 + $0x4c0] sm:$0xff] }
 0x45e   :  { %1824 = vmatpush2.msra.mxu0 %v5345_v6  ;;  %v5721_v6 = vld [vmem:[#allocation7 + $0x520] sm:$0xff]  ;;  %8503 = vst [vmem:[#allocation133_spill] sm:$0xff] %v5733_v19 }
 0x45f   :  { %1825 = vmatprep.subr.mxu0 %v5348_v7  ;;  %8499 = vst [vmem:[#allocation125_spill] sm:$0xff] %v5721_v6  ;;  %v5724_v7 = vld [vmem:[#allocation7 + $0x4f8] sm:$0xff] }
 0x460   :  { %1826 = vmatpush2.msra.mxu0 %v5351_v48  ;;  %8500 = vst [vmem:[#allocation127_spill] sm:$0xff] %v5724_v7  ;;  %v5727_v48 = vld [vmem:[#allocation7 + $0x4f0] sm:$0xff] }
 0x461   :  { %1827 = vmatprep.subr.mxu0 %v5354_v53  ;;  %8501 = vst [vmem:[#allocation129_spill] sm:$0xff] %v5727_v48  ;;  %v5730_v53 = vld [vmem:[#allocation7 + $0x4c8] sm:$0xff] }
 0x462   :  { %1828 = vmatpush2.msra.mxu0 %v5709_v2  ;;  %8502 = vst [vmem:[#allocation131_spill] sm:$0xff] %v5730_v53 }
 0x463   :  { %1829 = vmatprep.subr.mxu0 %v5712_v8 }
 0x464   :  { %1830 = vmatpush2.msra.mxu0 %v5715_v44 }
 0x465   :  { %1831 = vmatprep.subr.mxu0 %v5718_v37 }
 0x466   :  { %1832 = vmatpush2.msra.mxu0 %v5721_v6 }
 0x467   :  { %1833 = vmatprep.subr.mxu0 %v5724_v7 }
 0x468   :  { %1834 = vmatpush2.msra.mxu0 %v5727_v48 }
 0x469   :  { %1835 = vmatprep.subr.mxu0 %v5730_v53 }
 0x46a   :  { %1836 = vmatpush2.msra.mxu0 %v5733_v19 }
 0x46b   :  { %1837 = vmatprep.subr.mxu0 %v5736_v61 }
 0x46c   :  { %1838 = vmatpush2.msra.mxu0 %v5739_v11 }
 0x46d   :  { %1839 = vmatprep.subr.mxu0 %v5742_v17  ;;  %v5760_v17 = vld [vmem:[#allocation7 + $0x3d8] sm:$0xff] }
 0x46e   :  { %1840 = vmatpush2.msra.mxu0 %v5745_v26  ;;  %8512 = vst [vmem:[#allocation82_spill] sm:$0xff] %v5760_v17  ;;  %v5763_v26 = vld [vmem:[#allocation7 + $0x3d0] sm:$0xff] }
 0x46f   :  { %1841 = vmatprep.subr.mxu0 %v5748_v24  ;;  %8513 = vst [vmem:[#allocation14_spill] sm:$0xff] %v5763_v26  ;;  %v5766_v24 = vld [vmem:[#allocation7 + $0x3a8] sm:$0xff] }
 0x470   :  { %1842 = vmatpush2.msra.mxu0 %v5751_v41  ;;  %8514 = vst [vmem:[#allocation86_spill] sm:$0xff] %v5766_v24  ;;  %v5769_v41 = vld [vmem:[#allocation7 + $0x3a0] sm:$0xff] }
 0x471   :  { %1843 = vmatprep.subr.mxu0 %v5754_v51  ;;  %8515 = vst [vmem:[#allocation16_spill] sm:$0xff] %v5769_v41  ;;  %v5772_v51 = vld [vmem:[#allocation7 + $0x378] sm:$0xff] }
 0x472   :  { %1844 = vmatpush2.msra.mxu0 %v5757_v14  ;;  %8516 = vst [vmem:[#allocation88_spill] sm:$0xff] %v5772_v51  ;;  %v5775_v14 = vld [vmem:[#allocation7 + $0x370] sm:$0xff] }
 0x473   :  { %1845 = vmatprep.subr.mxu0 %v5760_v17  ;;  %8517 = vst [vmem:[#allocation17_spill] sm:$0xff] %v5775_v14  ;;  %v5778_v17 = vld [vmem:[#allocation7 + $0x348] sm:$0xff] }
 0x474   :  { %1846 = vmatpush2.msra.mxu0 %v5763_v26  ;;  %8518 = vst [vmem:[#allocation90_spill] sm:$0xff] %v5778_v17  ;;  %v5781_v26 = vld [vmem:[#allocation7 + $0x340] sm:$0xff] }
 0x475   :  { %1847 = vmatprep.subr.mxu0 %v5766_v24  ;;  %8519 = vst [vmem:[#allocation18_spill] sm:$0xff] %v5781_v26  ;;  %v5784_v24 = vld [vmem:[#allocation7 + $0x318] sm:$0xff] }
 0x476   :  { %1848 = vmatpush2.msra.mxu0 %v5769_v41  ;;  %8520 = vst [vmem:[#allocation92_spill] sm:$0xff] %v5784_v24  ;;  %v5787_v41 = vld [vmem:[#allocation7 + $0x310] sm:$0xff] }
 0x477   :  { %1849 = vmatprep.subr.mxu0 %v5772_v51  ;;  %8521 = vst [vmem:[#allocation19_spill] sm:$0xff] %v5787_v41  ;;  %v5790_v51 = vld [vmem:[#allocation7 + $0x2d8] sm:$0xff] }
 0x478   :  { %1850 = vmatpush2.msra.mxu0 %v5775_v14  ;;  %8522 = vst [vmem:[#allocation94_spill] sm:$0xff] %v5790_v51 }
 0x479   :  { %1851 = vmatprep.subr.mxu0 %v5778_v17 }
 0x47a   :  { %1852 = vmatpush2.msra.mxu0 %v5781_v26 }
 0x47b   :  { %1853 = vmatprep.subr.mxu0 %v5784_v24 }
 0x47c   :  { %1854 = vmatpush2.msra.mxu0 %v5787_v41 }
 0x47d   :  { %2024 = vmatprep.subr.mxu0 %v5790_v51 }
 0x4bd   :  { %v1483_v14 = vpop.f32.mrf.mxu0  ;;  %v1554_v48 = vpop.f32.mrf.mxu1 }
 0x4be   :  { %v1484_v17 = vadd.f32 %v1483_v14, %v4933_v0  ;;  %v1555_v41 = vadd.f32 %v1554_v48, %v8385_v40 }
 0x4bf   :  { %v1485_v11 = vpop.f32.mrf.mxu0  ;;  %v1556_v6 = vpop.f32.mrf.mxu1 }
 0x4c0   :  { %v1486_v61 = vadd.f32 %v1485_v11, %v4937_v62  ;;  %v1632_v19 = vrot.slane %v1484_v17, 6  ;;  %v1557_v51 = vadd.f32 %v1556_v6, %v8386_v29  ;;  %v1652_v44 = vrot.slane %v1555_v41, 6 }
 0x4c2   :  { %v1633_v26 = vrot.slane %v1486_v61, 6  ;;  %v1636_v53 = vadd.f32 %v1632_v19, %v4941_v28  ;;  %v1653_v14 = vrot.slane %v1557_v51, 6  ;;  %v1656_v11 = vadd.f32 %v1652_v44, %v8387_v32 }
 0x4c4   :  { %v1637_v24 = vadd.f32 %v1633_v26, %v8384_v20  ;;  %v3264_v7 = vmul.f32 -1.442695, %v1636_v53  ;;  %v1657_v61 = vadd.f32 %v1653_v14, %v8388_v1  ;;  %v3266_v17 = vmul.f32 -1.442695, %v1656_v11 }
 0x4c6   :  { %v3265_v37 = vmul.f32 -1.442695, %v1637_v24  ;;  %3346 = vpow2.f32 %v3264_v7  ;;  %v3267_v19 = vmul.f32 -1.442695, %v1657_v61 }
 0x4c8   :  { %3348 = vpow2.f32 %v3265_v37 }
 0x4c9   :  { %3350 = vpow2.f32 %v3266_v17 }
 0x4ca   :  { %3352 = vpow2.f32 %v3267_v19 }
 0x4d3   :  { %v3347_v28 = vpop.eup %3346 }
 0x4d4   :  { %v1644_v53 = vadd.f32 1.0, %v3347_v28 }
 0x4d5   :  { %v3349_v26 = vpop.eup %3348 }
 0x4d6   :  { %v1645_v20 = vadd.f32 1.0, %v3349_v26  ;;  %3354 = vrcp.f32 %v1644_v53  ;;  %v3351_v7 = vpop.eup %3350 }
 0x4d7   :  { %v3353_v48 = vpop.eup %3352  ;;  %v1664_v24 = vadd.f32 1.0, %v3351_v7 }
 0x4d8   :  { %3356 = vrcp.f32 %v1645_v20  ;;  %v1665_v44 = vadd.f32 1.0, %v3353_v48 }
 0x4d9   :  { %3358 = vrcp.f32 %v1664_v24  ;;  %v1687_v24 = vrot.slane %v5401_v60, 7 }
 0x4da   :  { %3360 = vrcp.f32 %v1665_v44 }
 0x4e3   :  { %v3355_v11 = vpop.eup %3354 }
 0x4e5   :  { %v3357_v28 = vpop.eup %3356 }
 0x4e6   :  { %v3359_v53 = vpop.eup %3358 }
 0x4e7   :  { %v3361_v7 = vpop.eup %3360 }
 0x4fd   :  { %v1625_v6 = vpop.f32.mrf.mxu0 }
 0x4fe   :  { %v1626_v37 = vadd.f32 %v1625_v6, %v4963_v56  ;;  %v1682_v6 = vsub.f32 1.0, %v3359_v53 }
 0x4ff   :  { %v1627_v41 = vpop.f32.mrf.mxu0 }
 0x500   :  { %v1672_v51 = vrot.slane %v1626_v37, 6  ;;  %v1628_v14 = vadd.f32 %v1627_v41, %v4966_v15  ;;  %v1686_v37 = vrot.slane %v5399_v22, 7  ;;  %v1683_v41 = vsub.f32 1.0, %v3361_v7 }
 0x501   :  { %v1691_v15 = vmul.f32 %v3361_v7, %v1687_v24  ;;  %v5831_v7 = vld [vmem:[#allocation7 + $0x2a0] sm:$0xff] }
 0x502   :  { %v1676_v61 = vmul.f32 %v3355_v11, %v1672_v51  ;;  %v1673_v17 = vrot.slane %v1628_v14, 6  ;;  %v1690_v11 = vmul.f32 %v3359_v53, %v1686_v37  ;;  %v5827_v53 = vld [vmem:[#allocation7 + $0x2a8] sm:$0xff]  ;;  %v5956_v37 = vld [vmem:[#allocation7 + $0x5d0] sm:$0xff]  ;;  %v8527_v24 = vld [vmem:[#allocation71_spill] sm:$0xff] }
 0x504   :  { %v1678_v19 = vadd.f32 %v1676_v61, %v4970_v63  ;;  %v1677_v20 = vmul.f32 %v3357_v28, %v1673_v17 }
 0x506   :  { %3362 = vtanh.f32 %v1678_v19  ;;  %v1679_v26 = vadd.f32 %v1677_v20, %v4973_v9 }
 0x508   :  { %3364 = vtanh.f32 %v1679_v26 }
 0x513   :  { %v3363_v48 = vpop.eup %3362 }
 0x514   :  { %v1684_v51 = vmul.f32 %v3363_v48, %v1682_v6  ;;  %v5948_v6 = vld [vmem:[#allocation7] sm:$0xff]  ;;  %v5952_v48 = vld [vmem:[#allocation7 + $0x5d8] sm:$0xff] }
 0x515   :  { %v3365_v14 = vpop.eup %3364 }
 0x516   :  { %v1685_v44 = vmul.f32 %v3365_v14, %v1683_v41  ;;  %v5807_v61 = vadd.f32 %v1690_v11, %v1684_v51  ;;  %v5960_v41 = vld [vmem:[#allocation7 + $0x5a8] sm:$0xff]  ;;  %v5964_v51 = vld [vmem:[#allocation7 + $0x5a0] sm:$0xff]  ;;  %v5968_v11 = vld [vmem:[#allocation7 + $0x578] sm:$0xff] }
 0x517   :  { %8528 = vst [vmem:[#allocation20_spill] sm:$0xff] %v5964_v51  ;;  %v8529_v14 = vld [vmem:[#allocation72_spill] sm:$0xff]  ;;  %8530 = vst [vmem:[#allocation96_spill] sm:$0xff] %v5968_v11 }
 0x518   :  { %v5809_v17 = vadd.f32 %v1691_v15, %v1685_v44  ;;  %v5815_v20 = vrot.slane %v5807_v61, 2  ;;  %v5823_v15 = vld [vmem:[#allocation7 + $0x2d0] sm:$0xff] }
 0x519   :  { %v8531_v44 = vld [vmem:[#allocation73_spill] sm:$0xff] }
 0x51a   :  { %v1717_v28 = vrot.slane %v5809_v17, 2  ;;  %v1696_v19 = vcombine.low %v5807_v61, %v5809_v17 }
 0x51c   :  { %1784 = vmatprep.mubr.f32.mxu1 %v1717_v28  ;;  %1855 = vmatprep.mubr.f32.mxu0 %v1717_v28  ;;  %v1703_v22 = vrot.slane %v1696_v19, %v4979_v45  ;;  %v8533_v19 = vld [vmem:[#allocation74_spill] sm:$0xff] }
 0x51d   :  { %1785 = vmatmul.mubr.f32.vlgmr.msra.gmra.mxu1 %v5815_v20  ;;  %1856 = vmatmul.mubr.f32.vlgmr.msra.gmra.mxu0 %v5815_v20 }
 0x51e   :  { %v1710_v60 = vrot.slane %v1703_v22, %v4979_v45  ;;  %1863 = vmatpush1.msra.mxu1 %v5412_v23  ;;  %1926 = vmatprep.mubr.f32.mxu1 %v1717_v28  ;;  %v5840_v23 = vld [vmem:[#allocation7 + $0x278] sm:$0xff]  ;;  %v5972_v28 = vld [vmem:[#allocation7 + $0x570] sm:$0xff]  ;;  %v5976_v22 = vld [vmem:[#allocation7 + $0x548] sm:$0xff] }
 0x51f   :  { %1864 = vmatprep.subr.mxu1 %v5415_v36  ;;  %2025 = vmatpush1.msra.mxu0 %v5823_v15  ;;  %v5844_v36 = vld [vmem:[#allocation7 + $0x270] sm:$0xff]  ;;  %8532 = vst [vmem:[#allocation21_spill] sm:$0xff] %v5972_v28  ;;  %8534 = vst [vmem:[#allocation98_spill] sm:$0xff] %v5976_v22 }
 0x520   :  { %v1711_v26 = vcombine.high %v1710_v60, %v1710_v60  ;;  %1865 = vmatpush1.msra.mxu1 %v5420_v54  ;;  %2026 = vmatprep.subr.mxu0 %v5827_v53  ;;  %v5848_v54 = vld [vmem:[#allocation7 + $0x248] sm:$0xff]  ;;  %v8535_v60 = vld [vmem:[#allocation75_spill] sm:$0xff] }
 0x521   :  { %1866 = vmatprep.subr.mxu1 %v5424_v16  ;;  %2027 = vmatpush1.msra.mxu0 %v5831_v7  ;;  %v5852_v16 = vld [vmem:[#allocation7 + $0x240] sm:$0xff] }
 0x522   :  { %3268 = vst.msk [vmem:[%s7511_s7 + $0x2] ss:$8 sm:$0x3] %vm4995_vm2, %v1711_v26  ;;  %1867 = vmatpush1.msra.mxu1 %v5433_v27  ;;  %2028 = vmatprep.subr.mxu0 %v5840_v23  ;;  %v5856_v27 = vld [vmem:[#allocation7 + $0x218] sm:$0xff]  ;;  %v5980_v26 = vld [vmem:[#allocation7 + $0x540] sm:$0xff] }
 0x523   :  { %1868 = vmatprep.subr.mxu1 %v5437_v58  ;;  %2029 = vmatpush1.msra.mxu0 %v5844_v36  ;;  %v5860_v58 = vld [vmem:[#allocation7 + $0x210] sm:$0xff]  ;;  %8536 = vst [vmem:[#allocation22_spill] sm:$0xff] %v5980_v26 }
 0x524   :  { %1869 = vmatpush1.msra.mxu1 %v5441_v25  ;;  %2030 = vmatprep.subr.mxu0 %v5848_v54  ;;  %v5864_v25 = vld [vmem:[#allocation7 + $0x1e8] sm:$0xff] }
 0x525   :  { %1870 = vmatprep.subr.mxu1 %v5445_v33  ;;  %2031 = vmatpush1.msra.mxu0 %v5852_v16  ;;  %v5868_v33 = vld [vmem:[#allocation7 + $0x1e0] sm:$0xff] }
 0x526   :  { %1871 = vmatpush1.msra.mxu1 %v5449_v46  ;;  %2032 = vmatprep.subr.mxu0 %v5856_v27  ;;  %v5872_v46 = vld [vmem:[#allocation7 + $0x1b8] sm:$0xff] }
 0x527   :  { %1872 = vmatprep.subr.mxu1 %v5453_v31  ;;  %2033 = vmatpush1.msra.mxu0 %v5860_v58  ;;  %v5876_v31 = vld [vmem:[#allocation7 + $0x1b0] sm:$0xff] }
 0x528   :  { %1873 = vmatpush1.msra.mxu1 %v5457_v12  ;;  %2034 = vmatprep.subr.mxu0 %v5864_v25  ;;  %v5880_v12 = vld [vmem:[#allocation7 + $0x188] sm:$0xff] }
 0x529   :  { %1874 = vmatprep.subr.mxu1 %v5461_v50  ;;  %2035 = vmatpush1.msra.mxu0 %v5868_v33  ;;  %v5884_v50 = vld [vmem:[#allocation7 + $0x180] sm:$0xff] }
 0x52a   :  { %1875 = vmatpush1.msra.mxu1 %v5465_v10  ;;  %2036 = vmatprep.subr.mxu0 %v5872_v46  ;;  %v5888_v10 = vld [vmem:[#allocation7 + $0x158] sm:$0xff] }
 0x52b   :  { %1876 = vmatprep.subr.mxu1 %v5469_v49  ;;  %2037 = vmatpush1.msra.mxu0 %v5876_v31  ;;  %v5892_v49 = vld [vmem:[#allocation7 + $0x150] sm:$0xff] }
 0x52c   :  { %1877 = vmatpush1.msra.mxu1 %v5473_v55  ;;  %2038 = vmatprep.subr.mxu0 %v5880_v12  ;;  %v5896_v55 = vld [vmem:[#allocation7 + $0x128] sm:$0xff] }
 0x52d   :  { %1878 = vmatprep.subr.mxu1 %v5477_v59  ;;  %2039 = vmatpush1.msra.mxu0 %v5884_v50  ;;  %v5900_v59 = vld [vmem:[#allocation7 + $0x120] sm:$0xff] }
 0x52e   :  { %1879 = vmatpush1.msra.mxu1 %v5481_v34  ;;  %2040 = vmatprep.subr.mxu0 %v5888_v10  ;;  %v5904_v34 = vld [vmem:[#allocation7 + $0xf8] sm:$0xff] }
 0x52f   :  { %1880 = vmatprep.subr.mxu1 %v5485_v57  ;;  %2041 = vmatpush1.msra.mxu0 %v5892_v49  ;;  %v5908_v57 = vld [vmem:[#allocation7 + $0xf0] sm:$0xff] }
 0x530   :  { %1881 = vmatpush1.msra.mxu1 %v5489_v21  ;;  %2042 = vmatprep.subr.mxu0 %v5896_v55  ;;  %v5912_v21 = vld [vmem:[#allocation7 + $0xc8] sm:$0xff] }
 0x531   :  { %1882 = vmatprep.subr.mxu1 %v5493_v35  ;;  %2043 = vmatpush1.msra.mxu0 %v5900_v59  ;;  %v5916_v35 = vld [vmem:[#allocation7 + $0xc0] sm:$0xff] }
 0x532   :  { %1883 = vmatpush1.msra.mxu1 %v5497_v39  ;;  %2044 = vmatprep.subr.mxu0 %v5904_v34  ;;  %v5920_v39 = vld [vmem:[#allocation7 + $0x98] sm:$0xff] }
 0x533   :  { %1884 = vmatprep.subr.mxu1 %v5501_v43  ;;  %2045 = vmatpush1.msra.mxu0 %v5908_v57  ;;  %v5924_v43 = vld [vmem:[#allocation7 + $0x90] sm:$0xff] }
 0x534   :  { %1885 = vmatpush1.msra.mxu1 %v5505_v47  ;;  %2046 = vmatprep.subr.mxu0 %v5912_v21  ;;  %v5928_v47 = vld [vmem:[#allocation7 + $0x68] sm:$0xff] }
 0x535   :  { %1886 = vmatprep.subr.mxu1 %v5509_v4  ;;  %2047 = vmatpush1.msra.mxu0 %v5916_v35  ;;  %v5932_v4 = vld [vmem:[#allocation7 + $0x60] sm:$0xff] }
 0x536   :  { %1887 = vmatpush1.msra.mxu1 %v5513_v13  ;;  %2048 = vmatprep.subr.mxu0 %v5920_v39  ;;  %v5936_v13 = vld [vmem:[#allocation7 + $0x38] sm:$0xff] }
 0x537   :  { %1888 = vmatprep.subr.mxu1 %v5517_v52  ;;  %2049 = vmatpush1.msra.mxu0 %v5924_v43  ;;  %v5940_v52 = vld [vmem:[#allocation7 + $0x30] sm:$0xff] }
 0x538   :  { %1889 = vmatpush1.msra.mxu1 %v5521_v5  ;;  %2050 = vmatprep.subr.mxu0 %v5928_v47  ;;  %v5944_v5 = vld [vmem:[#allocation7 + $0x8] sm:$0xff] }
 0x539   :  { %1890 = vmatprep.subr.mxu1 %v5525_v42  ;;  %2051 = vmatpush1.msra.mxu0 %v5932_v4  ;;  %v8523_v42 = vld [vmem:[#allocation67_spill] sm:$0xff] }
 0x53a   :  { %1891 = vmatpush1.msra.mxu1 %v5529_v30  ;;  %2052 = vmatprep.subr.mxu0 %v5936_v13  ;;  %v8524_v30 = vld [vmem:[#allocation68_spill] sm:$0xff] }
 0x53b   :  { %1892 = vmatprep.subr.mxu1 %v5533_v3  ;;  %2053 = vmatpush1.msra.mxu0 %v5940_v52  ;;  %v8525_v3 = vld [vmem:[#allocation69_spill] sm:$0xff] }
 0x53c   :  { %1893 = vmatpush1.msra.mxu1 %v5537_v38  ;;  %2054 = vmatprep.subr.mxu0 %v5944_v5  ;;  %v8526_v38 = vld [vmem:[#allocation70_spill] sm:$0xff] }
 0x53d   :  { %1894 = vmatprep.subr.mxu1 %v8523_v42  ;;  %2055 = vmatpush1.msra.mxu0 %v5948_v6  ;;  %v8537_v42 = vld [vmem:[#allocation76_spill] sm:$0xff] }
 0x53e   :  { %1895 = vmatpush2.msra.mxu1 %v8524_v30  ;;  %2056 = vmatprep.subr.mxu0 %v5952_v48  ;;  %v5984_v30 = vld [vmem:[#allocation7 + $0x518] sm:$0xff] }
 0x53f   :  { %1896 = vmatprep.subr.mxu1 %v8525_v3  ;;  %2057 = vmatpush2.msra.mxu0 %v5956_v37  ;;  %8538 = vst [vmem:[#allocation100_spill] sm:$0xff] %v5984_v30  ;;  %v8539_v3 = vld [vmem:[#allocation77_spill] sm:$0xff] }
 0x540   :  { %1897 = vmatpush2.msra.mxu1 %v8526_v38  ;;  %2058 = vmatprep.subr.mxu0 %v5960_v41  ;;  %v5988_v38 = vld [vmem:[#allocation7 + $0x510] sm:$0xff] }
 0x541   :  { %1898 = vmatprep.subr.mxu1 %v8527_v24  ;;  %2059 = vmatpush2.msra.mxu0 %v5964_v51  ;;  %8540 = vst [vmem:[#allocation23_spill] sm:$0xff] %v5988_v38  ;;  %v8541_v24 = vld [vmem:[#allocation79_spill] sm:$0xff] }
 0x542   :  { %1899 = vmatpush2.msra.mxu1 %v8529_v14  ;;  %2060 = vmatprep.subr.mxu0 %v5968_v11  ;;  %v5992_v14 = vld [vmem:[#allocation7 + $0x4e8] sm:$0xff] }
 0x543   :  { %1900 = vmatprep.subr.mxu1 %v8531_v44  ;;  %2061 = vmatpush2.msra.mxu0 %v5972_v28  ;;  %8542 = vst [vmem:[#allocation102_spill] sm:$0xff] %v5992_v14  ;;  %v8543_v44 = vld [vmem:[#allocation81_spill] sm:$0xff] }
 0x544   :  { %1901 = vmatpush2.msra.mxu1 %v8533_v19  ;;  %2062 = vmatprep.subr.mxu0 %v5976_v22  ;;  %v5996_v19 = vld [vmem:[#allocation7 + $0x4e0] sm:$0xff] }
 0x545   :  { %1902 = vmatprep.subr.mxu1 %v8535_v60  ;;  %2063 = vmatpush2.msra.mxu0 %v5980_v26  ;;  %8544 = vst [vmem:[#allocation24_spill] sm:$0xff] %v5996_v19  ;;  %v8545_v60 = vld [vmem:[#allocation83_spill] sm:$0xff]  ;;  %v8648_v26 = vld [vmem:[#allocation12_spill] sm:$0xff] }
 0x546   :  { %1903 = vmatpush2.msra.mxu1 %v8537_v42  ;;  %2064 = vmatprep.subr.mxu0 %v5984_v30  ;;  %v6000_v42 = vld [vmem:[#allocation7 + $0x4b8] sm:$0xff] }
 0x547   :  { %1904 = vmatprep.subr.mxu1 %v8539_v3  ;;  %2065 = vmatpush2.msra.mxu0 %v5988_v38  ;;  %8546 = vst [vmem:[#allocation104_spill] sm:$0xff] %v6000_v42  ;;  %v8547_v3 = vld [vmem:[#allocation85_spill] sm:$0xff] }
 0x548   :  { %1905 = vmatpush2.msra.mxu1 %v8541_v24  ;;  %2066 = vmatprep.subr.mxu0 %v5992_v14  ;;  %v6004_v38 = vld [vmem:[#allocation7 + $0x4b0] sm:$0xff]  ;;  %v8549_v24 = vld [vmem:[#allocation87_spill] sm:$0xff]  ;;  %v6008_v14 = vld [vmem:[#allocation7 + $0x488] sm:$0xff] }
 0x549   :  { %1906 = vmatprep.subr.mxu1 %v8543_v44  ;;  %2067 = vmatpush2.msra.mxu0 %v5996_v19  ;;  %8548 = vst [vmem:[#allocation25_spill] sm:$0xff] %v6004_v38  ;;  %8550 = vst [vmem:[#allocation106_spill] sm:$0xff] %v6008_v14  ;;  %v8551_v44 = vld [vmem:[#allocation89_spill] sm:$0xff]  ;;  %v6012_v19 = vld [vmem:[#allocation7 + $0x480] sm:$0xff] }
 0x54a   :  { %1907 = vmatpush2.msra.mxu1 %v8545_v60  ;;  %2068 = vmatprep.subr.mxu0 %v6000_v42  ;;  %8552 = vst [vmem:[#allocation26_spill] sm:$0xff] %v6012_v19  ;;  %v8553_v60 = vld [vmem:[#allocation91_spill] sm:$0xff] }
 0x54b   :  { %1908 = vmatprep.subr.mxu1 %v8547_v3  ;;  %2069 = vmatpush2.msra.mxu0 %v6004_v38  ;;  %v6016_v42 = vld [vmem:[#allocation7 + $0x458] sm:$0xff]  ;;  %v8555_v3 = vld [vmem:[#allocation93_spill] sm:$0xff] }
 0x54c   :  { %1909 = vmatpush2.msra.mxu1 %v8549_v24  ;;  %2070 = vmatprep.subr.mxu0 %v6008_v14  ;;  %8554 = vst [vmem:[#allocation108_spill] sm:$0xff] %v6016_v42  ;;  %v6020_v38 = vld [vmem:[#allocation7 + $0x450] sm:$0xff]  ;;  %v8557_v24 = vld [vmem:[#allocation95_spill] sm:$0xff]  ;;  %v6024_v14 = vld [vmem:[#allocation7 + $0x428] sm:$0xff] }
 0x54d   :  { %1910 = vmatprep.subr.mxu1 %v8551_v44  ;;  %2071 = vmatpush2.msra.mxu0 %v6012_v19  ;;  %8556 = vst [vmem:[#allocation27_spill] sm:$0xff] %v6020_v38  ;;  %8558 = vst [vmem:[#allocation110_spill] sm:$0xff] %v6024_v14  ;;  %v8559_v44 = vld [vmem:[#allocation97_spill] sm:$0xff]  ;;  %v6028_v19 = vld [vmem:[#allocation7 + $0x420] sm:$0xff] }
 0x54e   :  { %1911 = vmatpush2.msra.mxu1 %v8553_v60  ;;  %2072 = vmatprep.subr.mxu0 %v6016_v42  ;;  %8560 = vst [vmem:[#allocation28_spill] sm:$0xff] %v6028_v19  ;;  %v8561_v60 = vld [vmem:[#allocation99_spill] sm:$0xff] }
 0x54f   :  { %1912 = vmatprep.subr.mxu1 %v8555_v3  ;;  %2073 = vmatpush2.msra.mxu0 %v6020_v38  ;;  %v6032_v42 = vld [vmem:[#allocation7 + $0x3f8] sm:$0xff]  ;;  %v8563_v3 = vld [vmem:[#allocation101_spill] sm:$0xff] }
 0x550   :  { %1913 = vmatpush2.msra.mxu1 %v8557_v24  ;;  %2074 = vmatprep.subr.mxu0 %v6024_v14  ;;  %8562 = vst [vmem:[#allocation112_spill] sm:$0xff] %v6032_v42  ;;  %v6036_v38 = vld [vmem:[#allocation7 + $0x3f0] sm:$0xff]  ;;  %v8565_v24 = vld [vmem:[#allocation103_spill] sm:$0xff]  ;;  %v6040_v14 = vld [vmem:[#allocation7 + $0x3c8] sm:$0xff] }
 0x551   :  { %1914 = vmatprep.subr.mxu1 %v8559_v44  ;;  %2075 = vmatpush2.msra.mxu0 %v6028_v19  ;;  %8564 = vst [vmem:[#allocation29_spill] sm:$0xff] %v6036_v38  ;;  %8566 = vst [vmem:[#allocation114_spill] sm:$0xff] %v6040_v14  ;;  %v8567_v44 = vld [vmem:[#allocation105_spill] sm:$0xff]  ;;  %v6044_v19 = vld [vmem:[#allocation7 + $0x3c0] sm:$0xff] }
 0x552   :  { %1915 = vmatpush2.msra.mxu1 %v8561_v60  ;;  %2076 = vmatprep.subr.mxu0 %v6032_v42  ;;  %8568 = vst [vmem:[#allocation30_spill] sm:$0xff] %v6044_v19  ;;  %v8569_v60 = vld [vmem:[#allocation107_spill] sm:$0xff] }
 0x553   :  { %1916 = vmatprep.subr.mxu1 %v8563_v3  ;;  %2077 = vmatpush2.msra.mxu0 %v6036_v38  ;;  %v6048_v42 = vld [vmem:[#allocation7 + $0x398] sm:$0xff]  ;;  %v8571_v3 = vld [vmem:[#allocation109_spill] sm:$0xff] }
 0x554   :  { %1917 = vmatpush2.msra.mxu1 %v8565_v24  ;;  %2078 = vmatprep.subr.mxu0 %v6040_v14  ;;  %8570 = vst [vmem:[#allocation116_spill] sm:$0xff] %v6048_v42  ;;  %v6052_v38 = vld [vmem:[#allocation7 + $0x390] sm:$0xff]  ;;  %v8573_v24 = vld [vmem:[#allocation111_spill] sm:$0xff]  ;;  %v6056_v14 = vld [vmem:[#allocation7 + $0x368] sm:$0xff] }
 0x555   :  { %1918 = vmatprep.subr.mxu1 %v8567_v44  ;;  %2079 = vmatpush2.msra.mxu0 %v6044_v19  ;;  %8572 = vst [vmem:[#allocation31_spill] sm:$0xff] %v6052_v38  ;;  %8574 = vst [vmem:[#allocation118_spill] sm:$0xff] %v6056_v14  ;;  %v8575_v44 = vld [vmem:[#allocation113_spill] sm:$0xff]  ;;  %v6060_v19 = vld [vmem:[#allocation7 + $0x360] sm:$0xff] }
 0x556   :  { %1919 = vmatpush2.msra.mxu1 %v8569_v60  ;;  %2080 = vmatprep.subr.mxu0 %v6048_v42  ;;  %8576 = vst [vmem:[#allocation32_spill] sm:$0xff] %v6060_v19  ;;  %v8577_v60 = vld [vmem:[#allocation115_spill] sm:$0xff] }
 0x557   :  { %1920 = vmatprep.subr.mxu1 %v8571_v3  ;;  %2081 = vmatpush2.msra.mxu0 %v6052_v38  ;;  %v6064_v42 = vld [vmem:[#allocation7 + $0x338] sm:$0xff]  ;;  %v8579_v3 = vld [vmem:[#allocation117_spill] sm:$0xff] }
 0x558   :  { %1921 = vmatpush2.msra.mxu1 %v8573_v24  ;;  %2082 = vmatprep.subr.mxu0 %v6056_v14  ;;  %8578 = vst [vmem:[#allocation120_spill] sm:$0xff] %v6064_v42  ;;  %v6068_v38 = vld [vmem:[#allocation7 + $0x330] sm:$0xff]  ;;  %v8581_v24 = vld [vmem:[#allocation119_spill] sm:$0xff]  ;;  %v6072_v14 = vld [vmem:[#allocation7 + $0x308] sm:$0xff] }
 0x559   :  { %1922 = vmatprep.subr.mxu1 %v8575_v44  ;;  %2083 = vmatpush2.msra.mxu0 %v6060_v19  ;;  %8580 = vst [vmem:[#allocation33_spill] sm:$0xff] %v6068_v38  ;;  %8582 = vst [vmem:[#allocation122_spill] sm:$0xff] %v6072_v14  ;;  %v6076_v44 = vld [vmem:[#allocation7 + $0x2e8] sm:$0xff]  ;;  %v8629_v19 = vld [vmem:[#allocation135_spill] sm:$0xff] }
 0x55a   :  { %1923 = vmatpush2.msra.mxu1 %v8577_v60  ;;  %2084 = vmatprep.subr.mxu0 %v6064_v42  ;;  %8583 = vst [vmem:[#allocation34_spill] sm:$0xff] %v6076_v44  ;;  %v6079_v60 = vld [vmem:[#allocation7 + $0x2e0] sm:$0xff] }
 0x55b   :  { %1924 = vmatprep.subr.mxu1 %v8579_v3  ;;  %2085 = vmatpush2.msra.mxu0 %v6068_v38  ;;  %8584 = vst [vmem:[#allocation124_spill] sm:$0xff] %v6079_v60  ;;  %v6082_v3 = vld [vmem:[#allocation7 + $0x300] sm:$0xff]  ;;  %v6085_v38 = vld [vmem:[#allocation7 + $0x2b8] sm:$0xff] }
 0x55c   :  { %1925 = vmatpush2.msra.mxu1 %v8581_v24  ;;  %2086 = vmatprep.subr.mxu0 %v6072_v14  ;;  %8585 = vst [vmem:[#allocation35_spill] sm:$0xff] %v6082_v3  ;;  %8586 = vst [vmem:[#allocation126_spill] sm:$0xff] %v6085_v38  ;;  %v6088_v24 = vld [vmem:[#allocation7 + $0x2f8] sm:$0xff] }
 0x55d   :  { %1927 = vmatmul.mubr.f32.vlgmr.msra.gmra.mxu1 %v5815_v20  ;;  %2095 = vmatprep.subr.mxu1 %v6076_v44  ;;  %8587 = vst [vmem:[#allocation37_spill] sm:$0xff] %v6088_v24  ;;  %v6091_v20 = vld [vmem:[#allocation7 + $0x2b0] sm:$0xff]  ;;  %v6094_v44 = vld [vmem:[#allocation7 + $0x288] sm:$0xff]  ;;  %v8625_v14 = vld [vmem:[#allocation127_spill] sm:$0xff] }
 0x55e   :  { %2096 = vmatpush1.msra.mxu1 %v6079_v60  ;;  %2087 = vmatpush2.msra.mxu0 %v6082_v3  ;;  %8588 = vst [vmem:[#allocation128_spill] sm:$0xff] %v6091_v20  ;;  %8589 = vst [vmem:[#allocation38_spill] sm:$0xff] %v6094_v44  ;;  %v6097_v60 = vld [vmem:[#allocation7 + $0x280] sm:$0xff]  ;;  %v6100_v3 = vld [vmem:[#allocation7 + $0x258] sm:$0xff] }
 0x55f   :  { %2097 = vmatprep.subr.mxu1 %v6085_v38  ;;  %2166 = vmatprep.subr.mxu0 %v6088_v24  ;;  %8590 = vst [vmem:[#allocation130_spill] sm:$0xff] %v6097_v60  ;;  %8591 = vst [vmem:[#allocation39_spill] sm:$0xff] %v6100_v3  ;;  %v6103_v38 = vld [vmem:[#allocation7 + $0x250] sm:$0xff]  ;;  %v6106_v24 = vld [vmem:[#allocation7 + $0x228] sm:$0xff] }
 0x560   :  { %2098 = vmatpush1.msra.mxu1 %v6091_v20  ;;  %8592 = vst [vmem:[#allocation132_spill] sm:$0xff] %v6103_v38  ;;  %8593 = vst [vmem:[#allocation40_spill] sm:$0xff] %v6106_v24  ;;  %v6109_v20 = vld [vmem:[#allocation7 + $0x220] sm:$0xff] }
 0x561   :  { %2099 = vmatprep.subr.mxu1 %v6094_v44  ;;  %8594 = vst [vmem:[#allocation134_spill] sm:$0xff] %v6109_v20  ;;  %v6112_v44 = vld [vmem:[#allocation7 + $0x1f8] sm:$0xff] }
 0x562   :  { %2100 = vmatpush1.msra.mxu1 %v6097_v60  ;;  %8595 = vst [vmem:[#allocation41_spill] sm:$0xff] %v6112_v44  ;;  %v6115_v60 = vld [vmem:[#allocation7 + $0x1f0] sm:$0xff]  ;;  %v8627_v42 = vld [vmem:[#allocation131_spill] sm:$0xff] }
 0x563   :  { %2101 = vmatprep.subr.mxu1 %v6100_v3  ;;  %8596 = vst [vmem:[#allocation43_spill] sm:$0xff] %v6115_v60  ;;  %v6118_v3 = vld [vmem:[#allocation7 + $0x1c8] sm:$0xff] }
 0x564   :  { %2102 = vmatpush1.msra.mxu1 %v6103_v38  ;;  %8597 = vst [vmem:[#allocation45_spill] sm:$0xff] %v6118_v3  ;;  %v6121_v38 = vld [vmem:[#allocation7 + $0x1c0] sm:$0xff] }
 0x565   :  { %2103 = vmatprep.subr.mxu1 %v6106_v24  ;;  %8598 = vst [vmem:[#allocation46_spill] sm:$0xff] %v6121_v38  ;;  %v6124_v24 = vld [vmem:[#allocation7 + $0x198] sm:$0xff] }
 0x566   :  { %2104 = vmatpush1.msra.mxu1 %v6109_v20  ;;  %8599 = vst [vmem:[#allocation47_spill] sm:$0xff] %v6124_v24  ;;  %v6127_v20 = vld [vmem:[#allocation7 + $0x190] sm:$0xff] }
 0x567   :  { %2105 = vmatprep.subr.mxu1 %v6112_v44  ;;  %8600 = vst [vmem:[#allocation48_spill] sm:$0xff] %v6127_v20  ;;  %v6130_v44 = vld [vmem:[#allocation7 + $0x168] sm:$0xff] }
 0x568   :  { %2106 = vmatpush1.msra.mxu1 %v6115_v60  ;;  %8601 = vst [vmem:[#allocation49_spill] sm:$0xff] %v6130_v44  ;;  %v6133_v60 = vld [vmem:[#allocation7 + $0x160] sm:$0xff] }
 0x569   :  { %2107 = vmatprep.subr.mxu1 %v6118_v3  ;;  %8602 = vst [vmem:[#allocation44_spill] sm:$0xff] %v6133_v60  ;;  %v6136_v3 = vld [vmem:[#allocation7 + $0x138] sm:$0xff] }
 0x56a   :  { %2108 = vmatpush1.msra.mxu1 %v6121_v38  ;;  %8603 = vst [vmem:[#allocation42_spill] sm:$0xff] %v6136_v3  ;;  %v6139_v38 = vld [vmem:[#allocation7 + $0x130] sm:$0xff] }
 0x56b   :  { %2109 = vmatprep.subr.mxu1 %v6124_v24  ;;  %8604 = vst [vmem:[#allocation36_spill] sm:$0xff] %v6139_v38  ;;  %v6142_v24 = vld [vmem:[#allocation7 + $0x108] sm:$0xff] }
 0x56c   :  { %2110 = vmatpush1.msra.mxu1 %v6127_v20  ;;  %8605 = vst [vmem:[#allocation50_spill] sm:$0xff] %v6142_v24  ;;  %v6145_v20 = vld [vmem:[#allocation7 + $0x100] sm:$0xff] }
 0x56d   :  { %2111 = vmatprep.subr.mxu1 %v6130_v44  ;;  %8606 = vst [vmem:[#allocation51_spill] sm:$0xff] %v6145_v20  ;;  %v6148_v44 = vld [vmem:[#allocation7 + $0xd8] sm:$0xff] }
 0x56e   :  { %2112 = vmatpush1.msra.mxu1 %v6133_v60  ;;  %8607 = vst [vmem:[#allocation52_spill] sm:$0xff] %v6148_v44  ;;  %v6151_v60 = vld [vmem:[#allocation7 + $0xd0] sm:$0xff] }
 0x56f   :  { %2113 = vmatprep.subr.mxu1 %v6136_v3  ;;  %8608 = vst [vmem:[#allocation53_spill] sm:$0xff] %v6151_v60  ;;  %v6154_v3 = vld [vmem:[#allocation7 + $0xa8] sm:$0xff] }
 0x570   :  { %2114 = vmatpush1.msra.mxu1 %v6139_v38  ;;  %8609 = vst [vmem:[#allocation54_spill] sm:$0xff] %v6154_v3  ;;  %v6157_v38 = vld [vmem:[#allocation7 + $0xa0] sm:$0xff] }
 0x571   :  { %2115 = vmatprep.subr.mxu1 %v6142_v24  ;;  %8610 = vst [vmem:[#allocation55_spill] sm:$0xff] %v6157_v38  ;;  %v6160_v24 = vld [vmem:[#allocation7 + $0x78] sm:$0xff] }
 0x572   :  { %2116 = vmatpush1.msra.mxu1 %v6145_v20  ;;  %8611 = vst [vmem:[#allocation56_spill] sm:$0xff] %v6160_v24  ;;  %v6163_v20 = vld [vmem:[#allocation7 + $0x70] sm:$0xff] }
 0x573   :  { %2117 = vmatprep.subr.mxu1 %v6148_v44  ;;  %8612 = vst [vmem:[#allocation57_spill] sm:$0xff] %v6163_v20  ;;  %v6166_v44 = vld [vmem:[#allocation7 + $0x48] sm:$0xff] }
 0x574   :  { %2118 = vmatpush1.msra.mxu1 %v6151_v60  ;;  %8613 = vst [vmem:[#allocation58_spill] sm:$0xff] %v6166_v44  ;;  %v6169_v60 = vld [vmem:[#allocation7 + $0x40] sm:$0xff] }
 0x575   :  { %2119 = vmatprep.subr.mxu1 %v6154_v3  ;;  %8614 = vst [vmem:[#allocation59_spill] sm:$0xff] %v6169_v60  ;;  %v6172_v3 = vld [vmem:[#allocation7 + $0x18] sm:$0xff] }
 0x576   :  { %2120 = vmatpush1.msra.mxu1 %v6157_v38  ;;  %8615 = vst [vmem:[#allocation60_spill] sm:$0xff] %v6172_v3  ;;  %v6175_v38 = vld [vmem:[#allocation7 + $0x10] sm:$0xff] }
 0x577   :  { %2121 = vmatprep.subr.mxu1 %v6160_v24  ;;  %8616 = vst [vmem:[#allocation61_spill] sm:$0xff] %v6175_v38  ;;  %v6178_v24 = vld [vmem:[#allocation7 + $0x5e8] sm:$0xff] }
 0x578   :  { %2122 = vmatpush1.msra.mxu1 %v6163_v20  ;;  %8617 = vst [vmem:[#allocation62_spill] sm:$0xff] %v6178_v24  ;;  %v6181_v20 = vld [vmem:[#allocation7 + $0x5e0] sm:$0xff] }
 0x579   :  { %2123 = vmatprep.subr.mxu1 %v6166_v44  ;;  %8618 = vst [vmem:[#allocation63_spill] sm:$0xff] %v6181_v20  ;;  %v6184_v44 = vld [vmem:[#allocation7 + $0x5b8] sm:$0xff] }
 0x57a   :  { %2124 = vmatpush1.msra.mxu1 %v6169_v60  ;;  %8619 = vst [vmem:[#allocation64_spill] sm:$0xff] %v6184_v44  ;;  %v6187_v60 = vld [vmem:[#allocation7 + $0x5b0] sm:$0xff] }
 0x57b   :  { %2125 = vmatprep.subr.mxu1 %v6172_v3  ;;  %8620 = vst [vmem:[#allocation65_spill] sm:$0xff] %v6187_v60  ;;  %v6190_v3 = vld [vmem:[#allocation7 + $0x588] sm:$0xff] }
 0x57c   :  { %2126 = vmatpush1.msra.mxu1 %v6175_v38  ;;  %8621 = vst [vmem:[#allocation66_spill] sm:$0xff] %v6190_v3  ;;  %v8623_v38 = vld [vmem:[#allocation123_spill] sm:$0xff] }
 0x57d   :  { %2127 = vmatprep.subr.mxu1 %v6178_v24  ;;  %v8622_v24 = vld [vmem:[#allocation121_spill] sm:$0xff] }
 0x57e   :  { %2128 = vmatpush2.msra.mxu1 %v6181_v20  ;;  %v8624_v20 = vld [vmem:[#allocation125_spill] sm:$0xff] }
 0x57f   :  { %2129 = vmatprep.subr.mxu1 %v6184_v44  ;;  %v8626_v44 = vld [vmem:[#allocation129_spill] sm:$0xff] }
 0x580   :  { %2130 = vmatpush2.msra.mxu1 %v6187_v60  ;;  %v8628_v60 = vld [vmem:[#allocation133_spill] sm:$0xff] }
 0x581   :  { %2131 = vmatprep.subr.mxu1 %v6190_v3  ;;  %v8630_v3 = vld [vmem:[#allocation136_spill] sm:$0xff] }
 0x582   :  { %2132 = vmatpush2.msra.mxu1 %v5709_v2  ;;  %v8631_v2 = vld [vmem:[#allocation137_spill] sm:$0xff] }
 0x583   :  { %2133 = vmatprep.subr.mxu1 %v5712_v8  ;;  %v8632_v8 = vld [vmem:[#allocation138_spill] sm:$0xff] }
 0x584   :  { %2134 = vmatpush2.msra.mxu1 %v8622_v24  ;;  %v8633_v24 = vld [vmem:[#allocation139_spill] sm:$0xff] }
 0x585   :  { %2135 = vmatprep.subr.mxu1 %v8623_v38  ;;  %v8634_v38 = vld [vmem:[#allocation140_spill] sm:$0xff] }
 0x586   :  { %2136 = vmatpush2.msra.mxu1 %v8624_v20  ;;  %v8635_v20 = vld [vmem:[#allocation141_spill] sm:$0xff] }
 0x587   :  { %2137 = vmatprep.subr.mxu1 %v8625_v14  ;;  %v8636_v14 = vld [vmem:[#allocation13_spill] sm:$0xff] }
 0x588   :  { %2138 = vmatpush2.msra.mxu1 %v8626_v44  ;;  %v8637_v44 = vld [vmem:[#allocation82_spill] sm:$0xff] }
 0x589   :  { %2139 = vmatprep.subr.mxu1 %v8627_v42  ;;  %v8638_v42 = vld [vmem:[#allocation14_spill] sm:$0xff] }
 0x58a   :  { %2140 = vmatpush2.msra.mxu1 %v8628_v60  ;;  %v8639_v60 = vld [vmem:[#allocation86_spill] sm:$0xff] }
 0x58b   :  { %2141 = vmatprep.subr.mxu1 %v8629_v19  ;;  %v8640_v19 = vld [vmem:[#allocation16_spill] sm:$0xff] }
 0x58c   :  { %2142 = vmatpush2.msra.mxu1 %v8630_v3  ;;  %v8641_v3 = vld [vmem:[#allocation88_spill] sm:$0xff] }
 0x58d   :  { %2143 = vmatprep.subr.mxu1 %v8631_v2  ;;  %v8642_v2 = vld [vmem:[#allocation17_spill] sm:$0xff] }
 0x58e   :  { %2144 = vmatpush2.msra.mxu1 %v8632_v8  ;;  %v8643_v8 = vld [vmem:[#allocation90_spill] sm:$0xff] }
 0x58f   :  { %2145 = vmatprep.subr.mxu1 %v8633_v24  ;;  %v8644_v24 = vld [vmem:[#allocation18_spill] sm:$0xff] }
 0x590   :  { %2146 = vmatpush2.msra.mxu1 %v8634_v38  ;;  %v8645_v38 = vld [vmem:[#allocation92_spill] sm:$0xff] }
 0x591   :  { %2147 = vmatprep.subr.mxu1 %v8635_v20  ;;  %v8646_v20 = vld [vmem:[#allocation19_spill] sm:$0xff] }
 0x592   :  { %2148 = vmatpush2.msra.mxu1 %v8636_v14  ;;  %v8647_v14 = vld [vmem:[#allocation94_spill] sm:$0xff] }
 0x593   :  { %2149 = vmatprep.subr.mxu1 %v8637_v44 }
 0x594   :  { %2150 = vmatpush2.msra.mxu1 %v8638_v42 }
 0x595   :  { %2151 = vmatprep.subr.mxu1 %v8639_v60 }
 0x596   :  { %2152 = vmatpush2.msra.mxu1 %v8640_v19 }
 0x597   :  { %2153 = vmatprep.subr.mxu1 %v8641_v3 }
 0x598   :  { %2154 = vmatpush2.msra.mxu1 %v8642_v2 }
 0x599   :  { %2155 = vmatprep.subr.mxu1 %v8643_v8  ;;  %v8649_v8 = vld [vmem:[#allocation80_spill] sm:$0xff] }
 0x59a   :  { %2156 = vmatpush2.msra.mxu1 %v8644_v24 }
 0x59b   :  { %2157 = vmatprep.subr.mxu1 %v8645_v38 }
 0x59c   :  { %2158 = vmatpush2.msra.mxu1 %v8646_v20 }
 0x59d   :  { %2326 = vmatprep.subr.mxu1 %v8647_v14 }
 0x5dd   :  { %v1786_v44 = vpop.f32.mrf.mxu1  ;;  %v1857_v22 = vpop.f32.mrf.mxu0 }
 0x5de   :  { %v1787_v60 = vadd.f32 %v1786_v44, %v4933_v0  ;;  %v1858_v38 = vadd.f32 %v1857_v22, %v8385_v40 }
 0x5df   :  { %v1788_v42 = vpop.f32.mrf.mxu1  ;;  %v1859_v11 = vpop.f32.mrf.mxu0 }
 0x5e0   :  { %v1789_v19 = vadd.f32 %v1788_v42, %v4937_v62  ;;  %v1935_v30 = vrot.slane %v1787_v60, 5  ;;  %v1860_v14 = vadd.f32 %v1859_v11, %v8386_v29  ;;  %v1955_v51 = vrot.slane %v1858_v38, 5 }
 0x5e2   :  { %v1936_v3 = vrot.slane %v1789_v19, 5  ;;  %v1939_v2 = vadd.f32 %v1935_v30, %v8648_v26  ;;  %v1956_v44 = vrot.slane %v1860_v14, 5  ;;  %v1959_v42 = vadd.f32 %v1955_v51, %v8387_v32 }
 0x5e4   :  { %v1940_v28 = vadd.f32 %v1936_v3, %v8649_v8  ;;  %v3269_v24 = vmul.f32 -1.442695, %v1939_v2  ;;  %v1960_v60 = vadd.f32 %v1956_v44, %v8388_v1  ;;  %v3271_v19 = vmul.f32 -1.442695, %v1959_v42  ;;  %v8650_v44 = vld [vmem:[#allocation15_spill] sm:$0xff] }
 0x5e6   :  { %v3270_v20 = vmul.f32 -1.442695, %v1940_v28  ;;  %3366 = vpow2.f32 %v3269_v24  ;;  %v3272_v30 = vmul.f32 -1.442695, %v1960_v60 }
 0x5e8   :  { %3368 = vpow2.f32 %v3270_v20 }
 0x5e9   :  { %3370 = vpow2.f32 %v3271_v19 }
 0x5ea   :  { %3372 = vpow2.f32 %v3272_v30 }
 0x5f3   :  { %v3367_v26 = vpop.eup %3366 }
 0x5f4   :  { %v1947_v2 = vadd.f32 1.0, %v3367_v26 }
 0x5f5   :  { %v3369_v3 = vpop.eup %3368 }
 0x5f6   :  { %v1948_v8 = vadd.f32 1.0, %v3369_v3  ;;  %3374 = vrcp.f32 %v1947_v2  ;;  %v3371_v28 = vpop.eup %3370 }
 0x5f7   :  { %v3373_v22 = vpop.eup %3372  ;;  %v1967_v24 = vadd.f32 1.0, %v3371_v28 }
 0x5f8   :  { %3376 = vrcp.f32 %v1948_v8  ;;  %v1968_v51 = vadd.f32 1.0, %v3373_v22 }
 0x5f9   :  { %3378 = vrcp.f32 %v1967_v24  ;;  %v1990_v24 = vrot.slane %v5809_v17, 7 }
 0x5fa   :  { %3380 = vrcp.f32 %v1968_v51 }
 0x603   :  { %v3375_v60 = vpop.eup %3374 }
 0x605   :  { %v3377_v26 = vpop.eup %3376 }
 0x606   :  { %v3379_v2 = vpop.eup %3378 }
 0x607   :  { %v3381_v28 = vpop.eup %3380 }
 0x61d   :  { %v1928_v11 = vpop.f32.mrf.mxu1 }
 0x61e   :  { %v1929_v38 = vadd.f32 %v1928_v11, %v4963_v56  ;;  %v1985_v11 = vsub.f32 1.0, %v3379_v2 }
 0x61f   :  { %v1930_v20 = vpop.f32.mrf.mxu1 }
 0x620   :  { %v1975_v14 = vrot.slane %v1929_v38, 5  ;;  %v1931_v42 = vadd.f32 %v1930_v20, %v8650_v44  ;;  %v1989_v38 = vrot.slane %v5807_v61, 7  ;;  %v1986_v20 = vsub.f32 1.0, %v3381_v28 }
 0x621   :  { %v1994_v44 = vmul.f32 %v3381_v28, %v1990_v24  ;;  %v6256_v28 = vld [vmem:[#allocation7 + $0x2c0] sm:$0xff]  ;;  %v6397_v24 = vld [vmem:[#allocation7 + $0x590] sm:$0xff] }
 0x622   :  { %v1979_v19 = vmul.f32 %v3375_v60, %v1975_v14  ;;  %v1976_v1 = vrot.slane %v1931_v42, 5  ;;  %v1993_v60 = vmul.f32 %v3379_v2, %v1989_v38  ;;  %v6264_v38 = vld [vmem:[#allocation7 + $0x290] sm:$0xff]  ;;  %8653 = vst [vmem:[#allocation68_spill] sm:$0xff] %v6397_v24 }
 0x624   :  { %v1981_v30 = vadd.f32 %v1979_v19, %v4970_v63  ;;  %v1980_v8 = vmul.f32 %v3377_v26, %v1976_v1 }
 0x626   :  { %3382 = vtanh.f32 %v1981_v30  ;;  %v1982_v3 = vadd.f32 %v1980_v8, %v4973_v9 }
 0x628   :  { %3384 = vtanh.f32 %v1982_v3  ;;  %v6248_v3 = vld [vmem:[#allocation7 + $0x2f0] sm:$0xff] }
 0x633   :  { %v3383_v22 = vpop.eup %3382 }
 0x634   :  { %v1987_v14 = vmul.f32 %v3383_v22, %v1985_v11  ;;  %v6260_v11 = vld [vmem:[#allocation7 + $0x298] sm:$0xff] }
 0x635   :  { %v3385_v42 = vpop.eup %3384 }
 0x636   :  { %v1988_v51 = vmul.f32 %v3385_v42, %v1986_v20  ;;  %v6235_v19 = vadd.f32 %v1993_v60, %v1987_v14  ;;  %v6293_v20 = vld [vmem:[#allocation7 + $0x200] sm:$0xff]  ;;  %v6401_v14 = vld [vmem:[#allocation7 + $0x568] sm:$0xff]  ;;  %v6409_v60 = vld [vmem:[#allocation7 + $0x538] sm:$0xff] }
 0x637   :  { %8655 = vst [vmem:[#allocation69_spill] sm:$0xff] %v6401_v14  ;;  %v6405_v42 = vld [vmem:[#allocation7 + $0x560] sm:$0xff]  ;;  %8659 = vst [vmem:[#allocation71_spill] sm:$0xff] %v6409_v60 }
 0x638   :  { %v6237_v1 = vadd.f32 %v1994_v44, %v1988_v51  ;;  %v6243_v8 = vrot.slane %v6235_v19, 3  ;;  %v6251_v44 = vld [vmem:[#allocation7 + $0x2c8] sm:$0xff]  ;;  %8657 = vst [vmem:[#allocation70_spill] sm:$0xff] %v6405_v42  ;;  %v8660_v51 = vld [vmem:[#allocation22_spill] sm:$0xff] }
 0x63a   :  { %v2021_v26 = vrot.slane %v6237_v1, 3  ;;  %v1999_v30 = vcombine.low %v6235_v19, %v6237_v1 }
 0x63c   :  { %2088 = vmatprep.mubr.f32.mxu0 %v2021_v26  ;;  %2159 = vmatprep.mubr.f32.mxu1 %v2021_v26  ;;  %v2006_v61 = vrot.slane %v1999_v30, %v4979_v45  ;;  %v8662_v30 = vld [vmem:[#allocation100_spill] sm:$0xff] }
 0x63d   :  { %2089 = vmatmul.mubr.f32.vlgmr.msra.gmra.mxu0 %v6243_v8  ;;  %2160 = vmatmul.mubr.f32.vlgmr.msra.gmra.mxu1 %v6243_v8 }
 0x63e   :  { %v2007_v17 = vcombine.high %v2006_v61, %v2006_v61  ;;  %2167 = vmatpush1.msra.mxu0 %v6248_v3  ;;  %2230 = vmatprep.mubr.f32.mxu0 %v2021_v26  ;;  %v6413_v26 = vld [vmem:[#allocation7 + $0x530] sm:$0xff]  ;;  %v6417_v61 = vld [vmem:[#allocation7 + $0x508] sm:$0xff] }
 0x63f   :  { %2168 = vmatprep.subr.mxu0 %v6251_v44  ;;  %2327 = vmatpush1.msra.mxu1 %v5823_v15  ;;  %v6268_v15 = vld [vmem:[#allocation7 + $0x268] sm:$0xff]  ;;  %8661 = vst [vmem:[#allocation72_spill] sm:$0xff] %v6413_v26  ;;  %8663 = vst [vmem:[#allocation73_spill] sm:$0xff] %v6417_v61 }
 0x640   :  { %v2014_v2 = vrot.slane %v2007_v17, %v4979_v45  ;;  %2169 = vmatpush1.msra.mxu0 %v6256_v28  ;;  %2328 = vmatprep.subr.mxu1 %v5827_v53  ;;  %v6277_v53 = vld [vmem:[#allocation7 + $0x260] sm:$0xff] }
 0x641   :  { %2170 = vmatprep.subr.mxu0 %v6260_v11  ;;  %2329 = vmatpush1.msra.mxu1 %v5831_v7  ;;  %v6281_v7 = vld [vmem:[#allocation7 + $0x238] sm:$0xff] }
 0x642   :  { %v2015_v22 = vcombine.high %v2014_v2, %v2014_v2  ;;  %2171 = vmatpush1.msra.mxu0 %v6264_v38  ;;  %2330 = vmatprep.subr.mxu1 %v5840_v23  ;;  %v6285_v23 = vld [vmem:[#allocation7 + $0x230] sm:$0xff]  ;;  %v8664_v17 = vld [vmem:[#allocation23_spill] sm:$0xff] }
 0x643   :  { %2172 = vmatprep.subr.mxu0 %v6268_v15  ;;  %2331 = vmatpush1.msra.mxu1 %v5844_v36  ;;  %v6289_v36 = vld [vmem:[#allocation7 + $0x208] sm:$0xff]  ;;  %v6421_v2 = vld [vmem:[#allocation7 + $0x500] sm:$0xff] }
 0x644   :  { %3273 = vst.msk [vmem:[%s7511_s7 + $0x3] ss:$8 sm:$0x3] %vm4995_vm2, %v2015_v22  ;;  %2173 = vmatpush1.msra.mxu0 %v6277_v53  ;;  %2332 = vmatprep.subr.mxu1 %v5848_v54  ;;  %v6297_v54 = vld [vmem:[#allocation7 + $0x1d8] sm:$0xff]  ;;  %8665 = vst [vmem:[#allocation74_spill] sm:$0xff] %v6421_v2 }
 0x645   :  { %2174 = vmatprep.subr.mxu0 %v6281_v7  ;;  %2333 = vmatpush1.msra.mxu1 %v5852_v16  ;;  %v6301_v16 = vld [vmem:[#allocation7 + $0x1d0] sm:$0xff] }
 0x646   :  { %2175 = vmatpush1.msra.mxu0 %v6285_v23  ;;  %2334 = vmatprep.subr.mxu1 %v5856_v27  ;;  %v6305_v27 = vld [vmem:[#allocation7 + $0x1a8] sm:$0xff]  ;;  %v8666_v22 = vld [vmem:[#allocation102_spill] sm:$0xff] }
 0x647   :  { %2176 = vmatprep.subr.mxu0 %v6289_v36  ;;  %2335 = vmatpush1.msra.mxu1 %v5860_v58  ;;  %v6309_v58 = vld [vmem:[#allocation7 + $0x1a0] sm:$0xff] }
 0x648   :  { %2177 = vmatpush1.msra.mxu0 %v6293_v20  ;;  %2336 = vmatprep.subr.mxu1 %v5864_v25  ;;  %v6313_v25 = vld [vmem:[#allocation7 + $0x178] sm:$0xff] }
 0x649   :  { %2178 = vmatprep.subr.mxu0 %v6297_v54  ;;  %2337 = vmatpush1.msra.mxu1 %v5868_v33  ;;  %v6317_v33 = vld [vmem:[#allocation7 + $0x170] sm:$0xff] }
 0x64a   :  { %2179 = vmatpush1.msra.mxu0 %v6301_v16  ;;  %2338 = vmatprep.subr.mxu1 %v5872_v46  ;;  %v6321_v46 = vld [vmem:[#allocation7 + $0x148] sm:$0xff] }
 0x64b   :  { %2180 = vmatprep.subr.mxu0 %v6305_v27  ;;  %2339 = vmatpush1.msra.mxu1 %v5876_v31  ;;  %v6325_v31 = vld [vmem:[#allocation7 + $0x140] sm:$0xff] }
 0x64c   :  { %2181 = vmatpush1.msra.mxu0 %v6309_v58  ;;  %2340 = vmatprep.subr.mxu1 %v5880_v12  ;;  %v6329_v12 = vld [vmem:[#allocation7 + $0x118] sm:$0xff] }
 0x64d   :  { %2182 = vmatprep.subr.mxu0 %v6313_v25  ;;  %2341 = vmatpush1.msra.mxu1 %v5884_v50  ;;  %v6333_v50 = vld [vmem:[#allocation7 + $0x110] sm:$0xff] }
 0x64e   :  { %2183 = vmatpush1.msra.mxu0 %v6317_v33  ;;  %2342 = vmatprep.subr.mxu1 %v5888_v10  ;;  %v6337_v10 = vld [vmem:[#allocation7 + $0xe8] sm:$0xff] }
 0x64f   :  { %2184 = vmatprep.subr.mxu0 %v6321_v46  ;;  %2343 = vmatpush1.msra.mxu1 %v5892_v49  ;;  %v6341_v49 = vld [vmem:[#allocation7 + $0xe0] sm:$0xff] }
 0x650   :  { %2185 = vmatpush1.msra.mxu0 %v6325_v31  ;;  %2344 = vmatprep.subr.mxu1 %v5896_v55  ;;  %v6345_v55 = vld [vmem:[#allocation7 + $0xb8] sm:$0xff] }
 0x651   :  { %2186 = vmatprep.subr.mxu0 %v6329_v12  ;;  %2345 = vmatpush1.msra.mxu1 %v5900_v59  ;;  %v6349_v59 = vld [vmem:[#allocation7 + $0xb0] sm:$0xff] }
 0x652   :  { %2187 = vmatpush1.msra.mxu0 %v6333_v50  ;;  %2346 = vmatprep.subr.mxu1 %v5904_v34  ;;  %v6353_v34 = vld [vmem:[#allocation7 + $0x88] sm:$0xff] }
 0x653   :  { %2188 = vmatprep.subr.mxu0 %v6337_v10  ;;  %2347 = vmatpush1.msra.mxu1 %v5908_v57  ;;  %v6357_v57 = vld [vmem:[#allocation7 + $0x80] sm:$0xff] }
 0x654   :  { %2189 = vmatpush1.msra.mxu0 %v6341_v49  ;;  %2348 = vmatprep.subr.mxu1 %v5912_v21  ;;  %v6361_v21 = vld [vmem:[#allocation7 + $0x58] sm:$0xff] }
 0x655   :  { %2190 = vmatprep.subr.mxu0 %v6345_v55  ;;  %2349 = vmatpush1.msra.mxu1 %v5916_v35  ;;  %v6365_v35 = vld [vmem:[#allocation7 + $0x50] sm:$0xff] }
 0x656   :  { %2191 = vmatpush1.msra.mxu0 %v6349_v59  ;;  %2350 = vmatprep.subr.mxu1 %v5920_v39  ;;  %v6369_v39 = vld [vmem:[#allocation7 + $0x28] sm:$0xff] }
 0x657   :  { %2192 = vmatprep.subr.mxu0 %v6353_v34  ;;  %2351 = vmatpush1.msra.mxu1 %v5924_v43  ;;  %v6373_v43 = vld [vmem:[#allocation7 + $0x20] sm:$0xff] }
 0x658   :  { %2193 = vmatpush1.msra.mxu0 %v6357_v57  ;;  %2352 = vmatprep.subr.mxu1 %v5928_v47  ;;  %v6377_v47 = vld [vmem:[#allocation7 + $0x5f8] sm:$0xff] }
 0x659   :  { %2194 = vmatprep.subr.mxu0 %v6361_v21  ;;  %2353 = vmatpush1.msra.mxu1 %v5932_v4  ;;  %v6381_v4 = vld [vmem:[#allocation7 + $0x5f0] sm:$0xff] }
 0x65a   :  { %2195 = vmatpush1.msra.mxu0 %v6365_v35  ;;  %2354 = vmatprep.subr.mxu1 %v5936_v13  ;;  %v6385_v13 = vld [vmem:[#allocation7 + $0x5c8] sm:$0xff] }
 0x65b   :  { %2196 = vmatprep.subr.mxu0 %v6369_v39  ;;  %2355 = vmatpush1.msra.mxu1 %v5940_v52  ;;  %v6389_v52 = vld [vmem:[#allocation7 + $0x5c0] sm:$0xff] }
 0x65c   :  { %2197 = vmatpush1.msra.mxu0 %v6373_v43  ;;  %2356 = vmatprep.subr.mxu1 %v5944_v5  ;;  %v6393_v5 = vld [vmem:[#allocation7 + $0x598] sm:$0xff] }
 0x65d   :  { %2198 = vmatprep.subr.mxu0 %v6377_v47  ;;  %2357 = vmatpush1.msra.mxu1 %v5948_v6  ;;  %8651 = vst [vmem:[#allocation67_spill] sm:$0xff] %v6393_v5  ;;  %v8652_v6 = vld [vmem:[#allocation20_spill] sm:$0xff] }
 0x65e   :  { %2199 = vmatpush2.msra.mxu0 %v6381_v4  ;;  %2358 = vmatprep.subr.mxu1 %v5952_v48  ;;  %v8654_v48 = vld [vmem:[#allocation96_spill] sm:$0xff] }
 0x65f   :  { %2200 = vmatprep.subr.mxu0 %v6385_v13  ;;  %2359 = vmatpush2.msra.mxu1 %v5956_v37  ;;  %v8656_v37 = vld [vmem:[#allocation21_spill] sm:$0xff] }
 0x660   :  { %2201 = vmatpush2.msra.mxu0 %v6389_v52  ;;  %2360 = vmatprep.subr.mxu1 %v5960_v41  ;;  %v8658_v41 = vld [vmem:[#allocation98_spill] sm:$0xff] }
 0x661   :  { %2202 = vmatprep.subr.mxu0 %v6393_v5  ;;  %2361 = vmatpush2.msra.mxu1 %v8652_v6  ;;  %v6425_v6 = vld [vmem:[#allocation7 + $0x4d8] sm:$0xff] }
 0x662   :  { %2203 = vmatpush2.msra.mxu0 %v6397_v24  ;;  %2362 = vmatprep.subr.mxu1 %v8654_v48  ;;  %8667 = vst [vmem:[#allocation75_spill] sm:$0xff] %v6425_v6  ;;  %v8668_v48 = vld [vmem:[#allocation24_spill] sm:$0xff] }
 0x663   :  { %2204 = vmatprep.subr.mxu0 %v6401_v14  ;;  %2363 = vmatpush2.msra.mxu1 %v8656_v37  ;;  %v6429_v37 = vld [vmem:[#allocation7 + $0x4d0] sm:$0xff] }
 0x664   :  { %2205 = vmatpush2.msra.mxu0 %v6405_v42  ;;  %2364 = vmatprep.subr.mxu1 %v8658_v41  ;;  %8669 = vst [vmem:[#allocation76_spill] sm:$0xff] %v6429_v37  ;;  %v8670_v41 = vld [vmem:[#allocation104_spill] sm:$0xff] }
 0x665   :  { %2206 = vmatprep.subr.mxu0 %v6409_v60  ;;  %2365 = vmatpush2.msra.mxu1 %v8660_v51  ;;  %v6433_v51 = vld [vmem:[#allocation7 + $0x4a8] sm:$0xff] }
 0x666   :  { %2207 = vmatpush2.msra.mxu0 %v6413_v26  ;;  %2366 = vmatprep.subr.mxu1 %v8662_v30  ;;  %8671 = vst [vmem:[#allocation77_spill] sm:$0xff] %v6433_v51  ;;  %v8672_v30 = vld [vmem:[#allocation25_spill] sm:$0xff] }
 0x667   :  { %2208 = vmatprep.subr.mxu0 %v6417_v61  ;;  %2367 = vmatpush2.msra.mxu1 %v8664_v17  ;;  %v6437_v17 = vld [vmem:[#allocation7 + $0x4a0] sm:$0xff]  ;;  %v8714_v61 = vld [vmem:[#allocation130_spill] sm:$0xff] }
 0x668   :  { %2209 = vmatpush2.msra.mxu0 %v6421_v2  ;;  %2368 = vmatprep.subr.mxu1 %v8666_v22  ;;  %8673 = vst [vmem:[#allocation79_spill] sm:$0xff] %v6437_v17  ;;  %v8674_v22 = vld [vmem:[#allocation106_spill] sm:$0xff]  ;;  %v8711_v2 = vld [vmem:[#allocation37_spill] sm:$0xff] }
 0x669   :  { %2210 = vmatprep.subr.mxu0 %v6425_v6  ;;  %2369 = vmatpush2.msra.mxu1 %v8668_v48  ;;  %v6441_v6 = vld [vmem:[#allocation7 + $0x478] sm:$0xff] }
 0x66a   :  { %2211 = vmatpush2.msra.mxu0 %v6429_v37  ;;  %2370 = vmatprep.subr.mxu1 %v8670_v41  ;;  %8675 = vst [vmem:[#allocation81_spill] sm:$0xff] %v6441_v6  ;;  %v8676_v48 = vld [vmem:[#allocation26_spill] sm:$0xff]  ;;  %v8678_v41 = vld [vmem:[#allocation108_spill] sm:$0xff] }
 0x66b   :  { %2212 = vmatprep.subr.mxu0 %v6433_v51  ;;  %2371 = vmatpush2.msra.mxu1 %v8672_v30  ;;  %v6445_v37 = vld [vmem:[#allocation7 + $0x470] sm:$0xff]  ;;  %v6449_v51 = vld [vmem:[#allocation7 + $0x448] sm:$0xff]  ;;  %v8680_v30 = vld [vmem:[#allocation27_spill] sm:$0xff] }
 0x66c   :  { %2213 = vmatpush2.msra.mxu0 %v6437_v17  ;;  %2372 = vmatprep.subr.mxu1 %v8674_v22  ;;  %8677 = vst [vmem:[#allocation83_spill] sm:$0xff] %v6445_v37  ;;  %8679 = vst [vmem:[#allocation85_spill] sm:$0xff] %v6449_v51  ;;  %v6453_v17 = vld [vmem:[#allocation7 + $0x440] sm:$0xff]  ;;  %v8682_v22 = vld [vmem:[#allocation110_spill] sm:$0xff] }
 0x66d   :  { %2214 = vmatprep.subr.mxu0 %v6441_v6  ;;  %2373 = vmatpush2.msra.mxu1 %v8676_v48  ;;  %8681 = vst [vmem:[#allocation87_spill] sm:$0xff] %v6453_v17  ;;  %v6457_v6 = vld [vmem:[#allocation7 + $0x418] sm:$0xff]  ;;  %v8684_v48 = vld [vmem:[#allocation28_spill] sm:$0xff] }
 0x66e   :  { %2215 = vmatpush2.msra.mxu0 %v6445_v37  ;;  %2374 = vmatprep.subr.mxu1 %v8678_v41  ;;  %8683 = vst [vmem:[#allocation89_spill] sm:$0xff] %v6457_v6  ;;  %v6461_v37 = vld [vmem:[#allocation7 + $0x410] sm:$0xff]  ;;  %v8686_v41 = vld [vmem:[#allocation112_spill] sm:$0xff] }
 0x66f   :  { %2216 = vmatprep.subr.mxu0 %v6449_v51  ;;  %2375 = vmatpush2.msra.mxu1 %v8680_v30  ;;  %8685 = vst [vmem:[#allocation91_spill] sm:$0xff] %v6461_v37  ;;  %v6465_v51 = vld [vmem:[#allocation7 + $0x3e8] sm:$0xff] }
 0x670   :  { %2217 = vmatpush2.msra.mxu0 %v6453_v17  ;;  %2376 = vmatprep.subr.mxu1 %v8682_v22  ;;  %8687 = vst [vmem:[#allocation93_spill] sm:$0xff] %v6465_v51  ;;  %v8688_v30 = vld [vmem:[#allocation29_spill] sm:$0xff]  ;;  %v6469_v17 = vld [vmem:[#allocation7 + $0x3e0] sm:$0xff]  ;;  %v8690_v22 = vld [vmem:[#allocation114_spill] sm:$0xff] }
 0x671   :  { %2218 = vmatprep.subr.mxu0 %v6457_v6  ;;  %2377 = vmatpush2.msra.mxu1 %v8684_v48  ;;  %8689 = vst [vmem:[#allocation95_spill] sm:$0xff] %v6469_v17  ;;  %v6473_v6 = vld [vmem:[#allocation7 + $0x3b8] sm:$0xff] }
 0x672   :  { %2219 = vmatpush2.msra.mxu0 %v6461_v37  ;;  %2378 = vmatprep.subr.mxu1 %v8686_v41  ;;  %8691 = vst [vmem:[#allocation97_spill] sm:$0xff] %v6473_v6  ;;  %v8692_v48 = vld [vmem:[#allocation30_spill] sm:$0xff]  ;;  %v8694_v41 = vld [vmem:[#allocation116_spill] sm:$0xff] }
 0x673   :  { %2220 = vmatprep.subr.mxu0 %v6465_v51  ;;  %2379 = vmatpush2.msra.mxu1 %v8688_v30  ;;  %v6477_v37 = vld [vmem:[#allocation7 + $0x3b0] sm:$0xff]  ;;  %v6481_v51 = vld [vmem:[#allocation7 + $0x388] sm:$0xff]  ;;  %v8696_v30 = vld [vmem:[#allocation31_spill] sm:$0xff] }
 0x674   :  { %2221 = vmatpush2.msra.mxu0 %v6469_v17  ;;  %2380 = vmatprep.subr.mxu1 %v8690_v22  ;;  %8693 = vst [vmem:[#allocation99_spill] sm:$0xff] %v6477_v37  ;;  %8695 = vst [vmem:[#allocation101_spill] sm:$0xff] %v6481_v51  ;;  %v6485_v17 = vld [vmem:[#allocation7 + $0x380] sm:$0xff]  ;;  %v8698_v22 = vld [vmem:[#allocation118_spill] sm:$0xff] }
 0x675   :  { %2222 = vmatprep.subr.mxu0 %v6473_v6  ;;  %2381 = vmatpush2.msra.mxu1 %v8692_v48  ;;  %8697 = vst [vmem:[#allocation103_spill] sm:$0xff] %v6485_v17  ;;  %v6489_v6 = vld [vmem:[#allocation7 + $0x358] sm:$0xff]  ;;  %v8700_v48 = vld [vmem:[#allocation32_spill] sm:$0xff] }
 0x676   :  { %2223 = vmatpush2.msra.mxu0 %v6477_v37  ;;  %2382 = vmatprep.subr.mxu1 %v8694_v41  ;;  %8699 = vst [vmem:[#allocation105_spill] sm:$0xff] %v6489_v6  ;;  %v6493_v37 = vld [vmem:[#allocation7 + $0x350] sm:$0xff]  ;;  %v8702_v41 = vld [vmem:[#allocation120_spill] sm:$0xff] }
 0x677   :  { %2224 = vmatprep.subr.mxu0 %v6481_v51  ;;  %2383 = vmatpush2.msra.mxu1 %v8696_v30  ;;  %8701 = vst [vmem:[#allocation107_spill] sm:$0xff] %v6493_v37  ;;  %v6497_v51 = vld [vmem:[#allocation7 + $0x328] sm:$0xff] }
 0x678   :  { %2225 = vmatpush2.msra.mxu0 %v6485_v17  ;;  %2384 = vmatprep.subr.mxu1 %v8698_v22  ;;  %8703 = vst [vmem:[#allocation109_spill] sm:$0xff] %v6497_v51  ;;  %v8704_v30 = vld [vmem:[#allocation33_spill] sm:$0xff]  ;;  %v6501_v17 = vld [vmem:[#allocation7 + $0x320] sm:$0xff]  ;;  %v8706_v22 = vld [vmem:[#allocation122_spill] sm:$0xff] }
 0x679   :  { %2226 = vmatprep.subr.mxu0 %v6489_v6  ;;  %2385 = vmatpush2.msra.mxu1 %v8700_v48  ;;  %8705 = vst [vmem:[#allocation111_spill] sm:$0xff] %v6501_v17  ;;  %v8707_v48 = vld [vmem:[#allocation34_spill] sm:$0xff]  ;;  %v8708_v6 = vld [vmem:[#allocation124_spill] sm:$0xff] }
 0x67a   :  { %2227 = vmatpush2.msra.mxu0 %v6493_v37  ;;  %2386 = vmatprep.subr.mxu1 %v8702_v41  ;;  %v8709_v37 = vld [vmem:[#allocation35_spill] sm:$0xff]  ;;  %v8710_v41 = vld [vmem:[#allocation126_spill] sm:$0xff] }
 0x67b   :  { %2228 = vmatprep.subr.mxu0 %v6497_v51  ;;  %2387 = vmatpush2.msra.mxu1 %v8704_v30  ;;  %v8712_v51 = vld [vmem:[#allocation128_spill] sm:$0xff]  ;;  %v8713_v30 = vld [vmem:[#allocation38_spill] sm:$0xff] }
 0x67c   :  { %2229 = vmatpush2.msra.mxu0 %v6501_v17  ;;  %2388 = vmatprep.subr.mxu1 %v8706_v22  ;;  %v8715_v17 = vld [vmem:[#allocation39_spill] sm:$0xff]  ;;  %v8716_v22 = vld [vmem:[#allocation132_spill] sm:$0xff] }
 0x67d   :  { %2231 = vmatmul.mubr.f32.vlgmr.msra.gmra.mxu0 %v6243_v8  ;;  %2397 = vmatprep.subr.mxu0 %v8707_v48  ;;  %v8717_v8 = vld [vmem:[#allocation40_spill] sm:$0xff]  ;;  %v8718_v48 = vld [vmem:[#allocation134_spill] sm:$0xff] }
 0x67e   :  { %2398 = vmatpush1.msra.mxu0 %v8708_v6  ;;  %2389 = vmatpush2.msra.mxu1 %v8709_v37  ;;  %v8719_v6 = vld [vmem:[#allocation41_spill] sm:$0xff]  ;;  %v8720_v37 = vld [vmem:[#allocation43_spill] sm:$0xff] }
 0x67f   :  { %2399 = vmatprep.subr.mxu0 %v8710_v41  ;;  %2468 = vmatprep.subr.mxu1 %v8711_v2  ;;  %v8721_v41 = vld [vmem:[#allocation45_spill] sm:$0xff]  ;;  %v8722_v2 = vld [vmem:[#allocation46_spill] sm:$0xff] }
 0x680   :  { %2400 = vmatpush1.msra.mxu0 %v8712_v51  ;;  %v8723_v51 = vld [vmem:[#allocation47_spill] sm:$0xff] }
 0x681   :  { %2401 = vmatprep.subr.mxu0 %v8713_v30  ;;  %v8724_v30 = vld [vmem:[#allocation48_spill] sm:$0xff] }
 0x682   :  { %2402 = vmatpush1.msra.mxu0 %v8714_v61  ;;  %v8725_v61 = vld [vmem:[#allocation49_spill] sm:$0xff] }
 0x683   :  { %2403 = vmatprep.subr.mxu0 %v8715_v17  ;;  %v8726_v17 = vld [vmem:[#allocation44_spill] sm:$0xff] }
 0x684   :  { %2404 = vmatpush1.msra.mxu0 %v8716_v22  ;;  %v8727_v22 = vld [vmem:[#allocation42_spill] sm:$0xff] }
 0x685   :  { %2405 = vmatprep.subr.mxu0 %v8717_v8  ;;  %v8728_v8 = vld [vmem:[#allocation36_spill] sm:$0xff] }
 0x686   :  { %2406 = vmatpush1.msra.mxu0 %v8718_v48  ;;  %v8729_v48 = vld [vmem:[#allocation50_spill] sm:$0xff] }
 0x687   :  { %2407 = vmatprep.subr.mxu0 %v8719_v6  ;;  %v8730_v6 = vld [vmem:[#allocation51_spill] sm:$0xff] }
 0x688   :  { %2408 = vmatpush1.msra.mxu0 %v8720_v37  ;;  %v8731_v37 = vld [vmem:[#allocation52_spill] sm:$0xff] }
 0x689   :  { %2409 = vmatprep.subr.mxu0 %v8721_v41  ;;  %v8732_v41 = vld [vmem:[#allocation53_spill] sm:$0xff] }
 0x68a   :  { %2410 = vmatpush1.msra.mxu0 %v8722_v2  ;;  %v8733_v2 = vld [vmem:[#allocation54_spill] sm:$0xff] }
 0x68b   :  { %2411 = vmatprep.subr.mxu0 %v8723_v51  ;;  %v8734_v51 = vld [vmem:[#allocation55_spill] sm:$0xff] }
 0x68c   :  { %2412 = vmatpush1.msra.mxu0 %v8724_v30  ;;  %v8735_v30 = vld [vmem:[#allocation56_spill] sm:$0xff] }
 0x68d   :  { %2413 = vmatprep.subr.mxu0 %v8725_v61  ;;  %v8736_v61 = vld [vmem:[#allocation57_spill] sm:$0xff] }
 0x68e   :  { %2414 = vmatpush1.msra.mxu0 %v8726_v17  ;;  %v8737_v17 = vld [vmem:[#allocation58_spill] sm:$0xff] }
 0x68f   :  { %2415 = vmatprep.subr.mxu0 %v8727_v22  ;;  %v8738_v22 = vld [vmem:[#allocation59_spill] sm:$0xff] }
 0x690   :  { %2416 = vmatpush1.msra.mxu0 %v8728_v8  ;;  %v8739_v8 = vld [vmem:[#allocation60_spill] sm:$0xff] }
 0x691   :  { %2417 = vmatprep.subr.mxu0 %v8729_v48  ;;  %v8740_v48 = vld [vmem:[#allocation61_spill] sm:$0xff] }
 0x692   :  { %2418 = vmatpush1.msra.mxu0 %v8730_v6  ;;  %v8741_v6 = vld [vmem:[#allocation62_spill] sm:$0xff] }
 0x693   :  { %2419 = vmatprep.subr.mxu0 %v8731_v37  ;;  %v8742_v37 = vld [vmem:[#allocation63_spill] sm:$0xff] }
 0x694   :  { %2420 = vmatpush1.msra.mxu0 %v8732_v41  ;;  %v8743_v41 = vld [vmem:[#allocation64_spill] sm:$0xff] }
 0x695   :  { %2421 = vmatprep.subr.mxu0 %v8733_v2  ;;  %v8744_v2 = vld [vmem:[#allocation65_spill] sm:$0xff] }
 0x696   :  { %2422 = vmatpush1.msra.mxu0 %v8734_v51  ;;  %v8745_v51 = vld [vmem:[#allocation66_spill] sm:$0xff] }
 0x697   :  { %2423 = vmatprep.subr.mxu0 %v8735_v30  ;;  %v6545_v30 = vld [vmem:[#allocation7 + $0x580] sm:$0xff] }
 0x698   :  { %2424 = vmatpush1.msra.mxu0 %v8736_v61  ;;  %8746 = vst [vmem:[#allocation113_spill] sm:$0xff] %v6545_v30  ;;  %v6548_v61 = vld [vmem:[#allocation7 + $0x558] sm:$0xff] }
 0x699   :  { %2425 = vmatprep.subr.mxu0 %v8737_v17  ;;  %8747 = vst [vmem:[#allocation115_spill] sm:$0xff] %v6548_v61  ;;  %v6551_v17 = vld [vmem:[#allocation7 + $0x550] sm:$0xff] }
 0x69a   :  { %2426 = vmatpush1.msra.mxu0 %v8738_v22  ;;  %8748 = vst [vmem:[#allocation117_spill] sm:$0xff] %v6551_v17  ;;  %v6554_v22 = vld [vmem:[#allocation7 + $0x528] sm:$0xff] }
 0x69b   :  { %2427 = vmatprep.subr.mxu0 %v8739_v8  ;;  %8749 = vst [vmem:[#allocation119_spill] sm:$0xff] %v6554_v22  ;;  %v6557_v8 = vld [vmem:[#allocation7 + $0x520] sm:$0xff] }
 0x69c   :  { %2428 = vmatpush1.msra.mxu0 %v8740_v48  ;;  %8750 = vst [vmem:[#allocation121_spill] sm:$0xff] %v6557_v8  ;;  %v6560_v48 = vld [vmem:[#allocation7 + $0x4f8] sm:$0xff] }
 0x69d   :  { %2429 = vmatprep.subr.mxu0 %v8741_v6  ;;  %8751 = vst [vmem:[#allocation123_spill] sm:$0xff] %v6560_v48  ;;  %v6563_v6 = vld [vmem:[#allocation7 + $0x4f0] sm:$0xff] }
 0x69e   :  { %2430 = vmatpush2.msra.mxu0 %v8742_v37  ;;  %8752 = vst [vmem:[#allocation125_spill] sm:$0xff] %v6563_v6  ;;  %v6566_v37 = vld [vmem:[#allocation7 + $0x4c8] sm:$0xff] }
 0x69f   :  { %2431 = vmatprep.subr.mxu0 %v8743_v41  ;;  %8753 = vst [vmem:[#allocation127_spill] sm:$0xff] %v6566_v37  ;;  %v6569_v41 = vld [vmem:[#allocation7 + $0x4c0] sm:$0xff] }
 0x6a0   :  { %2432 = vmatpush2.msra.mxu0 %v8744_v2  ;;  %8754 = vst [vmem:[#allocation129_spill] sm:$0xff] %v6569_v41  ;;  %v6572_v2 = vld [vmem:[#allocation7 + $0x498] sm:$0xff] }
 0x6a1   :  { %2433 = vmatprep.subr.mxu0 %v8745_v51  ;;  %8755 = vst [vmem:[#allocation131_spill] sm:$0xff] %v6572_v2  ;;  %v6575_v51 = vld [vmem:[#allocation7 + $0x490] sm:$0xff] }
 0x6a2   :  { %2434 = vmatpush2.msra.mxu0 %v6545_v30  ;;  %8756 = vst [vmem:[#allocation133_spill] sm:$0xff] %v6575_v51 }
 0x6a3   :  { %2435 = vmatprep.subr.mxu0 %v6548_v61  ;;  %v8774_v61 = vld [vmem:[#allocation12_spill] sm:$0xff] }
 0x6a4   :  { %2436 = vmatpush2.msra.mxu0 %v6551_v17 }
 0x6a5   :  { %2437 = vmatprep.subr.mxu0 %v6554_v22 }
 0x6a6   :  { %2438 = vmatpush2.msra.mxu0 %v6557_v8 }
 0x6a7   :  { %2439 = vmatprep.subr.mxu0 %v6560_v48  ;;  %v6578_v48 = vld [vmem:[#allocation7 + $0x468] sm:$0xff] }
 0x6a8   :  { %2440 = vmatpush2.msra.mxu0 %v6563_v6  ;;  %8757 = vst [vmem:[#allocation135_spill] sm:$0xff] %v6578_v48  ;;  %v6581_v6 = vld [vmem:[#allocation7 + $0x460] sm:$0xff] }
 0x6a9   :  { %2441 = vmatprep.subr.mxu0 %v6566_v37  ;;  %8758 = vst [vmem:[#allocation136_spill] sm:$0xff] %v6581_v6  ;;  %v6584_v37 = vld [vmem:[#allocation7 + $0x438] sm:$0xff] }
 0x6aa   :  { %2442 = vmatpush2.msra.mxu0 %v6569_v41  ;;  %8759 = vst [vmem:[#allocation137_spill] sm:$0xff] %v6584_v37  ;;  %v6587_v41 = vld [vmem:[#allocation7 + $0x430] sm:$0xff] }
 0x6ab   :  { %2443 = vmatprep.subr.mxu0 %v6572_v2  ;;  %8760 = vst [vmem:[#allocation138_spill] sm:$0xff] %v6587_v41  ;;  %v6590_v2 = vld [vmem:[#allocation7 + $0x408] sm:$0xff] }
 0x6ac   :  { %2444 = vmatpush2.msra.mxu0 %v6575_v51  ;;  %8761 = vst [vmem:[#allocation139_spill] sm:$0xff] %v6590_v2  ;;  %v6593_v51 = vld [vmem:[#allocation7 + $0x400] sm:$0xff] }
 0x6ad   :  { %2445 = vmatprep.subr.mxu0 %v6578_v48  ;;  %8762 = vst [vmem:[#allocation140_spill] sm:$0xff] %v6593_v51  ;;  %v6596_v48 = vld [vmem:[#allocation7 + $0x3d8] sm:$0xff] }
 0x6ae   :  { %2446 = vmatpush2.msra.mxu0 %v6581_v6  ;;  %8763 = vst [vmem:[#allocation141_spill] sm:$0xff] %v6596_v48  ;;  %v6599_v6 = vld [vmem:[#allocation7 + $0x3d0] sm:$0xff] }
 0x6af   :  { %2447 = vmatprep.subr.mxu0 %v6584_v37  ;;  %8764 = vst [vmem:[#allocation13_spill] sm:$0xff] %v6599_v6  ;;  %v6602_v37 = vld [vmem:[#allocation7 + $0x3a8] sm:$0xff] }
 0x6b0   :  { %2448 = vmatpush2.msra.mxu0 %v6587_v41  ;;  %8765 = vst [vmem:[#allocation82_spill] sm:$0xff] %v6602_v37  ;;  %v6605_v41 = vld [vmem:[#allocation7 + $0x3a0] sm:$0xff] }
 0x6b1   :  { %2449 = vmatprep.subr.mxu0 %v6590_v2  ;;  %8766 = vst [vmem:[#allocation14_spill] sm:$0xff] %v6605_v41  ;;  %v6608_v2 = vld [vmem:[#allocation7 + $0x378] sm:$0xff] }
 0x6b2   :  { %2450 = vmatpush2.msra.mxu0 %v6593_v51  ;;  %8767 = vst [vmem:[#allocation86_spill] sm:$0xff] %v6608_v2  ;;  %v6611_v51 = vld [vmem:[#allocation7 + $0x370] sm:$0xff] }
 0x6b3   :  { %2451 = vmatprep.subr.mxu0 %v6596_v48  ;;  %8768 = vst [vmem:[#allocation16_spill] sm:$0xff] %v6611_v51  ;;  %v6614_v48 = vld [vmem:[#allocation7 + $0x348] sm:$0xff] }
 0x6b4   :  { %2452 = vmatpush2.msra.mxu0 %v6599_v6  ;;  %8769 = vst [vmem:[#allocation88_spill] sm:$0xff] %v6614_v48  ;;  %v6617_v6 = vld [vmem:[#allocation7 + $0x340] sm:$0xff] }
 0x6b5   :  { %2453 = vmatprep.subr.mxu0 %v6602_v37  ;;  %8770 = vst [vmem:[#allocation17_spill] sm:$0xff] %v6617_v6  ;;  %v6620_v37 = vld [vmem:[#allocation7 + $0x318] sm:$0xff] }
 0x6b6   :  { %2454 = vmatpush2.msra.mxu0 %v6605_v41  ;;  %8771 = vst [vmem:[#allocation90_spill] sm:$0xff] %v6620_v37  ;;  %v6623_v41 = vld [vmem:[#allocation7 + $0x310] sm:$0xff] }
 0x6b7   :  { %2455 = vmatprep.subr.mxu0 %v6608_v2  ;;  %8772 = vst [vmem:[#allocation18_spill] sm:$0xff] %v6623_v41  ;;  %v6626_v2 = vld [vmem:[#allocation7 + $0x2d8] sm:$0xff] }
 0x6b8   :  { %2456 = vmatpush2.msra.mxu0 %v6611_v51  ;;  %8773 = vst [vmem:[#allocation92_spill] sm:$0xff] %v6626_v2 }
 0x6b9   :  { %2457 = vmatprep.subr.mxu0 %v6614_v48 }
 0x6ba   :  { %2458 = vmatpush2.msra.mxu0 %v6617_v6 }
 0x6bb   :  { %2459 = vmatprep.subr.mxu0 %v6620_v37  ;;  %v8775_v37 = vld [vmem:[#allocation80_spill] sm:$0xff] }
 0x6bc   :  { %2460 = vmatpush2.msra.mxu0 %v6623_v41 }
 0x6bd   :  { %2629 = vmatprep.subr.mxu0 %v6626_v2 }
 0x6fd   :  { %v2090_v51 = vpop.f32.mrf.mxu0  ;;  %v2161_v26 = vpop.f32.mrf.mxu1 }
 0x6fe   :  { %v2091_v48 = vadd.f32 %v2090_v51, %v4933_v0  ;;  %v2162_v41 = vadd.f32 %v2161_v26, %v8385_v40 }
 0x6ff   :  { %v2092_v8 = vpop.f32.mrf.mxu0  ;;  %v2163_v14 = vpop.f32.mrf.mxu1 }
 0x700   :  { %v2093_v22 = vadd.f32 %v2092_v8, %v4937_v62  ;;  %v2239_v17 = vrot.slane %v2091_v48, 4  ;;  %v2164_v2 = vadd.f32 %v2163_v14, %v8386_v29  ;;  %v2259_v5 = vrot.slane %v2162_v41, 4  ;;  %v8776_v48 = vld [vmem:[#allocation84_spill] sm:$0xff] }
 0x702   :  { %v2240_v6 = vrot.slane %v2093_v22, 4  ;;  %v2243_v30 = vadd.f32 %v2239_v17, %v8774_v61  ;;  %v2260_v51 = vrot.slane %v2164_v2, 4  ;;  %v2263_v8 = vadd.f32 %v2259_v5, %v8387_v32 }
 0x704   :  { %v2244_v60 = vadd.f32 %v2240_v6, %v8775_v37  ;;  %v3274_v42 = vmul.f32 -1.442695, %v2243_v30  ;;  %v2264_v22 = vadd.f32 %v2260_v51, %v8776_v48  ;;  %v3276_v62 = vmul.f32 -1.442695, %v2263_v8  ;;  %v8777_v51 = vld [vmem:[#allocation15_spill] sm:$0xff] }
 0x706   :  { %v3275_v24 = vmul.f32 -1.442695, %v2244_v60  ;;  %3386 = vpow2.f32 %v3274_v42  ;;  %v3277_v17 = vmul.f32 -1.442695, %v2264_v22 }
 0x708   :  { %3388 = vpow2.f32 %v3275_v24 }
 0x709   :  { %3390 = vpow2.f32 %v3276_v62 }
 0x70a   :  { %3392 = vpow2.f32 %v3277_v17 }
 0x713   :  { %v3387_v61 = vpop.eup %3386 }
 0x714   :  { %v2251_v30 = vadd.f32 1.0, %v3387_v61 }
 0x715   :  { %v3389_v6 = vpop.eup %3388 }
 0x716   :  { %v2252_v37 = vadd.f32 1.0, %v3389_v6  ;;  %3394 = vrcp.f32 %v2251_v30  ;;  %v3391_v42 = vpop.eup %3390 }
 0x717   :  { %v3393_v60 = vpop.eup %3392  ;;  %v2271_v26 = vadd.f32 1.0, %v3391_v42 }
 0x718   :  { %3396 = vrcp.f32 %v2252_v37  ;;  %v2272_v5 = vadd.f32 1.0, %v3393_v60 }
 0x719   :  { %3398 = vrcp.f32 %v2271_v26  ;;  %v2294_v26 = vrot.slane %v6237_v1, 7 }
 0x71a   :  { %3400 = vrcp.f32 %v2272_v5 }
 0x723   :  { %v3395_v22 = vpop.eup %3394 }
 0x725   :  { %v3397_v61 = vpop.eup %3396 }
 0x726   :  { %v3399_v30 = vpop.eup %3398 }
 0x727   :  { %v3401_v42 = vpop.eup %3400 }
 0x73d   :  { %v2232_v14 = vpop.f32.mrf.mxu0 }
 0x73e   :  { %v2233_v24 = vadd.f32 %v2232_v14, %v4963_v56  ;;  %v2289_v14 = vsub.f32 1.0, %v3399_v30 }
 0x73f   :  { %v2234_v41 = vpop.f32.mrf.mxu0 }
 0x740   :  { %v2279_v2 = vrot.slane %v2233_v24, 4  ;;  %v2235_v8 = vadd.f32 %v2234_v41, %v8777_v51  ;;  %v2293_v24 = vrot.slane %v6235_v19, 7  ;;  %v2290_v41 = vsub.f32 1.0, %v3401_v42 }
 0x741   :  { %v2298_v51 = vmul.f32 %v3401_v42, %v2294_v26  ;;  %v6800_v42 = vld [vmem:[#allocation7 + $0x5a0] sm:$0xff] }
 0x742   :  { %v2283_v62 = vmul.f32 %v3395_v22, %v2279_v2  ;;  %v2280_v48 = vrot.slane %v2235_v8, 4  ;;  %v2297_v22 = vmul.f32 %v3399_v30, %v2293_v24  ;;  %v6680_v30 = vld [vmem:[#allocation7 + $0x270] sm:$0xff]  ;;  %v6812_v24 = vld [vmem:[#allocation7 + $0x548] sm:$0xff]  ;;  %v6816_v26 = vld [vmem:[#allocation7 + $0x540] sm:$0xff] }
 0x743   :  { %8784 = vst [vmem:[#allocation20_spill] sm:$0xff] %v6812_v24  ;;  %8786 = vst [vmem:[#allocation96_spill] sm:$0xff] %v6816_v26 }
 0x744   :  { %v2285_v17 = vadd.f32 %v2283_v62, %v4970_v63  ;;  %v2284_v37 = vmul.f32 %v3397_v61, %v2280_v48 }
 0x746   :  { %3402 = vtanh.f32 %v2285_v17  ;;  %v2286_v6 = vadd.f32 %v2284_v37, %v4973_v9 }
 0x748   :  { %3404 = vtanh.f32 %v2286_v6  ;;  %v6668_v6 = vld [vmem:[#allocation7 + $0x2a8] sm:$0xff] }
 0x753   :  { %v3403_v60 = vpop.eup %3402 }
 0x754   :  { %v2291_v2 = vmul.f32 %v3403_v60, %v2289_v14  ;;  %v6804_v14 = vld [vmem:[#allocation7 + $0x578] sm:$0xff]  ;;  %v6808_v60 = vld [vmem:[#allocation7 + $0x570] sm:$0xff] }
 0x755   :  { %v3405_v8 = vpop.eup %3404  ;;  %8780 = vst [vmem:[#allocation19_spill] sm:$0xff] %v6804_v14  ;;  %8782 = vst [vmem:[#allocation94_spill] sm:$0xff] %v6808_v60 }
 0x756   :  { %v2292_v5 = vmul.f32 %v3405_v8, %v2290_v41  ;;  %v6643_v62 = vadd.f32 %v2297_v22, %v2291_v2  ;;  %v8785_v41 = vld [vmem:[#allocation71_spill] sm:$0xff]  ;;  %v8787_v2 = vld [vmem:[#allocation72_spill] sm:$0xff]  ;;  %v8789_v22 = vld [vmem:[#allocation73_spill] sm:$0xff] }
 0x757   :  { %v6820_v8 = vld [vmem:[#allocation7 + $0x518] sm:$0xff] }
 0x758   :  { %v6645_v48 = vadd.f32 %v2298_v51, %v2292_v5  ;;  %v6651_v37 = vrot.slane %v6643_v62, 4  ;;  %v6659_v51 = vld [vmem:[#allocation7 + $0x2d0] sm:$0xff]  ;;  %8788 = vst [vmem:[#allocation21_spill] sm:$0xff] %v6820_v8 }
 0x759   :  { %v6824_v5 = vld [vmem:[#allocation7 + $0x510] sm:$0xff] }
 0x75a   :  { %v2323_v61 = vrot.slane %v6645_v48, 4  ;;  %v2303_v17 = vcombine.high %v6643_v62, %v6645_v48  ;;  %8790 = vst [vmem:[#allocation98_spill] sm:$0xff] %v6824_v5 }
 0x75c   :  { %2390 = vmatprep.mubr.f32.mxu1 %v2323_v61  ;;  %2461 = vmatprep.mubr.f32.mxu0 %v2323_v61  ;;  %v2310_v19 = vrot.slane %v2303_v17, %v4979_v45  ;;  %v6828_v17 = vld [vmem:[#allocation7 + $0x4e8] sm:$0xff] }
 0x75d   :  { %2391 = vmatmul.mubr.f32.vlgmr.msra.gmra.mxu1 %v6651_v37  ;;  %2462 = vmatmul.mubr.f32.vlgmr.msra.gmra.mxu0 %v6651_v37  ;;  %8792 = vst [vmem:[#allocation22_spill] sm:$0xff] %v6828_v17 }
 0x75e   :  { %v2317_v1 = vrot.slane %v2310_v19, %v4979_v45  ;;  %2469 = vmatpush1.msra.mxu1 %v6248_v3  ;;  %2532 = vmatprep.mubr.f32.mxu1 %v2323_v61  ;;  %v6672_v3 = vld [vmem:[#allocation7 + $0x2a0] sm:$0xff]  ;;  %v8791_v61 = vld [vmem:[#allocation74_spill] sm:$0xff] }
 0x75f   :  { %2470 = vmatprep.subr.mxu1 %v6251_v44  ;;  %2630 = vmatpush1.msra.mxu0 %v6659_v51  ;;  %v6676_v44 = vld [vmem:[#allocation7 + $0x278] sm:$0xff] }
 0x760   :  { %3278 = vst.msk [vmem:[%s7511_s7 + $0x4] ss:$8 sm:$0x3] %vm4995_vm2, %v2317_v1  ;;  %2471 = vmatpush1.msra.mxu1 %v6256_v28  ;;  %2631 = vmatprep.subr.mxu0 %v6668_v6  ;;  %v6684_v28 = vld [vmem:[#allocation7 + $0x248] sm:$0xff]  ;;  %v8793_v19 = vld [vmem:[#allocation75_spill] sm:$0xff] }
 0x761   :  { %2472 = vmatprep.subr.mxu1 %v6260_v11  ;;  %2632 = vmatpush1.msra.mxu0 %v6672_v3  ;;  %v6688_v11 = vld [vmem:[#allocation7 + $0x240] sm:$0xff] }
 0x762   :  { %2473 = vmatpush1.msra.mxu1 %v6264_v38  ;;  %2633 = vmatprep.subr.mxu0 %v6676_v44  ;;  %v6692_v38 = vld [vmem:[#allocation7 + $0x218] sm:$0xff]  ;;  %v6832_v1 = vld [vmem:[#allocation7 + $0x4e0] sm:$0xff] }
 0x763   :  { %2474 = vmatprep.subr.mxu1 %v6268_v15  ;;  %2634 = vmatpush1.msra.mxu0 %v6680_v30  ;;  %v6696_v15 = vld [vmem:[#allocation7 + $0x210] sm:$0xff]  ;;  %8794 = vst [vmem:[#allocation100_spill] sm:$0xff] %v6832_v1 }
 0x764   :  { %2475 = vmatpush1.msra.mxu1 %v6277_v53  ;;  %2635 = vmatprep.subr.mxu0 %v6684_v28  ;;  %v6700_v53 = vld [vmem:[#allocation7 + $0x1e8] sm:$0xff] }
 0x765   :  { %2476 = vmatprep.subr.mxu1 %v6281_v7  ;;  %2636 = vmatpush1.msra.mxu0 %v6688_v11  ;;  %v6704_v7 = vld [vmem:[#allocation7 + $0x1e0] sm:$0xff] }
 0x766   :  { %2477 = vmatpush1.msra.mxu1 %v6285_v23  ;;  %2637 = vmatprep.subr.mxu0 %v6692_v38  ;;  %v6708_v23 = vld [vmem:[#allocation7 + $0x1b8] sm:$0xff] }
 0x767   :  { %2478 = vmatprep.subr.mxu1 %v6289_v36  ;;  %2638 = vmatpush1.msra.mxu0 %v6696_v15  ;;  %v6712_v36 = vld [vmem:[#allocation7 + $0x1b0] sm:$0xff] }
 0x768   :  { %2479 = vmatpush1.msra.mxu1 %v6293_v20  ;;  %2639 = vmatprep.subr.mxu0 %v6700_v53  ;;  %v6716_v20 = vld [vmem:[#allocation7 + $0x188] sm:$0xff] }
 0x769   :  { %2480 = vmatprep.subr.mxu1 %v6297_v54  ;;  %2640 = vmatpush1.msra.mxu0 %v6704_v7  ;;  %v6720_v54 = vld [vmem:[#allocation7 + $0x180] sm:$0xff] }
 0x76a   :  { %2481 = vmatpush1.msra.mxu1 %v6301_v16  ;;  %2641 = vmatprep.subr.mxu0 %v6708_v23  ;;  %v6724_v16 = vld [vmem:[#allocation7 + $0x158] sm:$0xff] }
 0x76b   :  { %2482 = vmatprep.subr.mxu1 %v6305_v27  ;;  %2642 = vmatpush1.msra.mxu0 %v6712_v36  ;;  %v6728_v27 = vld [vmem:[#allocation7 + $0x150] sm:$0xff] }
 0x76c   :  { %2483 = vmatpush1.msra.mxu1 %v6309_v58  ;;  %2643 = vmatprep.subr.mxu0 %v6716_v20  ;;  %v6732_v58 = vld [vmem:[#allocation7 + $0x128] sm:$0xff] }
 0x76d   :  { %2484 = vmatprep.subr.mxu1 %v6313_v25  ;;  %2644 = vmatpush1.msra.mxu0 %v6720_v54  ;;  %v6736_v25 = vld [vmem:[#allocation7 + $0x120] sm:$0xff] }
 0x76e   :  { %2485 = vmatpush1.msra.mxu1 %v6317_v33  ;;  %2645 = vmatprep.subr.mxu0 %v6724_v16  ;;  %v6740_v33 = vld [vmem:[#allocation7 + $0xf8] sm:$0xff] }
 0x76f   :  { %2486 = vmatprep.subr.mxu1 %v6321_v46  ;;  %2646 = vmatpush1.msra.mxu0 %v6728_v27  ;;  %v6744_v46 = vld [vmem:[#allocation7 + $0xf0] sm:$0xff] }
 0x770   :  { %2487 = vmatpush1.msra.mxu1 %v6325_v31  ;;  %2647 = vmatprep.subr.mxu0 %v6732_v58  ;;  %v6748_v31 = vld [vmem:[#allocation7 + $0xc8] sm:$0xff] }
 0x771   :  { %2488 = vmatprep.subr.mxu1 %v6329_v12  ;;  %2648 = vmatpush1.msra.mxu0 %v6736_v25  ;;  %v6752_v12 = vld [vmem:[#allocation7 + $0xc0] sm:$0xff] }
 0x772   :  { %2489 = vmatpush1.msra.mxu1 %v6333_v50  ;;  %2649 = vmatprep.subr.mxu0 %v6740_v33  ;;  %v6756_v50 = vld [vmem:[#allocation7 + $0x98] sm:$0xff] }
 0x773   :  { %2490 = vmatprep.subr.mxu1 %v6337_v10  ;;  %2650 = vmatpush1.msra.mxu0 %v6744_v46  ;;  %v6760_v10 = vld [vmem:[#allocation7 + $0x90] sm:$0xff] }
 0x774   :  { %2491 = vmatpush1.msra.mxu1 %v6341_v49  ;;  %2651 = vmatprep.subr.mxu0 %v6748_v31  ;;  %v6764_v49 = vld [vmem:[#allocation7 + $0x68] sm:$0xff] }
 0x775   :  { %2492 = vmatprep.subr.mxu1 %v6345_v55  ;;  %2652 = vmatpush1.msra.mxu0 %v6752_v12  ;;  %v6768_v55 = vld [vmem:[#allocation7 + $0x60] sm:$0xff] }
 0x776   :  { %2493 = vmatpush1.msra.mxu1 %v6349_v59  ;;  %2653 = vmatprep.subr.mxu0 %v6756_v50  ;;  %v6772_v59 = vld [vmem:[#allocation7 + $0x38] sm:$0xff] }
 0x777   :  { %2494 = vmatprep.subr.mxu1 %v6353_v34  ;;  %2654 = vmatpush1.msra.mxu0 %v6760_v10  ;;  %v6776_v34 = vld [vmem:[#allocation7 + $0x30] sm:$0xff] }
 0x778   :  { %2495 = vmatpush1.msra.mxu1 %v6357_v57  ;;  %2655 = vmatprep.subr.mxu0 %v6764_v49  ;;  %v6780_v57 = vld [vmem:[#allocation7 + $0x8] sm:$0xff] }
 0x779   :  { %2496 = vmatprep.subr.mxu1 %v6361_v21  ;;  %2656 = vmatpush1.msra.mxu0 %v6768_v55  ;;  %v6784_v21 = vld [vmem:[#allocation7] sm:$0xff] }
 0x77a   :  { %2497 = vmatpush1.msra.mxu1 %v6365_v35  ;;  %2657 = vmatprep.subr.mxu0 %v6772_v59  ;;  %v6788_v35 = vld [vmem:[#allocation7 + $0x5d8] sm:$0xff] }
 0x77b   :  { %2498 = vmatprep.subr.mxu1 %v6369_v39  ;;  %2658 = vmatpush1.msra.mxu0 %v6776_v34  ;;  %v6792_v39 = vld [vmem:[#allocation7 + $0x5d0] sm:$0xff] }
 0x77c   :  { %2499 = vmatpush1.msra.mxu1 %v6373_v43  ;;  %2659 = vmatprep.subr.mxu0 %v6780_v57  ;;  %v6796_v43 = vld [vmem:[#allocation7 + $0x5a8] sm:$0xff] }
 0x77d   :  { %2500 = vmatprep.subr.mxu1 %v6377_v47  ;;  %2660 = vmatpush1.msra.mxu0 %v6784_v21  ;;  %v8778_v47 = vld [vmem:[#allocation67_spill] sm:$0xff] }
 0x77e   :  { %2501 = vmatpush2.msra.mxu1 %v6381_v4  ;;  %2661 = vmatprep.subr.mxu0 %v6788_v35  ;;  %v8779_v4 = vld [vmem:[#allocation68_spill] sm:$0xff] }
 0x77f   :  { %2502 = vmatprep.subr.mxu1 %v6385_v13  ;;  %2662 = vmatpush2.msra.mxu0 %v6792_v39  ;;  %v8781_v13 = vld [vmem:[#allocation69_spill] sm:$0xff] }
 0x780   :  { %2503 = vmatpush2.msra.mxu1 %v6389_v52  ;;  %2663 = vmatprep.subr.mxu0 %v6796_v43  ;;  %v8783_v52 = vld [vmem:[#allocation70_spill] sm:$0xff] }
 0x781   :  { %2504 = vmatprep.subr.mxu1 %v8778_v47  ;;  %2664 = vmatpush2.msra.mxu0 %v6800_v42  ;;  %v8795_v47 = vld [vmem:[#allocation76_spill] sm:$0xff] }
 0x782   :  { %2505 = vmatpush2.msra.mxu1 %v8779_v4  ;;  %2665 = vmatprep.subr.mxu0 %v6804_v14  ;;  %v6836_v4 = vld [vmem:[#allocation7 + $0x4b8] sm:$0xff] }
 0x783   :  { %2506 = vmatprep.subr.mxu1 %v8781_v13  ;;  %2666 = vmatpush2.msra.mxu0 %v6808_v60  ;;  %8796 = vst [vmem:[#allocation23_spill] sm:$0xff] %v6836_v4  ;;  %v8797_v13 = vld [vmem:[#allocation77_spill] sm:$0xff] }
 0x784   :  { %2507 = vmatpush2.msra.mxu1 %v8783_v52  ;;  %2667 = vmatprep.subr.mxu0 %v6812_v24  ;;  %v6840_v52 = vld [vmem:[#allocation7 + $0x4b0] sm:$0xff] }
 0x785   :  { %2508 = vmatprep.subr.mxu1 %v8785_v41  ;;  %2668 = vmatpush2.msra.mxu0 %v6816_v26  ;;  %8798 = vst [vmem:[#allocation102_spill] sm:$0xff] %v6840_v52  ;;  %v8799_v41 = vld [vmem:[#allocation79_spill] sm:$0xff] }
 0x786   :  { %2509 = vmatpush2.msra.mxu1 %v8787_v2  ;;  %2669 = vmatprep.subr.mxu0 %v6820_v8  ;;  %v6844_v2 = vld [vmem:[#allocation7 + $0x488] sm:$0xff] }
 0x787   :  { %2510 = vmatprep.subr.mxu1 %v8789_v22  ;;  %2670 = vmatpush2.msra.mxu0 %v6824_v5  ;;  %8800 = vst [vmem:[#allocation24_spill] sm:$0xff] %v6844_v2  ;;  %v8801_v22 = vld [vmem:[#allocation81_spill] sm:$0xff]  ;;  %v8901_v8 = vld [vmem:[#allocation12_spill] sm:$0xff] }
 0x788   :  { %2511 = vmatpush2.msra.mxu1 %v8791_v61  ;;  %2671 = vmatprep.subr.mxu0 %v6828_v17  ;;  %v6848_v61 = vld [vmem:[#allocation7 + $0x480] sm:$0xff]  ;;  %v8900_v17 = vld [vmem:[#allocation78_spill] sm:$0xff] }
 0x789   :  { %2512 = vmatprep.subr.mxu1 %v8793_v19  ;;  %2672 = vmatpush2.msra.mxu0 %v6832_v1  ;;  %8802 = vst [vmem:[#allocation104_spill] sm:$0xff] %v6848_v61  ;;  %v8803_v19 = vld [vmem:[#allocation83_spill] sm:$0xff] }
 0x78a   :  { %2513 = vmatpush2.msra.mxu1 %v8795_v47  ;;  %2673 = vmatprep.subr.mxu0 %v6836_v4  ;;  %v6852_v47 = vld [vmem:[#allocation7 + $0x458] sm:$0xff] }
 0x78b   :  { %2514 = vmatprep.subr.mxu1 %v8797_v13  ;;  %2674 = vmatpush2.msra.mxu0 %v6840_v52  ;;  %8804 = vst [vmem:[#allocation25_spill] sm:$0xff] %v6852_v47  ;;  %v8805_v13 = vld [vmem:[#allocation85_spill] sm:$0xff]  ;;  %v8879_v4 = vld [vmem:[#allocation127_spill] sm:$0xff] }
 0x78c   :  { %2515 = vmatpush2.msra.mxu1 %v8799_v41  ;;  %2675 = vmatprep.subr.mxu0 %v6844_v2  ;;  %v6856_v52 = vld [vmem:[#allocation7 + $0x450] sm:$0xff]  ;;  %v8807_v41 = vld [vmem:[#allocation87_spill] sm:$0xff]  ;;  %v6860_v2 = vld [vmem:[#allocation7 + $0x428] sm:$0xff] }
 0x78d   :  { %2516 = vmatprep.subr.mxu1 %v8801_v22  ;;  %2676 = vmatpush2.msra.mxu0 %v6848_v61  ;;  %8806 = vst [vmem:[#allocation106_spill] sm:$0xff] %v6856_v52  ;;  %8808 = vst [vmem:[#allocation26_spill] sm:$0xff] %v6860_v2  ;;  %v8809_v22 = vld [vmem:[#allocation89_spill] sm:$0xff]  ;;  %v6864_v61 = vld [vmem:[#allocation7 + $0x420] sm:$0xff] }
 0x78e   :  { %2517 = vmatpush2.msra.mxu1 %v8803_v19  ;;  %2677 = vmatprep.subr.mxu0 %v6852_v47  ;;  %8810 = vst [vmem:[#allocation108_spill] sm:$0xff] %v6864_v61  ;;  %v8811_v19 = vld [vmem:[#allocation91_spill] sm:$0xff] }
 0x78f   :  { %2518 = vmatprep.subr.mxu1 %v8805_v13  ;;  %2678 = vmatpush2.msra.mxu0 %v6856_v52  ;;  %v6868_v47 = vld [vmem:[#allocation7 + $0x3f8] sm:$0xff]  ;;  %v8813_v13 = vld [vmem:[#allocation93_spill] sm:$0xff] }
 0x790   :  { %2519 = vmatpush2.msra.mxu1 %v8807_v41  ;;  %2679 = vmatprep.subr.mxu0 %v6860_v2  ;;  %8812 = vst [vmem:[#allocation27_spill] sm:$0xff] %v6868_v47  ;;  %v6872_v52 = vld [vmem:[#allocation7 + $0x3f0] sm:$0xff]  ;;  %v8815_v41 = vld [vmem:[#allocation95_spill] sm:$0xff]  ;;  %v6876_v2 = vld [vmem:[#allocation7 + $0x3c8] sm:$0xff] }
 0x791   :  { %2520 = vmatprep.subr.mxu1 %v8809_v22  ;;  %2680 = vmatpush2.msra.mxu0 %v6864_v61  ;;  %8814 = vst [vmem:[#allocation110_spill] sm:$0xff] %v6872_v52  ;;  %8816 = vst [vmem:[#allocation28_spill] sm:$0xff] %v6876_v2  ;;  %v8817_v22 = vld [vmem:[#allocation97_spill] sm:$0xff]  ;;  %v6880_v61 = vld [vmem:[#allocation7 + $0x3c0] sm:$0xff] }
 0x792   :  { %2521 = vmatpush2.msra.mxu1 %v8811_v19  ;;  %2681 = vmatprep.subr.mxu0 %v6868_v47  ;;  %8818 = vst [vmem:[#allocation112_spill] sm:$0xff] %v6880_v61  ;;  %v8819_v19 = vld [vmem:[#allocation99_spill] sm:$0xff] }
 0x793   :  { %2522 = vmatprep.subr.mxu1 %v8813_v13  ;;  %2682 = vmatpush2.msra.mxu0 %v6872_v52  ;;  %v6884_v47 = vld [vmem:[#allocation7 + $0x398] sm:$0xff]  ;;  %v8821_v13 = vld [vmem:[#allocation101_spill] sm:$0xff] }
 0x794   :  { %2523 = vmatpush2.msra.mxu1 %v8815_v41  ;;  %2683 = vmatprep.subr.mxu0 %v6876_v2  ;;  %8820 = vst [vmem:[#allocation29_spill] sm:$0xff] %v6884_v47  ;;  %v6888_v52 = vld [vmem:[#allocation7 + $0x390] sm:$0xff]  ;;  %v8823_v41 = vld [vmem:[#allocation103_spill] sm:$0xff]  ;;  %v6892_v2 = vld [vmem:[#allocation7 + $0x368] sm:$0xff] }
 0x795   :  { %2524 = vmatprep.subr.mxu1 %v8817_v22  ;;  %2684 = vmatpush2.msra.mxu0 %v6880_v61  ;;  %8822 = vst [vmem:[#allocation114_spill] sm:$0xff] %v6888_v52  ;;  %8824 = vst [vmem:[#allocation30_spill] sm:$0xff] %v6892_v2  ;;  %v8825_v22 = vld [vmem:[#allocation105_spill] sm:$0xff]  ;;  %v6896_v61 = vld [vmem:[#allocation7 + $0x360] sm:$0xff] }
 0x796   :  { %2525 = vmatpush2.msra.mxu1 %v8819_v19  ;;  %2685 = vmatprep.subr.mxu0 %v6884_v47  ;;  %8826 = vst [vmem:[#allocation116_spill] sm:$0xff] %v6896_v61  ;;  %v8827_v19 = vld [vmem:[#allocation107_spill] sm:$0xff] }
 0x797   :  { %2526 = vmatprep.subr.mxu1 %v8821_v13  ;;  %2686 = vmatpush2.msra.mxu0 %v6888_v52  ;;  %v6900_v47 = vld [vmem:[#allocation7 + $0x338] sm:$0xff]  ;;  %v8829_v13 = vld [vmem:[#allocation109_spill] sm:$0xff] }
 0x798   :  { %2527 = vmatpush2.msra.mxu1 %v8823_v41  ;;  %2687 = vmatprep.subr.mxu0 %v6892_v2  ;;  %8828 = vst [vmem:[#allocation31_spill] sm:$0xff] %v6900_v47  ;;  %v6904_v52 = vld [vmem:[#allocation7 + $0x330] sm:$0xff]  ;;  %v8831_v41 = vld [vmem:[#allocation111_spill] sm:$0xff]  ;;  %v6908_v2 = vld [vmem:[#allocation7 + $0x308] sm:$0xff] }
 0x799   :  { %2528 = vmatprep.subr.mxu1 %v8825_v22  ;;  %2688 = vmatpush2.msra.mxu0 %v6896_v61  ;;  %8830 = vst [vmem:[#allocation118_spill] sm:$0xff] %v6904_v52  ;;  %8832 = vst [vmem:[#allocation32_spill] sm:$0xff] %v6908_v2  ;;  %v6912_v22 = vld [vmem:[#allocation7 + $0x2e8] sm:$0xff]  ;;  %v8877_v61 = vld [vmem:[#allocation123_spill] sm:$0xff] }
 0x79a   :  { %2529 = vmatpush2.msra.mxu1 %v8827_v19  ;;  %2689 = vmatprep.subr.mxu0 %v6900_v47  ;;  %8833 = vst [vmem:[#allocation120_spill] sm:$0xff] %v6912_v22  ;;  %v6915_v19 = vld [vmem:[#allocation7 + $0x2e0] sm:$0xff] }
 0x79b   :  { %2530 = vmatprep.subr.mxu1 %v8829_v13  ;;  %2690 = vmatpush2.msra.mxu0 %v6904_v52  ;;  %8834 = vst [vmem:[#allocation33_spill] sm:$0xff] %v6915_v19  ;;  %v6918_v13 = vld [vmem:[#allocation7 + $0x300] sm:$0xff]  ;;  %v6921_v52 = vld [vmem:[#allocation7 + $0x2b8] sm:$0xff] }
 0x79c   :  { %2531 = vmatpush2.msra.mxu1 %v8831_v41  ;;  %2691 = vmatprep.subr.mxu0 %v6908_v2  ;;  %8835 = vst [vmem:[#allocation122_spill] sm:$0xff] %v6918_v13  ;;  %8836 = vst [vmem:[#allocation34_spill] sm:$0xff] %v6921_v52  ;;  %v6924_v41 = vld [vmem:[#allocation7 + $0x2f8] sm:$0xff] }
 0x79d   :  { %2533 = vmatmul.mubr.f32.vlgmr.msra.gmra.mxu1 %v6651_v37  ;;  %2700 = vmatprep.subr.mxu1 %v6912_v22  ;;  %8837 = vst [vmem:[#allocation124_spill] sm:$0xff] %v6924_v41  ;;  %v6927_v37 = vld [vmem:[#allocation7 + $0x2b0] sm:$0xff]  ;;  %v6930_v22 = vld [vmem:[#allocation7 + $0x288] sm:$0xff]  ;;  %v8873_v2 = vld [vmem:[#allocation115_spill] sm:$0xff] }
 0x79e   :  { %2701 = vmatpush1.msra.mxu1 %v6915_v19  ;;  %2692 = vmatpush2.msra.mxu0 %v6918_v13  ;;  %8838 = vst [vmem:[#allocation35_spill] sm:$0xff] %v6927_v37  ;;  %8839 = vst [vmem:[#allocation126_spill] sm:$0xff] %v6930_v22  ;;  %v6933_v19 = vld [vmem:[#allocation7 + $0x280] sm:$0xff]  ;;  %v6936_v13 = vld [vmem:[#allocation7 + $0x258] sm:$0xff] }
 0x79f   :  { %2702 = vmatprep.subr.mxu1 %v6921_v52  ;;  %2771 = vmatprep.subr.mxu0 %v6924_v41  ;;  %8840 = vst [vmem:[#allocation37_spill] sm:$0xff] %v6933_v19  ;;  %8841 = vst [vmem:[#allocation128_spill] sm:$0xff] %v6936_v13  ;;  %v6939_v52 = vld [vmem:[#allocation7 + $0x250] sm:$0xff]  ;;  %v6942_v41 = vld [vmem:[#allocation7 + $0x228] sm:$0xff] }
 0x7a0   :  { %2703 = vmatpush1.msra.mxu1 %v6927_v37  ;;  %8842 = vst [vmem:[#allocation38_spill] sm:$0xff] %v6939_v52  ;;  %8843 = vst [vmem:[#allocation130_spill] sm:$0xff] %v6942_v41  ;;  %v6945_v37 = vld [vmem:[#allocation7 + $0x220] sm:$0xff] }
 0x7a1   :  { %2704 = vmatprep.subr.mxu1 %v6930_v22  ;;  %8844 = vst [vmem:[#allocation39_spill] sm:$0xff] %v6945_v37  ;;  %v6948_v22 = vld [vmem:[#allocation7 + $0x1f8] sm:$0xff] }
 0x7a2   :  { %2705 = vmatpush1.msra.mxu1 %v6933_v19  ;;  %8845 = vst [vmem:[#allocation132_spill] sm:$0xff] %v6948_v22  ;;  %v6951_v19 = vld [vmem:[#allocation7 + $0x1f0] sm:$0xff]  ;;  %v8875_v47 = vld [vmem:[#allocation119_spill] sm:$0xff] }
 0x7a3   :  { %2706 = vmatprep.subr.mxu1 %v6936_v13  ;;  %8846 = vst [vmem:[#allocation40_spill] sm:$0xff] %v6951_v19  ;;  %v6954_v13 = vld [vmem:[#allocation7 + $0x1c8] sm:$0xff]  ;;  %v8881_v1 = vld [vmem:[#allocation131_spill] sm:$0xff] }
 0x7a4   :  { %2707 = vmatpush1.msra.mxu1 %v6939_v52  ;;  %8847 = vst [vmem:[#allocation134_spill] sm:$0xff] %v6954_v13  ;;  %v6957_v52 = vld [vmem:[#allocation7 + $0x1c0] sm:$0xff] }
 0x7a5   :  { %2708 = vmatprep.subr.mxu1 %v6942_v41  ;;  %8848 = vst [vmem:[#allocation41_spill] sm:$0xff] %v6957_v52  ;;  %v6960_v41 = vld [vmem:[#allocation7 + $0x198] sm:$0xff] }
 0x7a6   :  { %2709 = vmatpush1.msra.mxu1 %v6945_v37  ;;  %8849 = vst [vmem:[#allocation43_spill] sm:$0xff] %v6960_v41  ;;  %v6963_v37 = vld [vmem:[#allocation7 + $0x190] sm:$0xff] }
 0x7a7   :  { %2710 = vmatprep.subr.mxu1 %v6948_v22  ;;  %8850 = vst [vmem:[#allocation45_spill] sm:$0xff] %v6963_v37  ;;  %v6966_v22 = vld [vmem:[#allocation7 + $0x168] sm:$0xff] }
 0x7a8   :  { %2711 = vmatpush1.msra.mxu1 %v6951_v19  ;;  %8851 = vst [vmem:[#allocation46_spill] sm:$0xff] %v6966_v22  ;;  %v6969_v19 = vld [vmem:[#allocation7 + $0x160] sm:$0xff] }
 0x7a9   :  { %2712 = vmatprep.subr.mxu1 %v6954_v13  ;;  %8852 = vst [vmem:[#allocation47_spill] sm:$0xff] %v6969_v19  ;;  %v6972_v13 = vld [vmem:[#allocation7 + $0x138] sm:$0xff] }
 0x7aa   :  { %2713 = vmatpush1.msra.mxu1 %v6957_v52  ;;  %8853 = vst [vmem:[#allocation48_spill] sm:$0xff] %v6972_v13  ;;  %v6975_v52 = vld [vmem:[#allocation7 + $0x130] sm:$0xff] }
 0x7ab   :  { %2714 = vmatprep.subr.mxu1 %v6960_v41  ;;  %8854 = vst [vmem:[#allocation49_spill] sm:$0xff] %v6975_v52  ;;  %v6978_v41 = vld [vmem:[#allocation7 + $0x108] sm:$0xff] }
 0x7ac   :  { %2715 = vmatpush1.msra.mxu1 %v6963_v37  ;;  %8855 = vst [vmem:[#allocation44_spill] sm:$0xff] %v6978_v41  ;;  %v6981_v37 = vld [vmem:[#allocation7 + $0x100] sm:$0xff] }
 0x7ad   :  { %2716 = vmatprep.subr.mxu1 %v6966_v22  ;;  %8856 = vst [vmem:[#allocation42_spill] sm:$0xff] %v6981_v37  ;;  %v6984_v22 = vld [vmem:[#allocation7 + $0xd8] sm:$0xff] }
 0x7ae   :  { %2717 = vmatpush1.msra.mxu1 %v6969_v19  ;;  %8857 = vst [vmem:[#allocation36_spill] sm:$0xff] %v6984_v22  ;;  %v6987_v19 = vld [vmem:[#allocation7 + $0xd0] sm:$0xff] }
 0x7af   :  { %2718 = vmatprep.subr.mxu1 %v6972_v13  ;;  %8858 = vst [vmem:[#allocation50_spill] sm:$0xff] %v6987_v19  ;;  %v6990_v13 = vld [vmem:[#allocation7 + $0xa8] sm:$0xff] }
 0x7b0   :  { %2719 = vmatpush1.msra.mxu1 %v6975_v52  ;;  %8859 = vst [vmem:[#allocation51_spill] sm:$0xff] %v6990_v13  ;;  %v6993_v52 = vld [vmem:[#allocation7 + $0xa0] sm:$0xff] }
 0x7b1   :  { %2720 = vmatprep.subr.mxu1 %v6978_v41  ;;  %8860 = vst [vmem:[#allocation52_spill] sm:$0xff] %v6993_v52  ;;  %v6996_v41 = vld [vmem:[#allocation7 + $0x78] sm:$0xff] }
 0x7b2   :  { %2721 = vmatpush1.msra.mxu1 %v6981_v37  ;;  %8861 = vst [vmem:[#allocation53_spill] sm:$0xff] %v6996_v41  ;;  %v6999_v37 = vld [vmem:[#allocation7 + $0x70] sm:$0xff] }
 0x7b3   :  { %2722 = vmatprep.subr.mxu1 %v6984_v22  ;;  %8862 = vst [vmem:[#allocation54_spill] sm:$0xff] %v6999_v37  ;;  %v7002_v22 = vld [vmem:[#allocation7 + $0x48] sm:$0xff] }
 0x7b4   :  { %2723 = vmatpush1.msra.mxu1 %v6987_v19  ;;  %8863 = vst [vmem:[#allocation55_spill] sm:$0xff] %v7002_v22  ;;  %v7005_v19 = vld [vmem:[#allocation7 + $0x40] sm:$0xff] }
 0x7b5   :  { %2724 = vmatprep.subr.mxu1 %v6990_v13  ;;  %8864 = vst [vmem:[#allocation56_spill] sm:$0xff] %v7005_v19  ;;  %v7008_v13 = vld [vmem:[#allocation7 + $0x18] sm:$0xff] }
 0x7b6   :  { %2725 = vmatpush1.msra.mxu1 %v6993_v52  ;;  %8865 = vst [vmem:[#allocation57_spill] sm:$0xff] %v7008_v13  ;;  %v7011_v52 = vld [vmem:[#allocation7 + $0x10] sm:$0xff] }
 0x7b7   :  { %2726 = vmatprep.subr.mxu1 %v6996_v41  ;;  %8866 = vst [vmem:[#allocation58_spill] sm:$0xff] %v7011_v52  ;;  %v7014_v41 = vld [vmem:[#allocation7 + $0x5e8] sm:$0xff] }
 0x7b8   :  { %2727 = vmatpush1.msra.mxu1 %v6999_v37  ;;  %8867 = vst [vmem:[#allocation59_spill] sm:$0xff] %v7014_v41  ;;  %v7017_v37 = vld [vmem:[#allocation7 + $0x5e0] sm:$0xff] }
 0x7b9   :  { %2728 = vmatprep.subr.mxu1 %v7002_v22  ;;  %8868 = vst [vmem:[#allocation60_spill] sm:$0xff] %v7017_v37  ;;  %v7020_v22 = vld [vmem:[#allocation7 + $0x5b8] sm:$0xff] }
 0x7ba   :  { %2729 = vmatpush1.msra.mxu1 %v7005_v19  ;;  %8869 = vst [vmem:[#allocation61_spill] sm:$0xff] %v7020_v22  ;;  %v7023_v19 = vld [vmem:[#allocation7 + $0x5b0] sm:$0xff] }
 0x7bb   :  { %2730 = vmatprep.subr.mxu1 %v7008_v13  ;;  %8870 = vst [vmem:[#allocation62_spill] sm:$0xff] %v7023_v19  ;;  %v7026_v13 = vld [vmem:[#allocation7 + $0x588] sm:$0xff] }
 0x7bc   :  { %2731 = vmatpush1.msra.mxu1 %v7011_v52  ;;  %8871 = vst [vmem:[#allocation63_spill] sm:$0xff] %v7026_v13  ;;  %v8872_v52 = vld [vmem:[#allocation113_spill] sm:$0xff] }
 0x7bd   :  { %2732 = vmatprep.subr.mxu1 %v7014_v41  ;;  %v8874_v41 = vld [vmem:[#allocation117_spill] sm:$0xff] }
 0x7be   :  { %2733 = vmatpush2.msra.mxu1 %v7017_v37  ;;  %v8876_v37 = vld [vmem:[#allocation121_spill] sm:$0xff] }
 0x7bf   :  { %2734 = vmatprep.subr.mxu1 %v7020_v22  ;;  %v8878_v22 = vld [vmem:[#allocation125_spill] sm:$0xff] }
 0x7c0   :  { %2735 = vmatpush2.msra.mxu1 %v7023_v19  ;;  %v8880_v19 = vld [vmem:[#allocation129_spill] sm:$0xff] }
 0x7c1   :  { %2736 = vmatprep.subr.mxu1 %v7026_v13  ;;  %v8882_v13 = vld [vmem:[#allocation133_spill] sm:$0xff] }
 0x7c2   :  { %2737 = vmatpush2.msra.mxu1 %v8872_v52  ;;  %v8883_v52 = vld [vmem:[#allocation135_spill] sm:$0xff] }
 0x7c3   :  { %2738 = vmatprep.subr.mxu1 %v8873_v2  ;;  %v8884_v2 = vld [vmem:[#allocation136_spill] sm:$0xff] }
 0x7c4   :  { %2739 = vmatpush2.msra.mxu1 %v8874_v41  ;;  %v8885_v41 = vld [vmem:[#allocation137_spill] sm:$0xff] }
 0x7c5   :  { %2740 = vmatprep.subr.mxu1 %v8875_v47  ;;  %v8886_v47 = vld [vmem:[#allocation138_spill] sm:$0xff] }
 0x7c6   :  { %2741 = vmatpush2.msra.mxu1 %v8876_v37  ;;  %v8887_v37 = vld [vmem:[#allocation139_spill] sm:$0xff] }
 0x7c7   :  { %2742 = vmatprep.subr.mxu1 %v8877_v61  ;;  %v8888_v61 = vld [vmem:[#allocation140_spill] sm:$0xff] }
 0x7c8   :  { %2743 = vmatpush2.msra.mxu1 %v8878_v22  ;;  %v8889_v22 = vld [vmem:[#allocation141_spill] sm:$0xff] }
 0x7c9   :  { %2744 = vmatprep.subr.mxu1 %v8879_v4  ;;  %v8890_v4 = vld [vmem:[#allocation13_spill] sm:$0xff] }
 0x7ca   :  { %2745 = vmatpush2.msra.mxu1 %v8880_v19  ;;  %v8891_v19 = vld [vmem:[#allocation82_spill] sm:$0xff] }
 0x7cb   :  { %2746 = vmatprep.subr.mxu1 %v8881_v1  ;;  %v8892_v1 = vld [vmem:[#allocation14_spill] sm:$0xff] }
 0x7cc   :  { %2747 = vmatpush2.msra.mxu1 %v8882_v13  ;;  %v8893_v13 = vld [vmem:[#allocation86_spill] sm:$0xff] }
 0x7cd   :  { %2748 = vmatprep.subr.mxu1 %v8883_v52  ;;  %v8894_v52 = vld [vmem:[#allocation16_spill] sm:$0xff] }
 0x7ce   :  { %2749 = vmatpush2.msra.mxu1 %v8884_v2  ;;  %v8895_v2 = vld [vmem:[#allocation88_spill] sm:$0xff] }
 0x7cf   :  { %2750 = vmatprep.subr.mxu1 %v8885_v41  ;;  %v8896_v41 = vld [vmem:[#allocation17_spill] sm:$0xff] }
 0x7d0   :  { %2751 = vmatpush2.msra.mxu1 %v8886_v47  ;;  %v8897_v47 = vld [vmem:[#allocation90_spill] sm:$0xff] }
 0x7d1   :  { %2752 = vmatprep.subr.mxu1 %v8887_v37  ;;  %v8898_v37 = vld [vmem:[#allocation18_spill] sm:$0xff] }
 0x7d2   :  { %2753 = vmatpush2.msra.mxu1 %v8888_v61  ;;  %v8899_v61 = vld [vmem:[#allocation92_spill] sm:$0xff] }
 0x7d3   :  { %2754 = vmatprep.subr.mxu1 %v8889_v22 }
 0x7d4   :  { %2755 = vmatpush2.msra.mxu1 %v8890_v4 }
 0x7d5   :  { %2756 = vmatprep.subr.mxu1 %v8891_v19 }
 0x7d6   :  { %2757 = vmatpush2.msra.mxu1 %v8892_v1 }
 0x7d7   :  { %2758 = vmatprep.subr.mxu1 %v8893_v13 }
 0x7d8   :  { %2759 = vmatpush2.msra.mxu1 %v8894_v52 }
 0x7d9   :  { %2760 = vmatprep.subr.mxu1 %v8895_v2  ;;  %v8902_v2 = vld [vmem:[#allocation80_spill] sm:$0xff] }
 0x7da   :  { %2761 = vmatpush2.msra.mxu1 %v8896_v41 }
 0x7db   :  { %2762 = vmatprep.subr.mxu1 %v8897_v47 }
 0x7dc   :  { %2763 = vmatpush2.msra.mxu1 %v8898_v37 }
 0x7dd   :  { %2932 = vmatprep.subr.mxu1 %v8899_v61 }
 0x81d   :  { %v2392_v22 = vpop.f32.mrf.mxu1  ;;  %v2463_v26 = vpop.f32.mrf.mxu0 }
 0x81e   :  { %v2393_v19 = vadd.f32 %v2392_v22, %v4933_v0  ;;  %v2464_v47 = vadd.f32 %v2463_v26, %v8385_v40 }
 0x81f   :  { %v2394_v4 = vpop.f32.mrf.mxu1  ;;  %v2465_v60 = vpop.f32.mrf.mxu0 }
 0x820   :  { %v2395_v1 = vadd.f32 %v2394_v4, %v8900_v17  ;;  %v2541_v5 = vrot.slane %v2393_v19, 3  ;;  %v2466_v61 = vadd.f32 %v2465_v60, %v8386_v29  ;;  %v2561_v14 = vrot.slane %v2464_v47, 3  ;;  %v8903_v19 = vld [vmem:[#allocation84_spill] sm:$0xff] }
 0x822   :  { %v2542_v13 = vrot.slane %v2395_v1, 3  ;;  %v2545_v52 = vadd.f32 %v2541_v5, %v8901_v8  ;;  %v2562_v22 = vrot.slane %v2466_v61, 3  ;;  %v2565_v4 = vadd.f32 %v2561_v14, %v8387_v32 }
 0x824   :  { %v2546_v24 = vadd.f32 %v2542_v13, %v8902_v2  ;;  %v3279_v41 = vmul.f32 -1.442695, %v2545_v52  ;;  %v2566_v1 = vadd.f32 %v2562_v22, %v8903_v19  ;;  %v3281_v17 = vmul.f32 -1.442695, %v2565_v4  ;;  %v8904_v22 = vld [vmem:[#allocation15_spill] sm:$0xff] }
 0x826   :  { %v3280_v37 = vmul.f32 -1.442695, %v2546_v24  ;;  %3406 = vpow2.f32 %v3279_v41  ;;  %v3282_v5 = vmul.f32 -1.442695, %v2566_v1 }
 0x828   :  { %3408 = vpow2.f32 %v3280_v37 }
 0x829   :  { %3410 = vpow2.f32 %v3281_v17 }
 0x82a   :  { %3412 = vpow2.f32 %v3282_v5 }
 0x833   :  { %v3407_v8 = vpop.eup %3406 }
 0x834   :  { %v2553_v52 = vadd.f32 1.0, %v3407_v8 }
 0x835   :  { %v3409_v13 = vpop.eup %3408 }
 0x836   :  { %v2554_v2 = vadd.f32 1.0, %v3409_v13  ;;  %3414 = vrcp.f32 %v2553_v52  ;;  %v3411_v24 = vpop.eup %3410 }
 0x837   :  { %v3413_v26 = vpop.eup %3412  ;;  %v2573_v41 = vadd.f32 1.0, %v3411_v24 }
 0x838   :  { %3416 = vrcp.f32 %v2554_v2  ;;  %v2574_v14 = vadd.f32 1.0, %v3413_v26 }
 0x839   :  { %3418 = vrcp.f32 %v2573_v41  ;;  %v2596_v41 = vrot.slane %v6645_v48, 7 }
 0x83a   :  { %3420 = vrcp.f32 %v2574_v14 }
 0x843   :  { %v3415_v1 = vpop.eup %3414 }
 0x845   :  { %v3417_v8 = vpop.eup %3416 }
 0x846   :  { %v3419_v52 = vpop.eup %3418 }
 0x847   :  { %v3421_v24 = vpop.eup %3420 }
 0x85d   :  { %v2534_v60 = vpop.f32.mrf.mxu1 }
 0x85e   :  { %v2535_v47 = vadd.f32 %v2534_v60, %v4963_v56  ;;  %v2591_v60 = vsub.f32 1.0, %v3419_v52 }
 0x85f   :  { %v2536_v37 = vpop.f32.mrf.mxu1 }
 0x860   :  { %v2581_v61 = vrot.slane %v2535_v47, 3  ;;  %v2537_v4 = vadd.f32 %v2536_v37, %v8904_v22  ;;  %v2595_v47 = vrot.slane %v6643_v62, 7  ;;  %v2592_v37 = vsub.f32 1.0, %v3421_v24 }
 0x861   :  { %v2600_v22 = vmul.f32 %v3421_v24, %v2596_v41  ;;  %v7092_v24 = vld [vmem:[#allocation7 + $0x2c0] sm:$0xff] }
 0x862   :  { %v2585_v17 = vmul.f32 %v3415_v1, %v2581_v61  ;;  %v2582_v19 = vrot.slane %v2537_v4, 3  ;;  %v2599_v1 = vmul.f32 %v3419_v52, %v2595_v47  ;;  %v7121_v47 = vld [vmem:[#allocation7 + $0x230] sm:$0xff]  ;;  %v7241_v41 = vld [vmem:[#allocation7 + $0x560] sm:$0xff] }
 0x863   :  { %8910 = vst [vmem:[#allocation67_spill] sm:$0xff] %v7241_v41 }
 0x864   :  { %v2587_v5 = vadd.f32 %v2585_v17, %v4970_v63  ;;  %v2586_v2 = vmul.f32 %v3417_v8, %v2582_v19 }
 0x866   :  { %3422 = vtanh.f32 %v2587_v5  ;;  %v2588_v13 = vadd.f32 %v2586_v2, %v4973_v9 }
 0x868   :  { %3424 = vtanh.f32 %v2588_v13  ;;  %v7084_v13 = vld [vmem:[#allocation7 + $0x2f0] sm:$0xff] }
 0x873   :  { %v3423_v26 = vpop.eup %3422 }
 0x874   :  { %v2593_v61 = vmul.f32 %v3423_v26, %v2591_v60  ;;  %v7096_v60 = vld [vmem:[#allocation7 + $0x298] sm:$0xff]  ;;  %v7109_v26 = vld [vmem:[#allocation7 + $0x268] sm:$0xff] }
 0x875   :  { %v3425_v4 = vpop.eup %3424 }
 0x876   :  { %v2594_v14 = vmul.f32 %v3425_v4, %v2592_v37  ;;  %v7071_v17 = vadd.f32 %v2599_v1, %v2593_v61  ;;  %v7237_v37 = vld [vmem:[#allocation7 + $0x568] sm:$0xff]  ;;  %v7245_v61 = vld [vmem:[#allocation7 + $0x538] sm:$0xff]  ;;  %v7249_v4 = vld [vmem:[#allocation7 + $0x530] sm:$0xff] }
 0x877   :  { %8908 = vst [vmem:[#allocation66_spill] sm:$0xff] %v7237_v37  ;;  %8912 = vst [vmem:[#allocation68_spill] sm:$0xff] %v7245_v61  ;;  %v8915_v1 = vld [vmem:[#allocation21_spill] sm:$0xff] }
 0x878   :  { %v7073_v19 = vadd.f32 %v2600_v22, %v2594_v14  ;;  %v7079_v2 = vrot.slane %v7071_v17, 5  ;;  %v7087_v22 = vld [vmem:[#allocation7 + $0x2c8] sm:$0xff]  ;;  %8914 = vst [vmem:[#allocation69_spill] sm:$0xff] %v7249_v4 }
 0x879   :  { %v7253_v14 = vld [vmem:[#allocation7 + $0x508] sm:$0xff] }
 0x87a   :  { %v2626_v8 = vrot.slane %v7073_v19, 5  ;;  %v2605_v5 = vcombine.high %v7071_v17, %v7073_v19  ;;  %8916 = vst [vmem:[#allocation70_spill] sm:$0xff] %v7253_v14 }
 0x87c   :  { %2693 = vmatprep.mubr.f32.mxu0 %v2626_v8  ;;  %2764 = vmatprep.mubr.f32.mxu1 %v2626_v8  ;;  %v2612_v62 = vrot.slane %v2605_v5, %v4979_v45  ;;  %v7257_v5 = vld [vmem:[#allocation7 + $0x500] sm:$0xff] }
 0x87d   :  { %2694 = vmatmul.mubr.f32.vlgmr.msra.gmra.mxu0 %v7079_v2  ;;  %2765 = vmatmul.mubr.f32.vlgmr.msra.gmra.mxu1 %v7079_v2  ;;  %8918 = vst [vmem:[#allocation71_spill] sm:$0xff] %v7257_v5 }
 0x87e   :  { %v2613_v48 = vcombine.high %v2612_v62, %v2612_v62  ;;  %2772 = vmatpush1.msra.mxu0 %v7084_v13  ;;  %2835 = vmatprep.mubr.f32.mxu0 %v2626_v8  ;;  %v8917_v8 = vld [vmem:[#allocation98_spill] sm:$0xff] }
 0x87f   :  { %2773 = vmatprep.subr.mxu0 %v7087_v22  ;;  %2933 = vmatpush1.msra.mxu1 %v6659_v51  ;;  %v7105_v51 = vld [vmem:[#allocation7 + $0x290] sm:$0xff] }
 0x880   :  { %v2620_v52 = vrot.slane %v2613_v48, %v4979_v45  ;;  %2774 = vmatpush1.msra.mxu0 %v7092_v24  ;;  %2934 = vmatprep.subr.mxu1 %v6668_v6  ;;  %v7113_v6 = vld [vmem:[#allocation7 + $0x260] sm:$0xff]  ;;  %v8919_v62 = vld [vmem:[#allocation22_spill] sm:$0xff] }
 0x881   :  { %2775 = vmatprep.subr.mxu0 %v7096_v60  ;;  %2935 = vmatpush1.msra.mxu1 %v6672_v3  ;;  %v7117_v3 = vld [vmem:[#allocation7 + $0x238] sm:$0xff] }
 0x882   :  { %3283 = vst.msk [vmem:[%s7511_s7 + $0x5] ss:$8 sm:$0x3] %vm4995_vm2, %v2620_v52  ;;  %2776 = vmatpush1.msra.mxu0 %v7105_v51  ;;  %2936 = vmatprep.subr.mxu1 %v6676_v44  ;;  %v7125_v44 = vld [vmem:[#allocation7 + $0x208] sm:$0xff]  ;;  %v7261_v48 = vld [vmem:[#allocation7 + $0x4d8] sm:$0xff] }
 0x883   :  { %2777 = vmatprep.subr.mxu0 %v7109_v26  ;;  %2937 = vmatpush1.msra.mxu1 %v6680_v30  ;;  %v7129_v30 = vld [vmem:[#allocation7 + $0x200] sm:$0xff]  ;;  %8920 = vst [vmem:[#allocation72_spill] sm:$0xff] %v7261_v48 }
 0x884   :  { %2778 = vmatpush1.msra.mxu0 %v7113_v6  ;;  %2938 = vmatprep.subr.mxu1 %v6684_v28  ;;  %v7133_v28 = vld [vmem:[#allocation7 + $0x1d8] sm:$0xff]  ;;  %v8921_v52 = vld [vmem:[#allocation100_spill] sm:$0xff] }
 0x885   :  { %2779 = vmatprep.subr.mxu0 %v7117_v3  ;;  %2939 = vmatpush1.msra.mxu1 %v6688_v11  ;;  %v7137_v11 = vld [vmem:[#allocation7 + $0x1d0] sm:$0xff] }
 0x886   :  { %2780 = vmatpush1.msra.mxu0 %v7121_v47  ;;  %2940 = vmatprep.subr.mxu1 %v6692_v38  ;;  %v7141_v38 = vld [vmem:[#allocation7 + $0x1a8] sm:$0xff] }
 0x887   :  { %2781 = vmatprep.subr.mxu0 %v7125_v44  ;;  %2941 = vmatpush1.msra.mxu1 %v6696_v15  ;;  %v7145_v15 = vld [vmem:[#allocation7 + $0x1a0] sm:$0xff] }
 0x888   :  { %2782 = vmatpush1.msra.mxu0 %v7129_v30  ;;  %2942 = vmatprep.subr.mxu1 %v6700_v53  ;;  %v7149_v53 = vld [vmem:[#allocation7 + $0x178] sm:$0xff] }
 0x889   :  { %2783 = vmatprep.subr.mxu0 %v7133_v28  ;;  %2943 = vmatpush1.msra.mxu1 %v6704_v7  ;;  %v7153_v7 = vld [vmem:[#allocation7 + $0x170] sm:$0xff] }
 0x88a   :  { %2784 = vmatpush1.msra.mxu0 %v7137_v11  ;;  %2944 = vmatprep.subr.mxu1 %v6708_v23  ;;  %v7157_v23 = vld [vmem:[#allocation7 + $0x148] sm:$0xff] }
 0x88b   :  { %2785 = vmatprep.subr.mxu0 %v7141_v38  ;;  %2945 = vmatpush1.msra.mxu1 %v6712_v36  ;;  %v7161_v36 = vld [vmem:[#allocation7 + $0x140] sm:$0xff] }
 0x88c   :  { %2786 = vmatpush1.msra.mxu0 %v7145_v15  ;;  %2946 = vmatprep.subr.mxu1 %v6716_v20  ;;  %v7165_v20 = vld [vmem:[#allocation7 + $0x118] sm:$0xff] }
 0x88d   :  { %2787 = vmatprep.subr.mxu0 %v7149_v53  ;;  %2947 = vmatpush1.msra.mxu1 %v6720_v54  ;;  %v7169_v54 = vld [vmem:[#allocation7 + $0x110] sm:$0xff] }
 0x88e   :  { %2788 = vmatpush1.msra.mxu0 %v7153_v7  ;;  %2948 = vmatprep.subr.mxu1 %v6724_v16  ;;  %v7173_v16 = vld [vmem:[#allocation7 + $0xe8] sm:$0xff] }
 0x88f   :  { %2789 = vmatprep.subr.mxu0 %v7157_v23  ;;  %2949 = vmatpush1.msra.mxu1 %v6728_v27  ;;  %v7177_v27 = vld [vmem:[#allocation7 + $0xe0] sm:$0xff] }
 0x890   :  { %2790 = vmatpush1.msra.mxu0 %v7161_v36  ;;  %2950 = vmatprep.subr.mxu1 %v6732_v58  ;;  %v7181_v58 = vld [vmem:[#allocation7 + $0xb8] sm:$0xff] }
 0x891   :  { %2791 = vmatprep.subr.mxu0 %v7165_v20  ;;  %2951 = vmatpush1.msra.mxu1 %v6736_v25  ;;  %v7185_v25 = vld [vmem:[#allocation7 + $0xb0] sm:$0xff] }
 0x892   :  { %2792 = vmatpush1.msra.mxu0 %v7169_v54  ;;  %2952 = vmatprep.subr.mxu1 %v6740_v33  ;;  %v7189_v33 = vld [vmem:[#allocation7 + $0x88] sm:$0xff] }
 0x893   :  { %2793 = vmatprep.subr.mxu0 %v7173_v16  ;;  %2953 = vmatpush1.msra.mxu1 %v6744_v46  ;;  %v7193_v46 = vld [vmem:[#allocation7 + $0x80] sm:$0xff] }
 0x894   :  { %2794 = vmatpush1.msra.mxu0 %v7177_v27  ;;  %2954 = vmatprep.subr.mxu1 %v6748_v31  ;;  %v7197_v31 = vld [vmem:[#allocation7 + $0x58] sm:$0xff] }
 0x895   :  { %2795 = vmatprep.subr.mxu0 %v7181_v58  ;;  %2955 = vmatpush1.msra.mxu1 %v6752_v12  ;;  %v7201_v12 = vld [vmem:[#allocation7 + $0x50] sm:$0xff] }
 0x896   :  { %2796 = vmatpush1.msra.mxu0 %v7185_v25  ;;  %2956 = vmatprep.subr.mxu1 %v6756_v50  ;;  %v7205_v50 = vld [vmem:[#allocation7 + $0x28] sm:$0xff] }
 0x897   :  { %2797 = vmatprep.subr.mxu0 %v7189_v33  ;;  %2957 = vmatpush1.msra.mxu1 %v6760_v10  ;;  %v7209_v10 = vld [vmem:[#allocation7 + $0x20] sm:$0xff] }
 0x898   :  { %2798 = vmatpush1.msra.mxu0 %v7193_v46  ;;  %2958 = vmatprep.subr.mxu1 %v6764_v49  ;;  %v7213_v49 = vld [vmem:[#allocation7 + $0x5f8] sm:$0xff] }
 0x899   :  { %2799 = vmatprep.subr.mxu0 %v7197_v31  ;;  %2959 = vmatpush1.msra.mxu1 %v6768_v55  ;;  %v7217_v55 = vld [vmem:[#allocation7 + $0x5f0] sm:$0xff] }
 0x89a   :  { %2800 = vmatpush1.msra.mxu0 %v7201_v12  ;;  %2960 = vmatprep.subr.mxu1 %v6772_v59  ;;  %v7221_v59 = vld [vmem:[#allocation7 + $0x5c8] sm:$0xff] }
 0x89b   :  { %2801 = vmatprep.subr.mxu0 %v7205_v50  ;;  %2961 = vmatpush1.msra.mxu1 %v6776_v34  ;;  %v7225_v34 = vld [vmem:[#allocation7 + $0x5c0] sm:$0xff] }
 0x89c   :  { %2802 = vmatpush1.msra.mxu0 %v7209_v10  ;;  %2962 = vmatprep.subr.mxu1 %v6780_v57  ;;  %v7229_v57 = vld [vmem:[#allocation7 + $0x598] sm:$0xff] }
 0x89d   :  { %2803 = vmatprep.subr.mxu0 %v7213_v49  ;;  %2963 = vmatpush1.msra.mxu1 %v6784_v21  ;;  %8905 = vst [vmem:[#allocation64_spill] sm:$0xff] %v7229_v57  ;;  %v7233_v21 = vld [vmem:[#allocation7 + $0x590] sm:$0xff] }
 0x89e   :  { %2804 = vmatpush2.msra.mxu0 %v7217_v55  ;;  %2964 = vmatprep.subr.mxu1 %v6788_v35  ;;  %8906 = vst [vmem:[#allocation65_spill] sm:$0xff] %v7233_v21  ;;  %v8907_v35 = vld [vmem:[#allocation19_spill] sm:$0xff] }
 0x89f   :  { %2805 = vmatprep.subr.mxu0 %v7221_v59  ;;  %2965 = vmatpush2.msra.mxu1 %v6792_v39  ;;  %v8909_v39 = vld [vmem:[#allocation94_spill] sm:$0xff] }
 0x8a0   :  { %2806 = vmatpush2.msra.mxu0 %v7225_v34  ;;  %2966 = vmatprep.subr.mxu1 %v6796_v43  ;;  %v8911_v43 = vld [vmem:[#allocation20_spill] sm:$0xff] }
 0x8a1   :  { %2807 = vmatprep.subr.mxu0 %v7229_v57  ;;  %2967 = vmatpush2.msra.mxu1 %v6800_v42  ;;  %v8913_v42 = vld [vmem:[#allocation96_spill] sm:$0xff] }
 0x8a2   :  { %2808 = vmatpush2.msra.mxu0 %v7233_v21  ;;  %2968 = vmatprep.subr.mxu1 %v8907_v35  ;;  %v7265_v35 = vld [vmem:[#allocation7 + $0x4d0] sm:$0xff] }
 0x8a3   :  { %2809 = vmatprep.subr.mxu0 %v7237_v37  ;;  %2969 = vmatpush2.msra.mxu1 %v8909_v39  ;;  %8922 = vst [vmem:[#allocation73_spill] sm:$0xff] %v7265_v35  ;;  %v8923_v39 = vld [vmem:[#allocation23_spill] sm:$0xff] }
 0x8a4   :  { %2810 = vmatpush2.msra.mxu0 %v7241_v41  ;;  %2970 = vmatprep.subr.mxu1 %v8911_v43  ;;  %v7269_v43 = vld [vmem:[#allocation7 + $0x4a8] sm:$0xff] }
 0x8a5   :  { %2811 = vmatprep.subr.mxu0 %v7245_v61  ;;  %2971 = vmatpush2.msra.mxu1 %v8913_v42  ;;  %8924 = vst [vmem:[#allocation74_spill] sm:$0xff] %v7269_v43  ;;  %v8925_v42 = vld [vmem:[#allocation102_spill] sm:$0xff]  ;;  %v9000_v61 = vld [vmem:[#allocation12_spill] sm:$0xff] }
 0x8a6   :  { %2812 = vmatpush2.msra.mxu0 %v7249_v4  ;;  %2972 = vmatprep.subr.mxu1 %v8915_v1  ;;  %v7273_v1 = vld [vmem:[#allocation7 + $0x4a0] sm:$0xff] }
 0x8a7   :  { %2813 = vmatprep.subr.mxu0 %v7253_v14  ;;  %2973 = vmatpush2.msra.mxu1 %v8917_v8  ;;  %8926 = vst [vmem:[#allocation75_spill] sm:$0xff] %v7273_v1  ;;  %v8927_v8 = vld [vmem:[#allocation24_spill] sm:$0xff]  ;;  %v8999_v14 = vld [vmem:[#allocation78_spill] sm:$0xff] }
 0x8a8   :  { %2814 = vmatpush2.msra.mxu0 %v7257_v5  ;;  %2974 = vmatprep.subr.mxu1 %v8919_v62  ;;  %v7277_v62 = vld [vmem:[#allocation7 + $0x478] sm:$0xff]  ;;  %v8967_v5 = vld [vmem:[#allocation37_spill] sm:$0xff] }
 0x8a9   :  { %2815 = vmatprep.subr.mxu0 %v7261_v48  ;;  %2975 = vmatpush2.msra.mxu1 %v8921_v52  ;;  %8928 = vst [vmem:[#allocation76_spill] sm:$0xff] %v7277_v62  ;;  %v8929_v52 = vld [vmem:[#allocation104_spill] sm:$0xff] }
 0x8aa   :  { %2816 = vmatpush2.msra.mxu0 %v7265_v35  ;;  %2976 = vmatprep.subr.mxu1 %v8923_v39  ;;  %v7281_v35 = vld [vmem:[#allocation7 + $0x470] sm:$0xff]  ;;  %v8964_v48 = vld [vmem:[#allocation124_spill] sm:$0xff] }
 0x8ab   :  { %2817 = vmatprep.subr.mxu0 %v7269_v43  ;;  %2977 = vmatpush2.msra.mxu1 %v8925_v42  ;;  %8930 = vst [vmem:[#allocation77_spill] sm:$0xff] %v7281_v35  ;;  %v8931_v39 = vld [vmem:[#allocation25_spill] sm:$0xff]  ;;  %v8933_v42 = vld [vmem:[#allocation106_spill] sm:$0xff] }
 0x8ac   :  { %2818 = vmatpush2.msra.mxu0 %v7273_v1  ;;  %2978 = vmatprep.subr.mxu1 %v8927_v8  ;;  %v7285_v43 = vld [vmem:[#allocation7 + $0x448] sm:$0xff]  ;;  %v7289_v1 = vld [vmem:[#allocation7 + $0x440] sm:$0xff]  ;;  %v8935_v8 = vld [vmem:[#allocation26_spill] sm:$0xff] }
 0x8ad   :  { %2819 = vmatprep.subr.mxu0 %v7277_v62  ;;  %2979 = vmatpush2.msra.mxu1 %v8929_v52  ;;  %8932 = vst [vmem:[#allocation79_spill] sm:$0xff] %v7285_v43  ;;  %8934 = vst [vmem:[#allocation81_spill] sm:$0xff] %v7289_v1  ;;  %v7293_v62 = vld [vmem:[#allocation7 + $0x418] sm:$0xff]  ;;  %v8937_v52 = vld [vmem:[#allocation108_spill] sm:$0xff] }
 0x8ae   :  { %2820 = vmatpush2.msra.mxu0 %v7281_v35  ;;  %2980 = vmatprep.subr.mxu1 %v8931_v39  ;;  %8936 = vst [vmem:[#allocation83_spill] sm:$0xff] %v7293_v62  ;;  %v7297_v35 = vld [vmem:[#allocation7 + $0x410] sm:$0xff]  ;;  %v8939_v39 = vld [vmem:[#allocation27_spill] sm:$0xff] }
 0x8af   :  { %2821 = vmatprep.subr.mxu0 %v7285_v43  ;;  %2981 = vmatpush2.msra.mxu1 %v8933_v42  ;;  %8938 = vst [vmem:[#allocation85_spill] sm:$0xff] %v7297_v35  ;;  %v7301_v43 = vld [vmem:[#allocation7 + $0x3e8] sm:$0xff]  ;;  %v8941_v42 = vld [vmem:[#allocation110_spill] sm:$0xff] }
 0x8b0   :  { %2822 = vmatpush2.msra.mxu0 %v7289_v1  ;;  %2982 = vmatprep.subr.mxu1 %v8935_v8  ;;  %8940 = vst [vmem:[#allocation87_spill] sm:$0xff] %v7301_v43  ;;  %v7305_v1 = vld [vmem:[#allocation7 + $0x3e0] sm:$0xff] }
 0x8b1   :  { %2823 = vmatprep.subr.mxu0 %v7293_v62  ;;  %2983 = vmatpush2.msra.mxu1 %v8937_v52  ;;  %8942 = vst [vmem:[#allocation89_spill] sm:$0xff] %v7305_v1  ;;  %v8943_v8 = vld [vmem:[#allocation28_spill] sm:$0xff]  ;;  %v7309_v62 = vld [vmem:[#allocation7 + $0x3b8] sm:$0xff] }
 0x8b2   :  { %2824 = vmatpush2.msra.mxu0 %v7297_v35  ;;  %2984 = vmatprep.subr.mxu1 %v8939_v39  ;;  %8944 = vst [vmem:[#allocation91_spill] sm:$0xff] %v7309_v62  ;;  %v8945_v52 = vld [vmem:[#allocation112_spill] sm:$0xff]  ;;  %v7313_v35 = vld [vmem:[#allocation7 + $0x3b0] sm:$0xff] }
 0x8b3   :  { %2825 = vmatprep.subr.mxu0 %v7301_v43  ;;  %2985 = vmatpush2.msra.mxu1 %v8941_v42  ;;  %8946 = vst [vmem:[#allocation93_spill] sm:$0xff] %v7313_v35  ;;  %v8947_v39 = vld [vmem:[#allocation29_spill] sm:$0xff]  ;;  %v8949_v42 = vld [vmem:[#allocation114_spill] sm:$0xff] }
 0x8b4   :  { %2826 = vmatpush2.msra.mxu0 %v7305_v1  ;;  %2986 = vmatprep.subr.mxu1 %v8943_v8  ;;  %v7317_v43 = vld [vmem:[#allocation7 + $0x388] sm:$0xff]  ;;  %v7321_v1 = vld [vmem:[#allocation7 + $0x380] sm:$0xff]  ;;  %v8951_v8 = vld [vmem:[#allocation30_spill] sm:$0xff] }
 0x8b5   :  { %2827 = vmatprep.subr.mxu0 %v7309_v62  ;;  %2987 = vmatpush2.msra.mxu1 %v8945_v52  ;;  %8948 = vst [vmem:[#allocation95_spill] sm:$0xff] %v7317_v43  ;;  %8950 = vst [vmem:[#allocation97_spill] sm:$0xff] %v7321_v1  ;;  %v7325_v62 = vld [vmem:[#allocation7 + $0x358] sm:$0xff]  ;;  %v8953_v52 = vld [vmem:[#allocation116_spill] sm:$0xff] }
 0x8b6   :  { %2828 = vmatpush2.msra.mxu0 %v7313_v35  ;;  %2988 = vmatprep.subr.mxu1 %v8947_v39  ;;  %8952 = vst [vmem:[#allocation99_spill] sm:$0xff] %v7325_v62  ;;  %v7329_v35 = vld [vmem:[#allocation7 + $0x350] sm:$0xff]  ;;  %v8955_v39 = vld [vmem:[#allocation31_spill] sm:$0xff] }
 0x8b7   :  { %2829 = vmatprep.subr.mxu0 %v7317_v43  ;;  %2989 = vmatpush2.msra.mxu1 %v8949_v42  ;;  %8954 = vst [vmem:[#allocation101_spill] sm:$0xff] %v7329_v35  ;;  %v7333_v43 = vld [vmem:[#allocation7 + $0x328] sm:$0xff]  ;;  %v8957_v42 = vld [vmem:[#allocation118_spill] sm:$0xff] }
 0x8b8   :  { %2830 = vmatpush2.msra.mxu0 %v7321_v1  ;;  %2990 = vmatprep.subr.mxu1 %v8951_v8  ;;  %8956 = vst [vmem:[#allocation103_spill] sm:$0xff] %v7333_v43  ;;  %v7337_v1 = vld [vmem:[#allocation7 + $0x320] sm:$0xff] }
 0x8b9   :  { %2831 = vmatprep.subr.mxu0 %v7325_v62  ;;  %2991 = vmatpush2.msra.mxu1 %v8953_v52  ;;  %8958 = vst [vmem:[#allocation105_spill] sm:$0xff] %v7337_v1  ;;  %v8959_v8 = vld [vmem:[#allocation32_spill] sm:$0xff]  ;;  %v8961_v62 = vld [vmem:[#allocation33_spill] sm:$0xff] }
 0x8ba   :  { %2832 = vmatpush2.msra.mxu0 %v7329_v35  ;;  %2992 = vmatprep.subr.mxu1 %v8955_v39  ;;  %v8960_v52 = vld [vmem:[#allocation120_spill] sm:$0xff]  ;;  %v8962_v35 = vld [vmem:[#allocation122_spill] sm:$0xff] }
 0x8bb   :  { %2833 = vmatprep.subr.mxu0 %v7333_v43  ;;  %2993 = vmatpush2.msra.mxu1 %v8957_v42  ;;  %v8963_v39 = vld [vmem:[#allocation34_spill] sm:$0xff]  ;;  %v8965_v43 = vld [vmem:[#allocation35_spill] sm:$0xff] }
 0x8bc   :  { %2834 = vmatpush2.msra.mxu0 %v7337_v1  ;;  %2994 = vmatprep.subr.mxu1 %v8959_v8  ;;  %v8966_v42 = vld [vmem:[#allocation126_spill] sm:$0xff]  ;;  %v8968_v1 = vld [vmem:[#allocation128_spill] sm:$0xff] }
 0x8bd   :  { %2836 = vmatmul.mubr.f32.vlgmr.msra.gmra.mxu0 %v7079_v2  ;;  %3003 = vmatprep.subr.mxu0 %v8960_v52  ;;  %v8969_v8 = vld [vmem:[#allocation38_spill] sm:$0xff]  ;;  %v8971_v52 = vld [vmem:[#allocation39_spill] sm:$0xff] }
 0x8be   :  { %3004 = vmatpush1.msra.mxu0 %v8961_v62  ;;  %2995 = vmatpush2.msra.mxu1 %v8962_v35  ;;  %v8970_v2 = vld [vmem:[#allocation130_spill] sm:$0xff]  ;;  %v8972_v62 = vld [vmem:[#allocation132_spill] sm:$0xff] }
 0x8bf   :  { %3005 = vmatprep.subr.mxu0 %v8963_v39  ;;  %3074 = vmatprep.subr.mxu1 %v8964_v48  ;;  %v8973_v35 = vld [vmem:[#allocation40_spill] sm:$0xff]  ;;  %v8974_v39 = vld [vmem:[#allocation134_spill] sm:$0xff]  ;;  %v8975_v48 = vld [vmem:[#allocation41_spill] sm:$0xff] }
 0x8c0   :  { %3006 = vmatpush1.msra.mxu0 %v8965_v43  ;;  %v8976_v43 = vld [vmem:[#allocation43_spill] sm:$0xff] }
 0x8c1   :  { %3007 = vmatprep.subr.mxu0 %v8966_v42  ;;  %v8977_v42 = vld [vmem:[#allocation45_spill] sm:$0xff] }
 0x8c2   :  { %3008 = vmatpush1.msra.mxu0 %v8967_v5  ;;  %v8978_v5 = vld [vmem:[#allocation46_spill] sm:$0xff] }
 0x8c3   :  { %3009 = vmatprep.subr.mxu0 %v8968_v1  ;;  %v8979_v1 = vld [vmem:[#allocation47_spill] sm:$0xff] }
 0x8c4   :  { %3010 = vmatpush1.msra.mxu0 %v8969_v8  ;;  %v8980_v8 = vld [vmem:[#allocation48_spill] sm:$0xff] }
 0x8c5   :  { %3011 = vmatprep.subr.mxu0 %v8970_v2  ;;  %v8981_v2 = vld [vmem:[#allocation49_spill] sm:$0xff] }
 0x8c6   :  { %3012 = vmatpush1.msra.mxu0 %v8971_v52  ;;  %v8982_v52 = vld [vmem:[#allocation44_spill] sm:$0xff] }
 0x8c7   :  { %3013 = vmatprep.subr.mxu0 %v8972_v62  ;;  %v8983_v62 = vld [vmem:[#allocation42_spill] sm:$0xff] }
 0x8c8   :  { %3014 = vmatpush1.msra.mxu0 %v8973_v35  ;;  %v8984_v35 = vld [vmem:[#allocation36_spill] sm:$0xff] }
 0x8c9   :  { %3015 = vmatprep.subr.mxu0 %v8974_v39  ;;  %v8985_v39 = vld [vmem:[#allocation50_spill] sm:$0xff] }
 0x8ca   :  { %3016 = vmatpush1.msra.mxu0 %v8975_v48  ;;  %v8986_v48 = vld [vmem:[#allocation51_spill] sm:$0xff] }
 0x8cb   :  { %3017 = vmatprep.subr.mxu0 %v8976_v43  ;;  %v8987_v43 = vld [vmem:[#allocation52_spill] sm:$0xff] }
 0x8cc   :  { %3018 = vmatpush1.msra.mxu0 %v8977_v42  ;;  %v8988_v42 = vld [vmem:[#allocation53_spill] sm:$0xff] }
 0x8cd   :  { %3019 = vmatprep.subr.mxu0 %v8978_v5  ;;  %v8989_v5 = vld [vmem:[#allocation54_spill] sm:$0xff] }
 0x8ce   :  { %3020 = vmatpush1.msra.mxu0 %v8979_v1  ;;  %v8990_v1 = vld [vmem:[#allocation55_spill] sm:$0xff] }
 0x8cf   :  { %3021 = vmatprep.subr.mxu0 %v8980_v8  ;;  %v8991_v8 = vld [vmem:[#allocation56_spill] sm:$0xff] }
 0x8d0   :  { %3022 = vmatpush1.msra.mxu0 %v8981_v2  ;;  %v8992_v2 = vld [vmem:[#allocation57_spill] sm:$0xff] }
 0x8d1   :  { %3023 = vmatprep.subr.mxu0 %v8982_v52  ;;  %v8993_v52 = vld [vmem:[#allocation58_spill] sm:$0xff] }
 0x8d2   :  { %3024 = vmatpush1.msra.mxu0 %v8983_v62  ;;  %v8994_v62 = vld [vmem:[#allocation59_spill] sm:$0xff] }
 0x8d3   :  { %3025 = vmatprep.subr.mxu0 %v8984_v35  ;;  %v8995_v35 = vld [vmem:[#allocation60_spill] sm:$0xff] }
 0x8d4   :  { %3026 = vmatpush1.msra.mxu0 %v8985_v39  ;;  %v8996_v39 = vld [vmem:[#allocation61_spill] sm:$0xff] }
 0x8d5   :  { %3027 = vmatprep.subr.mxu0 %v8986_v48  ;;  %v8997_v48 = vld [vmem:[#allocation62_spill] sm:$0xff] }
 0x8d6   :  { %3028 = vmatpush1.msra.mxu0 %v8987_v43  ;;  %v8998_v43 = vld [vmem:[#allocation63_spill] sm:$0xff] }
 0x8d7   :  { %3029 = vmatprep.subr.mxu0 %v8988_v42  ;;  %v4015_v42 = vld [vmem:[#allocation7 + $0x580] sm:$0xff] }
 0x8d8   :  { %3030 = vmatpush1.msra.mxu0 %v8989_v5  ;;  %v4016_v5 = vld [vmem:[#allocation7 + $0x558] sm:$0xff] }
 0x8d9   :  { %3031 = vmatprep.subr.mxu0 %v8990_v1  ;;  %v4017_v1 = vld [vmem:[#allocation7 + $0x550] sm:$0xff] }
 0x8da   :  { %3032 = vmatpush1.msra.mxu0 %v8991_v8  ;;  %v4018_v8 = vld [vmem:[#allocation7 + $0x528] sm:$0xff] }
 0x8db   :  { %3033 = vmatprep.subr.mxu0 %v8992_v2  ;;  %v4019_v2 = vld [vmem:[#allocation7 + $0x520] sm:$0xff] }
 0x8dc   :  { %3034 = vmatpush1.msra.mxu0 %v8993_v52  ;;  %v4020_v52 = vld [vmem:[#allocation7 + $0x4f8] sm:$0xff] }
 0x8dd   :  { %3035 = vmatprep.subr.mxu0 %v8994_v62  ;;  %v4021_v62 = vld [vmem:[#allocation7 + $0x4f0] sm:$0xff] }
 0x8de   :  { %3036 = vmatpush2.msra.mxu0 %v8995_v35  ;;  %v4022_v35 = vld [vmem:[#allocation7 + $0x4c8] sm:$0xff] }
 0x8df   :  { %3037 = vmatprep.subr.mxu0 %v8996_v39  ;;  %v4023_v39 = vld [vmem:[#allocation7 + $0x4c0] sm:$0xff] }
 0x8e0   :  { %3038 = vmatpush2.msra.mxu0 %v8997_v48  ;;  %v4024_v48 = vld [vmem:[#allocation7 + $0x498] sm:$0xff] }
 0x8e1   :  { %3039 = vmatprep.subr.mxu0 %v8998_v43  ;;  %v4025_v43 = vld [vmem:[#allocation7 + $0x490] sm:$0xff] }
 0x8e2   :  { %3040 = vmatpush2.msra.mxu0 %v4015_v42  ;;  %v4026_v42 = vld [vmem:[#allocation7 + $0x468] sm:$0xff] }
 0x8e3   :  { %3041 = vmatprep.subr.mxu0 %v4016_v5  ;;  %v4027_v5 = vld [vmem:[#allocation7 + $0x460] sm:$0xff] }
 0x8e4   :  { %3042 = vmatpush2.msra.mxu0 %v4017_v1  ;;  %v4028_v1 = vld [vmem:[#allocation7 + $0x438] sm:$0xff] }
 0x8e5   :  { %3043 = vmatprep.subr.mxu0 %v4018_v8  ;;  %v4029_v8 = vld [vmem:[#allocation7 + $0x430] sm:$0xff] }
 0x8e6   :  { %3044 = vmatpush2.msra.mxu0 %v4019_v2  ;;  %v4030_v2 = vld [vmem:[#allocation7 + $0x408] sm:$0xff] }
 0x8e7   :  { %3045 = vmatprep.subr.mxu0 %v4020_v52  ;;  %v4031_v52 = vld [vmem:[#allocation7 + $0x400] sm:$0xff] }
 0x8e8   :  { %3046 = vmatpush2.msra.mxu0 %v4021_v62  ;;  %v4032_v62 = vld [vmem:[#allocation7 + $0x3d8] sm:$0xff] }
 0x8e9   :  { %3047 = vmatprep.subr.mxu0 %v4022_v35  ;;  %v4033_v35 = vld [vmem:[#allocation7 + $0x3d0] sm:$0xff] }
 0x8ea   :  { %3048 = vmatpush2.msra.mxu0 %v4023_v39  ;;  %v4034_v39 = vld [vmem:[#allocation7 + $0x3a8] sm:$0xff] }
 0x8eb   :  { %3049 = vmatprep.subr.mxu0 %v4024_v48  ;;  %v4035_v48 = vld [vmem:[#allocation7 + $0x3a0] sm:$0xff] }
 0x8ec   :  { %3050 = vmatpush2.msra.mxu0 %v4025_v43  ;;  %v4036_v43 = vld [vmem:[#allocation7 + $0x378] sm:$0xff] }
 0x8ed   :  { %3051 = vmatprep.subr.mxu0 %v4026_v42  ;;  %v4037_v42 = vld [vmem:[#allocation7 + $0x370] sm:$0xff] }
 0x8ee   :  { %3052 = vmatpush2.msra.mxu0 %v4027_v5  ;;  %v4038_v5 = vld [vmem:[#allocation7 + $0x348] sm:$0xff] }
 0x8ef   :  { %3053 = vmatprep.subr.mxu0 %v4028_v1  ;;  %v4039_v1 = vld [vmem:[#allocation7 + $0x340] sm:$0xff] }
 0x8f0   :  { %3054 = vmatpush2.msra.mxu0 %v4029_v8  ;;  %v4040_v8 = vld [vmem:[#allocation7 + $0x318] sm:$0xff] }
 0x8f1   :  { %3055 = vmatprep.subr.mxu0 %v4030_v2  ;;  %v4041_v2 = vld [vmem:[#allocation7 + $0x310] sm:$0xff] }
 0x8f2   :  { %3056 = vmatpush2.msra.mxu0 %v4031_v52 }
 0x8f3   :  { %3057 = vmatprep.subr.mxu0 %v4032_v62 }
 0x8f4   :  { %3058 = vmatpush2.msra.mxu0 %v4033_v35 }
 0x8f5   :  { %3059 = vmatprep.subr.mxu0 %v4034_v39 }
 0x8f6   :  { %3060 = vmatpush2.msra.mxu0 %v4035_v48 }
 0x8f7   :  { %3061 = vmatprep.subr.mxu0 %v4036_v43 }
 0x8f8   :  { %3062 = vmatpush2.msra.mxu0 %v4037_v42  ;;  %v9001_v42 = vld [vmem:[#allocation80_spill] sm:$0xff] }
 0x8f9   :  { %3063 = vmatprep.subr.mxu0 %v4038_v5 }
 0x8fa   :  { %3064 = vmatpush2.msra.mxu0 %v4039_v1 }
 0x8fb   :  { %3065 = vmatprep.subr.mxu0 %v4040_v8 }
 0x8fc   :  { %3066 = vmatpush2.msra.mxu0 %v4041_v2 }
 0x93d   :  { %v2695_v52 = vpop.f32.mrf.mxu0  ;;  %v2766_v41 = vpop.f32.mrf.mxu1 }
 0x93e   :  { %v2696_v35 = vadd.f32 %v2695_v52, %v4933_v0  ;;  %v2767_v1 = vadd.f32 %v2766_v41, %v8385_v40 }
 0x93f   :  { %v2697_v62 = vpop.f32.mrf.mxu0  ;;  %v2768_v21 = vpop.f32.mrf.mxu1 }
 0x940   :  { %v2698_v39 = vadd.f32 %v2697_v62, %v8999_v14  ;;  %v2844_v4 = vrot.slane %v2696_v35, 2  ;;  %v2769_v2 = vadd.f32 %v2768_v21, %v8386_v29  ;;  %v2864_v57 = vrot.slane %v2767_v1, 2  ;;  %v9002_v35 = vld [vmem:[#allocation84_spill] sm:$0xff] }
 0x942   :  { %v2845_v48 = vrot.slane %v2698_v39, 2  ;;  %v2848_v43 = vadd.f32 %v2844_v4, %v9000_v61  ;;  %v2865_v52 = vrot.slane %v2769_v2, 2  ;;  %v2868_v62 = vadd.f32 %v2864_v57, %v8387_v32 }
 0x944   :  { %v2849_v37 = vadd.f32 %v2845_v48, %v9001_v42  ;;  %v3284_v5 = vmul.f32 -1.442695, %v2848_v43  ;;  %v2869_v39 = vadd.f32 %v2865_v52, %v9002_v35  ;;  %v3286_v14 = vmul.f32 -1.442695, %v2868_v62  ;;  %v9003_v52 = vld [vmem:[#allocation15_spill] sm:$0xff] }
 0x946   :  { %v3285_v8 = vmul.f32 -1.442695, %v2849_v37  ;;  %3426 = vpow2.f32 %v3284_v5  ;;  %v3287_v4 = vmul.f32 -1.442695, %v2869_v39 }
 0x948   :  { %3428 = vpow2.f32 %v3285_v8 }
 0x949   :  { %3430 = vpow2.f32 %v3286_v14 }
 0x94a   :  { %3432 = vpow2.f32 %v3287_v4 }
 0x953   :  { %v3427_v61 = vpop.eup %3426 }
 0x954   :  { %v2856_v43 = vadd.f32 1.0, %v3427_v61 }
 0x955   :  { %v3429_v48 = vpop.eup %3428 }
 0x956   :  { %v2857_v42 = vadd.f32 1.0, %v3429_v48  ;;  %3434 = vrcp.f32 %v2856_v43  ;;  %v3431_v37 = vpop.eup %3430 }
 0x957   :  { %v3433_v41 = vpop.eup %3432  ;;  %v2876_v5 = vadd.f32 1.0, %v3431_v37 }
 0x958   :  { %3436 = vrcp.f32 %v2857_v42  ;;  %v2877_v57 = vadd.f32 1.0, %v3433_v41 }
 0x959   :  { %3438 = vrcp.f32 %v2876_v5  ;;  %v2899_v5 = vrot.slane %v7073_v19, 7 }
 0x95a   :  { %3440 = vrcp.f32 %v2877_v57 }
 0x963   :  { %v3435_v39 = vpop.eup %3434 }
 0x965   :  { %v3437_v61 = vpop.eup %3436 }
 0x966   :  { %v3439_v43 = vpop.eup %3438 }
 0x967   :  { %v3441_v37 = vpop.eup %3440 }
 0x97d   :  { %v2837_v21 = vpop.f32.mrf.mxu0 }
 0x97e   :  { %v2838_v1 = vadd.f32 %v2837_v21, %v4963_v56  ;;  %v2894_v21 = vsub.f32 1.0, %v3439_v43 }
 0x97f   :  { %v2839_v8 = vpop.f32.mrf.mxu0 }
 0x980   :  { %v2884_v2 = vrot.slane %v2838_v1, 2  ;;  %v2840_v62 = vadd.f32 %v2839_v8, %v9003_v52  ;;  %v2898_v1 = vrot.slane %v7071_v17, 7  ;;  %v2895_v8 = vsub.f32 1.0, %v3441_v37 }
 0x981   :  { %v2903_v52 = vmul.f32 %v3441_v37, %v2899_v5 }
 0x982   :  { %v2888_v14 = vmul.f32 %v3435_v39, %v2884_v2  ;;  %v2885_v35 = vrot.slane %v2840_v62, 2  ;;  %v2902_v39 = vmul.f32 %v3439_v43, %v2898_v1 }
 0x984   :  { %v2890_v4 = vadd.f32 %v2888_v14, %v4970_v63  ;;  %v2889_v42 = vmul.f32 %v3437_v61, %v2885_v35 }
 0x986   :  { %3442 = vtanh.f32 %v2890_v4  ;;  %v2891_v48 = vadd.f32 %v2889_v42, %v4973_v9 }
 0x988   :  { %3444 = vtanh.f32 %v2891_v48  ;;  %v9033_v48 = vld [vmem:[#allocation12_spill] sm:$0xff] }
 0x993   :  { %v3443_v41 = vpop.eup %3442 }
 0x994   :  { %v2896_v2 = vmul.f32 %v3443_v41, %v2894_v21  ;;  %v9034_v21 = vld [vmem:[#allocation80_spill] sm:$0xff] }
 0x995   :  { %v3445_v62 = vpop.eup %3444 }
 0x996   :  { %v2897_v57 = vmul.f32 %v3445_v62, %v2895_v8  ;;  %v7395_v14 = vadd.f32 %v2902_v39, %v2896_v2 }
 0x998   :  { %v7397_v35 = vadd.f32 %v2903_v52, %v2897_v57  ;;  %v7403_v42 = vrot.slane %v7395_v14, 6 }
 0x99a   :  { %v2929_v61 = vrot.slane %v7397_v35, 6  ;;  %v2908_v4 = vcombine.high %v7395_v14, %v7397_v35 }
 0x99c   :  { %2996 = vmatprep.mubr.f32.mxu1 %v2929_v61  ;;  %3067 = vmatprep.mubr.f32.mxu0 %v2929_v61  ;;  %v2915_v17 = vrot.slane %v2908_v4, %v4979_v45 }
 0x99d   :  { %2997 = vmatmul.mubr.f32.vlgmr.msra.gmra.mxu1 %v7403_v42  ;;  %3068 = vmatmul.mubr.f32.vlgmr.msra.gmra.mxu0 %v7403_v42 }
 0x99e   :  { %v2922_v19 = vrot.slane %v2915_v17, %v4979_v45  ;;  %3075 = vmatpush1.msra.mxu1 %v7084_v13  ;;  %3138 = vmatprep.mubr.f32.mxu1 %v2929_v61  ;;  %v9004_v13 = vld [vmem:[#allocation64_spill] sm:$0xff] }
 0x99f   :  { %3076 = vmatprep.subr.mxu1 %v7087_v22  ;;  %v9005_v22 = vld [vmem:[#allocation65_spill] sm:$0xff]  ;;  %v9035_v61 = vld [vmem:[#allocation84_spill] sm:$0xff] }
 0x9a0   :  { %v2923_v52 = vcombine.high %v2922_v19, %v2922_v19  ;;  %3077 = vmatpush1.msra.mxu1 %v7092_v24  ;;  %v9006_v24 = vld [vmem:[#allocation66_spill] sm:$0xff] }
 0x9a1   :  { %3078 = vmatprep.subr.mxu1 %v7096_v60  ;;  %v9007_v60 = vld [vmem:[#allocation67_spill] sm:$0xff] }
 0x9a2   :  { %3288 = vst.msk [vmem:[%s7511_s7 + $0x6] ss:$8 sm:$0x3] %vm4995_vm2, %v2923_v52  ;;  %3079 = vmatpush1.msra.mxu1 %v7105_v51  ;;  %v9008_v51 = vld [vmem:[#allocation68_spill] sm:$0xff] }
 0x9a3   :  { %3080 = vmatprep.subr.mxu1 %v7109_v26  ;;  %v9009_v26 = vld [vmem:[#allocation69_spill] sm:$0xff] }
 0x9a4   :  { %3081 = vmatpush1.msra.mxu1 %v7113_v6  ;;  %v9010_v6 = vld [vmem:[#allocation70_spill] sm:$0xff] }
 0x9a5   :  { %3082 = vmatprep.subr.mxu1 %v7117_v3  ;;  %v9011_v3 = vld [vmem:[#allocation71_spill] sm:$0xff] }
 0x9a6   :  { %3083 = vmatpush1.msra.mxu1 %v7121_v47  ;;  %v9012_v47 = vld [vmem:[#allocation72_spill] sm:$0xff] }
 0x9a7   :  { %3084 = vmatprep.subr.mxu1 %v7125_v44  ;;  %v9013_v44 = vld [vmem:[#allocation73_spill] sm:$0xff] }
 0x9a8   :  { %3085 = vmatpush1.msra.mxu1 %v7129_v30  ;;  %v9014_v30 = vld [vmem:[#allocation74_spill] sm:$0xff] }
 0x9a9   :  { %3086 = vmatprep.subr.mxu1 %v7133_v28  ;;  %v9015_v28 = vld [vmem:[#allocation75_spill] sm:$0xff] }
 0x9aa   :  { %3087 = vmatpush1.msra.mxu1 %v7137_v11  ;;  %v9016_v11 = vld [vmem:[#allocation76_spill] sm:$0xff] }
 0x9ab   :  { %3088 = vmatprep.subr.mxu1 %v7141_v38  ;;  %v9017_v38 = vld [vmem:[#allocation77_spill] sm:$0xff] }
 0x9ac   :  { %3089 = vmatpush1.msra.mxu1 %v7145_v15  ;;  %v9018_v15 = vld [vmem:[#allocation79_spill] sm:$0xff] }
 0x9ad   :  { %3090 = vmatprep.subr.mxu1 %v7149_v53  ;;  %v9019_v53 = vld [vmem:[#allocation81_spill] sm:$0xff] }
 0x9ae   :  { %3091 = vmatpush1.msra.mxu1 %v7153_v7  ;;  %v9020_v7 = vld [vmem:[#allocation83_spill] sm:$0xff] }
 0x9af   :  { %3092 = vmatprep.subr.mxu1 %v7157_v23  ;;  %v9021_v23 = vld [vmem:[#allocation85_spill] sm:$0xff] }
 0x9b0   :  { %3093 = vmatpush1.msra.mxu1 %v7161_v36  ;;  %v9022_v36 = vld [vmem:[#allocation87_spill] sm:$0xff] }
 0x9b1   :  { %3094 = vmatprep.subr.mxu1 %v7165_v20  ;;  %v9023_v20 = vld [vmem:[#allocation89_spill] sm:$0xff] }
 0x9b2   :  { %3095 = vmatpush1.msra.mxu1 %v7169_v54  ;;  %v9024_v54 = vld [vmem:[#allocation91_spill] sm:$0xff] }
 0x9b3   :  { %3096 = vmatprep.subr.mxu1 %v7173_v16  ;;  %v9025_v16 = vld [vmem:[#allocation93_spill] sm:$0xff] }
 0x9b4   :  { %3097 = vmatpush1.msra.mxu1 %v7177_v27  ;;  %v9026_v27 = vld [vmem:[#allocation95_spill] sm:$0xff] }
 0x9b5   :  { %3098 = vmatprep.subr.mxu1 %v7181_v58  ;;  %v9027_v58 = vld [vmem:[#allocation97_spill] sm:$0xff] }
 0x9b6   :  { %3099 = vmatpush1.msra.mxu1 %v7185_v25  ;;  %v9028_v25 = vld [vmem:[#allocation99_spill] sm:$0xff] }
 0x9b7   :  { %3100 = vmatprep.subr.mxu1 %v7189_v33  ;;  %v9029_v33 = vld [vmem:[#allocation101_spill] sm:$0xff] }
 0x9b8   :  { %3101 = vmatpush1.msra.mxu1 %v7193_v46  ;;  %v9030_v46 = vld [vmem:[#allocation103_spill] sm:$0xff] }
 0x9b9   :  { %3102 = vmatprep.subr.mxu1 %v7197_v31  ;;  %v9031_v31 = vld [vmem:[#allocation105_spill] sm:$0xff] }
 0x9ba   :  { %3103 = vmatpush1.msra.mxu1 %v7201_v12 }
 0x9bb   :  { %3104 = vmatprep.subr.mxu1 %v7205_v50 }
 0x9bc   :  { %3105 = vmatpush1.msra.mxu1 %v7209_v10 }
 0x9bd   :  { %3106 = vmatprep.subr.mxu1 %v7213_v49  ;;  %v9032_v49 = vld [vmem:[#allocation78_spill] sm:$0xff] }
 0x9be   :  { %3107 = vmatpush2.msra.mxu1 %v7217_v55 }
 0x9bf   :  { %3108 = vmatprep.subr.mxu1 %v7221_v59 }
 0x9c0   :  { %3109 = vmatpush2.msra.mxu1 %v7225_v34 }
 0x9c1   :  { %3110 = vmatprep.subr.mxu1 %v9004_v13 }
 0x9c2   :  { %3111 = vmatpush2.msra.mxu1 %v9005_v22 }
 0x9c3   :  { %3112 = vmatprep.subr.mxu1 %v9006_v24 }
 0x9c4   :  { %3113 = vmatpush2.msra.mxu1 %v9007_v60 }
 0x9c5   :  { %3114 = vmatprep.subr.mxu1 %v9008_v51 }
 0x9c6   :  { %3115 = vmatpush2.msra.mxu1 %v9009_v26 }
 0x9c7   :  { %3116 = vmatprep.subr.mxu1 %v9010_v6 }
 0x9c8   :  { %3117 = vmatpush2.msra.mxu1 %v9011_v3  ;;  %v9036_v3 = vld [vmem:[#allocation15_spill] sm:$0xff] }
 0x9c9   :  { %3118 = vmatprep.subr.mxu1 %v9012_v47 }
 0x9ca   :  { %3119 = vmatpush2.msra.mxu1 %v9013_v44 }
 0x9cb   :  { %3120 = vmatprep.subr.mxu1 %v9014_v30 }
 0x9cc   :  { %3121 = vmatpush2.msra.mxu1 %v9015_v28 }
 0x9cd   :  { %3122 = vmatprep.subr.mxu1 %v9016_v11 }
 0x9ce   :  { %3123 = vmatpush2.msra.mxu1 %v9017_v38 }
 0x9cf   :  { %3124 = vmatprep.subr.mxu1 %v9018_v15 }
 0x9d0   :  { %3125 = vmatpush2.msra.mxu1 %v9019_v53 }
 0x9d1   :  { %3126 = vmatprep.subr.mxu1 %v9020_v7 }
 0x9d2   :  { %3127 = vmatpush2.msra.mxu1 %v9021_v23 }
 0x9d3   :  { %3128 = vmatprep.subr.mxu1 %v9022_v36 }
 0x9d4   :  { %3129 = vmatpush2.msra.mxu1 %v9023_v20  ;;  %v3202_v20 = vrot.slane %v7397_v35, 7 }
 0x9d5   :  { %3130 = vmatprep.subr.mxu1 %v9024_v54  ;;  %v3201_v54 = vrot.slane %v7395_v14, 7 }
 0x9d6   :  { %3131 = vmatpush2.msra.mxu1 %v9025_v16 }
 0x9d7   :  { %3132 = vmatprep.subr.mxu1 %v9026_v27 }
 0x9d8   :  { %3133 = vmatpush2.msra.mxu1 %v9027_v58 }
 0x9d9   :  { %3134 = vmatprep.subr.mxu1 %v9028_v25 }
 0x9da   :  { %3135 = vmatpush2.msra.mxu1 %v9029_v33 }
 0x9db   :  { %3136 = vmatprep.subr.mxu1 %v9030_v46 }
 0x9dc   :  { %3137 = vmatpush2.msra.mxu1 %v9031_v31 }
 0x9dd   :  { %3139 = vmatmul.mubr.f32.vlgmr.msra.gmra.mxu1 %v7403_v42 }
 0xa5d   :  { %v2998_v12 = vpop.f32.mrf.mxu1  ;;  %v3069_v37 = vpop.f32.mrf.mxu0 }
 0xa5e   :  { %v2999_v10 = vadd.f32 %v2998_v12, %v4933_v0  ;;  %v3070_v5 = vadd.f32 %v3069_v37, %v8385_v40 }
 0xa5f   :  { %v3000_v50 = vpop.f32.mrf.mxu1  ;;  %v3071_v8 = vpop.f32.mrf.mxu0 }
 0xa60   :  { %v3001_v55 = vadd.f32 %v3000_v50, %v9032_v49  ;;  %v3147_v59 = vrot.slane %v2999_v10, 1  ;;  %v3072_v62 = vadd.f32 %v3071_v8, %v8386_v29  ;;  %v3167_v39 = vrot.slane %v3070_v5, 1 }
 0xa62   :  { %v3148_v34 = vrot.slane %v3001_v55, 1  ;;  %v3151_v43 = vadd.f32 %v3147_v59, %v9033_v48  ;;  %v3168_v0 = vrot.slane %v3072_v62, 1  ;;  %v3171_v57 = vadd.f32 %v3167_v39, %v8387_v32 }
 0xa64   :  { %v3152_v41 = vadd.f32 %v3148_v34, %v9034_v21  ;;  %v3289_v1 = vmul.f32 -1.442695, %v3151_v43  ;;  %v3172_v4 = vadd.f32 %v3168_v0, %v9035_v61  ;;  %v3291_v42 = vmul.f32 -1.442695, %v3171_v57 }
 0xa66   :  { %v3290_v2 = vmul.f32 -1.442695, %v3152_v41  ;;  %3446 = vpow2.f32 %v3289_v1  ;;  %v3292_v17 = vmul.f32 -1.442695, %v3172_v4 }
 0xa68   :  { %3448 = vpow2.f32 %v3290_v2 }
 0xa69   :  { %3450 = vpow2.f32 %v3291_v42 }
 0xa6a   :  { %3452 = vpow2.f32 %v3292_v17 }
 0xa73   :  { %v3447_v19 = vpop.eup %3446 }
 0xa74   :  { %v3159_v13 = vadd.f32 1.0, %v3447_v19 }
 0xa75   :  { %v3449_v52 = vpop.eup %3448 }
 0xa76   :  { %v3160_v22 = vadd.f32 1.0, %v3449_v52  ;;  %3454 = vrcp.f32 %v3159_v13  ;;  %v3451_v40 = vpop.eup %3450 }
 0xa77   :  { %v3453_v24 = vpop.eup %3452  ;;  %v3179_v60 = vadd.f32 1.0, %v3451_v40 }
 0xa78   :  { %3456 = vrcp.f32 %v3160_v22  ;;  %v3180_v32 = vadd.f32 1.0, %v3453_v24 }
 0xa79   :  { %3458 = vrcp.f32 %v3179_v60 }
 0xa7a   :  { %3460 = vrcp.f32 %v3180_v32 }
 0xa83   :  { %v3455_v44 = vpop.eup %3454 }
 0xa85   :  { %v3457_v11 = vpop.eup %3456 }
 0xa86   :  { %v3459_v7 = vpop.eup %3458 }
 0xa87   :  { %v3197_v23 = vsub.f32 1.0, %v3459_v7  ;;  %v3205_v33 = vmul.f32 %v3459_v7, %v3201_v54 }
 0xa9d   :  { %v3140_v29 = vpop.f32.mrf.mxu1 }
 0xa9e   :  { %v3141_v51 = vadd.f32 %v3140_v29, %v4963_v56  ;;  %v3461_v56 = vpop.eup %3460 }
 0xa9f   :  { %v3142_v26 = vpop.f32.mrf.mxu1  ;;  %v3198_v16 = vsub.f32 1.0, %v3461_v56  ;;  %v3206_v46 = vmul.f32 %v3461_v56, %v3202_v20 }
 0xaa0   :  { %v3187_v6 = vrot.slane %v3141_v51, 1  ;;  %v3143_v47 = vadd.f32 %v3142_v26, %v9036_v3 }
 0xaa2   :  { %v3191_v30 = vmul.f32 %v3455_v44, %v3187_v6  ;;  %v3188_v28 = vrot.slane %v3143_v47, 1 }
 0xaa4   :  { %v3193_v38 = vadd.f32 %v3191_v30, %v4970_v63  ;;  %v3192_v15 = vmul.f32 %v3457_v11, %v3188_v28 }
 0xaa6   :  { %3462 = vtanh.f32 %v3193_v38  ;;  %v3194_v53 = vadd.f32 %v3192_v15, %v4973_v9 }
 0xaa8   :  { %3464 = vtanh.f32 %v3194_v53 }
 0xab3   :  { %v3463_v36 = vpop.eup %3462 }
 0xab4   :  { %v3199_v27 = vmul.f32 %v3463_v36, %v3197_v23 }
 0xab5   :  { %v3465_v58 = vpop.eup %3464 }
 0xab6   :  { %v3200_v25 = vmul.f32 %v3465_v58, %v3198_v16  ;;  %v3207_v63 = vadd.f32 %v3205_v33, %v3199_v27 }
 0xab8   :  { %v3208_v31 = vadd.f32 %v3206_v46, %v3200_v25 }
 0xaba   :  { %v3211_v12 = vcombine.high %v3207_v63, %v3208_v31 }
 0xabc   :  { %v3218_v9 = vrot.slane %v3211_v12, %v4979_v45 }
 0xabe   :  { %v3219_v50 = vcombine.high %v3218_v9, %v3218_v9 }
 0xac0   :  { %v3226_v10 = vrot.slane %v3219_v50, %v4979_v45 }
 0xac2   :  { %v3227_v49 = vcombine.high %v3226_v10, %v3226_v10 }
 0xac4   :  { %3293 = vst.msk [vmem:[%s7511_s7 + $0x7] ss:$8 sm:$0x3] %vm4995_vm2, %v3227_v49  ;;  %3232 = vst.msk [vmem:[#allocation8] sm:$0x3] %vm4995_vm2, %v3227_v49 }
 0xac5   :  { %4113 = shalt.err (!%p4110_p5)
}
 0xac6   :  { %3244 = dma.vmem_to_hbm [thread:$0]  %s3242_s18, 32, %s7512_s8, [#allocation4]  }
 0xac7   :  { %4126 = dma.done.wait [#allocation4], 32  }
 0xac8   :  { %4127 = vsyncadd [#allocation4], 4294967264 }
 0xac9   :  { %3250 = vsyncpa [#allocation3], 1 }
 0xaca   :  { %3251 = vsyncpa [#allocation6], 1 }
 0xacb   :  { %3252 = vsyncpa [#allocation4], 1 }

</bundles_post_ra>
